<compile_context>
chip_gen: v7x
topology: tpu7x:2x2x1
jax: 0.10.0
libtpu: 0.0.40
codegen_flags: <defaults>
</compile_context>

<pallas_src>
import jax
import jax.numpy as jnp
from jax.experimental import pallas as pl
from jax.experimental.pallas import tpu as pltpu

_POOL_CHUNK = 256   # points per conv3+max chunk (~1 MiB live f32 intermediate)


# --------------------- kernel 1: per-point MLP + global max-pool -------------

def point_mlp_pool_kernel(x_ref,
                          w1t_ref, b1_ref,
                          w2_ref, b2_ref,
                          w3_ref, b3_ref,
                          feat_ref):
    x = x_ref[0]                                                    # (k, N) native NCL
    # Conv1d(k, 64, 1): channels-first matmul (standard MXU orientation, K=k),
    # one aligned (64, N) -> (N, 64) transpose, then bias + ReLU points-major.
    h1t = jnp.dot(w1t_ref[...], x, preferred_element_type=jnp.float32)   # (64, N)
    h = jnp.maximum(h1t.T + b1_ref[...], 0.0)                       # (N, 64)
    # Conv1d(64, 128, 1) with BN1 folded in; bf16 weights, f32 accumulation.
    h = jnp.dot(h.astype(w2_ref.dtype), w2_ref[...],
                preferred_element_type=jnp.float32) + b2_ref[...]
    h = jnp.maximum(h, 0.0)                                          # (N, 128)
    hb = h.astype(w3_ref.dtype)                                      # bf16 for conv3

    # Conv1d(128, 1024, 1) + MaxPool1d(N), chunked over the point axis so the
    # (N, 1024) f32 conv3 output is never materialized.  The bias/ReLU/BN3
    # epilogue is hoisted past the max (exact: per-channel bias and monotone
    # ReLU commute with max; BN3 scale/shift is folded into fc1 at prep time).
    n_points = hb.shape[0]
    chunk = _POOL_CHUNK if n_points % _POOL_CHUNK == 0 else n_points
    run_max = jnp.full((1, w3_ref.shape[1]), -jnp.inf, jnp.float32)
    for c in range(n_points // chunk):
        zc = jnp.dot(hb[c * chunk:(c + 1) * chunk, :], w3_ref[...],
                     preferred_element_type=jnp.float32)             # (chunk, 1024)
        run_max = jnp.maximum(run_max, jnp.max(zc, axis=0, keepdims=True))
    feat_ref[0] = jnp.maximum(run_max + b3_ref[...], 0.0)            # (1, 1024)


# --------------------- kernel 2: head MLP on the pooled features -------------

def head_mlp_kernel(g_ref,
                    wf1_ref, bf1_ref,
                    wf2_ref, bf2_ref,
                    wf3_ref, bf3_ref,
                    out_ref):
    # fc1 carries the BN3 scale/shift folded across the max-pool.
    g = jnp.dot(g_ref[...].astype(wf1_ref.dtype), wf1_ref[...],
                preferred_element_type=jnp.float32) + bf1_ref[...]
    g = jnp.maximum(g, 0.0)
    g = jnp.dot(g.astype(wf2_ref.dtype), wf2_ref[...],
                preferred_element_type=jnp.float32) + bf2_ref[...]
    g = jnp.maximum(g, 0.0)
    g = jnp.dot(g, wf3_ref[...], preferred_element_type=jnp.float32) + bf3_ref[...]
    out_ref[...] = g.astype(out_ref.dtype)                           # (B, k*k)


def tnet_forward(x, kparams):
    """x: (B, k, N) float32 (native PyTorch NCL). Returns (B, k, k)."""
    (w1t, b1, w2f, b2f, w3f, b3f,
     wf1f, bf1f, wf2f, bf2f, wf3f, bf3f) = kparams
    B, k, N = x.shape
    c3 = w3f.shape[-1]
    kk = wf3f.shape[-1]

    def const_spec(arr):
        # Constant index_map over the grid -> single buffer: a second pipeline
        # buffer would only double VMEM held for data that never changes.
        return pl.BlockSpec(arr.shape, lambda b: (0,) * arr.ndim,
                            pipeline_mode=pl.Buffered(1))

    point_params = (w1t, b1, w2f, b2f, w3f, b3f)

    # One full batch element per grid step; native (1, k, N) input block.
    feat = pl.pallas_call(
        point_mlp_pool_kernel,
        out_shape=jax.ShapeDtypeStruct((B, 1, c3), jnp.float32),
        grid_spec=pltpu.PrefetchScalarGridSpec(
            num_scalar_prefetch=0,
            grid=(B,),
            in_specs=[pl.BlockSpec((1, k, N), lambda b: (b, 0, 0))]
                     + [const_spec(p) for p in point_params],
            out_specs=pl.BlockSpec((1, 1, c3), lambda b: (b, 0, 0)),
        ),
        compiler_params=pltpu.CompilerParams(
            dimension_semantics=("parallel",),
            vmem_limit_bytes=32 * 1024 * 1024,     # actual footprint ~3 MiB
        ),
    )(x, *point_params)

    # Head MLP batched over B (M=B rows); head weights never occupy VMEM
    # during the point loop.  At production batch sizes this call should get
    # an explicit B-tile grid and a lane-dense output layout.
    out = pl.pallas_call(
        head_mlp_kernel,
        out_shape=jax.ShapeDtypeStruct((B, kk), jnp.float32),
        compiler_params=pltpu.CompilerParams(vmem_limit_bytes=16 * 1024 * 1024),
    )(feat.reshape(B, c3), wf1f, bf1f, wf2f, bf2f, wf3f, bf3f)

    return out.reshape(B, k, k)


# ------------------------------ parameters -----------------------------------

def init_params(key, k=3):
    """Deterministic synthetic parameters (shapes from Tnet.__init__)."""
    eps = 1e-5
    keys = iter(jax.random.split(key, 32))
    params = []

    def layer(cin, cout, with_bn):
        w = jax.random.normal(next(keys), (cin, cout), jnp.float32) / jnp.sqrt(cin)
        b = 0.05 * jax.random.normal(next(keys), (1, cout), jnp.float32)
        params.extend([w, b])
        if with_bn:
            gamma = 1.0 + 0.1 * jax.random.normal(next(keys), (1, cout), jnp.float32)
            beta = 0.1 * jax.random.normal(next(keys), (1, cout), jnp.float32)
            run_mean = jnp.zeros((1, cout), jnp.float32)   # PyTorch BN defaults
            run_var = jnp.ones((1, cout), jnp.float32)
            scale = gamma / jnp.sqrt(run_var + eps)        # eval-mode BN -> scale/shift
            shift = beta - run_mean * scale
            params.extend([scale, shift])

    layer(k, 64, True)        # Conv1d(k, 64, 1)     + BN(64)
    layer(64, 128, True)      # Conv1d(64, 128, 1)   + BN(128)
    layer(128, 1024, True)    # Conv1d(128, 1024, 1) + BN(1024)
    layer(1024, 512, True)    # Linear(1024, 512)    + BN(512)
    layer(512, 256, True)     # Linear(512, 256)     + BN(256)
    layer(256, k * k, False)  # Linear(256, k*k)
    return params


def prepare_kernel_params(params, large_matmul_dtype=jnp.bfloat16):
    """Fold eval-BN into the following layer; pre-transpose conv1; cast to bf16.

    relu(z)*s + t followed by (.) @ W + b  ==  relu(z) @ (s.T * W) + (t @ W + b),
    so BN1/BN2 fold into conv2/conv3 and BN4/BN5 fold into fc2/fc3.  BN3 folds
    across MaxPool1d into fc1, which is exact iff its scale is positive
    (max commutes with monotone increasing per-channel maps).
    """
    (w1, b1, s1, t1, w2, b2, s2, t2, w3, b3, s3, t3,
     wf1, bf1, sf1, tf1, wf2, bf2, sf2, tf2, wf3, bf3) = params

    if not bool(jnp.all(s3 > 0)):
        # TODO(synk): negative BN3 gammas require a max/min-select epilogue in-kernel.
        raise NotImplementedError("BN3 scale must be positive to fold across MaxPool1d")

    w1t = w1.T                                          # (64, k) channels-first conv1
    w2f, b2f = s1.T * w2, t1 @ w2 + b2                  # BN1 -> conv2
    w3f, b3f = s2.T * w3, t2 @ w3 + b3                  # BN2 -> conv3
    wf1f, bf1f = s3.T * wf1, t3 @ wf1 + bf1             # BN3 -> fc1 (across max-pool)
    wf2f, bf2f = sf1.T * wf2, tf1 @ wf2 + bf2           # BN4 -> fc2
    wf3f, bf3f = sf2.T * wf3, tf2 @ wf3 + bf3           # BN5 -> fc3

    # bf16 weights (folded first) for the MXU-heavy layers; f32 accumulation.
    w2f = w2f.astype(large_matmul_dtype)
    w3f = w3f.astype(large_matmul_dtype)
    wf1f = wf1f.astype(large_matmul_dtype)
    wf2f = wf2f.astype(large_matmul_dtype)
    return (w1t, b1, w2f, b2f, w3f, b3f, wf1f, bf1f, wf2f, bf2f, wf3f, bf3f)


# ------------------------------ references -----------------------------------

def tnet_ref(x, params):
    """Pure-JAX f32 reference of the module forward (unfolded parameters)."""
    (w1, b1, s1, t1, w2, b2, s2, t2, w3, b3, s3, t3,
     wf1, bf1, sf1, tf1, wf2, bf2, sf2, tf2, wf3, bf3) = params
    B, k, N = x.shape
    h = jnp.transpose(x, (0, 2, 1)).reshape(B * N, k)
    h = jnp.maximum(h @ w1 + b1, 0.0) * s1 + t1
    h = jnp.maximum(h @ w2 + b2, 0.0) * s2 + t2
    h = jnp.maximum(h @ w3 + b3, 0.0) * s3 + t3
    g = jnp.max(h.reshape(B, N, -1), axis=1)
    g = jnp.maximum(g @ wf1 + bf1, 0.0) * sf1 + tf1
    g = jnp.maximum(g @ wf2 + bf2, 0.0) * sf2 + tf2
    g = g @ wf3 + bf3
    return g.reshape(B, k, k)


def tnet_ref_prepared(x, kparams):
    """Pure-JAX reference with the exact kernel params (folds, bf16, hoisted max)."""
    (w1t, b1, w2f, b2f, w3f, b3f,
     wf1f, bf1f, wf2f, bf2f, wf3f, bf3f) = kparams
    B, k, N = x.shape
    h = jnp.transpose(x, (0, 2, 1)).reshape(B * N, k)
    h = jnp.maximum(h @ w1t.T + b1, 0.0)
    h = jnp.dot(h.astype(w2f.dtype), w2f, preferred_element_type=jnp.float32) + b2f
    h = jnp.maximum(h, 0.0)
    z = jnp.dot(h.astype(w3f.dtype), w3f, preferred_element_type=jnp.float32)
    zmax = jnp.max(z.reshape(B, N, -1), axis=1)
    q = jnp.maximum(zmax + b3f, 0.0)
    g = jnp.dot(q.astype(wf1f.dtype), wf1f, preferred_element_type=jnp.float32) + bf1f
    g = jnp.maximum(g, 0.0)
    g = jnp.dot(g.astype(wf2f.dtype), wf2f, preferred_element_type=jnp.float32) + bf2f
    g = jnp.maximum(g, 0.0)
    g = g @ wf3f + bf3f
    return g.reshape(B, k, k)


if __name__ == "__main__":
    k, B, N = 3, 2, 1024   # N = 1024 matches MaxPool1d(1024) in the module
    key = jax.random.PRNGKey(0)
    kx, kp = jax.random.split(key)
    x = jax.random.normal(kx, (B, k, N), jnp.float32)
    params = init_params(kp, k)
    kparams = prepare_kernel_params(params)

    out = jax.block_until_ready(tnet_forward(x, kparams))
    assert out.shape == (B, k, k)

    # Tight check: pure-JAX reference using the exact kernel parameters (folded
    # BN, bf16 weights, hoisted epilogue) -- isolates kernel/layout correctness.
    err_kernel = float(jnp.max(jnp.abs(out - tnet_ref_prepared(x, kparams))))
    assert err_kernel < 2e-3, f"kernel-vs-matched-reference max abs error {err_kernel}"

    # Loose sanity check against the unfolded full-f32 module reference; the
    # bf16 casts of conv2/conv3/fc1/fc2 dominate this difference.
    err_f32 = float(jnp.max(jnp.abs(out - tnet_ref(x, params))))
    assert err_f32 < 2e-1, f"kernel-vs-f32-reference max abs error {err_f32}"

    print("KERNEL_OK")
</pallas_src>

<mosaic_0001>
module attributes {stable_mosaic.version = 11 : i64} {
  func.func @point_mlp_pool_kernel(%arg0: i32, %arg1: memref<1x3x1024xf32, #tpu.memory_space<vmem>>, %arg2: memref<64x3xf32, #tpu.memory_space<vmem>>, %arg3: memref<1x64xf32, #tpu.memory_space<vmem>>, %arg4: memref<64x128xbf16, #tpu.memory_space<vmem>>, %arg5: memref<1x128xf32, #tpu.memory_space<vmem>>, %arg6: memref<128x1024xbf16, #tpu.memory_space<vmem>>, %arg7: memref<1x1024xf32, #tpu.memory_space<vmem>>, %arg8: memref<1x1x1024xf32, #tpu.memory_space<vmem>>) attributes {dimension_semantics = [#tpu.dimension_semantics<parallel>], iteration_bounds = array<i64: 2>, scalar_prefetch = 0 : i64, scratch_operands = 0 : i64, tpu.core_type = #tpu.core_type<tc>, window_params = [{transform_indices = @transform_0, window_bounds = array<i64: 1, 3, 1024>}, {pipeline_mode = #tpu.pipeline_mode<synchronous>, transform_indices = @transform_1, window_bounds = array<i64: 64, 3>}, {pipeline_mode = #tpu.pipeline_mode<synchronous>, transform_indices = @transform_2, window_bounds = array<i64: 1, 64>}, {pipeline_mode = #tpu.pipeline_mode<synchronous>, transform_indices = @transform_3, window_bounds = array<i64: 64, 128>}, {pipeline_mode = #tpu.pipeline_mode<synchronous>, transform_indices = @transform_4, window_bounds = array<i64: 1, 128>}, {pipeline_mode = #tpu.pipeline_mode<synchronous>, transform_indices = @transform_5, window_bounds = array<i64: 128, 1024>}, {pipeline_mode = #tpu.pipeline_mode<synchronous>, transform_indices = @transform_6, window_bounds = array<i64: 1, 1024>}, {transform_indices = @transform_7, window_bounds = array<i64: 1, 1, 1024>}]} {
    %c0 = arith.constant 0 : index
    %c0_0 = arith.constant 0 : index
    %c0_1 = arith.constant 0 : index
    %0 = vector.load %arg1[%c0, %c0_0, %c0_1] : memref<1x3x1024xf32, #tpu.memory_space<vmem>>, vector<1x3x1024xf32>
    %1 = vector.shape_cast %0 : vector<1x3x1024xf32> to vector<3x1024xf32>
    %c0_2 = arith.constant 0 : index
    %c0_3 = arith.constant 0 : index
    %2 = vector.load %arg2[%c0_2, %c0_3] : memref<64x3xf32, #tpu.memory_space<vmem>>, vector<64x3xf32>
    %cst = arith.constant dense<0.000000e+00> : vector<64x1024xf32>
    %3 = tpu.matmul %2, %1, %cst {dimension_numbers = #tpu.dot_dimension_numbers<[1], [0], [0], [1], [0, 0, 1, 1], [], []>} : vector<64x3xf32>, vector<3x1024xf32>, vector<64x1024xf32> -> vector<64x1024xf32>
    %4 = tpu.transpose %3, [1, 0] : vector<64x1024xf32> -> vector<1024x64xf32>
    %c0_4 = arith.constant 0 : index
    %c0_5 = arith.constant 0 : index
    %5 = vector.load %arg3[%c0_4, %c0_5] : memref<1x64xf32, #tpu.memory_space<vmem>>, vector<1x64xf32>
    %6 = vector.broadcast %5 : vector<1x64xf32> to vector<1024x64xf32>
    %7 = arith.addf %4, %6 : vector<1024x64xf32>
    %cst_6 = arith.constant 0.000000e+00 : f32
    %8 = vector.broadcast %cst_6 : f32 to vector<1024x64xf32>
    %9 = arith.maximumf %7, %8 : vector<1024x64xf32>
    %10 = arith.truncf %9 : vector<1024x64xf32> to vector<1024x64xbf16>
    %c0_7 = arith.constant 0 : index
    %c0_8 = arith.constant 0 : index
    %11 = vector.load %arg4[%c0_7, %c0_8] : memref<64x128xbf16, #tpu.memory_space<vmem>>, vector<64x128xbf16>
    %cst_9 = arith.constant dense<0.000000e+00> : vector<1024x128xf32>
    %12 = tpu.matmul %10, %11, %cst_9 {dimension_numbers = #tpu.dot_dimension_numbers<[1], [0], [0], [1], [0, 0, 1, 1], [], []>} : vector<1024x64xbf16>, vector<64x128xbf16>, vector<1024x128xf32> -> vector<1024x128xf32>
    %c0_10 = arith.constant 0 : index
    %c0_11 = arith.constant 0 : index
    %13 = vector.load %arg5[%c0_10, %c0_11] : memref<1x128xf32, #tpu.memory_space<vmem>>, vector<1x128xf32>
    %14 = vector.broadcast %13 : vector<1x128xf32> to vector<1024x128xf32>
    %15 = arith.addf %12, %14 : vector<1024x128xf32>
    %cst_12 = arith.constant 0.000000e+00 : f32
    %16 = vector.broadcast %cst_12 : f32 to vector<1024x128xf32>
    %17 = arith.maximumf %15, %16 : vector<1024x128xf32>
    %18 = arith.truncf %17 : vector<1024x128xf32> to vector<1024x128xbf16>
    %cst_13 = arith.constant 0xFF800000 : f32
    %19 = vector.broadcast %cst_13 : f32 to vector<1x1024xf32>
    %20 = vector.extract_strided_slice %18 {offsets = [0, 0], sizes = [256, 128], strides = [1, 1]} : vector<1024x128xbf16> to vector<256x128xbf16>
    %c0_14 = arith.constant 0 : index
    %c0_15 = arith.constant 0 : index
    %21 = vector.load %arg6[%c0_14, %c0_15] : memref<128x1024xbf16, #tpu.memory_space<vmem>>, vector<128x1024xbf16>
    %cst_16 = arith.constant dense<0.000000e+00> : vector<256x1024xf32>
    %22 = tpu.matmul %20, %21, %cst_16 {dimension_numbers = #tpu.dot_dimension_numbers<[1], [0], [0], [1], [0, 0, 1, 1], [], []>} : vector<256x128xbf16>, vector<128x1024xbf16>, vector<256x1024xf32> -> vector<256x1024xf32>
    %cst_17 = arith.constant dense<0xFF800000> : vector<1024xf32>
    %23 = vector.multi_reduction <maximumf>, %22, %cst_17 [0] : vector<256x1024xf32> to vector<1024xf32>
    %24 = vector.shape_cast %23 : vector<1024xf32> to vector<1x1024xf32>
    %25 = arith.maximumf %19, %24 : vector<1x1024xf32>
    %26 = vector.extract_strided_slice %18 {offsets = [256, 0], sizes = [256, 128], strides = [1, 1]} : vector<1024x128xbf16> to vector<256x128xbf16>
    %c0_18 = arith.constant 0 : index
    %c0_19 = arith.constant 0 : index
    %27 = vector.load %arg6[%c0_18, %c0_19] : memref<128x1024xbf16, #tpu.memory_space<vmem>>, vector<128x1024xbf16>
    %cst_20 = arith.constant dense<0.000000e+00> : vector<256x1024xf32>
    %28 = tpu.matmul %26, %27, %cst_20 {dimension_numbers = #tpu.dot_dimension_numbers<[1], [0], [0], [1], [0, 0, 1, 1], [], []>} : vector<256x128xbf16>, vector<128x1024xbf16>, vector<256x1024xf32> -> vector<256x1024xf32>
    %cst_21 = arith.constant dense<0xFF800000> : vector<1024xf32>
    %29 = vector.multi_reduction <maximumf>, %28, %cst_21 [0] : vector<256x1024xf32> to vector<1024xf32>
    %30 = vector.shape_cast %29 : vector<1024xf32> to vector<1x1024xf32>
    %31 = arith.maximumf %25, %30 : vector<1x1024xf32>
    %32 = vector.extract_strided_slice %18 {offsets = [512, 0], sizes = [256, 128], strides = [1, 1]} : vector<1024x128xbf16> to vector<256x128xbf16>
    %c0_22 = arith.constant 0 : index
    %c0_23 = arith.constant 0 : index
    %33 = vector.load %arg6[%c0_22, %c0_23] : memref<128x1024xbf16, #tpu.memory_space<vmem>>, vector<128x1024xbf16>
    %cst_24 = arith.constant dense<0.000000e+00> : vector<256x1024xf32>
    %34 = tpu.matmul %32, %33, %cst_24 {dimension_numbers = #tpu.dot_dimension_numbers<[1], [0], [0], [1], [0, 0, 1, 1], [], []>} : vector<256x128xbf16>, vector<128x1024xbf16>, vector<256x1024xf32> -> vector<256x1024xf32>
    %cst_25 = arith.constant dense<0xFF800000> : vector<1024xf32>
    %35 = vector.multi_reduction <maximumf>, %34, %cst_25 [0] : vector<256x1024xf32> to vector<1024xf32>
    %36 = vector.shape_cast %35 : vector<1024xf32> to vector<1x1024xf32>
    %37 = arith.maximumf %31, %36 : vector<1x1024xf32>
    %38 = vector.extract_strided_slice %18 {offsets = [768, 0], sizes = [256, 128], strides = [1, 1]} : vector<1024x128xbf16> to vector<256x128xbf16>
    %c0_26 = arith.constant 0 : index
    %c0_27 = arith.constant 0 : index
    %39 = vector.load %arg6[%c0_26, %c0_27] : memref<128x1024xbf16, #tpu.memory_space<vmem>>, vector<128x1024xbf16>
    %cst_28 = arith.constant dense<0.000000e+00> : vector<256x1024xf32>
    %40 = tpu.matmul %38, %39, %cst_28 {dimension_numbers = #tpu.dot_dimension_numbers<[1], [0], [0], [1], [0, 0, 1, 1], [], []>} : vector<256x128xbf16>, vector<128x1024xbf16>, vector<256x1024xf32> -> vector<256x1024xf32>
    %cst_29 = arith.constant dense<0xFF800000> : vector<1024xf32>
    %41 = vector.multi_reduction <maximumf>, %40, %cst_29 [0] : vector<256x1024xf32> to vector<1024xf32>
    %42 = vector.shape_cast %41 : vector<1024xf32> to vector<1x1024xf32>
    %43 = arith.maximumf %37, %42 : vector<1x1024xf32>
    %c0_30 = arith.constant 0 : index
    %c0_31 = arith.constant 0 : index
    %44 = vector.load %arg7[%c0_30, %c0_31] : memref<1x1024xf32, #tpu.memory_space<vmem>>, vector<1x1024xf32>
    %45 = arith.addf %43, %44 : vector<1x1024xf32>
    %cst_32 = arith.constant 0.000000e+00 : f32
    %46 = vector.broadcast %cst_32 : f32 to vector<1x1024xf32>
    %47 = arith.maximumf %45, %46 : vector<1x1024xf32>
    %c0_33 = arith.constant 0 : index
    %c0_34 = arith.constant 0 : index
    %c0_35 = arith.constant 0 : index
    %48 = vector.load %arg8[%c0_33, %c0_34, %c0_35] : memref<1x1x1024xf32, #tpu.memory_space<vmem>>, vector<1x1x1024xf32>
    %49 = vector.shape_cast %48 : vector<1x1x1024xf32> to vector<1x1024xf32>
    %50 = vector.shape_cast %47 : vector<1x1024xf32> to vector<1x1x1024xf32>
    tpu.vector_store %arg8[%c0_33, %c0_34, %c0_35], %50 {strides = array<i32>} : memref<1x1x1024xf32, #tpu.memory_space<vmem>>, vector<1x1x1024xf32>,
    return
  }
  func.func @transform_0(%arg0: i32) -> (i32, i32, i32) {
    %c0_i32 = arith.constant 0 : i32
    %c0_i32_0 = arith.constant 0 : i32
    %c0_i32_1 = arith.constant 0 : i32
    return %arg0, %c0_i32, %c0_i32_0 : i32, i32, i32
  }
  func.func @transform_1(%arg0: i32) -> (i32, i32) {
    %c0_i32 = arith.constant 0 : i32
    %c0_i32_0 = arith.constant 0 : i32
    %c0_i32_1 = arith.constant 0 : i32
    return %c0_i32, %c0_i32_0 : i32, i32
  }
  func.func @transform_2(%arg0: i32) -> (i32, i32) {
    %c0_i32 = arith.constant 0 : i32
    %c0_i32_0 = arith.constant 0 : i32
    %c0_i32_1 = arith.constant 0 : i32
    return %c0_i32, %c0_i32_0 : i32, i32
  }
  func.func @transform_3(%arg0: i32) -> (i32, i32) {
    %c0_i32 = arith.constant 0 : i32
    %c0_i32_0 = arith.constant 0 : i32
    %c0_i32_1 = arith.constant 0 : i32
    return %c0_i32, %c0_i32_0 : i32, i32
  }
  func.func @transform_4(%arg0: i32) -> (i32, i32) {
    %c0_i32 = arith.constant 0 : i32
    %c0_i32_0 = arith.constant 0 : i32
    %c0_i32_1 = arith.constant 0 : i32
    return %c0_i32, %c0_i32_0 : i32, i32
  }
  func.func @transform_5(%arg0: i32) -> (i32, i32) {
    %c0_i32 = arith.constant 0 : i32
    %c0_i32_0 = arith.constant 0 : i32
    %c0_i32_1 = arith.constant 0 : i32
    return %c0_i32, %c0_i32_0 : i32, i32
  }
  func.func @transform_6(%arg0: i32) -> (i32, i32) {
    %c0_i32 = arith.constant 0 : i32
    %c0_i32_0 = arith.constant 0 : i32
    %c0_i32_1 = arith.constant 0 : i32
    return %c0_i32, %c0_i32_0 : i32, i32
  }
  func.func @transform_7(%arg0: i32) -> (i32, i32, i32) {
    %c0_i32 = arith.constant 0 : i32
    %c0_i32_0 = arith.constant 0 : i32
    %c0_i32_1 = arith.constant 0 : i32
    return %arg0, %c0_i32, %c0_i32_0 : i32, i32, i32
  }
}

</mosaic_0001>

<bundles_post_ra>
// kernel: tpu_custom_call.1
= control target key start
LH: loop header
LB: loop body
LE: loop exit
PB: predicated region body
PF: predicated region fallthrough
CT: control target
= control target key end

     0   :  { %12 = vsyncpa [#allocation3], 0  ;;  %s9897_s0 = inlined_call_operand.vmem [shape: f32[2,3,1024], index: 0, kind: input, shape index: {}]   ;;  %s9898_s1 = inlined_call_operand.vmem [shape: f32[64,3], index: 1, kind: input, shape index: {}]   ;;  %s9899_s2 = inlined_call_operand.vmem [shape: f32[1,64], index: 2, kind: input, shape index: {}]   ;;  %s9900_s3 = inlined_call_operand.vmem [shape: bf16[64,128], index: 3, kind: input, shape index: {}]   ;;  %s9901_s4 = inlined_call_operand.vmem [shape: f32[1,128], index: 4, kind: input, shape index: {}]   ;;  %s9902_s5 = inlined_call_operand.hbm [shape: bf16[128,1024], index: 5, kind: input, shape index: {}]   ;;  %s9903_s6 = inlined_call_operand.vmem [shape: f32[1,1024], index: 6, kind: input, shape index: {}]   ;;  %s9904_s7 = inlined_call_operand.hbm [shape: f32[2,1,1024], index: 7, kind: output, shape index: {}]  }
   0x1   :  { %13 = vsyncpa [#allocation4], 0 }
   0x2   :  { %15 = vsyncpa [#allocation4 + $0x1], 0  ;;  %s7845_s24 = smov 0   ;;  %s7847_s25 = smov 0  }
   0x3   :  { %s7849_s26 = smov 0   ;;  %s7851_s27 = smov 0  }
   0x4 LB: > { %s7866_s28 = sadd.s32 4294967295, %s7796_s27   ;;  %s7242_s29 = sadd.s32 4294967294, %s7796_s27   ;;  %s7796_s27 = sphi %s7851_s27, %s10364_s27   ;;  %s7792_s26 = sphi %s7849_s26, %s10363_s26   ;;  %s7788_s25 = sphi %s7847_s25, %s10362_s25   ;;  %s7784_s24 = sphi %s7845_s24, %s10361_s24  }
   0x5   : > { %s7870_s30 = sadd.s32 1, %s7796_s27   ;;  %s180_s8 = sadd.s32 1, %s7792_s26 }
   0x6   : > { %s177_s9 = ssub.s32 %s7796_s27, %s7870_s30  ;;  %p190_p0 = scmp.ne.s32.totalorder %s7792_s26, %s7788_s25 }
   0x7   : > { %p178_p1 = scmp.eq.s32.totalorder %s177_s9, 0  ;;  %p191_p2 = scmp.eq.s32.totalorder %s7866_s28, 1 }
   0x8   : > { %p196_p3 = scmp.ne.s32.totalorder %s7788_s25, %s7784_s24  ;;  %p197_p4 = scmp.eq.s32.totalorder %s7242_s29, 1 }
   0x9   : > { %s7881_s10 = scalar_select %p178_p1, %s7792_s26, %s180_s8  }
   0xa   : > { %p7883_p5 = por %p191_p2, %p190_p0  ;;  %p7887_p6 = por %p197_p4, %p196_p3 }
   0xb   : > { %p7243_p7 = scmp.ge.s32.totalorder %s7796_s27, 1  ;;  %p204_p8 = scmp.lt.s32.totalorder %s7796_s27, 3 }
   0xc   : > { %s10070_s11 = scalar_select %p7883_p5, 1, 0 }
   0xd   : > { %s10071_s12 = scalar_select %p7887_p6, 1, 0 }
   0xe   : > { %p9905_p9 = scmp.eq.s32.totalorder %s7866_s28, 0  ;;  %p7894_p10 = pnand %p7243_p7, %p204_p8 }
   0xf   : > { %s7798_s14 = smov [#allocation2]   ;;  %s7702_s19 = scalar_lea.hbm %s9902_s5, 8192 }
  0x10   : > { %s10072_s13 = scalar_select %p7894_p10, 1, 0 }
  0x11   : > { %s228_s15 = sshll.u32 %s7798_s14, 4  ;;  %p7642_p11 = pneg %p7894_p10  ;;  %s229_s15 = int_to_ptr.vmem [resolvable:$true] %s228_s15 }
  0x12   : > { %p7703_p13 = scmp.ne.s32.totalorder %s9902_s5, %s7702_s19  ;;  %p7709_p3 = scmp.lt.u32.totalorder %s7702_s19, %s9902_s5 }
  0x13   : > { %p7902_p12 = pnand %p9905_p9, %p7642_p11 }
  0x15   : > { %p7704_p0 = pneg %p7902_p12 }
  0x17   : > { %p7705_p1 = pnand %p7704_p0, %p7703_p13 }
  0x19   : > { %p7706_p2 = pneg %p7705_p1 }
  0x1b   : > { %p7711_p4 = pnand %p7709_p3, %p7706_p2 }
  0x1d   : > { %7714 = shalt.err (!%p7711_p4)
}
  0x1e   : > { %s7715_s29 = scalar_lea.vmem %s229_s15, 8192  ;;  %p7723_p9 = scmp.lt.s32.totalorder %s229_s15, %s229_s15 }
  0x1f   : > { %p7716_p7 = scmp.ne.s32.totalorder %s229_s15, %s7715_s29  ;;  %p7724_p6 = scmp.lt.s32.totalorder %s7715_s29, %s7715_s29 }
  0x21   : > { %p7718_p8 = pnand %p7716_p7, %p7704_p0  ;;  %p7725_p5 = por %p7724_p6, %p7723_p9 }
  0x23   : > { %p7719_p11 = pneg %p7718_p8 }
  0x25   : > { %p7726_p10 = pnand %p7725_p5, %p7719_p11 }
  0x27   : > { %7729 = shalt.err (!%p7726_p10)
}
  0x28   : > { %s7799_s8 = smov 512   ;;  %s7800_s9 = smov 32  }
  0x29   : > { %7645 = dma.hbm_to_vmem [thread:$0]  (!%p7902_p12), %s9902_s5, 8192, %s229_s15, [#allocation3], %s7799_s8, %s7799_s8, %s7800_s9  }
  0x2a   : > { %p10074_p13 = scmp.ne.s32.totalorder %s10072_s13, 0 }
  0x2c   : > { %255 = sbr.rel (%p10074_p13) target bundleno = 2048 (0x800), region = 48 }
  0x33   : > { %p10075_p1 = scmp.eq.s32.totalorder %s7866_s28, 0 }
  0x35   : > { %7775 = dma.done.wait (%p10075_p1), [#allocation3], 8192   ;;  %p10076_p0 = pmov %p10075_p1 }
  0x36   : > { %p287_p5 = scmp.lt.s32.totalorder %s7866_s28, 1  ;;  %v7801_v0 = vmov 0.0   ;;  %vm338_vm0 = vcmask 1042432   ;;  %v297_v3 = vld [vmem:[%s9898_s1] sm:$0xff]  ;;  %vm313_vm1 = vcmask 23552   ;;  %v298_v9 = vld [vmem:[%s9898_s1 + $0x8] sm:$0xff] }
  0x37   : > { %7777 = vsyncadd (%p10076_p0), [#allocation3], 4294959104  ;;  %419 = vmatprep.mubr.f32.mxu0 %v7801_v0  ;;  %532 = vmatprep.mubr.f32.mxu1 %v7801_v0  ;;  %v299_v11 = vld [vmem:[%s9898_s1 + $0x10] sm:$0xff]  ;;  %v300_v12 = vld [vmem:[%s9898_s1 + $0x18] sm:$0xff]  ;;  %vm1429_vm2 = vcmask 523264   ;;  %s284_s17 = sand.u32 1, %s7788_s25  }
  0x38   : > { %s288_s16 = scalar_select %p287_p5, %s7866_s28, 1  ;;  %v301_v13 = vld [vmem:[%s9898_s1 + $0x20] sm:$0xff]  ;;  %v302_v14 = vld [vmem:[%s9898_s1 + $0x28] sm:$0xff]  ;;  %v303_v15 = vld [vmem:[%s9898_s1 + $0x30] sm:$0xff] }
  0x39   : > { %v304_v16 = vld [vmem:[%s9898_s1 + $0x38] sm:$0xff]  ;;  %v7695_v17 = vld [vmem:[%s9900_s3] sm:$0xff]   ;;  %v7696_v18 = vld [vmem:[%s9900_s3 + $0x8] sm:$0xff]   ;;  %p10359_p9 = scmp.ne.s32.totalorder %s10070_s11, 0  ;;  %s7804_s23 = smov [#allocation5]  }
  0x3a   : > { %s7430_s18 = sshll.u32 %s288_s16, 5  ;;  %v7697_v24 = vld [vmem:[%s9900_s3 + $0x10] sm:$0xff]   ;;  %v7698_v33 = vld [vmem:[%s9900_s3 + $0x18] sm:$0xff]   ;;  %s7248_s16 = sshll.u32 %s284_s17, 3 }
  0x3b   : > { %s291_s13 = scalar_lea.vmem %s9897_s0, %s7430_s18  ;;  %s7431_s18 = sshll.u32 %s7866_s28, 7 }
  0x3c   : > { %v293_v1 = vld [vmem:[%s291_s13] sm:$0x77]  ;;  %v294_v4 = vld [vmem:[%s291_s13 + $0x8] sm:$0x77]  ;;  %v295_v5 = vld [vmem:[%s291_s13 + $0x10] sm:$0x77]  ;;  %s9855_s21 = scalar_lea.hbm %s9904_s7, %s7431_s18 }
  0x3d   : > { %v309_v2 = vcombine.high %v293_v1, %v293_v1  ;;  %v296_v6 = vld [vmem:[%s291_s13 + $0x18] sm:$0x77]  ;;  %v310_v7 = vcombine.high %v294_v4, %v294_v4  ;;  %v311_v8 = vcombine.high %v295_v5, %v295_v5  ;;  %s286_s15 = scalar_lea.vmem [#allocation5], %s7248_s16  ;;  %s7157_s28 = scalar_lea.sflag [#allocation4], %s284_s17 }
  0x3e   : > { %v312_v10 = vcombine.high %v296_v6, %v296_v6  ;;  %s7171_s19 = sshll.u32 %s286_s15, 4  ;;  %s7734_s29 = sshll.u32 %s7804_s23, 4  ;;  %s9857_s19 = int_to_ptr.vmem [resolvable:$true] %s7171_s19  ;;  %s7735_s29 = int_to_ptr.vmem [resolvable:$false] %s7734_s29 }
  0x3f   : > { %7251 = vmatprep.subr.msk.mxu0 %vm338_vm0, %v309_v2  ;;  %7261 = vmatprep.subr.msk.mxu1 %vm338_vm0, %v310_v7  ;;  %s7730_s22 = scalar_lea.vmem %s9857_s19, 128  ;;  %s7736_s8 = scalar_lea.vmem %s7735_s29, 256 }
  0x40   : > { %7252 = vmatpush1.msk.msra.mxu0 %vm338_vm0, %v293_v1  ;;  %7262 = vmatpush1.msk.msra.mxu1 %vm338_vm0, %v294_v4  ;;  %p7731_p6 = scmp.ne.s32.totalorder %s9857_s19, %s7730_s22  ;;  %p7737_p2 = scmp.lt.s32.totalorder %s9857_s19, %s7735_s29 }
  0x41   : > { %7253 = vmatmul.mubr.msk.f32.vlgmr.msra.gmra.mrb[0].mxu0 %vm313_vm1, %v297_v3  ;;  %7271 = vmatprep.subr.msk.mxu0 %vm338_vm0, %v311_v8  ;;  %p7738_p3 = scmp.lt.s32.totalorder %s7736_s8, %s7730_s22 }
  0x42   : > { %425 = vmatprep.mubr.f32.mxu0 %v7801_v0  ;;  %7263 = vmatmul.mubr.msk.f32.vlgmr.msra.gmra.mrb[0].mxu1 %vm313_vm1, %v297_v3  ;;  %p7732_p10 = pnand %p7731_p6, %p10359_p9 }
  0x43   : > { %7272 = vmatpush1.msk.msra.mxu0 %vm338_vm0, %v295_v5  ;;  %538 = vmatprep.mubr.f32.mxu1 %v7801_v0  ;;  %p7739_p4 = por %p7738_p3, %p7737_p2 }
  0x44   : > { %7281 = vmatprep.subr.msk.mxu1 %vm338_vm0, %v312_v10  ;;  %7500 = vmatprep.subr.bf16.mxu0 %v7695_v17  ;;  %p7733_p12 = pneg %p7732_p10 }
  0x45   : > { %7254 = vmatmul.mubr.msk.f32.gmra.mrb[2].mxu0 %vm313_vm1, %v298_v9  ;;  %7282 = vmatpush1.msk.msra.mxu1 %vm338_vm0, %v296_v6 }
  0x46   : > { %431 = vmatprep.mubr.f32.mxu0 %v7801_v0  ;;  %7264 = vmatmul.mubr.msk.f32.gmra.mrb[2].mxu1 %vm313_vm1, %v298_v9  ;;  %p7740_p7 = pnand %p7739_p4, %p7733_p12 }
  0x47   : > { %544 = vmatprep.mubr.f32.mxu1 %v7801_v0 }
  0x49   : > { %7255 = vmatmul.mubr.msk.f32.gmra.mrb[4].mxu0 %vm313_vm1, %v299_v11 }
  0x4a   : > { %437 = vmatprep.mubr.f32.mxu0 %v7801_v0  ;;  %7265 = vmatmul.mubr.msk.f32.gmra.mrb[4].mxu1 %vm313_vm1, %v299_v11 }
  0x4b   : > { %550 = vmatprep.mubr.f32.mxu1 %v7801_v0 }
  0x4d   : > { %7256 = vmatmul.mubr.msk.f32.gmra.mrb[6].mxu0 %vm313_vm1, %v300_v12 }
  0x4e   : > { %443 = vmatprep.mubr.f32.mxu0 %v7801_v0  ;;  %7266 = vmatmul.mubr.msk.f32.gmra.mrb[6].mxu1 %vm313_vm1, %v300_v12 }
  0x4f   : > { %556 = vmatprep.mubr.f32.mxu1 %v7801_v0 }
  0x51   : > { %7257 = vmatmul.mubr.msk.f32.gmra.mrb[8].mxu0 %vm313_vm1, %v301_v13 }
  0x52   : > { %449 = vmatprep.mubr.f32.mxu0 %v7801_v0  ;;  %7267 = vmatmul.mubr.msk.f32.gmra.mrb[8].mxu1 %vm313_vm1, %v301_v13 }
  0x53   : > { %562 = vmatprep.mubr.f32.mxu1 %v7801_v0 }
  0x55   : > { %7258 = vmatmul.mubr.msk.f32.gmra.mrb[10].mxu0 %vm313_vm1, %v302_v14 }
  0x56   : > { %455 = vmatprep.mubr.f32.mxu0 %v7801_v0  ;;  %7268 = vmatmul.mubr.msk.f32.gmra.mrb[10].mxu1 %vm313_vm1, %v302_v14 }
  0x57   : > { %568 = vmatprep.mubr.f32.mxu1 %v7801_v0 }
  0x59   : > { %7259 = vmatmul.mubr.msk.f32.gmra.mrb[12].mxu0 %vm313_vm1, %v303_v15 }
  0x5a   : > { %461 = vmatprep.mubr.f32.mxu0 %v7801_v0  ;;  %7269 = vmatmul.mubr.msk.f32.gmra.mrb[12].mxu1 %vm313_vm1, %v303_v15 }
  0x5b   : > { %574 = vmatprep.mubr.f32.mxu1 %v7801_v0 }
  0x5d   : > { %7260 = vmatmul.mubr.msk.f32.gmra.mrb[14].mxu0 %vm313_vm1, %v304_v16 }
  0x5e   : > { %645 = vmatprep.mubr.f32.mxu0 %v7801_v0  ;;  %7270 = vmatmul.mubr.msk.f32.gmra.mrb[14].mxu1 %vm313_vm1, %v304_v16 }
  0x5f   : > { %758 = vmatprep.mubr.f32.mxu1 %v7801_v0 }
  0x61   : > { %7273 = vmatmul.mubr.msk.f32.vlgmr.msra.gmra.mrb[16].mxu0 %vm313_vm1, %v297_v3 }
  0x62   : > { %651 = vmatprep.mubr.f32.mxu0 %v7801_v0  ;;  %7283 = vmatmul.mubr.msk.f32.vlgmr.msra.gmra.mrb[16].mxu1 %vm313_vm1, %v297_v3 }
  0x63   : > { %764 = vmatprep.mubr.f32.mxu1 %v7801_v0  ;;  %7501 = vmatpush3.bf16.msra.mxu0 %v7695_v17 }
  0x64   : > { %7502 = vmatprep.subr.bf16.mxu0 %v7696_v18 }
  0x65   : > { %7274 = vmatmul.mubr.msk.f32.gmra.mrb[18].mxu0 %vm313_vm1, %v298_v9 }
  0x66   : > { %657 = vmatprep.mubr.f32.mxu0 %v7801_v0  ;;  %7284 = vmatmul.mubr.msk.f32.gmra.mrb[18].mxu1 %vm313_vm1, %v298_v9 }
  0x67   : > { %770 = vmatprep.mubr.f32.mxu1 %v7801_v0  ;;  %7503 = vmatpush3.bf16.msra.mxu0 %v7696_v18 }
  0x68   : > { %7504 = vmatprep.subr.bf16.mxu0 %v7697_v24 }
  0x69   : > { %7275 = vmatmul.mubr.msk.f32.gmra.mrb[20].mxu0 %vm313_vm1, %v299_v11 }
  0x6a   : > { %663 = vmatprep.mubr.f32.mxu0 %v7801_v0  ;;  %7285 = vmatmul.mubr.msk.f32.gmra.mrb[20].mxu1 %vm313_vm1, %v299_v11 }
  0x6b   : > { %776 = vmatprep.mubr.f32.mxu1 %v7801_v0  ;;  %7505 = vmatpush3.bf16.msra.mxu0 %v7697_v24 }
  0x6c   : > { %7506 = vmatprep.subr.bf16.mxu0 %v7698_v33 }
  0x6d   : > { %7276 = vmatmul.mubr.msk.f32.gmra.mrb[22].mxu0 %vm313_vm1, %v300_v12 }
  0x6e   : > { %669 = vmatprep.mubr.f32.mxu0 %v7801_v0  ;;  %7286 = vmatmul.mubr.msk.f32.gmra.mrb[22].mxu1 %vm313_vm1, %v300_v12 }
  0x6f   : > { %782 = vmatprep.mubr.f32.mxu1 %v7801_v0  ;;  %7507 = vmatpush3.bf16.msra.mxu0 %v7698_v33 }
  0x71   : > { %7277 = vmatmul.mubr.msk.f32.gmra.mrb[24].mxu0 %vm313_vm1, %v301_v13 }
  0x72   : > { %675 = vmatprep.mubr.f32.mxu0 %v7801_v0  ;;  %7287 = vmatmul.mubr.msk.f32.gmra.mrb[24].mxu1 %vm313_vm1, %v301_v13 }
  0x73   : > { %788 = vmatprep.mubr.f32.mxu1 %v7801_v0 }
  0x75   : > { %7278 = vmatmul.mubr.msk.f32.gmra.mrb[26].mxu0 %vm313_vm1, %v302_v14 }
  0x76   : > { %681 = vmatprep.mubr.f32.mxu0 %v7801_v0  ;;  %7288 = vmatmul.mubr.msk.f32.gmra.mrb[26].mxu1 %vm313_vm1, %v302_v14 }
  0x77   : > { %794 = vmatprep.mubr.f32.mxu1 %v7801_v0 }
  0x79   : > { %7279 = vmatmul.mubr.msk.f32.gmra.mrb[28].mxu0 %vm313_vm1, %v303_v15 }
  0x7a   : > { %687 = vmatprep.mubr.f32.mxu0 %v7801_v0  ;;  %7289 = vmatmul.mubr.msk.f32.gmra.mrb[28].mxu1 %vm313_vm1, %v303_v15 }
  0x7b   : > { %800 = vmatprep.mubr.f32.mxu1 %v7801_v0 }
  0x7d   : > { %7280 = vmatmul.mubr.msk.f32.gmra.mrb[30].mxu0 %vm313_vm1, %v304_v16 }
  0x7e   : > { %7290 = vmatmul.mubr.msk.f32.gmra.mrb[30].mxu1 %vm313_vm1, %v304_v16 }
 0x114   : > { %v421_v19 = vpop.f32.mrb[0].mxu0 }
 0x115   : > { %807 = vxpose.xlu0.b32.start [1/8] (short) %v421_v19, 128  ;;  %v423_v20 = vpop.f32.mrb[1].mxu0  ;;  %v8035_v21 = vpop.f32.mrb[0].mxu1 }
 0x116   : > { %839 = vxpose.xlu1.b32.start [1/8] (short) %v423_v20, 128  ;;  %v8037_v23 = vpop.f32.mrb[1].mxu1 }
 0x118   : > { %v427_v22 = vpop.f32.mrb[2].mxu0 }
 0x119   : > { %808 = vxpose.xlu0.b32.cont [2/8] (short) %v427_v22, 128  ;;  %v429_v25 = vpop.f32.mrb[3].mxu0  ;;  %v540_v26 = vpop.f32.mrb[2].mxu1 }
 0x11a   : > { %840 = vxpose.xlu1.b32.cont [2/8] (short) %v429_v25, 128  ;;  %v542_v28 = vpop.f32.mrb[3].mxu1 }
 0x11c   : > { %v433_v27 = vpop.f32.mrb[4].mxu0 }
 0x11d   : > { %809 = vxpose.xlu0.b32.cont [3/8] (short) %v433_v27, 128  ;;  %v435_v29 = vpop.f32.mrb[5].mxu0  ;;  %v546_v30 = vpop.f32.mrb[4].mxu1 }
 0x11e   : > { %841 = vxpose.xlu1.b32.cont [3/8] (short) %v435_v29, 128  ;;  %v548_v32 = vpop.f32.mrb[5].mxu1 }
 0x120   : > { %v439_v31 = vpop.f32.mrb[6].mxu0 }
 0x121   : > { %810 = vxpose.xlu0.b32.cont [4/8] (short) %v439_v31, 128  ;;  %v441_v34 = vpop.f32.mrb[7].mxu0  ;;  %v552_v35 = vpop.f32.mrb[6].mxu1 }
 0x122   : > { %842 = vxpose.xlu1.b32.cont [4/8] (short) %v441_v34, 128  ;;  %v554_v37 = vpop.f32.mrb[7].mxu1 }
 0x124   : > { %v445_v36 = vpop.f32.mrb[8].mxu0 }
 0x125   : > { %811 = vxpose.xlu0.b32.cont [5/8] (short) %v445_v36, 128  ;;  %v447_v38 = vpop.f32.mrb[9].mxu0  ;;  %v558_v39 = vpop.f32.mrb[8].mxu1 }
 0x126   : > { %843 = vxpose.xlu1.b32.cont [5/8] (short) %v447_v38, 128  ;;  %v560_v41 = vpop.f32.mrb[9].mxu1 }
 0x128   : > { %v451_v40 = vpop.f32.mrb[10].mxu0 }
 0x129   : > { %812 = vxpose.xlu0.b32.cont [6/8] (short) %v451_v40, 128  ;;  %v453_v42 = vpop.f32.mrb[11].mxu0  ;;  %v564_v43 = vpop.f32.mrb[10].mxu1 }
 0x12a   : > { %844 = vxpose.xlu1.b32.cont [6/8] (short) %v453_v42, 128  ;;  %v566_v45 = vpop.f32.mrb[11].mxu1 }
 0x12c   : > { %v457_v44 = vpop.f32.mrb[12].mxu0 }
 0x12d   : > { %813 = vxpose.xlu0.b32.cont [7/8] (short) %v457_v44, 128  ;;  %v459_v46 = vpop.f32.mrb[13].mxu0  ;;  %v570_v47 = vpop.f32.mrb[12].mxu1 }
 0x12e   : > { %845 = vxpose.xlu1.b32.cont [7/8] (short) %v459_v46, 128  ;;  %v572_v49 = vpop.f32.mrb[13].mxu1 }
 0x130   : > { %v463_v48 = vpop.f32.mrb[14].mxu0 }
 0x131   : > { %814 = vxpose.xlu0.b32.end [8/8] (short) %v463_v48, 128  ;;  %v465_v50 = vpop.f32.mrb[15].mxu0  ;;  %v576_v51 = vpop.f32.mrb[14].mxu1 }
 0x132   : > { %846 = vxpose.xlu1.b32.end [8/8] (short) %v465_v50, 128  ;;  %v578_v52 = vpop.f32.mrb[15].mxu1 }
 0x134   : > { %v647_v53 = vpop.f32.mrb[16].mxu0 }
 0x135   : > { %v649_v54 = vpop.f32.mrb[17].mxu0  ;;  %v8061_v5 = vpop.f32.mrb[16].mxu1 }
 0x136   : > { %v8063_v6 = vpop.f32.mrb[17].mxu1 }
 0x138   : > { %v653_v55 = vpop.f32.mrb[18].mxu0 }
 0x139   : > { %v655_v56 = vpop.f32.mrb[19].mxu0  ;;  %v8065_v7 = vpop.f32.mrb[18].mxu1 }
 0x13a   : > { %v8067_v8 = vpop.f32.mrb[19].mxu1 }
 0x13c   : > { %v659_v57 = vpop.f32.mrb[20].mxu0 }
 0x13d   : > { %v661_v58 = vpop.f32.mrb[21].mxu0  ;;  %v8069_v9 = vpop.f32.mrb[20].mxu1 }
 0x13e   : > { %v8071_v10 = vpop.f32.mrb[21].mxu1 }
 0x140   : > { %v665_v59 = vpop.f32.mrb[22].mxu0 }
 0x141   : > { %v667_v60 = vpop.f32.mrb[23].mxu0  ;;  %v8073_v11 = vpop.f32.mrb[22].mxu1 }
 0x142   : > { %v8075_v12 = vpop.f32.mrb[23].mxu1 }
 0x144   : > { %v671_v61 = vpop.f32.mrb[24].mxu0 }
 0x145   : > { %v8045_v62 = vpop.f32.mrb[25].mxu0  ;;  %v8077_v13 = vpop.f32.mrb[24].mxu1 }
 0x146   : > { %v8079_v14 = vpop.f32.mrb[25].mxu1 }
 0x148   : > { %v8047_v63 = vpop.f32.mrb[26].mxu0 }
 0x149   : > { %v8049_v0 = vpop.f32.mrb[27].mxu0  ;;  %v8081_v15 = vpop.f32.mrb[26].mxu1 }
 0x14a   : > { %v8083_v16 = vpop.f32.mrb[27].mxu1 }
 0x14c   : > { %v8051_v1 = vpop.f32.mrb[28].mxu0 }
 0x14d   : > { %v8053_v2 = vpop.f32.mrb[29].mxu0  ;;  %v8085_v17 = vpop.f32.mrb[28].mxu1 }
 0x14e   : > { %v8087_v18 = vpop.f32.mrb[29].mxu1 }
 0x150   : > { %v8055_v3 = vpop.f32.mrb[30].mxu0 }
 0x151   : > { %v8057_v4 = vpop.f32.mrb[31].mxu0  ;;  %v8089_v19 = vpop.f32.mrb[30].mxu1 }
 0x152   : > { %871 = vxpose.xlu0.b32.start [1/8] (short) %v8035_v21, 128  ;;  %v8091_v20 = vpop.f32.mrb[31].mxu1  ;;  %v8096_v21 = vld [vmem:[%s9899_s2] ss:$0 sm:$0xff] }
 0x153   : > { %903 = vxpose.xlu1.b32.start [1/8] (short) %v8037_v23, 128 }
 0x156   : > { %872 = vxpose.xlu0.b32.cont [2/8] (short) %v540_v26, 128 }
 0x157   : > { %904 = vxpose.xlu1.b32.cont [2/8] (short) %v542_v28, 128 }
 0x15a   : > { %873 = vxpose.xlu0.b32.cont [3/8] (short) %v546_v30, 128 }
 0x15b   : > { %905 = vxpose.xlu1.b32.cont [3/8] (short) %v548_v32, 128 }
 0x15e   : > { %874 = vxpose.xlu0.b32.cont [4/8] (short) %v552_v35, 128 }
 0x15f   : > { %906 = vxpose.xlu1.b32.cont [4/8] (short) %v554_v37, 128 }
 0x162   : > { %875 = vxpose.xlu0.b32.cont [5/8] (short) %v558_v39, 128 }
 0x163   : > { %907 = vxpose.xlu1.b32.cont [5/8] (short) %v560_v41, 128 }
 0x166   : > { %876 = vxpose.xlu0.b32.cont [6/8] (short) %v564_v43, 128 }
 0x167   : > { %908 = vxpose.xlu1.b32.cont [6/8] (short) %v566_v45, 128 }
 0x16a   : > { %877 = vxpose.xlu0.b32.cont [7/8] (short) %v570_v47, 128 }
 0x16b   : > { %909 = vxpose.xlu1.b32.cont [7/8] (short) %v572_v49, 128 }
 0x16e   : > { %878 = vxpose.xlu0.b32.end [8/8] (short) %v576_v51, 128 }
 0x16f   : > { %910 = vxpose.xlu1.b32.end [8/8] (short) %v578_v52, 128 }
 0x18f   : > { %935 = vxpose.xlu0.b32.start [1/8] (short) %v647_v53, 128 }
 0x190   : > { %967 = vxpose.xlu1.b32.start [1/8] (short) %v649_v54, 128 }
 0x193   : > { %936 = vxpose.xlu0.b32.cont [2/8] (short) %v653_v55, 128 }
 0x194   : > { %968 = vxpose.xlu1.b32.cont [2/8] (short) %v655_v56, 128 }
 0x195   : > { %v823_v22 = vpop.trf.xlu0 }
 0x196   : > { %v8098_v23 = vpop.trf.xlu1  ;;  %v1070_v24 = vadd.f32 %v8096_v21, %v823_v22 }
 0x197   : > { %937 = vxpose.xlu0.b32.cont [3/8] (short) %v659_v57, 128 }
 0x198   : > { %969 = vxpose.xlu1.b32.cont [3/8] (short) %v661_v58, 128  ;;  %v1198_v28 = vmax.f32 %v1070_v24, 0.0 }
 0x199   : > { %v824_v25 = vpop.trf.xlu0 }
 0x19a   : > { %v1071_v26 = vadd.f32 %v8096_v21, %v824_v25  ;;  %v8102_v27 = vpop.trf.xlu1 }
 0x19b   : > { %938 = vxpose.xlu0.b32.cont [4/8] (short) %v665_v59, 128 }
 0x19c   : > { %v1199_v29 = vmax.f32 %v1071_v26, 0.0  ;;  %970 = vxpose.xlu1.b32.cont [4/8] (short) %v667_v60, 128 }
 0x19d   : > { %v825_v30 = vpop.trf.xlu0 }
 0x19e   : > { %v1326_v31 = vpack.c.bf16 %v1199_v29, %v1198_v28  ;;  %v8104_v32 = vpop.trf.xlu1  ;;  %v1072_v33 = vadd.f32 %v8096_v21, %v825_v30 }
 0x19f   : > { %939 = vxpose.xlu0.b32.cont [5/8] (short) %v671_v61, 128 }
 0x1a0   : > { %7508 = vmatprep.mubr.msk.bf16.mxu0 %vm1429_vm2, %v1326_v31  ;;  %971 = vxpose.xlu1.b32.cont [5/8] (short) %v8045_v62, 128  ;;  %v1200_v37 = vmax.f32 %v1072_v33, 0.0 }
 0x1a1   : > { %v826_v34 = vpop.trf.xlu0 }
 0x1a2   : > { %v1073_v35 = vadd.f32 %v8096_v21, %v826_v34  ;;  %v8110_v36 = vpop.trf.xlu1 }
 0x1a3   : > { %940 = vxpose.xlu0.b32.cont [6/8] (short) %v8047_v63, 128 }
 0x1a4   : > { %v1201_v38 = vmax.f32 %v1073_v35, 0.0  ;;  %972 = vxpose.xlu1.b32.cont [6/8] (short) %v8049_v0, 128 }
 0x1a5   : > { %v827_v39 = vpop.trf.xlu0 }
 0x1a6   : > { %v1327_v40 = vpack.c.bf16 %v1201_v38, %v1200_v37  ;;  %v8114_v41 = vpop.trf.xlu1  ;;  %v1074_v42 = vadd.f32 %v8096_v21, %v827_v39 }
 0x1a7   : > { %941 = vxpose.xlu0.b32.cont [7/8] (short) %v8051_v1, 128 }
 0x1a8   : > { %7509 = vmatmul.mubr.msk.bf16.vlgmr.msra.gmra.mrb[32].mxu0 %vm1429_vm2, %v1327_v40  ;;  %973 = vxpose.xlu1.b32.cont [7/8] (short) %v8053_v2, 128  ;;  %v1202_v46 = vmax.f32 %v1074_v42, 0.0  ;;  %v1086_v42 = vadd.f32 %v8096_v21, %v8098_v23 }
 0x1a9   : > { %v828_v43 = vpop.trf.xlu0 }
 0x1aa   : > { %v1075_v44 = vadd.f32 %v8096_v21, %v828_v43  ;;  %v8121_v45 = vpop.trf.xlu1  ;;  %v1087_v43 = vadd.f32 %v8096_v21, %v8102_v27 }
 0x1ab   : > { %942 = vxpose.xlu0.b32.end [8/8] (short) %v8055_v3, 128 }
 0x1ac   : > { %v1203_v47 = vmax.f32 %v1075_v44, 0.0  ;;  %974 = vxpose.xlu1.b32.end [8/8] (short) %v8057_v4, 128 }
 0x1ad   : > { %v829_v48 = vpop.trf.xlu0 }
 0x1ae   : > { %v1328_v49 = vpack.c.bf16 %v1203_v47, %v1202_v46  ;;  %v8125_v50 = vpop.trf.xlu1  ;;  %v1076_v51 = vadd.f32 %v8096_v21, %v829_v48 }
 0x1b0   : > { %7512 = vmatprep.mubr.msk.bf16.mxu0 %vm1429_vm2, %v1328_v49  ;;  %v1204_v55 = vmax.f32 %v1076_v51, 0.0  ;;  %v1214_v49 = vmax.f32 %v1086_v42, 0.0  ;;  %v1215_v51 = vmax.f32 %v1087_v43, 0.0 }
 0x1b1   : > { %v830_v52 = vpop.trf.xlu0 }
 0x1b2   : > { %v1077_v53 = vadd.f32 %v8096_v21, %v830_v52  ;;  %v8130_v54 = vpop.trf.xlu1 }
 0x1b4   : > { %v1205_v56 = vmax.f32 %v1077_v53, 0.0 }
 0x1b5   : > { %v831_v57 = vpop.trf.xlu0 }
 0x1b6   : > { %v1329_v58 = vpack.c.bf16 %v1205_v56, %v1204_v55  ;;  %v8132_v59 = vpop.trf.xlu1  ;;  %v1078_v60 = vadd.f32 %v8096_v21, %v831_v57  ;;  %v1334_v56 = vpack.c.bf16 %v1215_v51, %v1214_v49  ;;  %v1090_v57 = vadd.f32 %v8096_v21, %v8114_v41 }
 0x1b8   : > { %7513 = vmatmul.mubr.msk.bf16.gmra.mrb[36].mxu0 %vm1429_vm2, %v1329_v58  ;;  %v1206_v0 = vmax.f32 %v1078_v60, 0.0 }
 0x1b9   : > { %v832_v61 = vpop.trf.xlu0 }
 0x1ba   : > { %v1079_v62 = vadd.f32 %v8096_v21, %v832_v61  ;;  %v8137_v63 = vpop.trf.xlu1  ;;  %v1218_v61 = vmax.f32 %v1090_v57, 0.0 }
 0x1bc   : > { %v1207_v1 = vmax.f32 %v1079_v62, 0.0 }
 0x1bd   : > { %v833_v2 = vpop.trf.xlu0 }
 0x1be   : > { %v1330_v3 = vpack.c.bf16 %v1207_v1, %v1206_v0  ;;  %v8139_v4 = vpop.trf.xlu1  ;;  %v1080_v22 = vadd.f32 %v8096_v21, %v833_v2  ;;  %v1094_v2 = vadd.f32 %v8096_v21, %v8132_v59 }
 0x1c0   : > { %7516 = vmatprep.mubr.msk.bf16.mxu0 %vm1429_vm2, %v1330_v3  ;;  %v1208_v28 = vmax.f32 %v1080_v22, 0.0  ;;  %v1095_v3 = vadd.f32 %v8096_v21, %v8137_v63  ;;  %v2363_v63 = vld [vmem:[#allocation2 + $0x20] sm:$0xff] }
 0x1c1   : > { %v834_v24 = vpop.trf.xlu0 }
 0x1c2   : > { %v1081_v25 = vadd.f32 %v8096_v21, %v834_v24  ;;  %v8144_v26 = vpop.trf.xlu1  ;;  %v1223_v24 = vmax.f32 %v1095_v3, 0.0 }
 0x1c4   : > { %v1209_v29 = vmax.f32 %v1081_v25, 0.0 }
 0x1c5   : > { %v835_v30 = vpop.trf.xlu0 }
 0x1c6   : > { %v1331_v31 = vpack.c.bf16 %v1209_v29, %v1208_v28  ;;  %v8146_v33 = vpop.trf.xlu1  ;;  %v1082_v34 = vadd.f32 %v8096_v21, %v835_v30  ;;  %v1096_v29 = vadd.f32 %v8096_v21, %v8139_v4  ;;  %v1097_v30 = vadd.f32 %v8096_v21, %v8144_v26  ;;  %v2367_v4 = vld [vmem:[#allocation2 + $0x40] sm:$0xff] }
 0x1c7   : > { %v2371_v26 = vld [vmem:[#allocation2 + $0x60] sm:$0xff] }
 0x1c8   : > { %7517 = vmatmul.mubr.msk.bf16.gmra.mrb[40].mxu0 %vm1429_vm2, %v1331_v31  ;;  %v1210_v39 = vmax.f32 %v1082_v34, 0.0  ;;  %v1225_v42 = vmax.f32 %v1097_v30, 0.0 }
 0x1c9   : > { %v836_v35 = vpop.trf.xlu0 }
 0x1ca   : > { %v1083_v37 = vadd.f32 %v8096_v21, %v836_v35  ;;  %v8151_v38 = vpop.trf.xlu1 }
 0x1cc   : > { %v1211_v40 = vmax.f32 %v1083_v37, 0.0 }
 0x1cd   : > { %v837_v44 = vpop.trf.xlu0  ;;  %999 = vxpose.xlu0.b32.start [1/8] (short) %v8061_v5, 128  ;;  %v1088_v5 = vadd.f32 %v8096_v21, %v8104_v32 }
 0x1ce   : > { %v1332_v46 = vpack.c.bf16 %v1211_v40, %v1210_v39  ;;  %v8158_v47 = vpop.trf.xlu1  ;;  %1031 = vxpose.xlu1.b32.start [1/8] (short) %v8063_v6, 128  ;;  %v1084_v48 = vadd.f32 %v8096_v21, %v837_v44  ;;  %v1089_v6 = vadd.f32 %v8096_v21, %v8110_v36  ;;  %v8230_v39 = vcombine.high %v2367_v4, %v2371_v26  ;;  %v2375_v44 = vld [vmem:[#allocation2 + $0x80] sm:$0xff] }
 0x1cf   : > { %v1216_v32 = vmax.f32 %v1088_v5, 0.0  ;;  %v1224_v40 = vmax.f32 %v1096_v29, 0.0  ;;  %v1100_v51 = vadd.f32 %v8096_v21, %v8158_v47 }
 0x1d0   : > { %7520 = vmatprep.mubr.msk.bf16.mxu0 %vm1429_vm2, %v1332_v46  ;;  %v1212_v53 = vmax.f32 %v1084_v48, 0.0  ;;  %v1217_v36 = vmax.f32 %v1089_v6, 0.0  ;;  %10079 = vst [vmem:[#allocation10_spill] sm:$0xff] %v8230_v39  ;;  %v2379_v46 = vld [vmem:[#allocation2 + $0xa0] sm:$0xff] }
 0x1d1   : > { %v838_v52 = vpop.trf.xlu0  ;;  %1000 = vxpose.xlu0.b32.cont [2/8] (short) %v8065_v7, 128  ;;  %v1091_v7 = vadd.f32 %v8096_v21, %v8121_v45  ;;  %v1093_v45 = vadd.f32 %v8096_v21, %v8130_v54  ;;  %v1222_v54 = vmax.f32 %v1094_v2, 0.0  ;;  %v8242_v48 = vcombine.high %v2375_v44, %v2379_v46 }
 0x1d2   : > { %v1085_v23 = vadd.f32 %v8096_v21, %v838_v52  ;;  %v8165_v27 = vpop.trf.xlu1  ;;  %1032 = vxpose.xlu1.b32.cont [2/8] (short) %v8067_v8, 128  ;;  %v1339_v49 = vpack.c.bf16 %v1225_v42, %v1224_v40 }
 0x1d3   : > { %v1219_v62 = vmax.f32 %v1091_v7, 0.0  ;;  %v1338_v34 = vpack.c.bf16 %v1223_v24, %v1222_v54  ;;  %10081 = vst [vmem:[#allocation12_spill] sm:$0xff] %v8242_v48  ;;  %v1101_v52 = vadd.f32 %v8096_v21, %v8165_v27  ;;  %v1228_v27 = vmax.f32 %v1100_v51, 0.0  ;;  %v2399_v24 = vld [vmem:[#allocation2 + $0x140] sm:$0xff] }
 0x1d4   : > { %v1213_v55 = vmax.f32 %v1085_v23, 0.0  ;;  %v2415_v51 = vld [vmem:[#allocation2 + $0x1c0] sm:$0xff] }
 0x1d5   : > { %v8176_v58 = vpop.trf.xlu0  ;;  %1001 = vxpose.xlu0.b32.cont [3/8] (short) %v8069_v9, 128  ;;  %v1335_v9 = vpack.c.bf16 %v1217_v36, %v1216_v32  ;;  %v1336_v1 = vpack.c.bf16 %v1219_v62, %v1218_v61  ;;  %v1229_v57 = vmax.f32 %v1101_v52, 0.0  ;;  %v2391_v61 = vld [vmem:[#allocation2 + $0x100] sm:$0xff] }
 0x1d6   : > { %v1333_v8 = vpack.c.bf16 %v1213_v55, %v1212_v53  ;;  %v8179_v60 = vpop.trf.xlu1  ;;  %1033 = vxpose.xlu1.b32.cont [3/8] (short) %v8071_v10, 128  ;;  %v1092_v10 = vadd.f32 %v8096_v21, %v8125_v50  ;;  %v1221_v50 = vmax.f32 %v1093_v45, 0.0  ;;  %v2383_v55 = vld [vmem:[#allocation2 + $0xc0] sm:$0xff] }
 0x1d7   : > { %v2395_v62 = vld [vmem:[#allocation2 + $0x120] sm:$0xff]  ;;  %v1341_v45 = vpack.c.bf16 %v1229_v57, %v1228_v27 }
 0x1d8   : > { %7521 = vmatmul.mubr.msk.bf16.gmra.mrb[44].mxu0 %vm1429_vm2, %v1333_v8  ;;  %v2419_v52 = vld [vmem:[#allocation2 + $0x1e0] sm:$0xff] }
 0x1d9   : > { %v8183_v0 = vpop.trf.xlu0  ;;  %7524 = vmatprep.mubr.msk.bf16.mxu0 %vm1429_vm2, %v1334_v56  ;;  %1002 = vxpose.xlu0.b32.cont [4/8] (short) %v8073_v11, 128  ;;  %v2387_v56 = vld [vmem:[#allocation2 + $0xe0] sm:$0xff] }
 0x1da   : > { %v8187_v41 = vpop.trf.xlu1  ;;  %1034 = vxpose.xlu1.b32.cont [4/8] (short) %v8075_v12, 128  ;;  %v1220_v12 = vmax.f32 %v1092_v10, 0.0  ;;  %v1103_v23 = vadd.f32 %v8096_v21, %v8183_v0  ;;  %v8258_v47 = vcombine.high %v2383_v55, %v2387_v56  ;;  %v8261_v7 = vcombine.low %v2383_v55, %v2387_v56 }
 0x1db   : > { %v8268_v0 = vcombine.high %v2391_v61, %v2395_v62 }
 0x1dc   : > { %10083 = vst [vmem:[#allocation14_spill] sm:$0xff] %v8258_v47  ;;  %10084 = vst [vmem:[#allocation15_spill] sm:$0xff] %v8261_v7  ;;  %v1231_v8 = vmax.f32 %v1103_v23, 0.0 }
 0x1dd   : > { %v8198_v22 = vpop.trf.xlu0  ;;  %1003 = vxpose.xlu0.b32.cont [5/8] (short) %v8077_v13, 128  ;;  %v2359_v13 = vld [vmem:[#allocation2] sm:$0xff]  ;;  %10085 = vst [vmem:[#allocation16_spill] sm:$0xff] %v8268_v0 }
 0x1de   : > { %v8201_v11 = vpop.trf.xlu1  ;;  %1035 = vxpose.xlu1.b32.cont [5/8] (short) %v8079_v14, 128  ;;  %v8212_v28 = vcombine.high %v2359_v13, %v2363_v63  ;;  %v1337_v14 = vpack.c.bf16 %v1221_v50, %v1220_v12  ;;  %v8218_v31 = vcombine.low %v2359_v13, %v2363_v63  ;;  %v2403_v13 = vld [vmem:[#allocation2 + $0x160] sm:$0xff] }
 0x1e0   : > { %7525 = vmatmul.mubr.msk.bf16.gmra.mrb[48].mxu0 %vm1429_vm2, %v1335_v9  ;;  %10077 = vst [vmem:[#allocation8_spill] sm:$0xff] %v8212_v28  ;;  %10078 = vst [vmem:[#allocation9_spill] sm:$0xff] %v8218_v31  ;;  %2743 = vmatprep.subr.bf16.mxu1 %v8212_v28  ;;  %v1104_v9 = vadd.f32 %v8096_v21, %v8198_v22  ;;  %v8282_v22 = vcombine.high %v2399_v24, %v2403_v13 }
 0x1e1   : > { %v8205_v25 = vpop.trf.xlu0  ;;  %7528 = vmatprep.mubr.msk.bf16.mxu0 %vm1429_vm2, %v1336_v1  ;;  %1004 = vxpose.xlu0.b32.cont [6/8] (short) %v8081_v15, 128  ;;  %v1098_v15 = vadd.f32 %v8096_v21, %v8146_v33  ;;  %v8233_v33 = vcombine.low %v2367_v4, %v2371_v26  ;;  %v8274_v1 = vcombine.low %v2391_v61, %v2395_v62  ;;  %v9908_v61 = vmov 0  }
 0x1e2   : > { %v8209_v59 = vpop.trf.xlu1  ;;  %1036 = vxpose.xlu1.b32.cont [6/8] (short) %v8083_v16, 128  ;;  %v1099_v16 = vadd.f32 %v8096_v21, %v8151_v38  ;;  %2744 = vmatpush1.bf16.msra.mxu1 %v8218_v31  ;;  %v1105_v10 = vadd.f32 %v8096_v21, %v8205_v25  ;;  %10087 = vst [vmem:[#allocation18_spill] sm:$0xff] %v8282_v22  ;;  %v1232_v25 = vmax.f32 %v1104_v9, 0.0 }
 0x1e3   : > { %10080 = vst [vmem:[#allocation11_spill] sm:$0xff] %v8233_v33  ;;  %v1226_v38 = vmax.f32 %v1098_v15, 0.0  ;;  %2745 = vmatprep.subr.bf16.mxu1 %v8230_v39  ;;  %10086 = vst [vmem:[#allocation17_spill] sm:$0xff] %v8274_v1  ;;  %v2407_v15 = vld [vmem:[#allocation2 + $0x180] sm:$0xff]  ;;  %2775 = vmatprep.mubr.bf16.mxu1 %v9908_v61 }
 0x1e4   : > { %v1227_v43 = vmax.f32 %v1099_v16, 0.0  ;;  %v1233_v63 = vmax.f32 %v1105_v10, 0.0  ;;  %v2411_v16 = vld [vmem:[#allocation2 + $0x1a0] sm:$0xff] }
 0x1e5   : > { %v891_v35 = vpop.trf.xlu0  ;;  %1005 = vxpose.xlu0.b32.cont [7/8] (short) %v8085_v17, 128  ;;  %v8292_v4 = vcombine.high %v2407_v15, %v2411_v16 }
 0x1e6   : > { %v8226_v37 = vpop.trf.xlu1  ;;  %1037 = vxpose.xlu1.b32.cont [7/8] (short) %v8087_v18, 128  ;;  %2746 = vmatpush1.bf16.msra.mxu1 %v8233_v33  ;;  %v1340_v5 = vpack.c.bf16 %v1227_v43, %v1226_v38  ;;  %v1106_v3 = vadd.f32 %v8096_v21, %v891_v35  ;;  %v1343_v26 = vpack.c.bf16 %v1233_v63, %v1232_v25 }
 0x1e7   : > { %2747 = vmatprep.subr.bf16.mxu1 %v8242_v48  ;;  %10089 = vst [vmem:[#allocation20_spill] sm:$0xff] %v8292_v4  ;;  %v8296_v38 = vcombine.low %v2407_v15, %v2411_v16 }
 0x1e8   : > { %7529 = vmatmul.mubr.msk.bf16.gmra.mrb[52].mxu0 %vm1429_vm2, %v1337_v14  ;;  %v8285_v14 = vcombine.low %v2399_v24, %v2403_v13  ;;  %v1234_v29 = vmax.f32 %v1106_v3, 0.0  ;;  %v2364_v3 = vld [vmem:[#allocation2 + $0x28] sm:$0xff]  ;;  %v2365_v13 = vld [vmem:[#allocation2 + $0x30] sm:$0xff] }
 0x1e9   : > { %v892_v17 = vpop.trf.xlu0  ;;  %7532 = vmatprep.mubr.msk.bf16.mxu0 %vm1429_vm2, %v1338_v34  ;;  %1006 = vxpose.xlu0.b32.end [8/8] (short) %v8089_v19, 128  ;;  %v8248_v19 = vcombine.low %v2375_v44, %v2379_v46  ;;  %10090 = vst [vmem:[#allocation21_spill] sm:$0xff] %v8296_v38 }
 0x1ea   : > { %v8237_v18 = vpop.trf.xlu1  ;;  %1038 = vxpose.xlu1.b32.end [8/8] (short) %v8091_v20, 128  ;;  %v1102_v20 = vadd.f32 %v8096_v21, %v8176_v58  ;;  %v1107_v12 = vadd.f32 %v8096_v21, %v892_v17  ;;  %10088 = vst [vmem:[#allocation19_spill] sm:$0xff] %v8285_v14 }
 0x1eb   : > { %10082 = vst [vmem:[#allocation13_spill] sm:$0xff] %v8248_v19  ;;  %2748 = vmatpush1.bf16.msra.mxu1 %v8248_v19 }
 0x1ec   : > { %v1230_v58 = vmax.f32 %v1102_v20, 0.0  ;;  %2749 = vmatprep.subr.bf16.mxu1 %v8258_v47  ;;  %v1235_v30 = vmax.f32 %v1107_v12, 0.0  ;;  %v8304_v20 = vcombine.high %v2415_v51, %v2419_v52  ;;  %v2361_v12 = vld [vmem:[#allocation2 + $0x10] sm:$0xff] }
 0x1ed   : > { %v893_v6 = vpop.trf.xlu0  ;;  %v8323_v63 = vcombine.high %v2361_v12, %v2365_v13 }
 0x1ee   : > { %v8255_v53 = vpop.trf.xlu1  ;;  %v1342_v2 = vpack.c.bf16 %v1231_v8, %v1230_v58  ;;  %v1108_v40 = vadd.f32 %v8096_v21, %v893_v6  ;;  %v1344_v17 = vpack.c.bf16 %v1235_v30, %v1234_v29  ;;  %10091 = vst [vmem:[#allocation22_spill] sm:$0xff] %v8304_v20  ;;  %v8307_v6 = vcombine.low %v2415_v51, %v2419_v52 }
 0x1ef   : > { %2750 = vmatpush1.bf16.msra.mxu1 %v8261_v7  ;;  %10094 = vst [vmem:[#allocation25_spill] sm:$0xff] %v8323_v63  ;;  %v8325_v29 = vcombine.low %v2361_v12, %v2365_v13  ;;  %3129 = vmatprep.subr.bf16.mxu0 %v8323_v63 }
 0x1f0   : > { %7533 = vmatmul.mubr.msk.bf16.gmra.mrb[56].mxu0 %vm1429_vm2, %v1339_v49  ;;  %2751 = vmatprep.subr.bf16.mxu1 %v8268_v0  ;;  %v1236_v23 = vmax.f32 %v1108_v40, 0.0  ;;  %10092 = vst [vmem:[#allocation23_spill] sm:$0xff] %v8307_v6 }
 0x1f1   : > { %v894_v32 = vpop.trf.xlu0  ;;  %7536 = vmatprep.mubr.msk.bf16.mxu0 %vm1429_vm2, %v1340_v5  ;;  %10095 = vst [vmem:[#allocation26_spill] sm:$0xff] %v8325_v29  ;;  %3130 = vmatpush1.bf16.msra.mxu0 %v8325_v29 }
 0x1f2   : > { %v8265_v36 = vpop.trf.xlu1  ;;  %v1109_v42 = vadd.f32 %v8096_v21, %v894_v32 }
 0x1f3   : > { %2752 = vmatpush1.bf16.msra.mxu1 %v8274_v1 }
 0x1f4   : > { %2753 = vmatprep.subr.bf16.mxu1 %v8282_v22  ;;  %v1237_v5 = vmax.f32 %v1109_v42, 0.0 }
 0x1f5   : > { %v895_v50 = vpop.trf.xlu0 }
 0x1f6   : > { %v8279_v54 = vpop.trf.xlu1  ;;  %v1110_v43 = vadd.f32 %v8096_v21, %v895_v50  ;;  %v1345_v8 = vpack.c.bf16 %v1237_v5, %v1236_v23 }
 0x1f7   : > { %2754 = vmatpush1.bf16.msra.mxu1 %v8285_v14 }
 0x1f8   : > { %7537 = vmatmul.mubr.msk.bf16.gmra.mrb[60].mxu0 %vm1429_vm2, %v1341_v45  ;;  %2755 = vmatprep.subr.bf16.mxu1 %v8292_v4  ;;  %v1238_v55 = vmax.f32 %v1110_v43, 0.0  ;;  %v1119_v43 = vadd.f32 %v8096_v21, %v8187_v41  ;;  %v1120_v41 = vadd.f32 %v8096_v21, %v8201_v11 }
 0x1f9   : > { %v896_v34 = vpop.trf.xlu0  ;;  %7540 = vmatprep.mubr.msk.bf16.mxu0 %vm1429_vm2, %v1342_v2  ;;  %v2360_v2 = vld [vmem:[#allocation2 + $0x8] sm:$0xff] }
 0x1fa   : > { %v8289_v35 = vpop.trf.xlu1  ;;  %v1111_v44 = vadd.f32 %v8096_v21, %v896_v34  ;;  %v8320_v24 = vcombine.high %v2360_v2, %v2364_v3  ;;  %v8327_v30 = vcombine.low %v2360_v2, %v2364_v3  ;;  %v1247_v5 = vmax.f32 %v1119_v43, 0.0 }
 0x1fb   : > { %2756 = vmatpush1.bf16.msra.mxu1 %v8296_v38  ;;  %v1248_v12 = vmax.f32 %v1120_v41, 0.0 }
 0x1fc   : > { %v1239_v56 = vmax.f32 %v1111_v44, 0.0  ;;  %2757 = vmatprep.subr.bf16.mxu1 %v8304_v20  ;;  %10093 = vst [vmem:[#allocation24_spill] sm:$0xff] %v8320_v24  ;;  %10096 = vst [vmem:[#allocation27_spill] sm:$0xff] %v8327_v30 }
 0x1fd   : > { %v897_v46 = vpop.trf.xlu0 }
 0x1fe   : > { %v8301_v49 = vpop.trf.xlu1  ;;  %v1112_v58 = vadd.f32 %v8096_v21, %v897_v46  ;;  %v1346_v62 = vpack.c.bf16 %v1239_v56, %v1238_v55 }
 0x1ff   : > { %2758 = vmatpush1.bf16.msra.mxu1 %v8307_v6 }
 0x200   : > { %7541 = vmatmul.mubr.msk.bf16.gmra.mrb[64].mxu0 %vm1429_vm2, %v1343_v26  ;;  %v1240_v50 = vmax.f32 %v1112_v58, 0.0  ;;  %2936 = vmatprep.subr.bf16.mxu1 %v8320_v24  ;;  %v1121_v58 = vadd.f32 %v8096_v21, %v8209_v59 }
 0x201   : > { %v898_v27 = vpop.trf.xlu0  ;;  %7544 = vmatprep.mubr.msk.bf16.mxu0 %vm1429_vm2, %v1344_v17  ;;  %v1118_v17 = vadd.f32 %v8096_v21, %v8179_v60 }
 0x202   : > { %v8311_v57 = vpop.trf.xlu1  ;;  %v1113_v32 = vadd.f32 %v8096_v21, %v898_v27 }
 0x203   : > { %v1246_v23 = vmax.f32 %v1118_v17, 0.0 }
 0x204   : > { %v1241_v25 = vmax.f32 %v1113_v32, 0.0 }
 0x205   : > { %v899_v9 = vpop.trf.xlu0  ;;  %v1350_v32 = vpack.c.bf16 %v1247_v5, %v1246_v23  ;;  %v2373_v23 = vld [vmem:[#allocation2 + $0x70] sm:$0xff] }
 0x206   : > { %v1114_v10 = vadd.f32 %v8096_v21, %v899_v9  ;;  %v8318_v45 = vpop.trf.xlu1  ;;  %v1347_v40 = vpack.c.bf16 %v1241_v25, %v1240_v50  ;;  %v1123_v9 = vadd.f32 %v8096_v21, %v8237_v18  ;;  %v1249_v50 = vmax.f32 %v1121_v58, 0.0 }
 0x207   : > { %v1124_v18 = vadd.f32 %v8096_v21, %v8255_v53  ;;  %v1130_v58 = vadd.f32 %v8096_v21, %v8318_v45 }
 0x208   : > { %7545 = vmatmul.mubr.msk.bf16.gmra.mrb[68].mxu0 %vm1429_vm2, %v1345_v8  ;;  %v1242_v15 = vmax.f32 %v1114_v10, 0.0  ;;  %v1251_v13 = vmax.f32 %v1123_v9, 0.0  ;;  %v2381_v9 = vld [vmem:[#allocation2 + $0xb0] sm:$0xff] }
 0x209   : > { %v900_v34 = vpop.trf.xlu0  ;;  %7548 = vmatprep.mubr.msk.bf16.mxu0 %vm1429_vm2, %v1346_v62  ;;  %v1122_v62 = vadd.f32 %v8096_v21, %v8226_v37  ;;  %v1351_v37 = vpack.c.bf16 %v1249_v50, %v1248_v12  ;;  %v1252_v43 = vmax.f32 %v1124_v18, 0.0  ;;  %v1258_v45 = vmax.f32 %v1130_v58, 0.0 }
 0x20a   : > { %v1115_v16 = vadd.f32 %v8096_v21, %v900_v34  ;;  %v8332_v26 = vpop.trf.xlu1  ;;  %v1125_v34 = vadd.f32 %v8096_v21, %v8265_v36  ;;  %v2369_v36 = vld [vmem:[#allocation2 + $0x50] sm:$0xff] }
 0x20b   : > { %v1250_v11 = vmax.f32 %v1122_v62, 0.0  ;;  %v8382_v5 = vcombine.high %v2369_v36, %v2373_v23  ;;  %v2377_v62 = vld [vmem:[#allocation2 + $0x90] sm:$0xff] }
 0x20c   : > { %v1243_v42 = vmax.f32 %v1115_v16, 0.0  ;;  %v1126_v16 = vadd.f32 %v8096_v21, %v8279_v54  ;;  %v8400_v12 = vcombine.low %v2377_v62, %v2381_v9 }
 0x20d   : > { %v901_v44 = vpop.trf.xlu0  ;;  %10097 = vst [vmem:[#allocation28_spill] sm:$0xff] %v8382_v5  ;;  %3131 = vmatprep.subr.bf16.mxu0 %v8382_v5 }
 0x20e   : > { %v1348_v46 = vpack.c.bf16 %v1243_v42, %v1242_v15  ;;  %v1116_v51 = vadd.f32 %v8096_v21, %v901_v44  ;;  %v8341_v52 = vpop.trf.xlu1  ;;  %v1352_v15 = vpack.c.bf16 %v1251_v13, %v1250_v11  ;;  %v1253_v44 = vmax.f32 %v1125_v34, 0.0  ;;  %10100 = vst [vmem:[#allocation31_spill] sm:$0xff] %v8400_v12 }
 0x210   : > { %7549 = vmatmul.mubr.msk.bf16.gmra.mrb[72].mxu0 %vm1429_vm2, %v1347_v40  ;;  %v1244_v56 = vmax.f32 %v1116_v51, 0.0  ;;  %v1127_v40 = vadd.f32 %v8096_v21, %v8289_v35  ;;  %v8384_v35 = vcombine.low %v2369_v36, %v2373_v23  ;;  %v2393_v23 = vld [vmem:[#allocation2 + $0x110] sm:$0xff] }
 0x211   : > { %v902_v55 = vpop.trf.xlu0  ;;  %7552 = vmatprep.mubr.msk.bf16.mxu0 %vm1429_vm2, %v1348_v46  ;;  %v1254_v46 = vmax.f32 %v1126_v16, 0.0 }
 0x212   : > { %v1117_v27 = vadd.f32 %v8096_v21, %v902_v55  ;;  %v8346_v60 = vpop.trf.xlu1  ;;  %v1255_v53 = vmax.f32 %v1127_v40, 0.0  ;;  %10098 = vst [vmem:[#allocation29_spill] sm:$0xff] %v8384_v35  ;;  %v1353_v55 = vpack.c.bf16 %v1253_v44, %v1252_v43  ;;  %3132 = vmatpush1.bf16.msra.mxu0 %v8384_v35  ;;  %v1132_v40 = vadd.f32 %v8096_v21, %v8341_v52 }
 0x213   : > { %v1133_v43 = vadd.f32 %v8096_v21, %v8346_v60 }
 0x214   : > { %v1245_v8 = vmax.f32 %v1117_v27, 0.0  ;;  %v1129_v27 = vadd.f32 %v8096_v21, %v8311_v57  ;;  %v1354_v41 = vpack.c.bf16 %v1255_v53, %v1254_v46  ;;  %v1260_v60 = vmax.f32 %v1132_v40, 0.0 }
 0x215   : > { %v8356_v10 = vpop.trf.xlu0 }
 0x216   : > { %v1349_v2 = vpack.c.bf16 %v1245_v8, %v1244_v56  ;;  %v8358_v3 = vpop.trf.xlu1  ;;  %v1128_v56 = vadd.f32 %v8096_v21, %v8301_v49  ;;  %v8398_v49 = vcombine.high %v2377_v62, %v2381_v9  ;;  %v1257_v50 = vmax.f32 %v1129_v27, 0.0  ;;  %v2405_v62 = vld [vmem:[#allocation2 + $0x170] sm:$0xff] }
 0x217   : > { %v1134_v44 = vadd.f32 %v8096_v21, %v8356_v10 }
 0x218   : > { %7553 = vmatmul.mubr.msk.bf16.gmra.mrb[76].mxu0 %vm1429_vm2, %v1349_v2  ;;  %10099 = vst [vmem:[#allocation30_spill] sm:$0xff] %v8398_v49  ;;  %v1256_v57 = vmax.f32 %v1128_v56, 0.0  ;;  %3133 = vmatprep.subr.bf16.mxu0 %v8398_v49 }
 0x219   : > { %v952_v59 = vpop.trf.xlu0  ;;  %7556 = vmatprep.mubr.msk.bf16.mxu0 %vm1429_vm2, %v1350_v32  ;;  %v1131_v32 = vadd.f32 %v8096_v21, %v8332_v26  ;;  %3134 = vmatpush1.bf16.msra.mxu0 %v8400_v12  ;;  %v2385_v26 = vld [vmem:[#allocation2 + $0xd0] sm:$0xff]  ;;  %v1262_v10 = vmax.f32 %v1134_v44, 0.0 }
 0x21a   : > { %v8362_v25 = vpop.trf.xlu1  ;;  %v1355_v16 = vpack.c.bf16 %v1257_v50, %v1256_v57  ;;  %v1135_v46 = vadd.f32 %v8096_v21, %v952_v59  ;;  %v2409_v44 = vld [vmem:[#allocation2 + $0x190] sm:$0xff] }
 0x21b   : > { %v1259_v11 = vmax.f32 %v1131_v32, 0.0  ;;  %v2401_v32 = vld [vmem:[#allocation2 + $0x150] sm:$0xff] }
 0x21c   : > { %v1263_v59 = vmax.f32 %v1135_v46, 0.0  ;;  %v8433_v57 = vcombine.high %v2401_v32, %v2405_v62  ;;  %v8435_v50 = vcombine.low %v2401_v32, %v2405_v62  ;;  %v2413_v46 = vld [vmem:[#allocation2 + $0x1b0] sm:$0xff] }
 0x21d   : > { %v8372_v42 = vpop.trf.xlu0  ;;  %v1356_v53 = vpack.c.bf16 %v1259_v11, %v1258_v45 }
 0x21e   : > { %v8374_v17 = vpop.trf.xlu1  ;;  %10105 = vst [vmem:[#allocation36_spill] sm:$0xff] %v8433_v57  ;;  %10106 = vst [vmem:[#allocation37_spill] sm:$0xff] %v8435_v50  ;;  %v1136_v45 = vadd.f32 %v8096_v21, %v8372_v42 }
 0x220   : > { %7557 = vmatmul.mubr.msk.bf16.gmra.mrb[80].mxu0 %vm1429_vm2, %v1351_v37  ;;  %v2389_v37 = vld [vmem:[#allocation2 + $0xf0] sm:$0xff]  ;;  %v1264_v42 = vmax.f32 %v1136_v45, 0.0 }
 0x221   : > { %v8377_v51 = vpop.trf.xlu0  ;;  %7560 = vmatprep.mubr.msk.bf16.mxu0 %vm1429_vm2, %v1352_v15  ;;  %v8408_v34 = vcombine.high %v2385_v26, %v2389_v37  ;;  %v8410_v15 = vcombine.low %v2385_v26, %v2389_v37  ;;  %v1358_v37 = vpack.c.bf16 %v1263_v59, %v1262_v10  ;;  %v2421_v10 = vld [vmem:[#allocation2 + $0x1f0] sm:$0xff] }
 0x222   : > { %v8380_v54 = vpop.trf.xlu1  ;;  %v1137_v11 = vadd.f32 %v8096_v21, %v8377_v51  ;;  %v8451_v51 = vcombine.low %v2409_v44, %v2413_v46 }
 0x223   : > { %10101 = vst [vmem:[#allocation32_spill] sm:$0xff] %v8408_v34  ;;  %10102 = vst [vmem:[#allocation33_spill] sm:$0xff] %v8410_v15  ;;  %3135 = vmatprep.subr.bf16.mxu0 %v8408_v34 }
 0x224   : > { %3136 = vmatpush1.bf16.msra.mxu0 %v8410_v15  ;;  %10108 = vst [vmem:[#allocation39_spill] sm:$0xff] %v8451_v51 }
 0x225   : > { %v955_v8 = vpop.trf.xlu0 }
 0x226   : > { %v8396_v2 = vpop.trf.xlu1 }
 0x228   : > { %7561 = vmatmul.mubr.msk.bf16.gmra.mrb[84].mxu0 %vm1429_vm2, %v1353_v55  ;;  %v2397_v55 = vld [vmem:[#allocation2 + $0x130] sm:$0xff] }
 0x229   : > { %v956_v13 = vpop.trf.xlu0  ;;  %7564 = vmatprep.mubr.msk.bf16.mxu0 %vm1429_vm2, %v1354_v41  ;;  %v8423_v27 = vcombine.high %v2393_v23, %v2397_v55  ;;  %v8425_v52 = vcombine.low %v2393_v23, %v2397_v55  ;;  %v1261_v41 = vmax.f32 %v1133_v43, 0.0  ;;  %v8447_v23 = vcombine.high %v2409_v44, %v2413_v46 }
 0x22a   : > { %v8406_v18 = vpop.trf.xlu1  ;;  %v1139_v40 = vadd.f32 %v8096_v21, %v956_v13  ;;  %v1265_v55 = vmax.f32 %v1137_v11, 0.0 }
 0x22b   : > { %10103 = vst [vmem:[#allocation34_spill] sm:$0xff] %v8423_v27  ;;  %10104 = vst [vmem:[#allocation35_spill] sm:$0xff] %v8425_v52  ;;  %3137 = vmatprep.subr.bf16.mxu0 %v8423_v27  ;;  %v1357_v26 = vpack.c.bf16 %v1261_v41, %v1260_v60  ;;  %v2417_v41 = vld [vmem:[#allocation2 + $0x1d0] sm:$0xff] }
 0x22c   : > { %3138 = vmatpush1.bf16.msra.mxu0 %v8425_v52  ;;  %10107 = vst [vmem:[#allocation38_spill] sm:$0xff] %v8447_v23  ;;  %v1267_v60 = vmax.f32 %v1139_v40, 0.0  ;;  %v8457_v32 = vcombine.high %v2417_v41, %v2421_v10  ;;  %v8459_v62 = vcombine.low %v2417_v41, %v2421_v10  ;;  %v1359_v45 = vpack.c.bf16 %v1265_v55, %v1264_v42 }
 0x22d   : > { %v957_v36 = vpop.trf.xlu0  ;;  %3139 = vmatprep.subr.bf16.mxu0 %v8433_v57 }
 0x22e   : > { %v8421_v56 = vpop.trf.xlu1  ;;  %10109 = vst [vmem:[#allocation40_spill] sm:$0xff] %v8457_v32  ;;  %10110 = vst [vmem:[#allocation41_spill] sm:$0xff] %v8459_v62  ;;  %v1140_v11 = vadd.f32 %v8096_v21, %v957_v36 }
 0x230   : > { %7565 = vmatmul.mubr.msk.bf16.gmra.mrb[88].mxu0 %vm1429_vm2, %v1355_v16  ;;  %v1138_v16 = vadd.f32 %v8096_v21, %v955_v8  ;;  %v1268_v41 = vmax.f32 %v1140_v11, 0.0 }
 0x231   : > { %v958_v58 = vpop.trf.xlu0  ;;  %7568 = vmatprep.mubr.msk.bf16.mxu0 %vm1429_vm2, %v1356_v53  ;;  %3140 = vmatpush1.bf16.msra.mxu0 %v8435_v50  ;;  %v8573_v50 = vld [vmem:[#allocation2 + $0x38] sm:$0xff] }
 0x232   : > { %v8431_v9 = vpop.trf.xlu1  ;;  %3141 = vmatprep.subr.bf16.mxu0 %v8447_v23  ;;  %v1266_v8 = vmax.f32 %v1138_v16, 0.0 }
 0x234   : > { %v1360_v16 = vpack.c.bf16 %v1267_v60, %v1266_v8 }
 0x235   : > { %v959_v43 = vpop.trf.xlu0  ;;  %3142 = vmatpush1.bf16.msra.mxu0 %v8451_v51 }
 0x236   : > { %v8445_v53 = vpop.trf.xlu1  ;;  %3143 = vmatprep.subr.bf16.mxu0 %v8457_v32 }
 0x238   : > { %7569 = vmatmul.mubr.msk.bf16.gmra.mrb[92].mxu0 %vm1429_vm2, %v1357_v26  ;;  %v1141_v26 = vadd.f32 %v8096_v21, %v958_v58 }
 0x239   : > { %v960_v13 = vpop.trf.xlu0  ;;  %7572 = vmatprep.mubr.msk.bf16.mxu0 %vm1429_vm2, %v1358_v37  ;;  %v1142_v37 = vadd.f32 %v8096_v21, %v959_v43  ;;  %3144 = vmatpush1.bf16.msra.mxu0 %v8459_v62 }
 0x23a   : > { %v8454_v59 = vpop.trf.xlu1  ;;  %v1143_v40 = vadd.f32 %v8096_v21, %v960_v13  ;;  %3811 = vmatprep.subr.bf16.mxu0 %v8212_v28  ;;  %v1269_v42 = vmax.f32 %v1141_v26, 0.0 }
 0x23b   : > { %v1270_v36 = vmax.f32 %v1142_v37, 0.0 }
 0x23c   : > { %v1271_v58 = vmax.f32 %v1143_v40, 0.0  ;;  %v1361_v43 = vpack.c.bf16 %v1269_v42, %v1268_v41 }
 0x23d   : > { %v961_v44 = vpop.trf.xlu0 }
 0x23e   : > { %v8466_v46 = vpop.trf.xlu1  ;;  %v1144_v60 = vadd.f32 %v8096_v21, %v961_v44  ;;  %v1362_v10 = vpack.c.bf16 %v1271_v58, %v1270_v36  ;;  %v1150_v36 = vadd.f32 %v8096_v21, %v8358_v3  ;;  %v1152_v3 = vadd.f32 %v8096_v21, %v8374_v17 }
 0x240   : > { %7573 = vmatmul.mubr.msk.bf16.gmra.mrb[96].mxu0 %vm1429_vm2, %v1359_v45  ;;  %v1272_v26 = vmax.f32 %v1144_v60, 0.0 }
 0x241   : > { %v962_v55 = vpop.trf.xlu0  ;;  %7576 = vmatprep.mubr.msk.bf16.mxu0 %vm1429_vm2, %v1360_v16 }
 0x242   : > { %v8472_v8 = vpop.trf.xlu1  ;;  %v1145_v13 = vadd.f32 %v8096_v21, %v962_v55 }
 0x244   : > { %v1273_v45 = vmax.f32 %v1145_v13, 0.0  ;;  %v1278_v13 = vmax.f32 %v1150_v36, 0.0 }
 0x245   : > { %v963_v61 = vpop.trf.xlu0 }
 0x246   : > { %v1146_v28 = vadd.f32 %v8096_v21, %v963_v61  ;;  %v8477_v11 = vpop.trf.xlu1  ;;  %v1363_v44 = vpack.c.bf16 %v1273_v45, %v1272_v26  ;;  %v1151_v61 = vadd.f32 %v8096_v21, %v8362_v25  ;;  %v1153_v25 = vadd.f32 %v8096_v21, %v8380_v54 }
 0x248   : > { %7577 = vmatmul.mubr.msk.bf16.gmra.mrb[100].mxu0 %vm1429_vm2, %v1361_v43  ;;  %v1274_v16 = vmax.f32 %v1146_v28, 0.0  ;;  %v1279_v28 = vmax.f32 %v1151_v61, 0.0 }
 0x249   : > { %v964_v37 = vpop.trf.xlu0  ;;  %7580 = vmatprep.mubr.msk.bf16.mxu0 %vm1429_vm2, %v1362_v10 }
 0x24a   : > { %v1147_v40 = vadd.f32 %v8096_v21, %v964_v37  ;;  %v996_v41 = vpop.trf.xlu1 }
 0x24c   : > { %v1275_v42 = vmax.f32 %v1147_v40, 0.0  ;;  %v1366_v40 = vpack.c.bf16 %v1279_v28, %v1278_v13 }
 0x24d   : > { %v965_v58 = vpop.trf.xlu0 }
 0x24e   : > { %v1364_v55 = vpack.c.bf16 %v1275_v42, %v1274_v16  ;;  %v1148_v60 = vadd.f32 %v8096_v21, %v965_v58  ;;  %v997_v43 = vpop.trf.xlu1  ;;  %v1155_v42 = vadd.f32 %v8096_v21, %v8406_v18  ;;  %v1157_v18 = vadd.f32 %v8096_v21, %v8431_v9 }
 0x250   : > { %7581 = vmatmul.mubr.msk.bf16.gmra.mrb[104].mxu0 %vm1429_vm2, %v1363_v44  ;;  %v1276_v26 = vmax.f32 %v1148_v60, 0.0  ;;  %v1154_v44 = vadd.f32 %v8096_v21, %v8396_v2  ;;  %v1281_v60 = vmax.f32 %v1153_v25, 0.0  ;;  %v1156_v2 = vadd.f32 %v8096_v21, %v8421_v56 }
 0x251   : > { %v966_v10 = vpop.trf.xlu0  ;;  %7584 = vmatprep.mubr.msk.bf16.mxu0 %vm1429_vm2, %v1364_v55  ;;  %v1280_v55 = vmax.f32 %v1152_v3, 0.0 }
 0x252   : > { %v1149_v45 = vadd.f32 %v8096_v21, %v966_v10  ;;  %v998_v37 = vpop.trf.xlu1  ;;  %v1282_v17 = vmax.f32 %v1154_v44, 0.0  ;;  %v1283_v10 = vmax.f32 %v1155_v42, 0.0 }
 0x253   : > { %v1367_v13 = vpack.c.bf16 %v1281_v60, %v1280_v55 }
 0x254   : > { %v1277_v16 = vmax.f32 %v1149_v45, 0.0  ;;  %v1368_v28 = vpack.c.bf16 %v1283_v10, %v1282_v17  ;;  %v1159_v45 = vadd.f32 %v8096_v21, %v8454_v59  ;;  %v1161_v59 = vadd.f32 %v8096_v21, %v8472_v8  ;;  %v8532_v8 = vld [vmem:[%s9899_s2] ss:$0 sm:$0xff] }
 0x255   : > { %v1015_v36 = vpop.trf.xlu0  ;;  %v1162_v17 = vadd.f32 %v8096_v21, %v8477_v11  ;;  %v1163_v10 = vadd.f32 %v8096_v21, %v996_v41  ;;  %v1164_v11 = vadd.f32 %v8532_v8, %v997_v43 }
 0x256   : > { %v1365_v61 = vpack.c.bf16 %v1277_v16, %v1276_v26  ;;  %v8498_v58 = vpop.trf.xlu1  ;;  %v1158_v26 = vadd.f32 %v8096_v21, %v8445_v53  ;;  %v1284_v16 = vmax.f32 %v1156_v2, 0.0  ;;  %v1287_v42 = vmax.f32 %v1159_v45, 0.0 }
 0x257   : > { %v1160_v53 = vadd.f32 %v8096_v21, %v8466_v46  ;;  %v1291_v45 = vmax.f32 %v1163_v10, 0.0  ;;  %v1165_v21 = vadd.f32 %v8532_v8, %v998_v37  ;;  %v1166_v41 = vadd.f32 %v8532_v8, %v1015_v36 }
 0x258   : > { %7585 = vmatmul.mubr.msk.bf16.gmra.mrb[108].mxu0 %vm1429_vm2, %v1365_v61  ;;  %v1286_v44 = vmax.f32 %v1158_v26, 0.0 }
 0x259   : > { %v1016_v62 = vpop.trf.xlu0  ;;  %7588 = vmatprep.mubr.msk.bf16.mxu0 %vm1429_vm2, %v1366_v40  ;;  %v1285_v40 = vmax.f32 %v1157_v18, 0.0  ;;  %v1288_v2 = vmax.f32 %v1160_v53, 0.0  ;;  %v1289_v18 = vmax.f32 %v1161_v59, 0.0  ;;  %v1293_v53 = vmax.f32 %v1165_v21, 0.0 }
 0x25a   : > { %v8502_v54 = vpop.trf.xlu1  ;;  %v1370_v55 = vpack.c.bf16 %v1287_v42, %v1286_v44  ;;  %v1294_v59 = vmax.f32 %v1166_v41, 0.0 }
 0x25b   : > { %v1369_v61 = vpack.c.bf16 %v1285_v40, %v1284_v16  ;;  %v1371_v46 = vpack.c.bf16 %v1289_v18, %v1288_v2  ;;  %v1167_v16 = vadd.f32 %v8532_v8, %v1016_v62 }
 0x25d   : > { %v1017_v3 = vpop.trf.xlu0 }
 0x25e   : > { %v8512_v25 = vpop.trf.xlu1  ;;  %v1168_v37 = vadd.f32 %v8532_v8, %v1017_v3  ;;  %v8552_v3 = vld [vmem:[%s9901_s4] ss:$0 sm:$0xff] }
 0x260   : > { %7589 = vmatmul.mubr.msk.bf16.gmra.mrb[112].mxu0 %vm1429_vm2, %v1367_v13 }
 0x261   : > { %v1018_v56 = vpop.trf.xlu0  ;;  %7592 = vmatprep.mubr.msk.bf16.mxu0 %vm1429_vm2, %v1368_v28  ;;  %v1290_v28 = vmax.f32 %v1162_v17, 0.0 }
 0x262   : > { %v8516_v9 = vpop.trf.xlu1  ;;  %v1169_v36 = vadd.f32 %v8532_v8, %v1018_v56 }
 0x263   : > { %v1372_v40 = vpack.c.bf16 %v1291_v45, %v1290_v28  ;;  %v1296_v45 = vmax.f32 %v1168_v37, 0.0 }
 0x265   : > { %v1019_v60 = vpop.trf.xlu0 }
 0x266   : > { %v8525_v13 = vpop.trf.xlu1  ;;  %v1170_v2 = vadd.f32 %v8532_v8, %v1019_v60 }
 0x268   : > { %7593 = vmatmul.mubr.msk.bf16.gmra.mrb[116].mxu0 %vm1429_vm2, %v1369_v61  ;;  %v1292_v61 = vmax.f32 %v1164_v11, 0.0  ;;  %v1298_v11 = vmax.f32 %v1170_v2, 0.0 }
 0x269   : > { %v1020_v26 = vpop.trf.xlu0  ;;  %7596 = vmatprep.mubr.msk.bf16.mxu0 %vm1429_vm2, %v1370_v55  ;;  %v1295_v55 = vmax.f32 %v1167_v16, 0.0 }
 0x26a   : > { %v8538_v42 = vpop.trf.xlu1  ;;  %v1373_v62 = vpack.c.bf16 %v1293_v53, %v1292_v61  ;;  %v1171_v18 = vadd.f32 %v8532_v8, %v1020_v26 }
 0x26b   : > { %v1374_v10 = vpack.c.bf16 %v1295_v55, %v1294_v59 }
 0x26c   : > { %v1299_v21 = vmax.f32 %v1171_v18, 0.0 }
 0x26d   : > { %v1021_v44 = vpop.trf.xlu0 }
 0x26e   : > { %v8542_v43 = vpop.trf.xlu1  ;;  %v1172_v26 = vadd.f32 %v8532_v8, %v1021_v44  ;;  %v1376_v59 = vpack.c.bf16 %v1299_v21, %v1298_v11  ;;  %v2372_v11 = vld [vmem:[#allocation2 + $0x68] sm:$0xff] }
 0x270   : > { %7597 = vmatmul.mubr.msk.bf16.gmra.mrb[120].mxu0 %vm1429_vm2, %v1371_v46  ;;  %v1297_v46 = vmax.f32 %v1169_v36, 0.0 }
 0x271   : > { %v1022_v17 = vpop.trf.xlu0  ;;  %7600 = vmatprep.mubr.msk.bf16.mxu0 %vm1429_vm2, %v1372_v40 }
 0x272   : > { %v8555_v56 = vpop.trf.xlu1  ;;  %v1375_v16 = vpack.c.bf16 %v1297_v46, %v1296_v45  ;;  %v1173_v40 = vadd.f32 %v8532_v8, %v1022_v17  ;;  %v1300_v17 = vmax.f32 %v1172_v26, 0.0 }
 0x274   : > { %v1301_v46 = vmax.f32 %v1173_v40, 0.0 }
 0x275   : > { %v1023_v28 = vpop.trf.xlu0 }
 0x276   : > { %v1174_v55 = vadd.f32 %v8532_v8, %v1023_v28  ;;  %v8565_v44 = vpop.trf.xlu1  ;;  %v2368_v28 = vld [vmem:[#allocation2 + $0x48] sm:$0xff] }
 0x277   : > { %v8577_v40 = vcombine.high %v2368_v28, %v2372_v11 }
 0x278   : > { %7601 = vmatmul.mubr.msk.bf16.gmra.mrb[124].mxu0 %vm1429_vm2, %v1373_v62  ;;  %v1302_v21 = vmax.f32 %v1174_v55, 0.0 }
 0x279   : > { %v1024_v41 = vpop.trf.xlu0  ;;  %7604 = vmatprep.mubr.msk.bf16.mxu0 %vm1429_vm2, %v1374_v10  ;;  %10111 = vst [vmem:[#allocation42_spill] sm:$0xff] %v8577_v40 }
 0x27a   : > { %v1175_v37 = vadd.f32 %v8532_v8, %v1024_v41 }
 0x27b   : > { %v7510_v60 = vpop.f32.mrb[32].mxu0 }
 0x27c   : > { %v1665_v61 = vadd.f32 %v7510_v60, %v8552_v3  ;;  %v1656_v53 = vpop.f32.mrb[33].mxu0  ;;  %v1303_v41 = vmax.f32 %v1175_v37, 0.0  ;;  %v2376_v37 = vld [vmem:[#allocation2 + $0x88] sm:$0xff] }
 0x27d   : > { %v1657_v36 = vadd.f32 %v8552_v3, %v1656_v53  ;;  %v1025_v62 = vpop.trf.xlu0  ;;  %v7511_v10 = vpop.f32.mrb[34].mxu0 }
 0x27e   : > { %v1668_v2 = vadd.f32 %v7511_v10, %v8552_v3  ;;  %v1659_v18 = vpop.f32.mrb[35].mxu0  ;;  %v2169_v60 = vmax.f32 %v1665_v61, 0.0  ;;  %v1176_v61 = vadd.f32 %v8532_v8, %v1025_v62  ;;  %v8591_v62 = vcombine.low %v2368_v28, %v2372_v11 }
 0x27f   : > { %v1660_v45 = vadd.f32 %v8552_v3, %v1659_v18  ;;  %v2167_v53 = vmax.f32 %v1657_v36, 0.0  ;;  %v8571_v18 = vld [vmem:[#allocation2 + $0x18] sm:$0xff]  ;;  %v2380_v36 = vld [vmem:[#allocation2 + $0xa8] sm:$0xff] }
 0x280   : > { %v2170_v32 = vmax.f32 %v1668_v2, 0.0  ;;  %7605 = vmatmul.mubr.msk.bf16.gmra.mrb[128].mxu0 %vm1429_vm2, %v1375_v16  ;;  %v1377_v16 = vpack.c.bf16 %v1301_v46, %v1300_v17  ;;  %v1378_v2 = vpack.c.bf16 %v1303_v41, %v1302_v21  ;;  %v10113_v17 = vmov 0   ;;  %10114 = vst [vmem:[#allocation44_spill] sm:$0xff] %v8591_v62  ;;  %v2384_v21 = vld [vmem:[#allocation2 + $0xc8] sm:$0xff] }
 0x281   : > { %v2168_v51 = vmax.f32 %v1660_v45, 0.0  ;;  %v1026_v23 = vpop.trf.xlu0  ;;  %7608 = vmatprep.mubr.msk.bf16.mxu0 %vm1429_vm2, %v1376_v59  ;;  %v8586_v59 = vcombine.low %v8571_v18, %v8573_v50  ;;  %v1304_v46 = vmax.f32 %v1176_v61, 0.0  ;;  %v2388_v41 = vld [vmem:[#allocation2 + $0xe8] sm:$0xff]  ;;  %v8600_v28 = vcombine.low %v2376_v37, %v2380_v36 }
 0x282   : > { %v8569_v10 = vpack.c.bf16 %v2170_v32, %v2169_v60  ;;  %v1177_v55 = vadd.f32 %v8532_v8, %v1026_v23  ;;  %v8582_v32 = vpop.trf.xlu1  ;;  %v8594_v23 = vcombine.high %v2376_v37, %v2380_v36  ;;  %v8605_v61 = vcombine.high %v2384_v21, %v2388_v41 }
 0x283   : > { %v8575_v26 = vpack.c.bf16 %v2168_v51, %v2167_v53  ;;  %10112 = vst [vmem:[#allocation43_spill] sm:$0xff] %v8586_v59  ;;  %10116 = vst [vmem:[#allocation46_spill] sm:$0xff] %v8600_v28  ;;  %v1183_v37 = vadd.f32 %v8532_v8, %v8502_v54 }
 0x284   : > { %10115 = vst [vmem:[#allocation45_spill] sm:$0xff] %v8594_v23  ;;  %v1305_v60 = vmax.f32 %v1177_v55, 0.0  ;;  %10117 = vst [vmem:[#allocation47_spill] sm:$0xff] %v8605_v61 }
 0x285   : > { %v1027_v45 = vpop.trf.xlu0  ;;  %2776 = vmatmul.mubr.bf16.vlgmr.msra.gmra.mrb[32].mxu1 %v8575_v26 }
 0x286   : > { %v1178_v51 = vadd.f32 %v8532_v8, %v1027_v45  ;;  %2937 = vmatpush1.bf16.msra.mxu1 %v8327_v30  ;;  %2785 = vmatprep.mubr.bf16.mxu1 %v10113_v17 }
 0x287   : > { %2938 = vmatprep.subr.bf16.mxu1 %v8577_v40  ;;  %v8602_v40 = vpop.trf.xlu1 }
 0x288   : > { %7609 = vmatmul.mubr.msk.bf16.gmra.mrb[132].mxu0 %vm1429_vm2, %v1377_v16  ;;  %v1306_v45 = vmax.f32 %v1178_v51, 0.0  ;;  %v1379_v16 = vpack.c.bf16 %v1305_v60, %v1304_v46  ;;  %v2396_v51 = vld [vmem:[#allocation2 + $0x128] sm:$0xff] }
 0x289   : > { %v1028_v53 = vpop.trf.xlu0  ;;  %7612 = vmatprep.mubr.msk.bf16.mxu0 %vm1429_vm2, %v1378_v2  ;;  %v2392_v2 = vld [vmem:[#allocation2 + $0x108] sm:$0xff] }
 0x28a   : > { %v1179_v30 = vadd.f32 %v8532_v8, %v1028_v53  ;;  %2939 = vmatpush1.bf16.msra.mxu1 %v8591_v62  ;;  %v1182_v53 = vadd.f32 %v8532_v8, %v8498_v58 }
 0x28b   : > { %v7514_v11 = vpop.f32.mrb[36].mxu0  ;;  %2940 = vmatprep.subr.bf16.mxu1 %v8594_v23  ;;  %v8614_v23 = vcombine.low %v2384_v21, %v2388_v41  ;;  %v2400_v21 = vld [vmem:[#allocation2 + $0x148] sm:$0xff] }
 0x28c   : > { %v1307_v55 = vmax.f32 %v1179_v30, 0.0  ;;  %v1681_v57 = vadd.f32 %v7514_v11, %v8552_v3  ;;  %v1672_v52 = vpop.f32.mrb[37].mxu0  ;;  %v2404_v41 = vld [vmem:[#allocation2 + $0x168] sm:$0xff] }
 0x28d   : > { %v1673_v36 = vadd.f32 %v8552_v3, %v1672_v52  ;;  %v1029_v62 = vpop.trf.xlu0  ;;  %v7515_v27 = vpop.f32.mrb[38].mxu0  ;;  %2786 = vmatmul.mubr.bf16.gmra.mrb[36].mxu1 %v8569_v10  ;;  %v8622_v52 = vcombine.high %v2392_v2, %v2396_v51 }
 0x28e   : > { %v1380_v30 = vpack.c.bf16 %v1307_v55, %v1306_v45  ;;  %v1180_v46 = vadd.f32 %v8532_v8, %v1029_v62  ;;  %v1684_v60 = vadd.f32 %v7515_v27, %v8552_v3  ;;  %v1675_v11 = vpop.f32.mrb[39].mxu0  ;;  %2795 = vmatprep.mubr.bf16.mxu1 %v10113_v17  ;;  %2941 = vmatpush1.bf16.msra.mxu1 %v8600_v28  ;;  %v2173_v54 = vmax.f32 %v1681_v57, 0.0  ;;  %v8626_v28 = vpop.trf.xlu1 }
 0x28f   : > { %v1676_v58 = vadd.f32 %v8552_v3, %v1675_v11  ;;  %2942 = vmatprep.subr.bf16.mxu1 %v8605_v61  ;;  %v1310_v62 = vmax.f32 %v1182_v53, 0.0  ;;  %v1311_v45 = vmax.f32 %v1183_v37, 0.0  ;;  %v2171_v27 = vmax.f32 %v1673_v36, 0.0 }
 0x290   : > { %v2174_v15 = vmax.f32 %v1684_v60, 0.0  ;;  %7613 = vmatmul.mubr.msk.bf16.gmra.mrb[136].mxu0 %vm1429_vm2, %v1379_v16  ;;  %v1308_v11 = vmax.f32 %v1180_v46, 0.0  ;;  %v8632_v57 = vcombine.low %v2392_v2, %v2396_v51  ;;  %v8637_v53 = vcombine.high %v2400_v21, %v2404_v41  ;;  %v2412_v46 = vld [vmem:[#allocation2 + $0x1a8] sm:$0xff] }
 0x291   : > { %v2172_v55 = vmax.f32 %v1676_v58, 0.0  ;;  %v1030_v34 = vpop.trf.xlu0  ;;  %7616 = vmatprep.mubr.msk.bf16.mxu0 %vm1429_vm2, %v1380_v30  ;;  %v1184_v37 = vadd.f32 %v8532_v8, %v8512_v25  ;;  %v1185_v36 = vadd.f32 %v8532_v8, %v8516_v9  ;;  %v2408_v30 = vld [vmem:[#allocation2 + $0x188] sm:$0xff]  ;;  %v1186_v2 = vadd.f32 %v8532_v8, %v8525_v13 }
 0x292   : > { %v8628_v12 = vpack.c.bf16 %v2174_v15, %v2173_v54  ;;  %v1181_v61 = vadd.f32 %v8532_v8, %v1030_v34  ;;  %2943 = vmatpush1.bf16.msra.mxu1 %v8614_v23  ;;  %v1382_v34 = vpack.c.bf16 %v1311_v45, %v1310_v62  ;;  %v1187_v51 = vadd.f32 %v8532_v8, %v8538_v42  ;;  %v1059_v9 = vpop.trf.xlu1  ;;  %v2416_v13 = vld [vmem:[#allocation2 + $0x1c8] sm:$0xff] }
 0x293   : > { %v8634_v16 = vpack.c.bf16 %v2172_v55, %v2171_v27  ;;  %2944 = vmatprep.subr.bf16.mxu1 %v8622_v52  ;;  %v8650_v25 = vcombine.low %v2400_v21, %v2404_v41  ;;  %v1312_v58 = vmax.f32 %v1184_v37, 0.0  ;;  %v1313_v54 = vmax.f32 %v1185_v36, 0.0  ;;  %v2420_v42 = vld [vmem:[#allocation2 + $0x1e8] sm:$0xff] }
 0x294   : > { %v1309_v15 = vmax.f32 %v1181_v61, 0.0  ;;  %v8653_v61 = vcombine.high %v2408_v30, %v2412_v46  ;;  %v1314_v62 = vmax.f32 %v1186_v2, 0.0  ;;  %v1315_v45 = vmax.f32 %v1187_v51, 0.0 }
 0x295   : > { %2796 = vmatmul.mubr.bf16.gmra.mrb[40].mxu1 %v8634_v16  ;;  %v8658_v27 = vcombine.low %v2408_v30, %v2412_v46  ;;  %v8661_v41 = vcombine.high %v2416_v13, %v2420_v42  ;;  %v1383_v55 = vpack.c.bf16 %v1313_v54, %v1312_v58  ;;  %v1189_v37 = vadd.f32 %v8532_v8, %v8555_v56 }
 0x296   : > { %v1381_v60 = vpack.c.bf16 %v1309_v15, %v1308_v11  ;;  %2805 = vmatprep.mubr.bf16.mxu1 %v10113_v17  ;;  %2945 = vmatpush1.bf16.msra.mxu1 %v8632_v57  ;;  %10118 = vst [vmem:[#allocation48_spill] sm:$0xff] %v8653_v61  ;;  %v1188_v11 = vadd.f32 %v8532_v8, %v8542_v43 }
 0x297   : > { %2946 = vmatprep.subr.bf16.mxu1 %v8637_v53  ;;  %10119 = vst [vmem:[#allocation49_spill] sm:$0xff] %v8658_v27  ;;  %v1190_v30 = vadd.f32 %v8532_v8, %v8565_v44  ;;  %v1191_v46 = vadd.f32 %v8532_v8, %v8582_v32  ;;  %v8677_v56 = vcombine.low %v2416_v13, %v2420_v42 }
 0x298   : > { %7617 = vmatmul.mubr.msk.bf16.gmra.mrb[140].mxu0 %vm1429_vm2, %v1381_v60  ;;  %v1060_v60 = vpop.trf.xlu1  ;;  %v8683_v32 = vcombine.high %v8571_v18, %v8573_v50  ;;  %v1316_v54 = vmax.f32 %v1188_v11, 0.0  ;;  %v1192_v11 = vadd.f32 %v8532_v8, %v8602_v40 }
 0x299   : > { %7620 = vmatprep.mubr.msk.bf16.mxu0 %vm1429_vm2, %v1382_v34  ;;  %v1384_v34 = vpack.c.bf16 %v1315_v45, %v1314_v62  ;;  %v1317_v62 = vmax.f32 %v1189_v37, 0.0 }
 0x29a   : > { %2947 = vmatpush1.bf16.msra.mxu1 %v8650_v25 }
 0x29b   : > { %v7518_v21 = vpop.f32.mrb[40].mxu0  ;;  %2948 = vmatprep.subr.bf16.mxu1 %v8653_v61  ;;  %v1385_v18 = vpack.c.bf16 %v1317_v62, %v1316_v54 }
 0x29c   : > { %v1697_v36 = vadd.f32 %v7518_v21, %v8552_v3  ;;  %v1688_v15 = vpop.f32.mrb[41].mxu0  ;;  %v1061_v50 = vpop.trf.xlu1 }
 0x29d   : > { %v1689_v2 = vadd.f32 %v8552_v3, %v1688_v15  ;;  %v7519_v51 = vpop.f32.mrb[42].mxu0  ;;  %2806 = vmatmul.mubr.bf16.gmra.mrb[44].mxu1 %v8628_v12  ;;  %v1318_v15 = vmax.f32 %v1190_v30, 0.0 }
 0x29e   : > { %v1700_v43 = vadd.f32 %v7519_v51, %v8552_v3  ;;  %v1691_v58 = vpop.f32.mrb[43].mxu0  ;;  %2815 = vmatprep.mubr.bf16.mxu1 %v10113_v17  ;;  %2949 = vmatpush1.bf16.msra.mxu1 %v8658_v27  ;;  %v2177_v45 = vmax.f32 %v1697_v36, 0.0  ;;  %v1319_v51 = vmax.f32 %v1191_v46, 0.0  ;;  %v1194_v36 = vadd.f32 %v8532_v8, %v1059_v9 }
 0x29f   : > { %v1692_v44 = vadd.f32 %v8552_v3, %v1691_v58  ;;  %2950 = vmatprep.subr.bf16.mxu1 %v8661_v41  ;;  %v2175_v61 = vmax.f32 %v1689_v2, 0.0  ;;  %v1196_v58 = vadd.f32 %v8532_v8, %v1061_v50 }
 0x2a0   : > { %v2178_v21 = vmax.f32 %v1700_v43, 0.0  ;;  %7621 = vmatmul.mubr.msk.bf16.gmra.mrb[144].mxu0 %vm1429_vm2, %v1383_v55  ;;  %v1193_v55 = vadd.f32 %v8532_v8, %v8626_v28  ;;  %v1386_v37 = vpack.c.bf16 %v1319_v51, %v1318_v15  ;;  %v1322_v30 = vmax.f32 %v1194_v36, 0.0  ;;  %v1062_v40 = vpop.trf.xlu1 }
 0x2a1   : > { %v2176_v27 = vmax.f32 %v1692_v44, 0.0  ;;  %7624 = vmatprep.mubr.msk.bf16.mxu0 %vm1429_vm2, %v1384_v34  ;;  %v1195_v34 = vadd.f32 %v8532_v8, %v1060_v60  ;;  %v1197_v60 = vadd.f32 %v8532_v8, %v1062_v40 }
 0x2a2   : > { %v8687_v13 = vpack.c.bf16 %v2178_v21, %v2177_v45  ;;  %2951 = vmatpush1.bf16.msra.mxu1 %v8677_v56 }
 0x2a3   : > { %v8690_v42 = vpack.c.bf16 %v2176_v27, %v2175_v61  ;;  %3322 = vmatprep.subr.bf16.mxu1 %v8683_v32  ;;  %v1320_v61 = vmax.f32 %v1192_v11, 0.0  ;;  %v1321_v27 = vmax.f32 %v1193_v55, 0.0  ;;  %v1323_v46 = vmax.f32 %v1195_v34, 0.0 }
 0x2a4   : > { %v1325_v50 = vmax.f32 %v1197_v60, 0.0 }
 0x2a5   : > { %2816 = vmatmul.mubr.bf16.gmra.mrb[48].mxu1 %v8690_v42  ;;  %v1387_v28 = vpack.c.bf16 %v1321_v27, %v1320_v61  ;;  %v1388_v44 = vpack.c.bf16 %v1323_v46, %v1322_v30 }
 0x2a6   : > { %2825 = vmatprep.mubr.bf16.mxu1 %v10113_v17 }
 0x2a8   : > { %7625 = vmatmul.mubr.msk.bf16.gmra.mrb[148].mxu0 %vm1429_vm2, %v1385_v18  ;;  %v1324_v18 = vmax.f32 %v1196_v58, 0.0 }
 0x2a9   : > { %7628 = vmatprep.mubr.msk.bf16.mxu0 %vm1429_vm2, %v1386_v37 }
 0x2aa   : > { %v1389_v61 = vpack.c.bf16 %v1325_v50, %v1324_v18 }
 0x2ab   : > { %v7522_v2 = vpop.f32.mrb[44].mxu0 }
 0x2ac   : > { %v1713_v43 = vadd.f32 %v7522_v2, %v8552_v3  ;;  %v1704_v9 = vpop.f32.mrb[45].mxu0 }
 0x2ad   : > { %v1705_v54 = vadd.f32 %v8552_v3, %v1704_v9  ;;  %v7523_v62 = vpop.f32.mrb[46].mxu0  ;;  %2826 = vmatmul.mubr.bf16.gmra.mrb[52].mxu1 %v8687_v13 }
 0x2ae   : > { %v1716_v45 = vadd.f32 %v7523_v62, %v8552_v3  ;;  %v1707_v21 = vpop.f32.mrb[47].mxu0  ;;  %2835 = vmatprep.mubr.bf16.mxu1 %v10113_v17  ;;  %v2181_v51 = vmax.f32 %v1713_v43, 0.0 }
 0x2af   : > { %v1708_v15 = vadd.f32 %v8552_v3, %v1707_v21  ;;  %v2179_v8 = vmax.f32 %v1705_v54, 0.0 }
 0x2b0   : > { %v2182_v11 = vmax.f32 %v1716_v45, 0.0  ;;  %7629 = vmatmul.mubr.msk.bf16.gmra.mrb[152].mxu0 %vm1429_vm2, %v1387_v28 }
 0x2b1   : > { %v2180_v55 = vmax.f32 %v1708_v15, 0.0  ;;  %7632 = vmatprep.mubr.msk.bf16.mxu0 %vm1429_vm2, %v1388_v44 }
 0x2b2   : > { %v8713_v37 = vpack.c.bf16 %v2182_v11, %v2181_v51 }
 0x2b3   : > { %v8715_v36 = vpack.c.bf16 %v2180_v55, %v2179_v8  ;;  %v7526_v34 = vpop.f32.mrb[48].mxu0 }
 0x2b4   : > { %v1729_v27 = vadd.f32 %v7526_v34, %v8552_v3  ;;  %v1720_v30 = vpop.f32.mrb[49].mxu0 }
 0x2b5   : > { %v1721_v46 = vadd.f32 %v8552_v3, %v1720_v30  ;;  %2836 = vmatmul.mubr.bf16.gmra.mrb[56].mxu1 %v8715_v36  ;;  %v7527_v40 = vpop.f32.mrb[50].mxu0 }
 0x2b6   : > { %v2185_v2 = vmax.f32 %v1729_v27, 0.0  ;;  %v1732_v28 = vadd.f32 %v7527_v40, %v8552_v3  ;;  %v1723_v43 = vpop.f32.mrb[51].mxu0  ;;  %2845 = vmatprep.mubr.bf16.mxu1 %v10113_v17 }
 0x2b7   : > { %v2183_v9 = vmax.f32 %v1721_v46, 0.0  ;;  %v1724_v58 = vadd.f32 %v8552_v3, %v1723_v43 }
 0x2b8   : > { %v2186_v60 = vmax.f32 %v1732_v28, 0.0  ;;  %7633 = vmatmul.mubr.msk.bf16.gmra.mrb[156].mxu0 %vm1429_vm2, %v1389_v61 }
 0x2b9   : > { %v2184_v44 = vmax.f32 %v1724_v58, 0.0  ;;  %3161 = vmatprep.mubr.bf16.mxu0 %v10113_v17 }
 0x2ba   : > { %v8725_v54 = vpack.c.bf16 %v2186_v60, %v2185_v2 }
 0x2bb   : > { %v8727_v62 = vpack.c.bf16 %v2184_v44, %v2183_v9  ;;  %v7530_v45 = vpop.f32.mrb[52].mxu0 }
 0x2bc   : > { %v1745_v21 = vadd.f32 %v7530_v45, %v8552_v3  ;;  %v1736_v15 = vpop.f32.mrb[53].mxu0 }
 0x2bd   : > { %2846 = vmatmul.mubr.bf16.gmra.mrb[60].mxu1 %v8713_v37  ;;  %v1737_v51 = vadd.f32 %v8552_v3, %v1736_v15  ;;  %v7531_v18 = vpop.f32.mrb[54].mxu0 }
 0x2be   : > { %v2189_v11 = vmax.f32 %v1745_v21, 0.0  ;;  %2855 = vmatprep.mubr.bf16.mxu1 %v10113_v17  ;;  %v1748_v50 = vadd.f32 %v7531_v18, %v8552_v3  ;;  %v1739_v8 = vpop.f32.mrb[55].mxu0 }
 0x2bf   : > { %v2187_v55 = vmax.f32 %v1737_v51, 0.0  ;;  %v1740_v34 = vadd.f32 %v8552_v3, %v1739_v8 }
 0x2c0   : > { %3162 = vmatmul.mubr.bf16.vlgmr.msra.gmra.mrb[160].mxu0 %v8575_v26  ;;  %v2190_v61 = vmax.f32 %v1748_v50, 0.0 }
 0x2c1   : > { %v2188_v27 = vmax.f32 %v1740_v34, 0.0  ;;  %3171 = vmatprep.mubr.bf16.mxu0 %v10113_v17  ;;  %3812 = vmatpush1.bf16.msra.mxu0 %v8218_v31  ;;  %v2406_v31 = vld [vmem:[#allocation2 + $0x178] sm:$0xff] }
 0x2c2   : > { %v8738_v30 = vpack.c.bf16 %v2190_v61, %v2189_v11  ;;  %3813 = vmatprep.subr.bf16.mxu0 %v8230_v39 }
 0x2c3   : > { %v8741_v46 = vpack.c.bf16 %v2188_v27, %v2187_v55  ;;  %v7534_v40 = vpop.f32.mrb[56].mxu0 }
 0x2c4   : > { %v1761_v2 = vadd.f32 %v7534_v40, %v8552_v3  ;;  %v1752_v28 = vpop.f32.mrb[57].mxu0 }
 0x2c5   : > { %2856 = vmatmul.mubr.bf16.gmra.mrb[64].mxu1 %v8727_v62  ;;  %v1753_v43 = vadd.f32 %v8552_v3, %v1752_v28  ;;  %v7535_v9 = vpop.f32.mrb[58].mxu0  ;;  %3814 = vmatpush1.bf16.msra.mxu0 %v8233_v33  ;;  %v2398_v33 = vld [vmem:[#allocation2 + $0x138] sm:$0xff] }
 0x2c6   : > { %2865 = vmatprep.mubr.bf16.mxu1 %v10113_v17  ;;  %v2193_v58 = vmax.f32 %v1761_v2, 0.0  ;;  %v1764_v60 = vadd.f32 %v7535_v9, %v8552_v3  ;;  %v1755_v44 = vpop.f32.mrb[59].mxu0  ;;  %3815 = vmatprep.subr.bf16.mxu0 %v8242_v48  ;;  %v2390_v48 = vld [vmem:[#allocation2 + $0xf8] sm:$0xff] }
 0x2c7   : > { %v2191_v45 = vmax.f32 %v1753_v43, 0.0  ;;  %v1756_v21 = vadd.f32 %v8552_v3, %v1755_v44 }
 0x2c8   : > { %3172 = vmatmul.mubr.bf16.gmra.mrb[164].mxu0 %v8569_v10  ;;  %v2194_v15 = vmax.f32 %v1764_v60, 0.0 }
 0x2c9   : > { %3181 = vmatprep.mubr.bf16.mxu0 %v10113_v17  ;;  %v2192_v51 = vmax.f32 %v1756_v21, 0.0  ;;  %3816 = vmatpush1.bf16.msra.mxu0 %v8248_v19 }
 0x2ca   : > { %v8754_v18 = vpack.c.bf16 %v2194_v15, %v2193_v58  ;;  %3817 = vmatprep.subr.bf16.mxu0 %v8258_v47 }
 0x2cb   : > { %v8757_v11 = vpack.c.bf16 %v2192_v51, %v2191_v45  ;;  %v7538_v50 = vpop.f32.mrb[60].mxu0 }
 0x2cc   : > { %v1777_v8 = vadd.f32 %v7538_v50, %v8552_v3  ;;  %v1768_v55 = vpop.f32.mrb[61].mxu0 }
 0x2cd   : > { %2866 = vmatmul.mubr.bf16.gmra.mrb[68].mxu1 %v8725_v54  ;;  %v1769_v34 = vadd.f32 %v8552_v3, %v1768_v55  ;;  %v7539_v61 = vpop.f32.mrb[62].mxu0  ;;  %3818 = vmatpush1.bf16.msra.mxu0 %v8261_v7  ;;  %v2382_v7 = vld [vmem:[#allocation2 + $0xb8] sm:$0xff] }
 0x2ce   : > { %2875 = vmatprep.mubr.bf16.mxu1 %v10113_v17  ;;  %v2197_v27 = vmax.f32 %v1777_v8, 0.0  ;;  %v1780_v40 = vadd.f32 %v7539_v61, %v8552_v3  ;;  %v1771_v2 = vpop.f32.mrb[63].mxu0  ;;  %3819 = vmatprep.subr.bf16.mxu0 %v8268_v0 }
 0x2cf   : > { %v2195_v28 = vmax.f32 %v1769_v34, 0.0  ;;  %v1772_v43 = vadd.f32 %v8552_v3, %v1771_v2 }
 0x2d0   : > { %3182 = vmatmul.mubr.bf16.gmra.mrb[168].mxu0 %v8634_v16  ;;  %v2198_v9 = vmax.f32 %v1780_v40, 0.0 }
 0x2d1   : > { %3191 = vmatprep.mubr.bf16.mxu0 %v10113_v17  ;;  %v2196_v58 = vmax.f32 %v1772_v43, 0.0  ;;  %3820 = vmatpush1.bf16.msra.mxu0 %v8274_v1 }
 0x2d2   : > { %v8770_v60 = vpack.c.bf16 %v2198_v9, %v2197_v27  ;;  %3821 = vmatprep.subr.bf16.mxu0 %v8282_v22 }
 0x2d3   : > { %v8773_v44 = vpack.c.bf16 %v2196_v58, %v2195_v28  ;;  %v7542_v45 = vpop.f32.mrb[64].mxu0 }
 0x2d4   : > { %v1793_v21 = vadd.f32 %v7542_v45, %v8552_v3  ;;  %v1784_v15 = vpop.f32.mrb[65].mxu0 }
 0x2d5   : > { %2876 = vmatmul.mubr.bf16.gmra.mrb[72].mxu1 %v8741_v46  ;;  %v1785_v51 = vadd.f32 %v8552_v3, %v1784_v15  ;;  %v7543_v50 = vpop.f32.mrb[66].mxu0  ;;  %3822 = vmatpush1.bf16.msra.mxu0 %v8285_v14 }
 0x2d6   : > { %2885 = vmatprep.mubr.bf16.mxu1 %v10113_v17  ;;  %v2201_v8 = vmax.f32 %v1793_v21, 0.0  ;;  %v1796_v55 = vadd.f32 %v7543_v50, %v8552_v3  ;;  %v1787_v34 = vpop.f32.mrb[67].mxu0  ;;  %3823 = vmatprep.subr.bf16.mxu0 %v8292_v4 }
 0x2d7   : > { %v2199_v61 = vmax.f32 %v1785_v51, 0.0  ;;  %v1788_v27 = vadd.f32 %v8552_v3, %v1787_v34 }
 0x2d8   : > { %3192 = vmatmul.mubr.bf16.gmra.mrb[172].mxu0 %v8628_v12  ;;  %v2202_v40 = vmax.f32 %v1796_v55, 0.0 }
 0x2d9   : > { %3201 = vmatprep.mubr.bf16.mxu0 %v10113_v17  ;;  %v2200_v2 = vmax.f32 %v1788_v27, 0.0  ;;  %3824 = vmatpush1.bf16.msra.mxu0 %v8296_v38 }
 0x2da   : > { %v8786_v28 = vpack.c.bf16 %v2202_v40, %v2201_v8  ;;  %3825 = vmatprep.subr.bf16.mxu0 %v8304_v20 }
 0x2db   : > { %v8789_v43 = vpack.c.bf16 %v2200_v2, %v2199_v61  ;;  %v7546_v9 = vpop.f32.mrb[68].mxu0 }
 0x2dc   : > { %v1809_v58 = vadd.f32 %v7546_v9, %v8552_v3  ;;  %v1800_v45 = vpop.f32.mrb[69].mxu0 }
 0x2dd   : > { %2886 = vmatmul.mubr.bf16.gmra.mrb[76].mxu1 %v8738_v30  ;;  %v1801_v21 = vadd.f32 %v8552_v3, %v1800_v45  ;;  %v7547_v15 = vpop.f32.mrb[70].mxu0  ;;  %3826 = vmatpush1.bf16.msra.mxu0 %v8307_v6 }
 0x2de   : > { %2895 = vmatprep.mubr.bf16.mxu1 %v10113_v17  ;;  %v2205_v51 = vmax.f32 %v1809_v58, 0.0  ;;  %v1812_v50 = vadd.f32 %v7547_v15, %v8552_v3  ;;  %v1803_v8 = vpop.f32.mrb[71].mxu0  ;;  %4197 = vmatprep.subr.bf16.mxu0 %v8323_v63 }
 0x2df   : > { %v2203_v55 = vmax.f32 %v1801_v21, 0.0  ;;  %v1804_v34 = vadd.f32 %v8552_v3, %v1803_v8 }
 0x2e0   : > { %3202 = vmatmul.mubr.bf16.gmra.mrb[176].mxu0 %v8690_v42  ;;  %v2206_v61 = vmax.f32 %v1812_v50, 0.0 }
 0x2e1   : > { %3211 = vmatprep.mubr.bf16.mxu0 %v10113_v17  ;;  %v2204_v27 = vmax.f32 %v1804_v34, 0.0 }
 0x2e2   : > { %v8801_v40 = vpack.c.bf16 %v2206_v61, %v2205_v51 }
 0x2e3   : > { %v8803_v2 = vpack.c.bf16 %v2204_v27, %v2203_v55  ;;  %v7550_v9 = vpop.f32.mrb[72].mxu0 }
 0x2e4   : > { %v1825_v58 = vadd.f32 %v7550_v9, %v8552_v3  ;;  %v1816_v45 = vpop.f32.mrb[73].mxu0 }
 0x2e5   : > { %2896 = vmatmul.mubr.bf16.gmra.mrb[80].mxu1 %v8757_v11  ;;  %v1817_v21 = vadd.f32 %v8552_v3, %v1816_v45  ;;  %v7551_v15 = vpop.f32.mrb[74].mxu0 }
 0x2e6   : > { %2905 = vmatprep.mubr.bf16.mxu1 %v10113_v17  ;;  %v2209_v8 = vmax.f32 %v1825_v58, 0.0  ;;  %v1828_v50 = vadd.f32 %v7551_v15, %v8552_v3  ;;  %v1819_v63 = vpop.f32.mrb[75].mxu0 }
 0x2e7   : > { %v2207_v34 = vmax.f32 %v1817_v21, 0.0  ;;  %v1820_v51 = vadd.f32 %v8552_v3, %v1819_v63 }
 0x2e8   : > { %3212 = vmatmul.mubr.bf16.gmra.mrb[180].mxu0 %v8687_v13  ;;  %v2210_v55 = vmax.f32 %v1828_v50, 0.0 }
 0x2e9   : > { %3221 = vmatprep.mubr.bf16.mxu0 %v10113_v17  ;;  %v2208_v61 = vmax.f32 %v1820_v51, 0.0 }
 0x2ea   : > { %v8813_v27 = vpack.c.bf16 %v2210_v55, %v2209_v8 }
 0x2eb   : > { %v8815_v9 = vpack.c.bf16 %v2208_v61, %v2207_v34  ;;  %v7554_v45 = vpop.f32.mrb[76].mxu0 }
 0x2ec   : > { %v1841_v6 = vadd.f32 %v7554_v45, %v8552_v3  ;;  %v1832_v58 = vpop.f32.mrb[77].mxu0 }
 0x2ed   : > { %2906 = vmatmul.mubr.bf16.gmra.mrb[84].mxu1 %v8754_v18  ;;  %v1833_v21 = vadd.f32 %v8552_v3, %v1832_v58  ;;  %v7555_v15 = vpop.f32.mrb[78].mxu0 }
 0x2ee   : > { %2915 = vmatprep.mubr.bf16.mxu1 %v10113_v17  ;;  %v2213_v63 = vmax.f32 %v1841_v6, 0.0  ;;  %v1844_v50 = vadd.f32 %v7555_v15, %v8552_v3  ;;  %v1835_v20 = vpop.f32.mrb[79].mxu0 }
 0x2ef   : > { %v2211_v51 = vmax.f32 %v1833_v21, 0.0  ;;  %v1836_v8 = vadd.f32 %v8552_v3, %v1835_v20 }
 0x2f0   : > { %3222 = vmatmul.mubr.bf16.gmra.mrb[184].mxu0 %v8715_v36  ;;  %v2214_v34 = vmax.f32 %v1844_v50, 0.0 }
 0x2f1   : > { %3231 = vmatprep.mubr.bf16.mxu0 %v10113_v17  ;;  %v2212_v55 = vmax.f32 %v1836_v8, 0.0 }
 0x2f2   : > { %v8825_v61 = vpack.c.bf16 %v2214_v34, %v2213_v63 }
 0x2f3   : > { %v8827_v45 = vpack.c.bf16 %v2212_v55, %v2211_v51  ;;  %v7558_v58 = vpop.f32.mrb[80].mxu0 }
 0x2f4   : > { %v1857_v38 = vadd.f32 %v7558_v58, %v8552_v3  ;;  %v1848_v6 = vpop.f32.mrb[81].mxu0 }
 0x2f5   : > { %2916 = vmatmul.mubr.bf16.gmra.mrb[88].mxu1 %v8773_v44  ;;  %v1849_v21 = vadd.f32 %v8552_v3, %v1848_v6  ;;  %v7559_v15 = vpop.f32.mrb[82].mxu0 }
 0x2f6   : > { %2925 = vmatprep.mubr.bf16.mxu1 %v10113_v17  ;;  %v2217_v20 = vmax.f32 %v1857_v38, 0.0  ;;  %v1860_v50 = vadd.f32 %v7559_v15, %v8552_v3  ;;  %v1851_v4 = vpop.f32.mrb[83].mxu0 }
 0x2f7   : > { %v2215_v8 = vmax.f32 %v1849_v21, 0.0  ;;  %v1852_v63 = vadd.f32 %v8552_v3, %v1851_v4 }
 0x2f8   : > { %3232 = vmatmul.mubr.bf16.gmra.mrb[188].mxu0 %v8713_v37  ;;  %v2218_v51 = vmax.f32 %v1860_v50, 0.0 }
 0x2f9   : > { %3241 = vmatprep.mubr.bf16.mxu0 %v10113_v17  ;;  %v2216_v34 = vmax.f32 %v1852_v63, 0.0 }
 0x2fa   : > { %v8837_v55 = vpack.c.bf16 %v2218_v51, %v2217_v20  ;;  %v2374_v51 = vld [vmem:[#allocation2 + $0x78] sm:$0xff] }
 0x2fb   : > { %v8839_v58 = vpack.c.bf16 %v2216_v34, %v2215_v8  ;;  %v7562_v6 = vpop.f32.mrb[84].mxu0  ;;  %v2370_v8 = vld [vmem:[#allocation2 + $0x58] sm:$0xff] }
 0x2fc   : > { %v1873_v14 = vadd.f32 %v7562_v6, %v8552_v3  ;;  %v1864_v38 = vpop.f32.mrb[85].mxu0 }
 0x2fd   : > { %2926 = vmatmul.mubr.bf16.gmra.mrb[92].mxu1 %v8770_v60  ;;  %v1865_v21 = vadd.f32 %v8552_v3, %v1864_v38  ;;  %v7563_v15 = vpop.f32.mrb[86].mxu0  ;;  %v8851_v38 = vcombine.high %v2370_v8, %v2374_v51 }
 0x2fe   : > { %2968 = vmatprep.mubr.bf16.mxu1 %v10113_v17  ;;  %v2221_v4 = vmax.f32 %v1873_v14, 0.0  ;;  %v1876_v50 = vadd.f32 %v7563_v15, %v8552_v3  ;;  %v1867_v22 = vpop.f32.mrb[87].mxu0  ;;  %v2378_v15 = vld [vmem:[#allocation2 + $0x98] sm:$0xff] }
 0x2ff   : > { %v2219_v63 = vmax.f32 %v1865_v21, 0.0  ;;  %v1868_v20 = vadd.f32 %v8552_v3, %v1867_v22  ;;  %10120 = vst [vmem:[#allocation50_spill] sm:$0xff] %v8851_v38 }
 0x300   : > { %3242 = vmatmul.mubr.bf16.gmra.mrb[192].mxu0 %v8727_v62  ;;  %v2222_v34 = vmax.f32 %v1876_v50, 0.0 }
 0x301   : > { %3251 = vmatprep.mubr.bf16.mxu0 %v10113_v17  ;;  %v2220_v6 = vmax.f32 %v1868_v20, 0.0 }
 0x302   : > { %v8849_v1 = vpack.c.bf16 %v2222_v34, %v2221_v4  ;;  %v8860_v4 = vcombine.low %v2370_v8, %v2374_v51  ;;  %v8870_v51 = vcombine.low %v2378_v15, %v2382_v7 }
 0x303   : > { %v8853_v0 = vpack.c.bf16 %v2220_v6, %v2219_v63  ;;  %v7566_v14 = vpop.f32.mrb[88].mxu0  ;;  %v8864_v6 = vcombine.high %v2378_v15, %v2382_v7 }
 0x304   : > { %v1889_v21 = vadd.f32 %v7566_v14, %v8552_v3  ;;  %v1880_v22 = vpop.f32.mrb[89].mxu0  ;;  %10121 = vst [vmem:[#allocation51_spill] sm:$0xff] %v8860_v4  ;;  %10123 = vst [vmem:[#allocation53_spill] sm:$0xff] %v8870_v51 }
 0x305   : > { %2969 = vmatmul.mubr.bf16.vlgmr.msra.gmra.mrb[96].mxu1 %v8575_v26  ;;  %v1881_v47 = vadd.f32 %v8552_v3, %v1880_v22  ;;  %v7567_v50 = vpop.f32.mrb[90].mxu0  ;;  %10122 = vst [vmem:[#allocation52_spill] sm:$0xff] %v8864_v6  ;;  %v2386_v22 = vld [vmem:[#allocation2 + $0xd8] sm:$0xff] }
 0x306   : > { %3323 = vmatpush1.bf16.msra.mxu1 %v8586_v59  ;;  %2978 = vmatprep.mubr.bf16.mxu1 %v10113_v17  ;;  %v2225_v20 = vmax.f32 %v1889_v21, 0.0  ;;  %v1892_v63 = vadd.f32 %v7567_v50, %v8552_v3  ;;  %v1883_v34 = vpop.f32.mrb[91].mxu0  ;;  %v8875_v50 = vcombine.high %v2386_v22, %v2390_v48 }
 0x307   : > { %3324 = vmatprep.subr.bf16.mxu1 %v8851_v38  ;;  %v2223_v14 = vmax.f32 %v1881_v47, 0.0  ;;  %v1884_v19 = vadd.f32 %v8552_v3, %v1883_v34  ;;  %v2394_v38 = vld [vmem:[#allocation2 + $0x118] sm:$0xff] }
 0x308   : > { %3252 = vmatmul.mubr.bf16.gmra.mrb[196].mxu0 %v8725_v54  ;;  %v2226_v59 = vmax.f32 %v1892_v63, 0.0  ;;  %10125 = vst [vmem:[#allocation55_spill] sm:$0xff] %v8875_v50 }
 0x309   : > { %3261 = vmatprep.mubr.bf16.mxu0 %v10113_v17  ;;  %v2224_v8 = vmax.f32 %v1884_v19, 0.0 }
 0x30a   : > { %3325 = vmatpush1.bf16.msra.mxu1 %v8860_v4  ;;  %v8872_v21 = vpack.c.bf16 %v2226_v59, %v2225_v20  ;;  %v8884_v59 = vcombine.low %v2386_v22, %v2390_v48  ;;  %v2402_v4 = vld [vmem:[#allocation2 + $0x158] sm:$0xff]  ;;  %v8894_v22 = vcombine.low %v2394_v38, %v2398_v33 }
 0x30b   : > { %3326 = vmatprep.subr.bf16.mxu1 %v8864_v6  ;;  %v8877_v47 = vpack.c.bf16 %v2224_v8, %v2223_v14  ;;  %v7570_v34 = vpop.f32.mrb[92].mxu0  ;;  %v8888_v8 = vcombine.high %v2394_v38, %v2398_v33 }
 0x30c   : > { %10124 = vst [vmem:[#allocation54_spill] sm:$0xff] %v8872_v21  ;;  %v1905_v63 = vadd.f32 %v7570_v34, %v8552_v3  ;;  %v1896_v39 = vpop.f32.mrb[93].mxu0  ;;  %10126 = vst [vmem:[#allocation56_spill] sm:$0xff] %v8884_v59  ;;  %v2414_v21 = vld [vmem:[#allocation2 + $0x1b8] sm:$0xff] }
 0x30d   : > { %2979 = vmatmul.mubr.bf16.gmra.mrb[100].mxu1 %v8569_v10  ;;  %v1897_v19 = vadd.f32 %v8552_v3, %v1896_v39  ;;  %v7571_v7 = vpop.f32.mrb[94].mxu0  ;;  %10127 = vst [vmem:[#allocation57_spill] sm:$0xff] %v8888_v8  ;;  %10128 = vst [vmem:[#allocation58_spill] sm:$0xff] %v8894_v22 }
 0x30e   : > { %2988 = vmatprep.mubr.bf16.mxu1 %v10113_v17  ;;  %3327 = vmatpush1.bf16.msra.mxu1 %v8870_v51  ;;  %v2229_v15 = vmax.f32 %v1905_v63, 0.0  ;;  %v1908_v20 = vadd.f32 %v7571_v7, %v8552_v3  ;;  %v1899_v14 = vpop.f32.mrb[95].mxu0  ;;  %v2410_v51 = vld [vmem:[#allocation2 + $0x198] sm:$0xff] }
 0x30f   : > { %3328 = vmatprep.subr.bf16.mxu1 %v8875_v50  ;;  %v2227_v34 = vmax.f32 %v1897_v19, 0.0  ;;  %v1900_v6 = vadd.f32 %v8552_v3, %v1899_v14  ;;  %v8901_v14 = vcombine.high %v2402_v4, %v2406_v31 }
 0x310   : > { %3262 = vmatmul.mubr.bf16.gmra.mrb[200].mxu0 %v8741_v46  ;;  %v2230_v39 = vmax.f32 %v1908_v20, 0.0 }
 0x311   : > { %3271 = vmatprep.mubr.bf16.mxu0 %v10113_v17  ;;  %v2228_v48 = vmax.f32 %v1900_v6, 0.0  ;;  %10130 = vst [vmem:[#allocation60_spill] sm:$0xff] %v8901_v14 }
 0x312   : > { %3329 = vmatpush1.bf16.msra.mxu1 %v8884_v59  ;;  %v8896_v63 = vpack.c.bf16 %v2230_v39, %v2229_v15  ;;  %v2418_v59 = vld [vmem:[#allocation2 + $0x1d8] sm:$0xff] }
 0x313   : > { %3330 = vmatprep.subr.bf16.mxu1 %v8888_v8  ;;  %v8899_v7 = vpack.c.bf16 %v2228_v48, %v2227_v34  ;;  %v7574_v19 = vpop.f32.mrb[96].mxu0  ;;  %v8909_v34 = vcombine.low %v2402_v4, %v2406_v31  ;;  %v8913_v8 = vcombine.high %v2410_v51, %v2414_v21  ;;  %v8920_v31 = vcombine.low %v2410_v51, %v2414_v21 }
 0x314   : > { %10129 = vst [vmem:[#allocation59_spill] sm:$0xff] %v8896_v63  ;;  %v1921_v20 = vadd.f32 %v7574_v19, %v8552_v3  ;;  %v1912_v50 = vpop.f32.mrb[97].mxu0  ;;  %v2422_v63 = vld [vmem:[#allocation2 + $0x1f8] sm:$0xff] }
 0x315   : > { %2989 = vmatmul.mubr.bf16.gmra.mrb[104].mxu1 %v8634_v16  ;;  %v1913_v6 = vadd.f32 %v8552_v3, %v1912_v50  ;;  %v7575_v33 = vpop.f32.mrb[98].mxu0  ;;  %10131 = vst [vmem:[#allocation61_spill] sm:$0xff] %v8909_v34  ;;  %10132 = vst [vmem:[#allocation62_spill] sm:$0xff] %v8913_v8 }
 0x316   : > { %2998 = vmatprep.mubr.bf16.mxu1 %v10113_v17  ;;  %3331 = vmatpush1.bf16.msra.mxu1 %v8894_v22  ;;  %v2233_v38 = vmax.f32 %v1921_v20, 0.0  ;;  %v1924_v15 = vadd.f32 %v7575_v33, %v8552_v3  ;;  %v1915_v39 = vpop.f32.mrb[99].mxu0  ;;  %10134 = vst [vmem:[#allocation64_spill] sm:$0xff] %v8920_v31  ;;  %v8925_v33 = vcombine.high %v2418_v59, %v2422_v63 }
 0x317   : > { %v2231_v48 = vmax.f32 %v1913_v6, 0.0  ;;  %3332 = vmatprep.subr.bf16.mxu1 %v8901_v14  ;;  %v1916_v19 = vadd.f32 %v8552_v3, %v1915_v39 }
 0x318   : > { %3272 = vmatmul.mubr.bf16.gmra.mrb[204].mxu0 %v8738_v30  ;;  %v2234_v50 = vmax.f32 %v1924_v15, 0.0  ;;  %10136 = vst [vmem:[#allocation66_spill] sm:$0xff] %v8925_v33 }
 0x319   : > { %3281 = vmatprep.mubr.bf16.mxu0 %v10113_v17  ;;  %v2232_v20 = vmax.f32 %v1916_v19, 0.0 }
 0x31a   : > { %v8917_v22 = vpack.c.bf16 %v2234_v50, %v2233_v38  ;;  %3333 = vmatpush1.bf16.msra.mxu1 %v8909_v34 }
 0x31b   : > { %v8922_v4 = vpack.c.bf16 %v2232_v20, %v2231_v48  ;;  %v7578_v6 = vpop.f32.mrb[100].mxu0  ;;  %3334 = vmatprep.subr.bf16.mxu1 %v8913_v8  ;;  %v8933_v48 = vcombine.low %v2418_v59, %v2422_v63 }
 0x31c   : > { %10133 = vst [vmem:[#allocation63_spill] sm:$0xff] %v8917_v22  ;;  %v1937_v15 = vadd.f32 %v7578_v6, %v8552_v3  ;;  %v1928_v39 = vpop.f32.mrb[101].mxu0  ;;  %v8938_v6 = vld [vmem:[%s9901_s4] ss:$0 sm:$0xff] }
 0x31d   : > { %10135 = vst [vmem:[#allocation65_spill] sm:$0xff] %v8922_v4  ;;  %2999 = vmatmul.mubr.bf16.gmra.mrb[108].mxu1 %v8628_v12  ;;  %v1929_v19 = vadd.f32 %v8552_v3, %v1928_v39  ;;  %v7579_v38 = vpop.f32.mrb[102].mxu0  ;;  %10137 = vst [vmem:[#allocation67_spill] sm:$0xff] %v8933_v48 }
 0x31e   : > { %3008 = vmatprep.mubr.bf16.mxu1 %v10113_v17  ;;  %v2237_v50 = vmax.f32 %v1937_v15, 0.0  ;;  %v1940_v51 = vadd.f32 %v7579_v38, %v8552_v3  ;;  %v1931_v21 = vpop.f32.mrb[103].mxu0  ;;  %3335 = vmatpush1.bf16.msra.mxu1 %v8920_v31 }
 0x31f   : > { %v2235_v20 = vmax.f32 %v1929_v19, 0.0  ;;  %v1932_v22 = vadd.f32 %v8938_v6, %v1931_v21  ;;  %3336 = vmatprep.subr.bf16.mxu1 %v8925_v33 }
 0x320   : > { %3282 = vmatmul.mubr.bf16.gmra.mrb[208].mxu0 %v8757_v11  ;;  %v2238_v15 = vmax.f32 %v1940_v51, 0.0 }
 0x321   : > { %3291 = vmatprep.mubr.bf16.mxu0 %v10113_v17  ;;  %v2236_v3 = vmax.f32 %v1932_v22, 0.0 }
 0x322   : > { %v8944_v39 = vpack.c.bf16 %v2238_v15, %v2237_v50  ;;  %3337 = vmatpush1.bf16.msra.mxu1 %v8933_v48 }
 0x323   : > { %v8947_v59 = vpack.c.bf16 %v2236_v3, %v2235_v20  ;;  %v7582_v63 = vpop.f32.mrb[104].mxu0  ;;  %4004 = vmatprep.subr.bf16.mxu1 %v8320_v24 }
 0x324   : > { %10138 = vst [vmem:[#allocation68_spill] sm:$0xff] %v8944_v39  ;;  %v1953_v19 = vadd.f32 %v8938_v6, %v7582_v63  ;;  %v1944_v38 = vpop.f32.mrb[105].mxu0 }
 0x325   : > { %10139 = vst [vmem:[#allocation69_spill] sm:$0xff] %v8947_v59  ;;  %3009 = vmatmul.mubr.bf16.gmra.mrb[112].mxu1 %v8690_v42  ;;  %v1945_v21 = vadd.f32 %v8938_v6, %v1944_v38  ;;  %v7583_v51 = vpop.f32.mrb[106].mxu0 }
 0x326   : > { %3018 = vmatprep.mubr.bf16.mxu1 %v10113_v17  ;;  %v2241_v22 = vmax.f32 %v1953_v19, 0.0  ;;  %v1956_v50 = vadd.f32 %v8938_v6, %v7583_v51  ;;  %v1947_v15 = vpop.f32.mrb[107].mxu0 }
 0x327   : > { %v2239_v39 = vmax.f32 %v1945_v21, 0.0  ;;  %v1948_v20 = vadd.f32 %v8938_v6, %v1947_v15 }
 0x328   : > { %3292 = vmatmul.mubr.bf16.gmra.mrb[212].mxu0 %v8754_v18  ;;  %v2242_v3 = vmax.f32 %v1956_v50, 0.0 }
 0x329   : > { %3301 = vmatprep.mubr.bf16.mxu0 %v10113_v17  ;;  %v2240_v63 = vmax.f32 %v1948_v20, 0.0 }
 0x32a   : > { %v8958_v59 = vpack.c.bf16 %v2242_v3, %v2241_v22 }
 0x32b   : > { %v8960_v4 = vpack.c.bf16 %v2240_v63, %v2239_v39  ;;  %v7586_v38 = vpop.f32.mrb[108].mxu0 }
 0x32c   : > { %10140 = vst [vmem:[#allocation70_spill] sm:$0xff] %v8958_v59  ;;  %v1969_v24 = vadd.f32 %v8938_v6, %v7586_v38  ;;  %v1960_v19 = vpop.f32.mrb[109].mxu0 }
 0x32d   : > { %10141 = vst [vmem:[#allocation71_spill] sm:$0xff] %v8960_v4  ;;  %3019 = vmatmul.mubr.bf16.gmra.mrb[116].mxu1 %v8687_v13  ;;  %v1961_v21 = vadd.f32 %v8938_v6, %v1960_v19  ;;  %v7587_v51 = vpop.f32.mrb[110].mxu0 }
 0x32e   : > { %3028 = vmatprep.mubr.bf16.mxu1 %v10113_v17  ;;  %v2245_v15 = vmax.f32 %v1969_v24, 0.0  ;;  %v1972_v50 = vadd.f32 %v8938_v6, %v7587_v51  ;;  %v1963_v48 = vpop.f32.mrb[111].mxu0 }
 0x32f   : > { %v2243_v20 = vmax.f32 %v1961_v21, 0.0  ;;  %v1964_v22 = vadd.f32 %v8938_v6, %v1963_v48 }
 0x330   : > { %3302 = vmatmul.mubr.bf16.gmra.mrb[216].mxu0 %v8773_v44  ;;  %v2246_v39 = vmax.f32 %v1972_v50, 0.0 }
 0x331   : > { %3311 = vmatprep.mubr.bf16.mxu0 %v10113_v17  ;;  %v2244_v3 = vmax.f32 %v1964_v22, 0.0 }
 0x332   : > { %v8970_v63 = vpack.c.bf16 %v2246_v39, %v2245_v15 }
 0x333   : > { %v8972_v38 = vpack.c.bf16 %v2244_v3, %v2243_v20  ;;  %v7590_v19 = vpop.f32.mrb[112].mxu0 }
 0x334   : > { %10142 = vst [vmem:[#allocation72_spill] sm:$0xff] %v8970_v63  ;;  %v1985_v59 = vadd.f32 %v8938_v6, %v7590_v19  ;;  %v1976_v24 = vpop.f32.mrb[113].mxu0 }
 0x335   : > { %10143 = vst [vmem:[#allocation73_spill] sm:$0xff] %v8972_v38  ;;  %3029 = vmatmul.mubr.bf16.gmra.mrb[120].mxu1 %v8715_v36  ;;  %v1977_v21 = vadd.f32 %v8938_v6, %v1976_v24  ;;  %v7591_v51 = vpop.f32.mrb[114].mxu0 }
 0x336   : > { %3038 = vmatprep.mubr.bf16.mxu1 %v10113_v17  ;;  %v2249_v48 = vmax.f32 %v1985_v59, 0.0  ;;  %v1988_v50 = vadd.f32 %v8938_v6, %v7591_v51  ;;  %v1979_v4 = vpop.f32.mrb[115].mxu0 }
 0x337   : > { %v2247_v22 = vmax.f32 %v1977_v21, 0.0  ;;  %v1980_v15 = vadd.f32 %v8938_v6, %v1979_v4 }
 0x338   : > { %3312 = vmatmul.mubr.bf16.gmra.mrb[220].mxu0 %v8770_v60  ;;  %v2250_v20 = vmax.f32 %v1988_v50, 0.0 }
 0x339   : > { %3843 = vmatprep.mubr.bf16.mxu0 %v10113_v17  ;;  %v2248_v39 = vmax.f32 %v1980_v15, 0.0 }
 0x33a   : > { %v8982_v3 = vpack.c.bf16 %v2250_v20, %v2249_v48 }
 0x33b   : > { %v8984_v19 = vpack.c.bf16 %v2248_v39, %v2247_v22  ;;  %v7594_v24 = vpop.f32.mrb[116].mxu0 }
 0x33c   : > { %10144 = vst [vmem:[#allocation74_spill] sm:$0xff] %v8982_v3  ;;  %v2001_v63 = vadd.f32 %v8938_v6, %v7594_v24  ;;  %v1992_v59 = vpop.f32.mrb[117].mxu0 }
 0x33d   : > { %10145 = vst [vmem:[#allocation75_spill] sm:$0xff] %v8984_v19  ;;  %3039 = vmatmul.mubr.bf16.gmra.mrb[124].mxu1 %v8713_v37  ;;  %v1993_v21 = vadd.f32 %v8938_v6, %v1992_v59  ;;  %v7595_v51 = vpop.f32.mrb[118].mxu0  ;;  %v10152_v19 = vld [vmem:[#allocation33_spill] sm:$0xff] }
 0x33e   : > { %3048 = vmatprep.mubr.bf16.mxu1 %v10113_v17  ;;  %v2253_v4 = vmax.f32 %v2001_v63, 0.0  ;;  %v2004_v50 = vadd.f32 %v8938_v6, %v7595_v51  ;;  %v1995_v38 = vpop.f32.mrb[119].mxu0 }
 0x33f   : > { %v2251_v15 = vmax.f32 %v1993_v21, 0.0  ;;  %v1996_v48 = vadd.f32 %v8938_v6, %v1995_v38 }
 0x340   : > { %3844 = vmatmul.mubr.bf16.vlgmr.msra.gmra.mrb[224].mxu0 %v8789_v43  ;;  %v2254_v22 = vmax.f32 %v2004_v50, 0.0 }
 0x341   : > { %3853 = vmatprep.mubr.bf16.mxu0 %v10113_v17  ;;  %v2252_v20 = vmax.f32 %v1996_v48, 0.0  ;;  %4198 = vmatpush1.bf16.msra.mxu0 %v8325_v29 }
 0x342   : > { %v8995_v39 = vpack.c.bf16 %v2254_v22, %v2253_v4  ;;  %4199 = vmatprep.subr.bf16.mxu0 %v8382_v5 }
 0x343   : > { %v8998_v24 = vpack.c.bf16 %v2252_v20, %v2251_v15  ;;  %v7598_v63 = vpop.f32.mrb[120].mxu0 }
 0x344   : > { %10146 = vst [vmem:[#allocation76_spill] sm:$0xff] %v8995_v39  ;;  %v2017_v59 = vadd.f32 %v8938_v6, %v7598_v63  ;;  %v2008_v21 = vpop.f32.mrb[121].mxu0 }
 0x345   : > { %10147 = vst [vmem:[#allocation77_spill] sm:$0xff] %v8998_v24  ;;  %3049 = vmatmul.mubr.bf16.gmra.mrb[128].mxu1 %v8727_v62  ;;  %v2009_v38 = vadd.f32 %v8938_v6, %v2008_v21  ;;  %v7599_v51 = vpop.f32.mrb[122].mxu0  ;;  %4200 = vmatpush1.bf16.msra.mxu0 %v8384_v35  ;;  %v10148_v21 = vld [vmem:[#allocation31_spill] sm:$0xff]  ;;  %v10150_v24 = vld [vmem:[#allocation32_spill] sm:$0xff] }
 0x346   : > { %3058 = vmatprep.mubr.bf16.mxu1 %v10113_v17  ;;  %v2257_v50 = vmax.f32 %v2017_v59, 0.0  ;;  %v2020_v4 = vadd.f32 %v8938_v6, %v7599_v51  ;;  %v2011_v48 = vpop.f32.mrb[123].mxu0  ;;  %4201 = vmatprep.subr.bf16.mxu0 %v8398_v49 }
 0x347   : > { %v2255_v15 = vmax.f32 %v2009_v38, 0.0  ;;  %v2012_v22 = vadd.f32 %v8938_v6, %v2011_v48 }
 0x348   : > { %3854 = vmatmul.mubr.bf16.gmra.mrb[228].mxu0 %v8786_v28  ;;  %v2258_v20 = vmax.f32 %v2020_v4, 0.0 }
 0x349   : > { %3863 = vmatprep.mubr.bf16.mxu0 %v10113_v17  ;;  %v2256_v63 = vmax.f32 %v2012_v22, 0.0  ;;  %4202 = vmatpush1.bf16.msra.mxu0 %v10148_v21  ;;  %v10158_v21 = vld [vmem:[#allocation37_spill] sm:$0xff] }
 0x34a   : > { %v9011_v39 = vpack.c.bf16 %v2258_v20, %v2257_v50  ;;  %4203 = vmatprep.subr.bf16.mxu0 %v10150_v24  ;;  %v10156_v24 = vld [vmem:[#allocation36_spill] sm:$0xff] }
 0x34b   : > { %v9014_v59 = vpack.c.bf16 %v2256_v63, %v2255_v15  ;;  %v7602_v51 = vpop.f32.mrb[124].mxu0 }
 0x34c   : > { %10149 = vst [vmem:[#allocation78_spill] sm:$0xff] %v9011_v39  ;;  %v2033_v3 = vadd.f32 %v8938_v6, %v7602_v51  ;;  %v2024_v38 = vpop.f32.mrb[125].mxu0  ;;  %v10153_v39 = vld [vmem:[#allocation34_spill] sm:$0xff] }
 0x34d   : > { %10151 = vst [vmem:[#allocation79_spill] sm:$0xff] %v9014_v59  ;;  %3059 = vmatmul.mubr.bf16.gmra.mrb[132].mxu1 %v8725_v54  ;;  %v2025_v48 = vadd.f32 %v8938_v6, %v2024_v38  ;;  %v7603_v4 = vpop.f32.mrb[126].mxu0  ;;  %4204 = vmatpush1.bf16.msra.mxu0 %v10152_v19  ;;  %v10154_v59 = vld [vmem:[#allocation35_spill] sm:$0xff] }
 0x34e   : > { %3068 = vmatprep.mubr.bf16.mxu1 %v10113_v17  ;;  %v2261_v22 = vmax.f32 %v2033_v3, 0.0  ;;  %v2036_v50 = vadd.f32 %v8938_v6, %v7603_v4  ;;  %v2027_v20 = vpop.f32.mrb[127].mxu0  ;;  %4205 = vmatprep.subr.bf16.mxu0 %v10153_v39 }
 0x34f   : > { %v2259_v15 = vmax.f32 %v2025_v48, 0.0  ;;  %v2028_v63 = vadd.f32 %v8938_v6, %v2027_v20 }
 0x350   : > { %3864 = vmatmul.mubr.bf16.gmra.mrb[232].mxu0 %v8803_v2  ;;  %v2262_v51 = vmax.f32 %v2036_v50, 0.0 }
 0x351   : > { %3873 = vmatprep.mubr.bf16.mxu0 %v10113_v17  ;;  %v2260_v38 = vmax.f32 %v2028_v63, 0.0  ;;  %4206 = vmatpush1.bf16.msra.mxu0 %v10154_v59 }
 0x352   : > { %v9027_v19 = vpack.c.bf16 %v2262_v51, %v2261_v22  ;;  %4207 = vmatprep.subr.bf16.mxu0 %v10156_v24 }
 0x353   : > { %v9030_v3 = vpack.c.bf16 %v2260_v38, %v2259_v15  ;;  %v7606_v4 = vpop.f32.mrb[128].mxu0 }
 0x354   : > { %10155 = vst [vmem:[#allocation80_spill] sm:$0xff] %v9027_v19  ;;  %v2049_v39 = vadd.f32 %v8938_v6, %v7606_v4  ;;  %v2040_v48 = vpop.f32.mrb[129].mxu0  ;;  %v10159_v19 = vld [vmem:[#allocation38_spill] sm:$0xff] }
 0x355   : > { %10157 = vst [vmem:[#allocation81_spill] sm:$0xff] %v9030_v3  ;;  %3069 = vmatmul.mubr.bf16.gmra.mrb[136].mxu1 %v8741_v46  ;;  %v2041_v20 = vadd.f32 %v8938_v6, %v2040_v48  ;;  %v7607_v50 = vpop.f32.mrb[130].mxu0  ;;  %4208 = vmatpush1.bf16.msra.mxu0 %v10158_v21  ;;  %v10160_v21 = vld [vmem:[#allocation39_spill] sm:$0xff] }
 0x356   : > { %3078 = vmatprep.mubr.bf16.mxu1 %v10113_v17  ;;  %v2265_v63 = vmax.f32 %v2049_v39, 0.0  ;;  %v2052_v22 = vadd.f32 %v8938_v6, %v7607_v50  ;;  %v2043_v51 = vpop.f32.mrb[131].mxu0  ;;  %4209 = vmatprep.subr.bf16.mxu0 %v10159_v19  ;;  %v10162_v50 = vld [vmem:[#allocation40_spill] sm:$0xff] }
 0x357   : > { %v2263_v15 = vmax.f32 %v2041_v20, 0.0  ;;  %v2044_v38 = vadd.f32 %v8938_v6, %v2043_v51 }
 0x358   : > { %v2777_v4 = vpop.f32.mrb[32].mxu1  ;;  %3874 = vmatmul.mubr.bf16.gmra.mrb[236].mxu0 %v8801_v40  ;;  %v2266_v3 = vmax.f32 %v2052_v22, 0.0 }
 0x359   : > { %v2779_v24 = vpop.f32.mrb[33].mxu1  ;;  %3883 = vmatprep.mubr.bf16.mxu0 %v10113_v17  ;;  %v2264_v48 = vmax.f32 %v2044_v38, 0.0  ;;  %4210 = vmatpush1.bf16.msra.mxu0 %v10160_v21  ;;  %v10164_v21 = vld [vmem:[#allocation41_spill] sm:$0xff] }
 0x35a   : > { %v2781_v59 = vpop.f32.mrb[34].mxu1  ;;  %v9043_v39 = vpack.c.bf16 %v2266_v3, %v2265_v63  ;;  %4211 = vmatprep.subr.bf16.mxu0 %v10162_v50 }
 0x35b   : > { %v3515_v49 = vmax.f32 %v2777_v4, %v2781_v59  ;;  %v2783_v19 = vpop.f32.mrb[35].mxu1  ;;  %v9046_v20 = vpack.c.bf16 %v2264_v48, %v2263_v15  ;;  %v7610_v51 = vpop.f32.mrb[132].mxu0  ;;  %v10165_v15 = vld [vmem:[#allocation8_spill] sm:$0xff] }
 0x35c   : > { %10161 = vst [vmem:[#allocation82_spill] sm:$0xff] %v9043_v39  ;;  %v3552_v35 = vmax.f32 %v2779_v24, %v2783_v19  ;;  %v2065_v5 = vadd.f32 %v8938_v6, %v7610_v51  ;;  %v2056_v22 = vpop.f32.mrb[133].mxu0 }
 0x35d   : > { %10163 = vst [vmem:[#allocation83_spill] sm:$0xff] %v9046_v20  ;;  %3079 = vmatmul.mubr.bf16.gmra.mrb[140].mxu1 %v8738_v30  ;;  %v2057_v38 = vadd.f32 %v8938_v6, %v2056_v22  ;;  %v7611_v29 = vpop.f32.mrb[134].mxu0  ;;  %4212 = vmatpush1.bf16.msra.mxu0 %v10164_v21 }
 0x35e   : > { %3088 = vmatprep.mubr.bf16.mxu1 %v10113_v17  ;;  %v2269_v3 = vmax.f32 %v2065_v5, 0.0  ;;  %v2068_v59 = vadd.f32 %v8938_v6, %v7611_v29  ;;  %v2059_v63 = vpop.f32.mrb[135].mxu0  ;;  %4887 = vmatprep.subr.bf16.mxu0 %v10165_v15 }
 0x35f   : > { %v2267_v4 = vmax.f32 %v2057_v38, 0.0  ;;  %v2060_v19 = vadd.f32 %v8938_v6, %v2059_v63 }
 0x360   : > { %v2787_v24 = vpop.f32.mrb[36].mxu1  ;;  %3884 = vmatmul.mubr.bf16.gmra.mrb[240].mxu0 %v8815_v9  ;;  %v2270_v48 = vmax.f32 %v2068_v59, 0.0 }
 0x361   : > { %v3516_v51 = vmax.f32 %v3515_v49, %v2787_v24  ;;  %v2789_v22 = vpop.f32.mrb[37].mxu1  ;;  %3893 = vmatprep.mubr.bf16.mxu0 %v10113_v17  ;;  %v2268_v39 = vmax.f32 %v2060_v19, 0.0 }
 0x362   : > { %v3553_v20 = vmax.f32 %v3552_v35, %v2789_v22  ;;  %v2791_v21 = vpop.f32.mrb[38].mxu1  ;;  %v9058_v5 = vpack.c.bf16 %v2270_v48, %v2269_v3 }
 0x363   : > { %v3517_v29 = vmax.f32 %v3516_v51, %v2791_v21  ;;  %v2793_v50 = vpop.f32.mrb[39].mxu1  ;;  %v9060_v33 = vpack.c.bf16 %v2268_v39, %v2267_v4  ;;  %v7614_v38 = vpop.f32.mrb[136].mxu0 }
 0x364   : > { %10166 = vst [vmem:[#allocation84_spill] sm:$0xff] %v9058_v5  ;;  %v3554_v15 = vmax.f32 %v3553_v20, %v2793_v50  ;;  %v2081_v63 = vadd.f32 %v8938_v6, %v7614_v38  ;;  %v2072_v31 = vpop.f32.mrb[137].mxu0 }
 0x365   : > { %10167 = vst [vmem:[#allocation85_spill] sm:$0xff] %v9060_v33  ;;  %3089 = vmatmul.mubr.bf16.gmra.mrb[144].mxu1 %v8757_v11  ;;  %v2073_v49 = vadd.f32 %v8938_v6, %v2072_v31  ;;  %v7615_v59 = vpop.f32.mrb[138].mxu0 }
 0x366   : > { %3098 = vmatprep.mubr.bf16.mxu1 %v10113_v17  ;;  %v2273_v35 = vmax.f32 %v2081_v63, 0.0  ;;  %v2084_v3 = vadd.f32 %v8938_v6, %v7615_v59  ;;  %v2075_v19 = vpop.f32.mrb[139].mxu0 }
 0x367   : > { %v2271_v21 = vmax.f32 %v2073_v49, 0.0  ;;  %v2076_v39 = vadd.f32 %v8938_v6, %v2075_v19 }
 0x368   : > { %v2797_v4 = vpop.f32.mrb[40].mxu1  ;;  %3894 = vmatmul.mubr.bf16.gmra.mrb[244].mxu0 %v8813_v27  ;;  %v2274_v50 = vmax.f32 %v2084_v3, 0.0 }
 0x369   : > { %v3518_v20 = vmax.f32 %v3517_v29, %v2797_v4  ;;  %v2799_v24 = vpop.f32.mrb[41].mxu1  ;;  %3903 = vmatprep.mubr.bf16.mxu0 %v10113_v17  ;;  %v2272_v48 = vmax.f32 %v2076_v39, 0.0 }
 0x36a   : > { %v3555_v31 = vmax.f32 %v3554_v15, %v2799_v24  ;;  %v2801_v51 = vpop.f32.mrb[42].mxu1  ;;  %v9070_v22 = vpack.c.bf16 %v2274_v50, %v2273_v35 }
 0x36b   : > { %v3519_v38 = vmax.f32 %v3518_v20, %v2801_v51  ;;  %v2803_v63 = vpop.f32.mrb[43].mxu1  ;;  %v9072_v59 = vpack.c.bf16 %v2272_v48, %v2271_v21  ;;  %v7618_v49 = vpop.f32.mrb[140].mxu0 }
 0x36c   : > { %10168 = vst [vmem:[#allocation86_spill] sm:$0xff] %v9070_v22  ;;  %v3556_v5 = vmax.f32 %v3555_v31, %v2803_v63  ;;  %v2097_v19 = vadd.f32 %v8938_v6, %v7618_v49  ;;  %v2088_v33 = vpop.f32.mrb[141].mxu0 }
 0x36d   : > { %10169 = vst [vmem:[#allocation87_spill] sm:$0xff] %v9072_v59  ;;  %3099 = vmatmul.mubr.bf16.gmra.mrb[148].mxu1 %v8754_v18  ;;  %v2089_v29 = vadd.f32 %v8938_v6, %v2088_v33  ;;  %v7619_v3 = vpop.f32.mrb[142].mxu0 }
 0x36e   : > { %3108 = vmatprep.mubr.bf16.mxu1 %v10113_v17  ;;  %v2277_v15 = vmax.f32 %v2097_v19, 0.0  ;;  %v2100_v35 = vadd.f32 %v8938_v6, %v7619_v3  ;;  %v2091_v39 = vpop.f32.mrb[143].mxu0 }
 0x36f   : > { %v2275_v4 = vmax.f32 %v2089_v29, 0.0  ;;  %v2092_v21 = vadd.f32 %v8938_v6, %v2091_v39 }
 0x370   : > { %v2807_v50 = vpop.f32.mrb[44].mxu1  ;;  %3904 = vmatmul.mubr.bf16.gmra.mrb[248].mxu0 %v8827_v45  ;;  %v2278_v20 = vmax.f32 %v2100_v35, 0.0 }
 0x371   : > { %v3520_v24 = vmax.f32 %v3519_v38, %v2807_v50  ;;  %v2809_v48 = vpop.f32.mrb[45].mxu1  ;;  %3913 = vmatprep.mubr.bf16.mxu0 %v10113_v17  ;;  %v2276_v31 = vmax.f32 %v2092_v21, 0.0 }
 0x372   : > { %v3557_v33 = vmax.f32 %v3556_v5, %v2809_v48  ;;  %v2811_v51 = vpop.f32.mrb[46].mxu1  ;;  %v9082_v63 = vpack.c.bf16 %v2278_v20, %v2277_v15 }
 0x373   : > { %v3521_v49 = vmax.f32 %v3520_v24, %v2811_v51  ;;  %v2813_v19 = vpop.f32.mrb[47].mxu1  ;;  %v9084_v3 = vpack.c.bf16 %v2276_v31, %v2275_v4  ;;  %v7622_v29 = vpop.f32.mrb[144].mxu0 }
 0x374   : > { %10170 = vst [vmem:[#allocation88_spill] sm:$0xff] %v9082_v63  ;;  %v3558_v22 = vmax.f32 %v3557_v33, %v2813_v19  ;;  %v2113_v39 = vadd.f32 %v8938_v6, %v7622_v29  ;;  %v2104_v59 = vpop.f32.mrb[145].mxu0 }
 0x375   : > { %10171 = vst [vmem:[#allocation89_spill] sm:$0xff] %v9084_v3  ;;  %3109 = vmatmul.mubr.bf16.gmra.mrb[152].mxu1 %v8773_v44  ;;  %v2105_v38 = vadd.f32 %v8938_v6, %v2104_v59  ;;  %v7623_v35 = vpop.f32.mrb[146].mxu0 }
 0x376   : > { %3118 = vmatprep.mubr.bf16.mxu1 %v10113_v17  ;;  %v2281_v5 = vmax.f32 %v2113_v39, 0.0  ;;  %v2116_v15 = vadd.f32 %v8938_v6, %v7623_v35  ;;  %v2107_v21 = vpop.f32.mrb[147].mxu0 }
 0x377   : > { %v2279_v50 = vmax.f32 %v2105_v38, 0.0  ;;  %v2108_v4 = vadd.f32 %v8938_v6, %v2107_v21 }
 0x378   : > { %v2817_v20 = vpop.f32.mrb[48].mxu1  ;;  %3914 = vmatmul.mubr.bf16.gmra.mrb[252].mxu0 %v8825_v61  ;;  %v2282_v24 = vmax.f32 %v2116_v15, 0.0 }
 0x379   : > { %v3522_v48 = vmax.f32 %v3521_v49, %v2817_v20  ;;  %v2819_v31 = vpop.f32.mrb[49].mxu1  ;;  %3923 = vmatprep.mubr.bf16.mxu0 %v10113_v17  ;;  %v2280_v33 = vmax.f32 %v2108_v4, 0.0 }
 0x37a   : > { %v3559_v59 = vmax.f32 %v3558_v22, %v2819_v31  ;;  %v2821_v51 = vpop.f32.mrb[50].mxu1  ;;  %v9094_v19 = vpack.c.bf16 %v2282_v24, %v2281_v5 }
 0x37b   : > { %v3523_v29 = vmax.f32 %v3522_v48, %v2821_v51  ;;  %v2823_v39 = vpop.f32.mrb[51].mxu1  ;;  %v9096_v35 = vpack.c.bf16 %v2280_v33, %v2279_v50  ;;  %v7626_v38 = vpop.f32.mrb[148].mxu0 }
 0x37c   : > { %10172 = vst [vmem:[#allocation90_spill] sm:$0xff] %v9094_v19  ;;  %v3560_v63 = vmax.f32 %v3559_v59, %v2823_v39  ;;  %v2129_v21 = vadd.f32 %v8938_v6, %v7626_v38  ;;  %v2120_v3 = vpop.f32.mrb[149].mxu0 }
 0x37d   : > { %10173 = vst [vmem:[#allocation91_spill] sm:$0xff] %v9096_v35  ;;  %3119 = vmatmul.mubr.bf16.gmra.mrb[156].mxu1 %v8770_v60  ;;  %v2121_v49 = vadd.f32 %v8938_v6, %v2120_v3  ;;  %v7627_v15 = vpop.f32.mrb[150].mxu0 }
 0x37e   : > { %3354 = vmatprep.mubr.bf16.mxu1 %v10113_v17  ;;  %v2285_v22 = vmax.f32 %v2129_v21, 0.0  ;;  %v2132_v5 = vadd.f32 %v8938_v6, %v7627_v15  ;;  %v2123_v4 = vpop.f32.mrb[151].mxu0 }
 0x37f   : > { %v2283_v20 = vmax.f32 %v2121_v49, 0.0  ;;  %v2124_v50 = vadd.f32 %v8938_v6, %v2123_v4 }
 0x380   : > { %v2827_v24 = vpop.f32.mrb[52].mxu1  ;;  %3924 = vmatmul.mubr.bf16.gmra.mrb[0].mxu0 %v8839_v58  ;;  %v2286_v48 = vmax.f32 %v2132_v5, 0.0 }
 0x381   : > { %v3524_v31 = vmax.f32 %v3523_v29, %v2827_v24  ;;  %v2829_v33 = vpop.f32.mrb[53].mxu1  ;;  %3933 = vmatprep.mubr.bf16.mxu0 %v10113_v17  ;;  %v2284_v59 = vmax.f32 %v2124_v50, 0.0  ;;  %v10176_v24 = vld [vmem:[#allocation27_spill] sm:$0xff] }
 0x382   : > { %v3561_v3 = vmax.f32 %v3560_v63, %v2829_v33  ;;  %v2831_v51 = vpop.f32.mrb[54].mxu1  ;;  %v9106_v39 = vpack.c.bf16 %v2286_v48, %v2285_v22 }
 0x383   : > { %v3525_v38 = vmax.f32 %v3524_v31, %v2831_v51  ;;  %v2833_v21 = vpop.f32.mrb[55].mxu1  ;;  %v9108_v15 = vpack.c.bf16 %v2284_v59, %v2283_v20  ;;  %v7630_v49 = vpop.f32.mrb[152].mxu0  ;;  %v10177_v31 = vld [vmem:[#allocation42_spill] sm:$0xff] }
 0x384   : > { %10174 = vst [vmem:[#allocation92_spill] sm:$0xff] %v9106_v39  ;;  %v3562_v19 = vmax.f32 %v3561_v3, %v2833_v21  ;;  %v2145_v4 = vadd.f32 %v8938_v6, %v7630_v49  ;;  %v2136_v35 = vpop.f32.mrb[153].mxu0 }
 0x385   : > { %10175 = vst [vmem:[#allocation93_spill] sm:$0xff] %v9108_v15  ;;  %3355 = vmatmul.mubr.bf16.vlgmr.msra.gmra.mrb[160].mxu1 %v8575_v26  ;;  %v2137_v29 = vadd.f32 %v8938_v6, %v2136_v35  ;;  %v7631_v5 = vpop.f32.mrb[154].mxu0  ;;  %v10181_v15 = vld [vmem:[#allocation45_spill] sm:$0xff] }
 0x386   : > { %4005 = vmatpush1.bf16.msra.mxu1 %v10176_v24  ;;  %v2289_v63 = vmax.f32 %v2145_v4, 0.0  ;;  %3364 = vmatprep.mubr.bf16.mxu1 %v10113_v17  ;;  %v2148_v22 = vadd.f32 %v8938_v6, %v7631_v5  ;;  %v2139_v50 = vpop.f32.mrb[155].mxu0  ;;  %v10179_v4 = vld [vmem:[#allocation44_spill] sm:$0xff] }
 0x387   : > { %v2287_v20 = vmax.f32 %v2137_v29, 0.0  ;;  %v2140_v48 = vadd.f32 %v8938_v6, %v2139_v50  ;;  %4006 = vmatprep.subr.bf16.mxu1 %v10177_v31 }
 0x388   : > { %v2837_v33 = vpop.f32.mrb[56].mxu1  ;;  %3934 = vmatmul.mubr.bf16.gmra.mrb[4].mxu0 %v8837_v55  ;;  %v2290_v26 = vmax.f32 %v2148_v22, 0.0 }
 0x389   : > { %v3526_v59 = vmax.f32 %v3525_v38, %v2837_v33  ;;  %v2839_v35 = vpop.f32.mrb[57].mxu1  ;;  %v2288_v3 = vmax.f32 %v2140_v48, 0.0  ;;  %3943 = vmatprep.mubr.bf16.mxu0 %v10113_v17 }
 0x38a   : > { %v3563_v51 = vmax.f32 %v3562_v19, %v2839_v35  ;;  %v2841_v21 = vpop.f32.mrb[58].mxu1  ;;  %v9120_v49 = vpack.c.bf16 %v2290_v26, %v2289_v63  ;;  %4007 = vmatpush1.bf16.msra.mxu1 %v10179_v4 }
 0x38b   : > { %v3527_v29 = vmax.f32 %v3526_v59, %v2841_v21  ;;  %v2843_v5 = vpop.f32.mrb[59].mxu1  ;;  %v9123_v50 = vpack.c.bf16 %v2288_v3, %v2287_v20  ;;  %v7634_v39 = vpop.f32.mrb[156].mxu0  ;;  %4008 = vmatprep.subr.bf16.mxu1 %v10181_v15  ;;  %v10182_v20 = vld [vmem:[#allocation46_spill] sm:$0xff]  ;;  %v10183_v3 = vld [vmem:[#allocation47_spill] sm:$0xff] }
 0x38c   : > { %10178 = vst [vmem:[#allocation94_spill] sm:$0xff] %v9120_v49  ;;  %v3564_v31 = vmax.f32 %v3563_v51, %v2843_v5  ;;  %v2161_v38 = vadd.f32 %v8938_v6, %v7634_v39  ;;  %v2152_v22 = vpop.f32.mrb[157].mxu0 }
 0x38d   : > { %10180 = vst [vmem:[#allocation44_spill] sm:$0xff] %v9123_v50  ;;  %3365 = vmatmul.mubr.bf16.gmra.mrb[164].mxu1 %v8569_v10  ;;  %v2153_v19 = vadd.f32 %v8938_v6, %v2152_v22  ;;  %v7635_v48 = vpop.f32.mrb[158].mxu0 }
 0x38e   : > { %v2293_v63 = vmax.f32 %v2161_v38, 0.0  ;;  %v2164_v33 = vadd.f32 %v8938_v6, %v7635_v48  ;;  %v2155_v26 = vpop.f32.mrb[159].mxu0  ;;  %3374 = vmatprep.mubr.bf16.mxu1 %v10113_v17  ;;  %4009 = vmatpush1.bf16.msra.mxu1 %v10182_v20 }
 0x38f   : > { %v2291_v59 = vmax.f32 %v2153_v19, 0.0  ;;  %v2156_v35 = vadd.f32 %v8938_v6, %v2155_v26  ;;  %4010 = vmatprep.subr.bf16.mxu1 %v10183_v3 }
 0x390   : > { %v2847_v39 = vpop.f32.mrb[60].mxu1  ;;  %3944 = vmatmul.mubr.bf16.gmra.mrb[8].mxu0 %v8853_v0  ;;  %v2294_v10 = vmax.f32 %v2164_v33, 0.0 }
 0x391   : > { %v3528_v51 = vmax.f32 %v3527_v29, %v2847_v39  ;;  %v2849_v21 = vpop.f32.mrb[61].mxu1  ;;  %v2292_v5 = vmax.f32 %v2156_v35, 0.0  ;;  %3953 = vmatprep.mubr.bf16.mxu0 %v10113_v17 }
 0x392   : > { %v9136_v38 = vpack.c.bf16 %v2294_v10, %v2293_v63  ;;  %v3565_v22 = vmax.f32 %v3564_v31, %v2849_v21  ;;  %v2851_v48 = vpop.f32.mrb[62].mxu1  ;;  %4011 = vmatpush1.bf16.msra.mxu1 %v8614_v23 }
 0x393   : > { %v9139_v19 = vpack.c.bf16 %v2292_v5, %v2291_v59  ;;  %v3529_v6 = vmax.f32 %v3528_v51, %v2851_v48  ;;  %v2853_v26 = vpop.f32.mrb[63].mxu1  ;;  %v3163_v49 = vpop.f32.mrb[160].mxu0  ;;  %4012 = vmatprep.subr.bf16.mxu1 %v8622_v52 }
 0x394   : > { %10184 = vst [vmem:[#allocation95_spill] sm:$0xff] %v9136_v38  ;;  %v3566_v50 = vmax.f32 %v3565_v22, %v2853_v26  ;;  %v3165_v33 = vpop.f32.mrb[161].mxu0  ;;  %v10186_v22 = vld [vmem:[#allocation48_spill] sm:$0xff]  ;;  %v10188_v38 = vld [vmem:[#allocation54_spill] sm:$0xff] }
 0x395   : > { %10185 = vst [vmem:[#allocation96_spill] sm:$0xff] %v9139_v19  ;;  %v3167_v29 = vpop.f32.mrb[162].mxu0  ;;  %3375 = vmatmul.mubr.bf16.gmra.mrb[168].mxu1 %v8634_v16 }
 0x396   : > { %v3663_v35 = vmax.f32 %v3163_v49, %v3167_v29  ;;  %v3169_v39 = vpop.f32.mrb[163].mxu0  ;;  %3384 = vmatprep.mubr.bf16.mxu1 %v10113_v17  ;;  %4013 = vmatpush1.bf16.msra.mxu1 %v8632_v57 }
 0x397   : > { %v3700_v31 = vmax.f32 %v3165_v33, %v3169_v39  ;;  %4014 = vmatprep.subr.bf16.mxu1 %v8637_v53 }
 0x398   : > { %v2857_v63 = vpop.f32.mrb[64].mxu1  ;;  %3954 = vmatmul.mubr.bf16.gmra.mrb[12].mxu0 %v8849_v1 }
 0x399   : > { %v3530_v59 = vmax.f32 %v3529_v6, %v2857_v63  ;;  %v2859_v10 = vpop.f32.mrb[65].mxu1  ;;  %3963 = vmatprep.mubr.bf16.mxu0 %v10113_v17 }
 0x39a   : > { %v3567_v51 = vmax.f32 %v3566_v50, %v2859_v10  ;;  %v2861_v21 = vpop.f32.mrb[66].mxu1  ;;  %4015 = vmatpush1.bf16.msra.mxu1 %v8650_v25  ;;  %v10187_v50 = vld [vmem:[#allocation49_spill] sm:$0xff] }
 0x39b   : > { %v3531_v16 = vmax.f32 %v3530_v59, %v2861_v21  ;;  %v2863_v49 = vpop.f32.mrb[67].mxu1  ;;  %v3173_v5 = vpop.f32.mrb[164].mxu0  ;;  %4016 = vmatprep.subr.bf16.mxu1 %v10186_v22 }
 0x39c   : > { %v3568_v48 = vmax.f32 %v3567_v51, %v2863_v49  ;;  %v3664_v26 = vmax.f32 %v3663_v35, %v3173_v5  ;;  %v3175_v33 = vpop.f32.mrb[165].mxu0 }
 0x39d   : > { %v3701_v29 = vmax.f32 %v3700_v31, %v3175_v33  ;;  %v3177_v39 = vpop.f32.mrb[166].mxu0  ;;  %3385 = vmatmul.mubr.bf16.gmra.mrb[172].mxu1 %v8628_v12 }
 0x39e   : > { %v3665_v6 = vmax.f32 %v3664_v26, %v3177_v39  ;;  %v3179_v63 = vpop.f32.mrb[167].mxu0  ;;  %3394 = vmatprep.mubr.bf16.mxu1 %v10113_v17  ;;  %4017 = vmatpush1.bf16.msra.mxu1 %v10187_v50 }
 0x39f   : > { %v3702_v10 = vmax.f32 %v3701_v29, %v3179_v63  ;;  %4018 = vmatprep.subr.bf16.mxu1 %v8661_v41 }
 0x3a0   : > { %v2867_v59 = vpop.f32.mrb[68].mxu1  ;;  %3964 = vmatmul.mubr.bf16.gmra.mrb[16].mxu0 %v8877_v47 }
 0x3a1   : > { %v3532_v21 = vmax.f32 %v3531_v16, %v2867_v59  ;;  %v2869_v51 = vpop.f32.mrb[69].mxu1  ;;  %3973 = vmatprep.mubr.bf16.mxu0 %v10113_v17 }
 0x3a2   : > { %v3569_v35 = vmax.f32 %v3568_v48, %v2869_v51  ;;  %v2871_v31 = vpop.f32.mrb[70].mxu1  ;;  %4019 = vmatpush1.bf16.msra.mxu1 %v8677_v56 }
 0x3a3   : > { %v3533_v12 = vmax.f32 %v3532_v21, %v2871_v31  ;;  %v2873_v49 = vpop.f32.mrb[71].mxu1  ;;  %v3183_v5 = vpop.f32.mrb[168].mxu0  ;;  %4390 = vmatprep.subr.bf16.mxu1 %v8683_v32 }
 0x3a4   : > { %v3570_v26 = vmax.f32 %v3569_v35, %v2873_v49  ;;  %v3666_v33 = vmax.f32 %v3665_v6, %v3183_v5  ;;  %v3185_v29 = vpop.f32.mrb[169].mxu0 }
 0x3a5   : > { %v3703_v39 = vmax.f32 %v3702_v10, %v3185_v29  ;;  %v3187_v63 = vpop.f32.mrb[170].mxu0  ;;  %3395 = vmatmul.mubr.bf16.gmra.mrb[176].mxu1 %v8690_v42 }
 0x3a6   : > { %v3667_v16 = vmax.f32 %v3666_v33, %v3187_v63  ;;  %v3189_v59 = vpop.f32.mrb[171].mxu0  ;;  %3404 = vmatprep.mubr.bf16.mxu1 %v10113_v17 }
 0x3a7   : > { %v3704_v48 = vmax.f32 %v3703_v39, %v3189_v59 }
 0x3a8   : > { %v2877_v51 = vpop.f32.mrb[72].mxu1  ;;  %3974 = vmatmul.mubr.bf16.gmra.mrb[20].mxu0 %v10188_v38 }
 0x3a9   : > { %v3534_v21 = vmax.f32 %v3533_v12, %v2877_v51  ;;  %v2879_v31 = vpop.f32.mrb[73].mxu1  ;;  %3983 = vmatprep.mubr.bf16.mxu0 %v10113_v17 }
 0x3aa   : > { %v3571_v19 = vmax.f32 %v3570_v26, %v2879_v31  ;;  %v2881_v35 = vpop.f32.mrb[74].mxu1 }
 0x3ab   : > { %v3535_v6 = vmax.f32 %v3534_v21, %v2881_v35  ;;  %v2883_v49 = vpop.f32.mrb[75].mxu1  ;;  %v3193_v10 = vpop.f32.mrb[172].mxu0 }
 0x3ac   : > { %v3572_v5 = vmax.f32 %v3571_v19, %v2883_v49  ;;  %v3668_v29 = vmax.f32 %v3667_v16, %v3193_v10  ;;  %v3195_v42 = vpop.f32.mrb[173].mxu0 }
 0x3ad   : > { %v3705_v33 = vmax.f32 %v3704_v48, %v3195_v42  ;;  %v3197_v63 = vpop.f32.mrb[174].mxu0  ;;  %3405 = vmatmul.mubr.bf16.gmra.mrb[180].mxu1 %v8687_v13 }
 0x3ae   : > { %v3669_v39 = vmax.f32 %v3668_v29, %v3197_v63  ;;  %v3199_v59 = vpop.f32.mrb[175].mxu0  ;;  %3414 = vmatprep.mubr.bf16.mxu1 %v10113_v17 }
 0x3af   : > { %v3706_v12 = vmax.f32 %v3705_v33, %v3199_v59 }
 0x3b0   : > { %v2887_v51 = vpop.f32.mrb[76].mxu1  ;;  %3984 = vmatmul.mubr.bf16.gmra.mrb[24].mxu0 %v8899_v7 }
 0x3b1   : > { %v3536_v26 = vmax.f32 %v3535_v6, %v2887_v51  ;;  %v2889_v31 = vpop.f32.mrb[77].mxu1  ;;  %3993 = vmatprep.mubr.bf16.mxu0 %v10113_v17  ;;  %v10189_v51 = vld [vmem:[#allocation59_spill] sm:$0xff] }
 0x3b2   : > { %v3573_v21 = vmax.f32 %v3572_v5, %v2889_v31  ;;  %v2891_v19 = vpop.f32.mrb[78].mxu1 }
 0x3b3   : > { %v3537_v16 = vmax.f32 %v3536_v26, %v2891_v19  ;;  %v2893_v35 = vpop.f32.mrb[79].mxu1  ;;  %v3203_v48 = vpop.f32.mrb[176].mxu0 }
 0x3b4   : > { %v3574_v49 = vmax.f32 %v3573_v21, %v2893_v35  ;;  %v3670_v10 = vmax.f32 %v3669_v39, %v3203_v48  ;;  %v3205_v13 = vpop.f32.mrb[177].mxu0 }
 0x3b5   : > { %v3707_v29 = vmax.f32 %v3706_v12, %v3205_v13  ;;  %v3207_v42 = vpop.f32.mrb[178].mxu0  ;;  %3415 = vmatmul.mubr.bf16.gmra.mrb[184].mxu1 %v8715_v36 }
 0x3b6   : > { %v3671_v33 = vmax.f32 %v3670_v10, %v3207_v42  ;;  %v3209_v63 = vpop.f32.mrb[179].mxu0  ;;  %3424 = vmatprep.mubr.bf16.mxu1 %v10113_v17 }
 0x3b7   : > { %v3708_v6 = vmax.f32 %v3707_v29, %v3209_v63 }
 0x3b8   : > { %v2897_v59 = vpop.f32.mrb[80].mxu1  ;;  %3994 = vmatmul.mubr.bf16.gmra.mrb[28].mxu0 %v10189_v51 }
 0x3b9   : > { %v3538_v5 = vmax.f32 %v3537_v16, %v2897_v59  ;;  %v2899_v31 = vpop.f32.mrb[81].mxu1  ;;  %4229 = vmatprep.mubr.bf16.mxu0 %v10113_v17 }
 0x3ba   : > { %v3575_v26 = vmax.f32 %v3574_v49, %v2899_v31  ;;  %v2901_v21 = vpop.f32.mrb[82].mxu1 }
 0x3bb   : > { %v3539_v39 = vmax.f32 %v3538_v5, %v2901_v21  ;;  %v2903_v19 = vpop.f32.mrb[83].mxu1  ;;  %v3213_v12 = vpop.f32.mrb[180].mxu0  ;;  %v10190_v5 = vld [vmem:[#allocation9_spill] sm:$0xff] }
 0x3bc   : > { %v3576_v35 = vmax.f32 %v3575_v26, %v2903_v19  ;;  %v3672_v48 = vmax.f32 %v3671_v33, %v3213_v12  ;;  %v3215_v36 = vpop.f32.mrb[181].mxu0 }
 0x3bd   : > { %v3709_v10 = vmax.f32 %v3708_v6, %v3215_v36  ;;  %v3217_v13 = vpop.f32.mrb[182].mxu0  ;;  %3425 = vmatmul.mubr.bf16.gmra.mrb[188].mxu1 %v8713_v37  ;;  %v10191_v6 = vld [vmem:[#allocation10_spill] sm:$0xff] }
 0x3be   : > { %v3673_v29 = vmax.f32 %v3672_v48, %v3217_v13  ;;  %v3219_v42 = vpop.f32.mrb[183].mxu0  ;;  %3434 = vmatprep.mubr.bf16.mxu1 %v10113_v17 }
 0x3bf   : > { %v3710_v16 = vmax.f32 %v3709_v10, %v3219_v42 }
 0x3c0   : > { %v2907_v63 = vpop.f32.mrb[84].mxu1  ;;  %4230 = vmatmul.mubr.bf16.vlgmr.msra.gmra.mrb[32].mxu0 %v8789_v43 }
 0x3c1   : > { %v3540_v49 = vmax.f32 %v3539_v39, %v2907_v63  ;;  %v2909_v59 = vpop.f32.mrb[85].mxu1  ;;  %4239 = vmatprep.mubr.bf16.mxu0 %v10113_v17  ;;  %4888 = vmatpush1.bf16.msra.mxu0 %v10190_v5  ;;  %v10192_v39 = vld [vmem:[#allocation11_spill] sm:$0xff] }
 0x3c2   : > { %v3577_v33 = vmax.f32 %v3576_v35, %v2909_v59  ;;  %v2911_v31 = vpop.f32.mrb[86].mxu1  ;;  %4889 = vmatprep.subr.bf16.mxu0 %v10191_v6  ;;  %v10193_v35 = vld [vmem:[#allocation12_spill] sm:$0xff] }
 0x3c3   : > { %v3541_v26 = vmax.f32 %v3540_v49, %v2911_v31  ;;  %v2913_v37 = vpop.f32.mrb[87].mxu1  ;;  %v3223_v21 = vpop.f32.mrb[184].mxu0  ;;  %v10195_v31 = vld [vmem:[#allocation14_spill] sm:$0xff] }
 0x3c4   : > { %v3578_v19 = vmax.f32 %v3577_v33, %v2913_v37  ;;  %v3674_v12 = vmax.f32 %v3673_v29, %v3223_v21  ;;  %v3225_v48 = vpop.f32.mrb[185].mxu0  ;;  %v10194_v29 = vld [vmem:[#allocation13_spill] sm:$0xff] }
 0x3c5   : > { %v3711_v36 = vmax.f32 %v3710_v16, %v3225_v48  ;;  %v3227_v10 = vpop.f32.mrb[186].mxu0  ;;  %3435 = vmatmul.mubr.bf16.gmra.mrb[192].mxu1 %v8727_v62  ;;  %4890 = vmatpush1.bf16.msra.mxu0 %v10192_v39 }
 0x3c6   : > { %v3675_v13 = vmax.f32 %v3674_v12, %v3227_v10  ;;  %v3229_v42 = vpop.f32.mrb[187].mxu0  ;;  %3444 = vmatprep.mubr.bf16.mxu1 %v10113_v17  ;;  %4891 = vmatprep.subr.bf16.mxu0 %v10193_v35 }
 0x3c7   : > { %v3712_v63 = vmax.f32 %v3711_v36, %v3229_v42 }
 0x3c8   : > { %v2917_v59 = vpop.f32.mrb[88].mxu1  ;;  %4240 = vmatmul.mubr.bf16.gmra.mrb[36].mxu0 %v8786_v28 }
 0x3c9   : > { %v3542_v49 = vmax.f32 %v3541_v26, %v2917_v59  ;;  %v2919_v33 = vpop.f32.mrb[89].mxu1  ;;  %4249 = vmatprep.mubr.bf16.mxu0 %v10113_v17  ;;  %4892 = vmatpush1.bf16.msra.mxu0 %v10194_v29  ;;  %v10196_v26 = vld [vmem:[#allocation15_spill] sm:$0xff] }
 0x3ca   : > { %v3579_v16 = vmax.f32 %v3578_v19, %v2919_v33  ;;  %v2921_v62 = vpop.f32.mrb[90].mxu1  ;;  %4893 = vmatprep.subr.bf16.mxu0 %v10195_v31  ;;  %v10197_v19 = vld [vmem:[#allocation16_spill] sm:$0xff] }
 0x3cb   : > { %v3543_v37 = vmax.f32 %v3542_v49, %v2921_v62  ;;  %v2923_v21 = vpop.f32.mrb[91].mxu1  ;;  %v3233_v12 = vpop.f32.mrb[188].mxu0 }
 0x3cc   : > { %v3580_v48 = vmax.f32 %v3579_v16, %v2923_v21  ;;  %v3676_v10 = vmax.f32 %v3675_v13, %v3233_v12  ;;  %v3235_v35 = vpop.f32.mrb[189].mxu0  ;;  %v10198_v13 = vld [vmem:[#allocation17_spill] sm:$0xff] }
 0x3cd   : > { %v3713_v36 = vmax.f32 %v3712_v63, %v3235_v35  ;;  %v3237_v42 = vpop.f32.mrb[190].mxu0  ;;  %3445 = vmatmul.mubr.bf16.gmra.mrb[196].mxu1 %v8725_v54  ;;  %4894 = vmatpush1.bf16.msra.mxu0 %v10196_v26  ;;  %v10199_v63 = vld [vmem:[#allocation18_spill] sm:$0xff] }
 0x3ce   : > { %v3677_v59 = vmax.f32 %v3676_v10, %v3237_v42  ;;  %v3239_v39 = vpop.f32.mrb[191].mxu0  ;;  %3454 = vmatprep.mubr.bf16.mxu1 %v10113_v17  ;;  %4895 = vmatprep.subr.bf16.mxu0 %v10197_v19 }
 0x3cf   : > { %v3714_v33 = vmax.f32 %v3713_v36, %v3239_v39 }
 0x3d0   : > { %v2927_v31 = vpop.f32.mrb[92].mxu1  ;;  %4250 = vmatmul.mubr.bf16.gmra.mrb[40].mxu0 %v8803_v2 }
 0x3d1   : > { %v3544_v49 = vmax.f32 %v3543_v37, %v2927_v31  ;;  %v2929_v16 = vpop.f32.mrb[93].mxu1  ;;  %4259 = vmatprep.mubr.bf16.mxu0 %v10113_v17  ;;  %4896 = vmatpush1.bf16.msra.mxu0 %v10198_v13  ;;  %v10200_v31 = vld [vmem:[#allocation19_spill] sm:$0xff] }
 0x3d2   : > { %v3581_v35 = vmax.f32 %v3580_v48, %v2929_v16  ;;  %v2931_v54 = vpop.f32.mrb[94].mxu1  ;;  %4897 = vmatprep.subr.bf16.mxu0 %v10199_v63  ;;  %v10201_v48 = vld [vmem:[#allocation20_spill] sm:$0xff] }
 0x3d3   : > { %v9192_v62 = vmax.f32 %v3544_v49, %v2931_v54  ;;  %v2933_v21 = vpop.f32.mrb[95].mxu1  ;;  %v3243_v12 = vpop.f32.mrb[192].mxu0  ;;  %v10203_v54 = vld [vmem:[#allocation22_spill] sm:$0xff] }
 0x3d4   : > { %v9194_v10 = vmax.f32 %v3581_v35, %v2933_v21  ;;  %v3678_v39 = vmax.f32 %v3677_v59, %v3243_v12  ;;  %v3245_v36 = vpop.f32.mrb[193].mxu0  ;;  %v10202_v59 = vld [vmem:[#allocation21_spill] sm:$0xff] }
 0x3d5   : > { %v3715_v42 = vmax.f32 %v3714_v33, %v3245_v36  ;;  %v3247_v19 = vpop.f32.mrb[194].mxu0  ;;  %3455 = vmatmul.mubr.bf16.gmra.mrb[200].mxu1 %v8741_v46  ;;  %4898 = vmatpush1.bf16.msra.mxu0 %v10200_v31 }
 0x3d6   : > { %v3679_v37 = vmax.f32 %v3678_v39, %v3247_v19  ;;  %v3249_v13 = vpop.f32.mrb[195].mxu0  ;;  %3464 = vmatprep.mubr.bf16.mxu1 %v10113_v17  ;;  %4899 = vmatprep.subr.bf16.mxu0 %v10201_v48 }
 0x3d7   : > { %v3716_v49 = vmax.f32 %v3715_v42, %v3249_v13  ;;  %v10204_v13 = vld [vmem:[#allocation23_spill] sm:$0xff] }
 0x3d8   : > { %v2970_v16 = vpop.f32.mrb[96].mxu1  ;;  %4260 = vmatmul.mubr.bf16.gmra.mrb[44].mxu0 %v8801_v40 }
 0x3d9   : > { %v2972_v35 = vpop.f32.mrb[97].mxu1  ;;  %4269 = vmatprep.mubr.bf16.mxu0 %v10113_v17  ;;  %4900 = vmatpush1.bf16.msra.mxu0 %v10202_v59  ;;  %v10205_v59 = vld [vmem:[#allocation25_spill] sm:$0xff] }
 0x3da   : > { %v2974_v33 = vpop.f32.mrb[98].mxu1  ;;  %4901 = vmatprep.subr.bf16.mxu0 %v10203_v54 }
 0x3db   : > { %v3589_v46 = vmax.f32 %v2970_v16, %v2974_v33  ;;  %v2976_v21 = vpop.f32.mrb[99].mxu1  ;;  %v3253_v19 = vpop.f32.mrb[196].mxu0 }
 0x3dc   : > { %v3626_v12 = vmax.f32 %v2972_v35, %v2976_v21  ;;  %v3680_v39 = vmax.f32 %v3679_v37, %v3253_v19  ;;  %v3255_v36 = vpop.f32.mrb[197].mxu0 }
 0x3dd   : > { %v3717_v31 = vmax.f32 %v3716_v49, %v3255_v36  ;;  %v3257_v48 = vpop.f32.mrb[198].mxu0  ;;  %3465 = vmatmul.mubr.bf16.gmra.mrb[204].mxu1 %v8738_v30  ;;  %4902 = vmatpush1.bf16.msra.mxu0 %v10204_v13 }
 0x3de   : > { %v3681_v42 = vmax.f32 %v3680_v39, %v3257_v48  ;;  %v3259_v63 = vpop.f32.mrb[199].mxu0  ;;  %3474 = vmatprep.mubr.bf16.mxu1 %v10113_v17  ;;  %5273 = vmatprep.subr.bf16.mxu0 %v10205_v59 }
 0x3df   : > { %v3718_v26 = vmax.f32 %v3717_v31, %v3259_v63 }
 0x3e0   : > { %v2980_v54 = vpop.f32.mrb[100].mxu1  ;;  %4270 = vmatmul.mubr.bf16.gmra.mrb[48].mxu0 %v8815_v9 }
 0x3e1   : > { %v3590_v16 = vmax.f32 %v3589_v46, %v2980_v54  ;;  %v2982_v35 = vpop.f32.mrb[101].mxu1  ;;  %4279 = vmatprep.mubr.bf16.mxu0 %v10113_v17 }
 0x3e2   : > { %v3627_v37 = vmax.f32 %v3626_v12, %v2982_v35  ;;  %v2984_v49 = vpop.f32.mrb[102].mxu1 }
 0x3e3   : > { %v3591_v33 = vmax.f32 %v3590_v16, %v2984_v49  ;;  %v2986_v30 = vpop.f32.mrb[103].mxu1  ;;  %v3263_v21 = vpop.f32.mrb[200].mxu0 }
 0x3e4   : > { %v3628_v19 = vmax.f32 %v3627_v37, %v2986_v30  ;;  %v3682_v48 = vmax.f32 %v3681_v42, %v3263_v21  ;;  %v3265_v39 = vpop.f32.mrb[201].mxu0 }
 0x3e5   : > { %v3719_v36 = vmax.f32 %v3718_v26, %v3265_v39  ;;  %v3267_v13 = vpop.f32.mrb[202].mxu0  ;;  %3475 = vmatmul.mubr.bf16.gmra.mrb[208].mxu1 %v8757_v11 }
 0x3e6   : > { %v3683_v63 = vmax.f32 %v3682_v48, %v3267_v13  ;;  %v3269_v31 = vpop.f32.mrb[203].mxu0  ;;  %3484 = vmatprep.mubr.bf16.mxu1 %v10113_v17 }
 0x3e7   : > { %v3720_v54 = vmax.f32 %v3719_v36, %v3269_v31 }
 0x3e8   : > { %v2990_v46 = vpop.f32.mrb[104].mxu1  ;;  %4280 = vmatmul.mubr.bf16.gmra.mrb[52].mxu0 %v8813_v27 }
 0x3e9   : > { %v3592_v12 = vmax.f32 %v3591_v33, %v2990_v46  ;;  %v2992_v35 = vpop.f32.mrb[105].mxu1  ;;  %4289 = vmatprep.mubr.bf16.mxu0 %v10113_v17 }
 0x3ea   : > { %v3629_v16 = vmax.f32 %v3628_v19, %v2992_v35  ;;  %v2994_v37 = vpop.f32.mrb[106].mxu1 }
 0x3eb   : > { %v3593_v42 = vmax.f32 %v3592_v12, %v2994_v37  ;;  %v2996_v49 = vpop.f32.mrb[107].mxu1  ;;  %v3273_v26 = vpop.f32.mrb[204].mxu0 }
 0x3ec   : > { %v3630_v30 = vmax.f32 %v3629_v16, %v2996_v49  ;;  %v3684_v21 = vmax.f32 %v3683_v63, %v3273_v26  ;;  %v3275_v11 = vpop.f32.mrb[205].mxu0 }
 0x3ed   : > { %v3721_v13 = vmax.f32 %v3720_v54, %v3275_v11  ;;  %v3277_v48 = vpop.f32.mrb[206].mxu0  ;;  %3485 = vmatmul.mubr.bf16.gmra.mrb[212].mxu1 %v8754_v18 }
 0x3ee   : > { %v3685_v39 = vmax.f32 %v3684_v21, %v3277_v48  ;;  %v3279_v36 = vpop.f32.mrb[207].mxu0  ;;  %3494 = vmatprep.mubr.bf16.mxu1 %v10113_v17 }
 0x3ef   : > { %v3722_v33 = vmax.f32 %v3721_v13, %v3279_v36 }
 0x3f0   : > { %v3000_v31 = vpop.f32.mrb[108].mxu1  ;;  %4290 = vmatmul.mubr.bf16.gmra.mrb[56].mxu0 %v8827_v45 }
 0x3f1   : > { %v3594_v19 = vmax.f32 %v3593_v42, %v3000_v31  ;;  %v3002_v46 = vpop.f32.mrb[109].mxu1  ;;  %4299 = vmatprep.mubr.bf16.mxu0 %v10113_v17 }
 0x3f2   : > { %v3631_v12 = vmax.f32 %v3630_v30, %v3002_v46  ;;  %v3004_v35 = vpop.f32.mrb[110].mxu1 }
 0x3f3   : > { %v3595_v63 = vmax.f32 %v3594_v19, %v3004_v35  ;;  %v3006_v16 = vpop.f32.mrb[111].mxu1  ;;  %v3283_v54 = vpop.f32.mrb[208].mxu0 }
 0x3f4   : > { %v3632_v37 = vmax.f32 %v3631_v12, %v3006_v16  ;;  %v3686_v49 = vmax.f32 %v3685_v39, %v3283_v54  ;;  %v3285_v18 = vpop.f32.mrb[209].mxu0 }
 0x3f5   : > { %v3723_v26 = vmax.f32 %v3722_v33, %v3285_v18  ;;  %v3287_v21 = vpop.f32.mrb[210].mxu0  ;;  %3495 = vmatmul.mubr.bf16.gmra.mrb[216].mxu1 %v8773_v44 }
 0x3f6   : > { %v3687_v11 = vmax.f32 %v3686_v49, %v3287_v21  ;;  %v3289_v13 = vpop.f32.mrb[211].mxu0  ;;  %3504 = vmatprep.mubr.bf16.mxu1 %v10113_v17 }
 0x3f7   : > { %v3724_v42 = vmax.f32 %v3723_v26, %v3289_v13 }
 0x3f8   : > { %v3010_v48 = vpop.f32.mrb[112].mxu1  ;;  %4300 = vmatmul.mubr.bf16.gmra.mrb[60].mxu0 %v8825_v61 }
 0x3f9   : > { %v3596_v30 = vmax.f32 %v3595_v63, %v3010_v48  ;;  %v3012_v36 = vpop.f32.mrb[113].mxu1  ;;  %4309 = vmatprep.mubr.bf16.mxu0 %v10113_v17 }
 0x3fa   : > { %v3633_v31 = vmax.f32 %v3632_v37, %v3012_v36  ;;  %v3014_v19 = vpop.f32.mrb[114].mxu1 }
 0x3fb   : > { %v3597_v39 = vmax.f32 %v3596_v30, %v3014_v19  ;;  %v3016_v46 = vpop.f32.mrb[115].mxu1  ;;  %v3293_v33 = vpop.f32.mrb[212].mxu0 }
 0x3fc   : > { %v3634_v12 = vmax.f32 %v3633_v31, %v3016_v46  ;;  %v3688_v35 = vmax.f32 %v3687_v11, %v3293_v33  ;;  %v3295_v44 = vpop.f32.mrb[213].mxu0 }
 0x3fd   : > { %v3725_v16 = vmax.f32 %v3724_v42, %v3295_v44  ;;  %v3297_v54 = vpop.f32.mrb[214].mxu0  ;;  %3505 = vmatmul.mubr.bf16.gmra.mrb[220].mxu1 %v8770_v60 }
 0x3fe   : > { %v3689_v49 = vmax.f32 %v3688_v35, %v3297_v54  ;;  %v3299_v18 = vpop.f32.mrb[215].mxu0  ;;  %4036 = vmatprep.mubr.bf16.mxu1 %v10113_v17  ;;  %v10206_v35 = vld [vmem:[#allocation43_spill] sm:$0xff] }
 0x3ff   : > { %v3726_v63 = vmax.f32 %v3725_v16, %v3299_v18  ;;  %v10207_v16 = vld [vmem:[#allocation50_spill] sm:$0xff] }
 0x400   : > { %v3020_v26 = vpop.f32.mrb[116].mxu1  ;;  %4310 = vmatmul.mubr.bf16.gmra.mrb[64].mxu0 %v8839_v58 }
 0x401   : > { %v3598_v37 = vmax.f32 %v3597_v39, %v3020_v26  ;;  %v3022_v21 = vpop.f32.mrb[117].mxu1  ;;  %4319 = vmatprep.mubr.bf16.mxu0 %v10113_v17  ;;  %v10208_v26 = vld [vmem:[#allocation51_spill] sm:$0xff] }
 0x402   : > { %v3635_v13 = vmax.f32 %v3634_v12, %v3022_v21  ;;  %v3024_v48 = vpop.f32.mrb[118].mxu1 }
 0x403   : > { %v3599_v11 = vmax.f32 %v3598_v37, %v3024_v48  ;;  %v3026_v30 = vpop.f32.mrb[119].mxu1  ;;  %v3303_v42 = vpop.f32.mrb[216].mxu0  ;;  %v10209_v48 = vld [vmem:[#allocation52_spill] sm:$0xff] }
 0x404   : > { %v3636_v36 = vmax.f32 %v3635_v13, %v3026_v30  ;;  %v3690_v31 = vmax.f32 %v3689_v49, %v3303_v42  ;;  %v3305_v60 = vpop.f32.mrb[217].mxu0 }
 0x405   : > { %v3727_v19 = vmax.f32 %v3726_v63, %v3305_v60  ;;  %v3307_v46 = vpop.f32.mrb[218].mxu0  ;;  %4037 = vmatmul.mubr.bf16.vlgmr.msra.gmra.mrb[224].mxu1 %v8789_v43 }
 0x406   : > { %v3691_v33 = vmax.f32 %v3690_v31, %v3307_v46  ;;  %4391 = vmatpush1.bf16.msra.mxu1 %v10206_v35  ;;  %v3309_v44 = vpop.f32.mrb[219].mxu0  ;;  %4046 = vmatprep.mubr.bf16.mxu1 %v10113_v17 }
 0x407   : > { %v3728_v39 = vmax.f32 %v3727_v19, %v3309_v44  ;;  %4392 = vmatprep.subr.bf16.mxu1 %v10207_v16 }
 0x408   : > { %v3030_v12 = vpop.f32.mrb[120].mxu1  ;;  %4320 = vmatmul.mubr.bf16.gmra.mrb[68].mxu0 %v8837_v55 }
 0x409   : > { %v3600_v54 = vmax.f32 %v3599_v11, %v3030_v12  ;;  %v3032_v18 = vpop.f32.mrb[121].mxu1  ;;  %4329 = vmatprep.mubr.bf16.mxu0 %v10113_v17  ;;  %v10213_v12 = vld [vmem:[#allocation55_spill] sm:$0xff] }
 0x40a   : > { %v3637_v49 = vmax.f32 %v3636_v36, %v3032_v18  ;;  %v3034_v63 = vpop.f32.mrb[122].mxu1  ;;  %4393 = vmatpush1.bf16.msra.mxu1 %v10208_v26  ;;  %v10211_v36 = vld [vmem:[#allocation53_spill] sm:$0xff] }
 0x40b   : > { %v3601_v37 = vmax.f32 %v3600_v54, %v3034_v63  ;;  %v3036_v21 = vpop.f32.mrb[123].mxu1  ;;  %v3313_v13 = vpop.f32.mrb[220].mxu0  ;;  %4394 = vmatprep.subr.bf16.mxu1 %v10209_v48  ;;  %v10214_v63 = vld [vmem:[#allocation56_spill] sm:$0xff] }
 0x40c   : > { %v3638_v30 = vmax.f32 %v3637_v49, %v3036_v21  ;;  %v3692_v42 = vmax.f32 %v3691_v33, %v3313_v13  ;;  %v3315_v31 = vpop.f32.mrb[221].mxu0 }
 0x40d   : > { %v3729_v60 = vmax.f32 %v3728_v39, %v3315_v31  ;;  %v3317_v19 = vpop.f32.mrb[222].mxu0  ;;  %4047 = vmatmul.mubr.bf16.gmra.mrb[228].mxu1 %v8786_v28 }
 0x40e   : > { %v9235_v11 = vmax.f32 %v3692_v42, %v3317_v19  ;;  %v3319_v46 = vpop.f32.mrb[223].mxu0  ;;  %4056 = vmatprep.mubr.bf16.mxu1 %v10113_v17  ;;  %4395 = vmatpush1.bf16.msra.mxu1 %v10211_v36  ;;  %v10215_v42 = vld [vmem:[#allocation57_spill] sm:$0xff] }
 0x40f   : > { %v9239_v44 = vmax.f32 %v3729_v60, %v3319_v46  ;;  %4396 = vmatprep.subr.bf16.mxu1 %v10213_v12 }
 0x410   : > { %10210 = vst [vmem:[#allocation48_spill] sm:$0xff] %v9235_v11  ;;  %v3040_v54 = vpop.f32.mrb[124].mxu1  ;;  %4330 = vmatmul.mubr.bf16.gmra.mrb[72].mxu0 %v8853_v0  ;;  %v10245_v11 = vld [vmem:[#allocation73_spill] sm:$0xff] }
 0x411   : > { %10212 = vst [vmem:[#allocation49_spill] sm:$0xff] %v9239_v44  ;;  %v3602_v33 = vmax.f32 %v3601_v37, %v3040_v54  ;;  %v3042_v18 = vpop.f32.mrb[125].mxu1  ;;  %4339 = vmatprep.mubr.bf16.mxu0 %v10113_v17  ;;  %v10216_v37 = vld [vmem:[#allocation58_spill] sm:$0xff] }
 0x412   : > { %v3639_v39 = vmax.f32 %v3638_v30, %v3042_v18  ;;  %v3044_v49 = vpop.f32.mrb[126].mxu1  ;;  %4397 = vmatpush1.bf16.msra.mxu1 %v10214_v63 }
 0x413   : > { %v3603_v21 = vmax.f32 %v3602_v33, %v3044_v49  ;;  %v3046_v13 = vpop.f32.mrb[127].mxu1  ;;  %4398 = vmatprep.subr.bf16.mxu1 %v10215_v42  ;;  %v3845_v31 = vpop.f32.mrb[224].mxu0 }
 0x414   : > { %v3640_v60 = vmax.f32 %v3639_v39, %v3046_v13  ;;  %v3847_v19 = vpop.f32.mrb[225].mxu0 }
 0x415   : > { %4057 = vmatmul.mubr.bf16.gmra.mrb[232].mxu1 %v8803_v2  ;;  %v3849_v46 = vpop.f32.mrb[226].mxu0 }
 0x416   : > { %4066 = vmatprep.mubr.bf16.mxu1 %v10113_v17  ;;  %4399 = vmatpush1.bf16.msra.mxu1 %v10216_v37  ;;  %v4583_v54 = vmax.f32 %v3845_v31, %v3849_v46  ;;  %v3851_v12 = vpop.f32.mrb[227].mxu0  ;;  %v10221_v37 = vld [vmem:[#allocation65_spill] sm:$0xff] }
 0x417   : > { %v4620_v30 = vmax.f32 %v3847_v19, %v3851_v12  ;;  %4400 = vmatprep.subr.bf16.mxu1 %v8901_v14 }
 0x418   : > { %v3050_v18 = vpop.f32.mrb[128].mxu1  ;;  %4340 = vmatmul.mubr.bf16.gmra.mrb[76].mxu0 %v8849_v1 }
 0x419   : > { %v3604_v33 = vmax.f32 %v3603_v21, %v3050_v18  ;;  %v3052_v49 = vpop.f32.mrb[129].mxu1  ;;  %4349 = vmatprep.mubr.bf16.mxu0 %v10113_v17 }
 0x41a   : > { %v3641_v39 = vmax.f32 %v3640_v60, %v3052_v49  ;;  %v3054_v13 = vpop.f32.mrb[130].mxu1  ;;  %4401 = vmatpush1.bf16.msra.mxu1 %v8909_v34  ;;  %v10217_v60 = vld [vmem:[#allocation64_spill] sm:$0xff]  ;;  %v10218_v34 = vld [vmem:[#allocation66_spill] sm:$0xff] }
 0x41b   : > { %v3605_v42 = vmax.f32 %v3604_v33, %v3054_v13  ;;  %v3056_v63 = vpop.f32.mrb[131].mxu1  ;;  %v3855_v36 = vpop.f32.mrb[228].mxu0  ;;  %4402 = vmatprep.subr.bf16.mxu1 %v8913_v8 }
 0x41c   : > { %v3642_v31 = vmax.f32 %v3641_v39, %v3056_v63  ;;  %v4584_v12 = vmax.f32 %v4583_v54, %v3855_v36  ;;  %v3857_v19 = vpop.f32.mrb[229].mxu0 }
 0x41d   : > { %4067 = vmatmul.mubr.bf16.gmra.mrb[236].mxu1 %v8801_v40  ;;  %v4621_v46 = vmax.f32 %v4620_v30, %v3857_v19  ;;  %v3859_v14 = vpop.f32.mrb[230].mxu0  ;;  %v10219_v30 = vld [vmem:[#allocation67_spill] sm:$0xff] }
 0x41e   : > { %4076 = vmatprep.mubr.bf16.mxu1 %v10113_v17  ;;  %v4585_v21 = vmax.f32 %v4584_v12, %v3859_v14  ;;  %v3861_v18 = vpop.f32.mrb[231].mxu0  ;;  %4403 = vmatpush1.bf16.msra.mxu1 %v10217_v60  ;;  %v10220_v12 = vld [vmem:[#allocation24_spill] sm:$0xff] }
 0x41f   : > { %v4622_v49 = vmax.f32 %v4621_v46, %v3861_v18  ;;  %4404 = vmatprep.subr.bf16.mxu1 %v10218_v34 }
 0x420   : > { %v3060_v33 = vpop.f32.mrb[132].mxu1  ;;  %4350 = vmatmul.mubr.bf16.gmra.mrb[80].mxu0 %v8877_v47 }
 0x421   : > { %v3606_v13 = vmax.f32 %v3605_v42, %v3060_v33  ;;  %v3062_v63 = vpop.f32.mrb[133].mxu1  ;;  %4359 = vmatprep.mubr.bf16.mxu0 %v10113_v17 }
 0x422   : > { %v3643_v36 = vmax.f32 %v3642_v31, %v3062_v63  ;;  %v3064_v54 = vpop.f32.mrb[134].mxu1  ;;  %4405 = vmatpush1.bf16.msra.mxu1 %v10219_v30 }
 0x423   : > { %v3607_v39 = vmax.f32 %v3606_v13, %v3064_v54  ;;  %v3066_v19 = vpop.f32.mrb[135].mxu1  ;;  %v3865_v14 = vpop.f32.mrb[232].mxu0  ;;  %5080 = vmatprep.subr.bf16.mxu1 %v10220_v12 }
 0x424   : > { %v3644_v60 = vmax.f32 %v3643_v36, %v3066_v19  ;;  %v4586_v46 = vmax.f32 %v4585_v21, %v3865_v14  ;;  %v3867_v18 = vpop.f32.mrb[233].mxu0 }
 0x425   : > { %4077 = vmatmul.mubr.bf16.gmra.mrb[240].mxu1 %v8815_v9  ;;  %v4623_v34 = vmax.f32 %v4622_v49, %v3867_v18  ;;  %v3869_v8 = vpop.f32.mrb[234].mxu0 }
 0x426   : > { %4086 = vmatprep.mubr.bf16.mxu1 %v10113_v17  ;;  %v4587_v42 = vmax.f32 %v4586_v46, %v3869_v8  ;;  %v3871_v33 = vpop.f32.mrb[235].mxu0 }
 0x427   : > { %v4624_v31 = vmax.f32 %v4623_v34, %v3871_v33 }
 0x428   : > { %v3070_v63 = vpop.f32.mrb[136].mxu1  ;;  %4360 = vmatmul.mubr.bf16.gmra.mrb[84].mxu0 %v10188_v38 }
 0x429   : > { %v3608_v13 = vmax.f32 %v3607_v39, %v3070_v63  ;;  %v3072_v54 = vpop.f32.mrb[137].mxu1  ;;  %4369 = vmatprep.mubr.bf16.mxu0 %v10113_v17 }
 0x42a   : > { %v3645_v12 = vmax.f32 %v3644_v60, %v3072_v54  ;;  %v3074_v36 = vpop.f32.mrb[138].mxu1 }
 0x42b   : > { %v3609_v21 = vmax.f32 %v3608_v13, %v3074_v36  ;;  %v3076_v19 = vpop.f32.mrb[139].mxu1  ;;  %v3875_v14 = vpop.f32.mrb[236].mxu0 }
 0x42c   : > { %v3646_v30 = vmax.f32 %v3645_v12, %v3076_v19  ;;  %v4588_v49 = vmax.f32 %v4587_v42, %v3875_v14  ;;  %v3877_v18 = vpop.f32.mrb[237].mxu0 }
 0x42d   : > { %4087 = vmatmul.mubr.bf16.gmra.mrb[244].mxu1 %v8813_v27  ;;  %v4625_v8 = vmax.f32 %v4624_v31, %v3877_v18  ;;  %v3879_v46 = vpop.f32.mrb[238].mxu0 }
 0x42e   : > { %4096 = vmatprep.mubr.bf16.mxu1 %v10113_v17  ;;  %v4589_v34 = vmax.f32 %v4588_v49, %v3879_v46  ;;  %v3881_v33 = vpop.f32.mrb[239].mxu0 }
 0x42f   : > { %v4626_v39 = vmax.f32 %v4625_v8, %v3881_v33 }
 0x430   : > { %v3080_v63 = vpop.f32.mrb[140].mxu1  ;;  %4370 = vmatmul.mubr.bf16.gmra.mrb[88].mxu0 %v8899_v7 }
 0x431   : > { %v3610_v60 = vmax.f32 %v3609_v21, %v3080_v63  ;;  %v3082_v54 = vpop.f32.mrb[141].mxu1  ;;  %4379 = vmatprep.mubr.bf16.mxu0 %v10113_v17 }
 0x432   : > { %v3647_v13 = vmax.f32 %v3646_v30, %v3082_v54  ;;  %v3084_v12 = vpop.f32.mrb[142].mxu1 }
 0x433   : > { %v3611_v42 = vmax.f32 %v3610_v60, %v3084_v12  ;;  %v3086_v36 = vpop.f32.mrb[143].mxu1  ;;  %v3885_v19 = vpop.f32.mrb[240].mxu0 }
 0x434   : > { %v3648_v14 = vmax.f32 %v3647_v13, %v3086_v36  ;;  %v4590_v31 = vmax.f32 %v4589_v34, %v3885_v19  ;;  %v3887_v18 = vpop.f32.mrb[241].mxu0 }
 0x435   : > { %4097 = vmatmul.mubr.bf16.gmra.mrb[248].mxu1 %v8827_v45  ;;  %v4627_v49 = vmax.f32 %v4626_v39, %v3887_v18  ;;  %v3889_v46 = vpop.f32.mrb[242].mxu0 }
 0x436   : > { %4106 = vmatprep.mubr.bf16.mxu1 %v10113_v17  ;;  %v4591_v8 = vmax.f32 %v4590_v31, %v3889_v46  ;;  %v3891_v33 = vpop.f32.mrb[243].mxu0 }
 0x437   : > { %v4628_v21 = vmax.f32 %v4627_v49, %v3891_v33 }
 0x438   : > { %v3090_v63 = vpop.f32.mrb[144].mxu1  ;;  %4380 = vmatmul.mubr.bf16.gmra.mrb[92].mxu0 %v10189_v51 }
 0x439   : > { %v3612_v30 = vmax.f32 %v3611_v42, %v3090_v63  ;;  %v3092_v54 = vpop.f32.mrb[145].mxu1  ;;  %4919 = vmatprep.mubr.bf16.mxu0 %v10113_v17 }
 0x43a   : > { %v3649_v60 = vmax.f32 %v3648_v14, %v3092_v54  ;;  %v3094_v13 = vpop.f32.mrb[146].mxu1 }
 0x43b   : > { %v3613_v34 = vmax.f32 %v3612_v30, %v3094_v13  ;;  %v3096_v12 = vpop.f32.mrb[147].mxu1  ;;  %v3895_v36 = vpop.f32.mrb[244].mxu0  ;;  %v10222_v30 = vld [vmem:[#allocation26_spill] sm:$0xff]  ;;  %v10223_v13 = vld [vmem:[#allocation28_spill] sm:$0xff] }
 0x43c   : > { %v3650_v19 = vmax.f32 %v3649_v60, %v3096_v12  ;;  %v4592_v39 = vmax.f32 %v4591_v8, %v3895_v36  ;;  %v3897_v18 = vpop.f32.mrb[245].mxu0 }
 0x43d   : > { %4107 = vmatmul.mubr.bf16.gmra.mrb[252].mxu1 %v8825_v61  ;;  %v4629_v31 = vmax.f32 %v4628_v21, %v3897_v18  ;;  %v3899_v46 = vpop.f32.mrb[246].mxu0 }
 0x43e   : > { %4116 = vmatprep.mubr.bf16.mxu1 %v10113_v17  ;;  %v4593_v49 = vmax.f32 %v4592_v39, %v3899_v46  ;;  %v3901_v33 = vpop.f32.mrb[247].mxu0 }
 0x43f   : > { %v4630_v42 = vmax.f32 %v4629_v31, %v3901_v33 }
 0x440   : > { %v3100_v63 = vpop.f32.mrb[148].mxu1  ;;  %4920 = vmatmul.mubr.bf16.vlgmr.msra.gmra.mrb[96].mxu0 %v10221_v37 }
 0x441   : > { %v3614_v14 = vmax.f32 %v3613_v34, %v3100_v63  ;;  %v3102_v54 = vpop.f32.mrb[149].mxu1  ;;  %4929 = vmatprep.mubr.bf16.mxu0 %v10113_v17  ;;  %5274 = vmatpush1.bf16.msra.mxu0 %v10222_v30  ;;  %v10224_v34 = vld [vmem:[#allocation29_spill] sm:$0xff] }
 0x442   : > { %v3651_v8 = vmax.f32 %v3650_v19, %v3102_v54  ;;  %v3104_v60 = vpop.f32.mrb[150].mxu1  ;;  %5275 = vmatprep.subr.bf16.mxu0 %v10223_v13  ;;  %v10225_v19 = vld [vmem:[#allocation30_spill] sm:$0xff] }
 0x443   : > { %v3615_v21 = vmax.f32 %v3614_v14, %v3104_v60  ;;  %v3106_v12 = vpop.f32.mrb[151].mxu1  ;;  %v3905_v36 = vpop.f32.mrb[248].mxu0  ;;  %v10226_v14 = vld [vmem:[#allocation63_spill] sm:$0xff] }
 0x444   : > { %v3652_v18 = vmax.f32 %v3651_v8, %v3106_v12  ;;  %v4594_v39 = vmax.f32 %v4593_v49, %v3905_v36  ;;  %v3907_v46 = vpop.f32.mrb[249].mxu0  ;;  %v10227_v49 = vld [vmem:[#allocation31_spill] sm:$0xff]  ;;  %v10228_v36 = vld [vmem:[#allocation32_spill] sm:$0xff] }
 0x445   : > { %4117 = vmatmul.mubr.bf16.gmra.mrb[0].mxu1 %v8839_v58  ;;  %v4631_v31 = vmax.f32 %v4630_v42, %v3907_v46  ;;  %v3909_v33 = vpop.f32.mrb[250].mxu0  ;;  %5276 = vmatpush1.bf16.msra.mxu0 %v10224_v34 }
 0x446   : > { %4126 = vmatprep.mubr.bf16.mxu1 %v10113_v17  ;;  %v4595_v63 = vmax.f32 %v4594_v39, %v3909_v33  ;;  %v3911_v30 = vpop.f32.mrb[251].mxu0  ;;  %5277 = vmatprep.subr.bf16.mxu0 %v10225_v19 }
 0x447   : > { %v4632_v54 = vmax.f32 %v4631_v31, %v3911_v30 }
 0x448   : > { %v3110_v13 = vpop.f32.mrb[152].mxu1  ;;  %4930 = vmatmul.mubr.bf16.gmra.mrb[100].mxu0 %v10226_v14 }
 0x449   : > { %v3616_v60 = vmax.f32 %v3615_v21, %v3110_v13  ;;  %v3112_v8 = vpop.f32.mrb[153].mxu1  ;;  %4939 = vmatprep.mubr.bf16.mxu0 %v10113_v17  ;;  %5278 = vmatpush1.bf16.msra.mxu0 %v10227_v49  ;;  %v10229_v13 = vld [vmem:[#allocation33_spill] sm:$0xff] }
 0x44a   : > { %v3653_v42 = vmax.f32 %v3652_v18, %v3112_v8  ;;  %v3114_v12 = vpop.f32.mrb[154].mxu1  ;;  %5279 = vmatprep.subr.bf16.mxu0 %v10228_v36  ;;  %v10230_v18 = vld [vmem:[#allocation34_spill] sm:$0xff] }
 0x44b   : > { %v3617_v46 = vmax.f32 %v3616_v60, %v3114_v12  ;;  %v3116_v34 = vpop.f32.mrb[155].mxu1  ;;  %v3915_v39 = vpop.f32.mrb[252].mxu0  ;;  %v10231_v60 = vld [vmem:[#allocation69_spill] sm:$0xff] }
 0x44c   : > { %v3654_v33 = vmax.f32 %v3653_v42, %v3116_v34  ;;  %v4596_v48 = vmax.f32 %v4595_v63, %v3915_v39  ;;  %v3917_v19 = vpop.f32.mrb[253].mxu0  ;;  %v10232_v63 = vld [vmem:[#allocation35_spill] sm:$0xff]  ;;  %v10233_v42 = vld [vmem:[#allocation36_spill] sm:$0xff] }
 0x44d   : > { %4127 = vmatmul.mubr.bf16.gmra.mrb[4].mxu1 %v8837_v55  ;;  %v4633_v30 = vmax.f32 %v4632_v54, %v3917_v19  ;;  %v3919_v31 = vpop.f32.mrb[254].mxu0  ;;  %5280 = vmatpush1.bf16.msra.mxu0 %v10229_v13 }
 0x44e   : > { %4136 = vmatprep.mubr.bf16.mxu1 %v10113_v17  ;;  %v4597_v21 = vmax.f32 %v4596_v48, %v3919_v31  ;;  %v3921_v49 = vpop.f32.mrb[255].mxu0  ;;  %5281 = vmatprep.subr.bf16.mxu0 %v10230_v18  ;;  %v10236_v18 = vld [vmem:[#allocation37_spill] sm:$0xff] }
 0x44f   : > { %v4634_v8 = vmax.f32 %v4633_v30, %v3921_v49 }
 0x450   : > { %v3120_v36 = vpop.f32.mrb[156].mxu1  ;;  %4940 = vmatmul.mubr.bf16.gmra.mrb[104].mxu0 %v10231_v60 }
 0x451   : > { %v3618_v12 = vmax.f32 %v3617_v46, %v3120_v36  ;;  %v3122_v34 = vpop.f32.mrb[157].mxu1  ;;  %4949 = vmatprep.mubr.bf16.mxu0 %v10113_v17  ;;  %5282 = vmatpush1.bf16.msra.mxu0 %v10232_v63  ;;  %v10237_v63 = vld [vmem:[#allocation38_spill] sm:$0xff] }
 0x452   : > { %v3655_v19 = vmax.f32 %v3654_v33, %v3122_v34  ;;  %v3124_v54 = vpop.f32.mrb[158].mxu1  ;;  %5283 = vmatprep.subr.bf16.mxu0 %v10233_v42  ;;  %v10238_v42 = vld [vmem:[#allocation68_spill] sm:$0xff] }
 0x453   : > { %v9296_v39 = vmax.f32 %v3618_v12, %v3124_v54  ;;  %v3126_v48 = vpop.f32.mrb[159].mxu1  ;;  %v3925_v31 = vpop.f32.mrb[0].mxu0 }
 0x454   : > { %v9298_v13 = vmax.f32 %v3655_v19, %v3126_v48  ;;  %v4598_v49 = vmax.f32 %v4597_v21, %v3925_v31  ;;  %v3927_v30 = vpop.f32.mrb[1].mxu0  ;;  %v10239_v21 = vld [vmem:[#allocation39_spill] sm:$0xff] }
 0x455   : > { %10234 = vst [vmem:[#allocation54_spill] sm:$0xff] %v9296_v39  ;;  %4137 = vmatmul.mubr.bf16.gmra.mrb[8].mxu1 %v8853_v0  ;;  %v4635_v36 = vmax.f32 %v4634_v8, %v3927_v30  ;;  %v3929_v46 = vpop.f32.mrb[2].mxu0  ;;  %5284 = vmatpush1.bf16.msra.mxu0 %v10236_v18  ;;  %v10240_v8 = vld [vmem:[#allocation40_spill] sm:$0xff] }
 0x456   : > { %10235 = vst [vmem:[#allocation59_spill] sm:$0xff] %v9298_v13  ;;  %4146 = vmatprep.mubr.bf16.mxu1 %v10113_v17  ;;  %v4599_v33 = vmax.f32 %v4598_v49, %v3929_v46  ;;  %v3931_v34 = vpop.f32.mrb[3].mxu0  ;;  %5285 = vmatprep.subr.bf16.mxu0 %v10237_v63  ;;  %v10241_v63 = vld [vmem:[#allocation41_spill] sm:$0xff] }
 0x457   : > { %v4636_v12 = vmax.f32 %v4635_v36, %v3931_v34 }
 0x458   : > { %v3356_v54 = vpop.f32.mrb[160].mxu1  ;;  %4950 = vmatmul.mubr.bf16.gmra.mrb[108].mxu0 %v10238_v42 }
 0x459   : > { %v3358_v19 = vpop.f32.mrb[161].mxu1  ;;  %4959 = vmatprep.mubr.bf16.mxu0 %v10113_v17  ;;  %5286 = vmatpush1.bf16.msra.mxu0 %v10239_v21  ;;  %v10242_v21 = vld [vmem:[#allocation8_spill] sm:$0xff] }
 0x45a   : > { %v3360_v48 = vpop.f32.mrb[162].mxu1  ;;  %5287 = vmatprep.subr.bf16.mxu0 %v10240_v8 }
 0x45b   : > { %v3737_v31 = vmax.f32 %v3356_v54, %v3360_v48  ;;  %v3362_v30 = vpop.f32.mrb[163].mxu1  ;;  %v3935_v18 = vpop.f32.mrb[4].mxu0  ;;  %v10243_v54 = vld [vmem:[#allocation71_spill] sm:$0xff] }
 0x45c   : > { %v3774_v13 = vmax.f32 %v3358_v19, %v3362_v30  ;;  %v4600_v49 = vmax.f32 %v4599_v33, %v3935_v18  ;;  %v3937_v46 = vpop.f32.mrb[5].mxu0 }
 0x45d   : > { %4147 = vmatmul.mubr.bf16.gmra.mrb[12].mxu1 %v8849_v1  ;;  %v4637_v36 = vmax.f32 %v4636_v12, %v3937_v46  ;;  %v3939_v34 = vpop.f32.mrb[6].mxu0  ;;  %5288 = vmatpush1.bf16.msra.mxu0 %v10241_v63 }
 0x45e   : > { %4156 = vmatprep.mubr.bf16.mxu1 %v10113_v17  ;;  %v4601_v39 = vmax.f32 %v4600_v49, %v3939_v34  ;;  %v3941_v26 = vpop.f32.mrb[7].mxu0  ;;  %5963 = vmatprep.subr.bf16.mxu0 %v10242_v21  ;;  %v10244_v34 = vld [vmem:[#allocation70_spill] sm:$0xff] }
 0x45f   : > { %v4638_v16 = vmax.f32 %v4637_v36, %v3941_v26 }
 0x460   : > { %v3366_v8 = vpop.f32.mrb[164].mxu1  ;;  %4960 = vmatmul.mubr.bf16.gmra.mrb[112].mxu0 %v10243_v54 }
 0x461   : > { %v3738_v48 = vmax.f32 %v3737_v31, %v3366_v8  ;;  %v3368_v19 = vpop.f32.mrb[165].mxu1  ;;  %4969 = vmatprep.mubr.bf16.mxu0 %v10113_v17 }
 0x462   : > { %v3775_v18 = vmax.f32 %v3774_v13, %v3368_v19  ;;  %v3370_v33 = vpop.f32.mrb[166].mxu1 }
 0x463   : > { %v3739_v12 = vmax.f32 %v3738_v48, %v3370_v33  ;;  %v3372_v30 = vpop.f32.mrb[167].mxu1  ;;  %v3945_v46 = vpop.f32.mrb[8].mxu0 }
 0x464   : > { %v3776_v63 = vmax.f32 %v3775_v18, %v3372_v30  ;;  %v4602_v44 = vmax.f32 %v4601_v39, %v3945_v46  ;;  %v3947_v35 = vpop.f32.mrb[9].mxu0 }
 0x465   : > { %4157 = vmatmul.mubr.bf16.gmra.mrb[16].mxu1 %v8877_v47  ;;  %v4639_v49 = vmax.f32 %v4638_v16, %v3947_v35  ;;  %v3949_v21 = vpop.f32.mrb[10].mxu0 }
 0x466   : > { %4166 = vmatprep.mubr.bf16.mxu1 %v10113_v17  ;;  %v4603_v26 = vmax.f32 %v4602_v44, %v3949_v21  ;;  %v3951_v36 = vpop.f32.mrb[11].mxu0 }
 0x467   : > { %v4640_v8 = vmax.f32 %v4639_v49, %v3951_v36 }
 0x468   : > { %v3376_v31 = vpop.f32.mrb[168].mxu1  ;;  %4970 = vmatmul.mubr.bf16.gmra.mrb[116].mxu0 %v10244_v34 }
 0x469   : > { %v3740_v13 = vmax.f32 %v3739_v12, %v3376_v31  ;;  %v3378_v19 = vpop.f32.mrb[169].mxu1  ;;  %4979 = vmatprep.mubr.bf16.mxu0 %v10113_v17 }
 0x46a   : > { %v3777_v48 = vmax.f32 %v3776_v63, %v3378_v19  ;;  %v3380_v18 = vpop.f32.mrb[170].mxu1 }
 0x46b   : > { %v3741_v39 = vmax.f32 %v3740_v13, %v3380_v18  ;;  %v3382_v33 = vpop.f32.mrb[171].mxu1  ;;  %v3955_v30 = vpop.f32.mrb[12].mxu0 }
 0x46c   : > { %v3778_v46 = vmax.f32 %v3777_v48, %v3382_v33  ;;  %v4604_v35 = vmax.f32 %v4603_v26, %v3955_v30  ;;  %v3957_v16 = vpop.f32.mrb[13].mxu0 }
 0x46d   : > { %4167 = vmatmul.mubr.bf16.gmra.mrb[20].mxu1 %v10188_v38  ;;  %v4641_v44 = vmax.f32 %v4640_v8, %v3957_v16  ;;  %v3959_v21 = vpop.f32.mrb[14].mxu0 }
 0x46e   : > { %4176 = vmatprep.mubr.bf16.mxu1 %v10113_v17  ;;  %v4605_v49 = vmax.f32 %v4604_v35, %v3959_v21  ;;  %v3961_v36 = vpop.f32.mrb[15].mxu0 }
 0x46f   : > { %v4642_v12 = vmax.f32 %v4641_v44, %v3961_v36 }
 0x470   : > { %v3386_v31 = vpop.f32.mrb[172].mxu1  ;;  %4980 = vmatmul.mubr.bf16.gmra.mrb[120].mxu0 %v10245_v11  ;;  %v10246_v11 = vld [vmem:[#allocation72_spill] sm:$0xff] }
 0x471   : > { %v3742_v63 = vmax.f32 %v3741_v39, %v3386_v31  ;;  %v3388_v19 = vpop.f32.mrb[173].mxu1  ;;  %4989 = vmatprep.mubr.bf16.mxu0 %v10113_v17 }
 0x472   : > { %v3779_v13 = vmax.f32 %v3778_v46, %v3388_v19  ;;  %v3390_v48 = vpop.f32.mrb[174].mxu1 }
 0x473   : > { %v3743_v26 = vmax.f32 %v3742_v63, %v3390_v48  ;;  %v3392_v18 = vpop.f32.mrb[175].mxu1  ;;  %v3965_v33 = vpop.f32.mrb[16].mxu0 }
 0x474   : > { %v3780_v30 = vmax.f32 %v3779_v13, %v3392_v18  ;;  %v4606_v8 = vmax.f32 %v4605_v49, %v3965_v33  ;;  %v3967_v16 = vpop.f32.mrb[17].mxu0 }
 0x475   : > { %4177 = vmatmul.mubr.bf16.gmra.mrb[24].mxu1 %v8899_v7  ;;  %v4643_v35 = vmax.f32 %v4642_v12, %v3967_v16  ;;  %v3969_v21 = vpop.f32.mrb[18].mxu0 }
 0x476   : > { %4186 = vmatprep.mubr.bf16.mxu1 %v10113_v17  ;;  %v4607_v44 = vmax.f32 %v4606_v8, %v3969_v21  ;;  %v3971_v36 = vpop.f32.mrb[19].mxu0 }
 0x477   : > { %v4644_v39 = vmax.f32 %v4643_v35, %v3971_v36 }
 0x478   : > { %v3396_v31 = vpop.f32.mrb[176].mxu1  ;;  %4990 = vmatmul.mubr.bf16.gmra.mrb[124].mxu0 %v10246_v11  ;;  %v10247_v11 = vld [vmem:[#allocation75_spill] sm:$0xff] }
 0x479   : > { %v3744_v46 = vmax.f32 %v3743_v26, %v3396_v31  ;;  %v3398_v19 = vpop.f32.mrb[177].mxu1  ;;  %4999 = vmatprep.mubr.bf16.mxu0 %v10113_v17 }
 0x47a   : > { %v3781_v63 = vmax.f32 %v3780_v30, %v3398_v19  ;;  %v3400_v13 = vpop.f32.mrb[178].mxu1 }
 0x47b   : > { %v3745_v49 = vmax.f32 %v3744_v46, %v3400_v13  ;;  %v3402_v48 = vpop.f32.mrb[179].mxu1  ;;  %v3975_v18 = vpop.f32.mrb[20].mxu0 }
 0x47c   : > { %v3782_v33 = vmax.f32 %v3781_v63, %v3402_v48  ;;  %v4608_v12 = vmax.f32 %v4607_v44, %v3975_v18  ;;  %v3977_v16 = vpop.f32.mrb[21].mxu0 }
 0x47d   : > { %4187 = vmatmul.mubr.bf16.gmra.mrb[28].mxu1 %v10189_v51  ;;  %v4645_v8 = vmax.f32 %v4644_v39, %v3977_v16  ;;  %v3979_v21 = vpop.f32.mrb[22].mxu0 }
 0x47e   : > { %4422 = vmatprep.mubr.bf16.mxu1 %v10113_v17  ;;  %v4609_v35 = vmax.f32 %v4608_v12, %v3979_v21  ;;  %v3981_v36 = vpop.f32.mrb[23].mxu0 }
 0x47f   : > { %v4646_v26 = vmax.f32 %v4645_v8, %v3981_v36  ;;  %v3546_v8 = vrot.slane %v9192_v62, 4 }
 0x480   : > { %v3406_v31 = vpop.f32.mrb[180].mxu1  ;;  %5000 = vmatmul.mubr.bf16.gmra.mrb[128].mxu0 %v10247_v11 }
 0x481   : > { %v3746_v30 = vmax.f32 %v3745_v49, %v3406_v31  ;;  %v3408_v19 = vpop.f32.mrb[181].mxu1  ;;  %5009 = vmatprep.mubr.bf16.mxu0 %v10113_v17 }
 0x482   : > { %v3783_v46 = vmax.f32 %v3782_v33, %v3408_v19  ;;  %v3410_v63 = vpop.f32.mrb[182].mxu1  ;;  %v3583_v33 = vrot.slane %v9194_v10, 4 }
 0x483   : > { %v3747_v44 = vmax.f32 %v3746_v30, %v3410_v63  ;;  %v3412_v13 = vpop.f32.mrb[183].mxu1  ;;  %v3985_v48 = vpop.f32.mrb[24].mxu0  ;;  %v10248_v30 = vld [vmem:[#allocation42_spill] sm:$0xff] }
 0x484   : > { %v3784_v18 = vmax.f32 %v3783_v46, %v3412_v13  ;;  %v4610_v39 = vmax.f32 %v4609_v35, %v3985_v48  ;;  %v3987_v16 = vpop.f32.mrb[25].mxu0  ;;  %v10249_v35 = vld [vmem:[#allocation74_spill] sm:$0xff]  ;;  %v3584_v48 = vmax.f32 %v9194_v10, %v3583_v33 }
 0x485   : > { %4423 = vmatmul.mubr.bf16.vlgmr.msra.gmra.mrb[32].mxu1 %v8789_v43  ;;  %v4647_v12 = vmax.f32 %v4646_v26, %v3987_v16  ;;  %v3989_v21 = vpop.f32.mrb[26].mxu0  ;;  %v3547_v26 = vmax.f32 %v9192_v62, %v3546_v8 }
 0x486   : > { %5081 = vmatpush1.bf16.msra.mxu1 %v10176_v24  ;;  %v4611_v49 = vmax.f32 %v4610_v39, %v3989_v21  ;;  %v3991_v36 = vpop.f32.mrb[27].mxu0  ;;  %4432 = vmatprep.mubr.bf16.mxu1 %v10113_v17  ;;  %v3585_v10 = vrot.slane %v3584_v48, 2 }
 0x487   : > { %v4648_v31 = vmax.f32 %v4647_v12, %v3991_v36  ;;  %5082 = vmatprep.subr.bf16.mxu1 %v10248_v30  ;;  %v3548_v24 = vrot.slane %v3547_v26, 2 }
 0x488   : > { %v3416_v19 = vpop.f32.mrb[184].mxu1  ;;  %5010 = vmatmul.mubr.bf16.gmra.mrb[132].mxu0 %v10249_v35 }
 0x489   : > { %v3748_v46 = vmax.f32 %v3747_v44, %v3416_v19  ;;  %v3418_v43 = vpop.f32.mrb[185].mxu1  ;;  %5019 = vmatprep.mubr.bf16.mxu0 %v10113_v17 }
 0x48a   : > { %v3785_v63 = vmax.f32 %v3784_v18, %v3418_v43  ;;  %v3420_v13 = vpop.f32.mrb[186].mxu1  ;;  %5083 = vmatpush1.bf16.msra.mxu1 %v10179_v4  ;;  %v10250_v43 = vld [vmem:[#allocation77_spill] sm:$0xff] }
 0x48b   : > { %v3749_v39 = vmax.f32 %v3748_v46, %v3420_v13  ;;  %v3422_v16 = vpop.f32.mrb[187].mxu1  ;;  %v3995_v12 = vpop.f32.mrb[28].mxu0  ;;  %5084 = vmatprep.subr.bf16.mxu1 %v10181_v15 }
 0x48c   : > { %v3786_v21 = vmax.f32 %v3785_v63, %v3422_v16  ;;  %v4612_v36 = vmax.f32 %v4611_v49, %v3995_v12  ;;  %v3997_v30 = vpop.f32.mrb[29].mxu0  ;;  %v3586_v12 = vmax.f32 %v3584_v48, %v3585_v10 }
 0x48d   : > { %v4649_v44 = vmax.f32 %v4648_v31, %v3997_v30  ;;  %v3999_v19 = vpop.f32.mrb[30].mxu0  ;;  %4433 = vmatmul.mubr.bf16.gmra.mrb[36].mxu1 %v8786_v28  ;;  %v3549_v28 = vmax.f32 %v3547_v26, %v3548_v24 }
 0x48e   : > { %v4613_v62 = vmax.f32 %v4612_v36, %v3999_v19  ;;  %v4001_v18 = vpop.f32.mrb[31].mxu0  ;;  %4442 = vmatprep.mubr.bf16.mxu1 %v10113_v17  ;;  %5085 = vmatpush1.bf16.msra.mxu1 %v10182_v20  ;;  %v3587_v48 = vrot.slane %v3586_v12, 1 }
 0x48f   : > { %v4650_v8 = vmax.f32 %v4649_v44, %v4001_v18  ;;  %5086 = vmatprep.subr.bf16.mxu1 %v10183_v3  ;;  %v3550_v24 = vrot.slane %v3549_v28, 1 }
 0x490   : > { %v4614_v33 = vrot.slane %v4613_v62, 4  ;;  %v3426_v46 = vpop.f32.mrb[188].mxu1  ;;  %5020 = vmatmul.mubr.bf16.gmra.mrb[136].mxu0 %v10250_v43 }
 0x491   : > { %v4651_v49 = vrot.slane %v4650_v8, 4  ;;  %v3750_v31 = vmax.f32 %v3749_v39, %v3426_v46  ;;  %v3428_v30 = vpop.f32.mrb[189].mxu1  ;;  %5029 = vmatprep.mubr.bf16.mxu0 %v10113_v17 }
 0x492   : > { %v4615_v63 = vmax.f32 %v4613_v62, %v4614_v33  ;;  %v3787_v13 = vmax.f32 %v3786_v21, %v3428_v30  ;;  %v3430_v16 = vpop.f32.mrb[190].mxu1  ;;  %5087 = vmatpush1.bf16.msra.mxu1 %v8614_v23 }
 0x493   : > { %v4652_v36 = vmax.f32 %v4650_v8, %v4651_v49  ;;  %v3751_v44 = vmax.f32 %v3750_v31, %v3430_v16  ;;  %v3432_v19 = vpop.f32.mrb[191].mxu1  ;;  %v4231_v18 = vpop.f32.mrb[32].mxu0  ;;  %5088 = vmatprep.subr.bf16.mxu1 %v8622_v52  ;;  %v10251_v31 = vld [vmem:[#allocation76_spill] sm:$0xff] }
 0x494   : > { %v4616_v3 = vrot.slane %v4615_v63, 2  ;;  %v3788_v20 = vmax.f32 %v3787_v13, %v3432_v19  ;;  %v4233_v15 = vpop.f32.mrb[33].mxu0 }
 0x495   : > { %v4653_v39 = vrot.slane %v4652_v36, 2  ;;  %v4235_v46 = vpop.f32.mrb[34].mxu0  ;;  %4443 = vmatmul.mubr.bf16.gmra.mrb[40].mxu1 %v8803_v2 }
 0x496   : > { %v4617_v26 = vmax.f32 %v4615_v63, %v4616_v3  ;;  %v4731_v21 = vmax.f32 %v4231_v18, %v4235_v46  ;;  %v4237_v62 = vpop.f32.mrb[35].mxu0  ;;  %4452 = vmatprep.mubr.bf16.mxu1 %v10113_v17  ;;  %5089 = vmatpush1.bf16.msra.mxu1 %v8632_v57  ;;  %v9356_v3 = vmax.f32 %v3549_v28, %v3550_v24  ;;  %v10279_v28 = vld [vmem:[#allocation57_spill] sm:$0xff] }
 0x497   : > { %v4654_v10 = vmax.f32 %v4652_v36, %v4653_v39  ;;  %v4768_v8 = vmax.f32 %v4233_v15, %v4237_v62  ;;  %5090 = vmatprep.subr.bf16.mxu1 %v8637_v53  ;;  %v9361_v15 = vmax.f32 %v3586_v12, %v3587_v48  ;;  %v10254_v12 = vld [vmem:[#allocation81_spill] sm:$0xff] }
 0x498   : > { %v4618_v33 = vrot.slane %v4617_v26, 1  ;;  %v3436_v49 = vpop.f32.mrb[192].mxu1  ;;  %5030 = vmatmul.mubr.bf16.gmra.mrb[140].mxu0 %v10251_v31 }
 0x499   : > { %v4655_v30 = vrot.slane %v4654_v10, 1  ;;  %v3752_v13 = vmax.f32 %v3751_v44, %v3436_v49  ;;  %v3438_v2 = vpop.f32.mrb[193].mxu1  ;;  %5039 = vmatprep.mubr.bf16.mxu0 %v10113_v17 }
 0x49a   : > { %v9358_v63 = vmax.f32 %v4617_v26, %v4618_v33  ;;  %v3789_v16 = vmax.f32 %v3788_v20, %v3438_v2  ;;  %v3440_v19 = vpop.f32.mrb[194].mxu1  ;;  %5091 = vmatpush1.bf16.msra.mxu1 %v8650_v25  ;;  %v10252_v33 = vld [vmem:[#allocation79_spill] sm:$0xff] }
 0x49b   : > { %v9363_v36 = vmax.f32 %v4654_v10, %v4655_v30  ;;  %v3753_v18 = vmax.f32 %v3752_v13, %v3440_v19  ;;  %v3442_v39 = vpop.f32.mrb[195].mxu1  ;;  %v4241_v46 = vpop.f32.mrb[36].mxu0  ;;  %5092 = vmatprep.subr.bf16.mxu1 %v10186_v22 }
 0x49c   : > { %v3790_v44 = vmax.f32 %v3789_v16, %v3442_v39  ;;  %v4732_v62 = vmax.f32 %v4731_v21, %v4241_v46  ;;  %v4243_v49 = vpop.f32.mrb[37].mxu0 }
 0x49d   : > { %v4769_v24 = vmax.f32 %v4768_v8, %v4243_v49  ;;  %v4245_v20 = vpop.f32.mrb[38].mxu0  ;;  %4453 = vmatmul.mubr.bf16.gmra.mrb[44].mxu1 %v8801_v40 }
 0x49e   : > { %v4733_v26 = vmax.f32 %v4732_v62, %v4245_v20  ;;  %v4247_v48 = vpop.f32.mrb[39].mxu0  ;;  %4462 = vmatprep.mubr.bf16.mxu1 %v10113_v17  ;;  %5093 = vmatpush1.bf16.msra.mxu1 %v10187_v50 }
 0x49f   : > { %v4770_v10 = vmax.f32 %v4769_v24, %v4247_v48  ;;  %5094 = vmatprep.subr.bf16.mxu1 %v8661_v41 }
 0x4a0   : > { %v3446_v21 = vpop.f32.mrb[196].mxu1  ;;  %5040 = vmatmul.mubr.bf16.gmra.mrb[144].mxu0 %v10252_v33 }
 0x4a1   : > { %v3754_v30 = vmax.f32 %v3753_v18, %v3446_v21  ;;  %v3448_v8 = vpop.f32.mrb[197].mxu1  ;;  %5049 = vmatprep.mubr.bf16.mxu0 %v10113_v17  ;;  %v10253_v21 = vld [vmem:[#allocation78_spill] sm:$0xff] }
 0x4a2   : > { %v3791_v40 = vmax.f32 %v3790_v44, %v3448_v8  ;;  %v3450_v13 = vpop.f32.mrb[198].mxu1  ;;  %5095 = vmatpush1.bf16.msra.mxu1 %v8677_v56 }
 0x4a3   : > { %v3755_v2 = vmax.f32 %v3754_v30, %v3450_v13  ;;  %v3452_v16 = vpop.f32.mrb[199].mxu1  ;;  %v4251_v19 = vpop.f32.mrb[40].mxu0  ;;  %5466 = vmatprep.subr.bf16.mxu1 %v8683_v32 }
 0x4a4   : > { %v3792_v39 = vmax.f32 %v3791_v40, %v3452_v16  ;;  %v4734_v46 = vmax.f32 %v4733_v26, %v4251_v19  ;;  %v4253_v62 = vpop.f32.mrb[41].mxu0 }
 0x4a5   : > { %v4771_v49 = vmax.f32 %v4770_v10, %v4253_v62  ;;  %v4255_v24 = vpop.f32.mrb[42].mxu0  ;;  %4463 = vmatmul.mubr.bf16.gmra.mrb[48].mxu1 %v8815_v9 }
 0x4a6   : > { %v4735_v18 = vmax.f32 %v4734_v46, %v4255_v24  ;;  %v4257_v20 = vpop.f32.mrb[43].mxu0  ;;  %4472 = vmatprep.mubr.bf16.mxu1 %v10113_v17 }
 0x4a7   : > { %v4772_v44 = vmax.f32 %v4771_v49, %v4257_v20 }
 0x4a8   : > { %v3456_v48 = vpop.f32.mrb[200].mxu1  ;;  %5050 = vmatmul.mubr.bf16.gmra.mrb[148].mxu0 %v10253_v21 }
 0x4a9   : > { %v3756_v30 = vmax.f32 %v3755_v2, %v3456_v48  ;;  %v3458_v8 = vpop.f32.mrb[201].mxu1  ;;  %5059 = vmatprep.mubr.bf16.mxu0 %v10113_v17 }
 0x4aa   : > { %v3793_v13 = vmax.f32 %v3792_v39, %v3458_v8  ;;  %v3460_v40 = vpop.f32.mrb[202].mxu1 }
 0x4ab   : > { %v3757_v26 = vmax.f32 %v3756_v30, %v3460_v40  ;;  %v3462_v16 = vpop.f32.mrb[203].mxu1  ;;  %v4261_v10 = vpop.f32.mrb[44].mxu0 }
 0x4ac   : > { %v3794_v19 = vmax.f32 %v3793_v13, %v3462_v16  ;;  %v4736_v62 = vmax.f32 %v4735_v18, %v4261_v10  ;;  %v4263_v9 = vpop.f32.mrb[45].mxu0 }
 0x4ad   : > { %v4773_v46 = vmax.f32 %v4772_v44, %v4263_v9  ;;  %v4265_v24 = vpop.f32.mrb[46].mxu0  ;;  %4473 = vmatmul.mubr.bf16.gmra.mrb[52].mxu1 %v8813_v27 }
 0x4ae   : > { %v4737_v49 = vmax.f32 %v4736_v62, %v4265_v24  ;;  %v4267_v20 = vpop.f32.mrb[47].mxu0  ;;  %4482 = vmatprep.mubr.bf16.mxu1 %v10113_v17 }
 0x4af   : > { %v4774_v2 = vmax.f32 %v4773_v46, %v4267_v20 }
 0x4b0   : > { %v3466_v48 = vpop.f32.mrb[204].mxu1  ;;  %5060 = vmatmul.mubr.bf16.gmra.mrb[152].mxu0 %v10254_v12 }
 0x4b1   : > { %v3758_v39 = vmax.f32 %v3757_v26, %v3466_v48  ;;  %v3468_v8 = vpop.f32.mrb[205].mxu1  ;;  %5069 = vmatprep.mubr.bf16.mxu0 %v10113_v17  ;;  %v10255_v48 = vld [vmem:[#allocation80_spill] sm:$0xff] }
 0x4b2   : > { %v3795_v30 = vmax.f32 %v3794_v19, %v3468_v8  ;;  %v3470_v13 = vpop.f32.mrb[206].mxu1 }
 0x4b3   : > { %v3759_v18 = vmax.f32 %v3758_v39, %v3470_v13  ;;  %v3472_v40 = vpop.f32.mrb[207].mxu1  ;;  %v4271_v44 = vpop.f32.mrb[48].mxu0 }
 0x4b4   : > { %v3796_v16 = vmax.f32 %v3795_v30, %v3472_v40  ;;  %v4738_v10 = vmax.f32 %v4737_v49, %v4271_v44  ;;  %v4273_v27 = vpop.f32.mrb[49].mxu0 }
 0x4b5   : > { %v4775_v62 = vmax.f32 %v4774_v2, %v4273_v27  ;;  %v4275_v9 = vpop.f32.mrb[50].mxu0  ;;  %4483 = vmatmul.mubr.bf16.gmra.mrb[56].mxu1 %v8827_v45 }
 0x4b6   : > { %v4739_v46 = vmax.f32 %v4738_v10, %v4275_v9  ;;  %v4277_v24 = vpop.f32.mrb[51].mxu0  ;;  %4492 = vmatprep.mubr.bf16.mxu1 %v10113_v17 }
 0x4b7   : > { %v4776_v26 = vmax.f32 %v4775_v62, %v4277_v24 }
 0x4b8   : > { %v3476_v20 = vpop.f32.mrb[208].mxu1  ;;  %5070 = vmatmul.mubr.bf16.gmra.mrb[156].mxu0 %v10255_v48 }
 0x4b9   : > { %v3760_v19 = vmax.f32 %v3759_v18, %v3476_v20  ;;  %v3478_v8 = vpop.f32.mrb[209].mxu1  ;;  %5305 = vmatprep.mubr.bf16.mxu0 %v10113_v17 }
 0x4ba   : > { %v3797_v39 = vmax.f32 %v3796_v16, %v3478_v8  ;;  %v3480_v30 = vpop.f32.mrb[210].mxu1 }
 0x4bb   : > { %v3761_v49 = vmax.f32 %v3760_v19, %v3480_v30  ;;  %v3482_v13 = vpop.f32.mrb[211].mxu1  ;;  %v4281_v2 = vpop.f32.mrb[52].mxu0 }
 0x4bc   : > { %v3798_v40 = vmax.f32 %v3797_v39, %v3482_v13  ;;  %v4740_v44 = vmax.f32 %v4739_v46, %v4281_v2  ;;  %v4283_v45 = vpop.f32.mrb[53].mxu0 }
 0x4bd   : > { %v4777_v10 = vmax.f32 %v4776_v26, %v4283_v45  ;;  %v4285_v27 = vpop.f32.mrb[54].mxu0  ;;  %4493 = vmatmul.mubr.bf16.gmra.mrb[60].mxu1 %v8825_v61 }
 0x4be   : > { %v4741_v62 = vmax.f32 %v4740_v44, %v4285_v27  ;;  %v4287_v9 = vpop.f32.mrb[55].mxu0  ;;  %4502 = vmatprep.mubr.bf16.mxu1 %v10113_v17 }
 0x4bf   : > { %v4778_v18 = vmax.f32 %v4777_v10, %v4287_v9 }
 0x4c0   : > { %v3486_v24 = vpop.f32.mrb[212].mxu1  ;;  %5306 = vmatmul.mubr.bf16.vlgmr.msra.gmra.mrb[160].mxu0 %v10221_v37 }
 0x4c1   : > { %v3762_v16 = vmax.f32 %v3761_v49, %v3486_v24  ;;  %v3488_v20 = vpop.f32.mrb[213].mxu1  ;;  %5315 = vmatprep.mubr.bf16.mxu0 %v10113_v17  ;;  %5964 = vmatpush1.bf16.msra.mxu0 %v10190_v5  ;;  %v10256_v49 = vld [vmem:[#allocation11_spill] sm:$0xff]  ;;  %v10257_v5 = vld [vmem:[#allocation12_spill] sm:$0xff] }
 0x4c2   : > { %v3799_v46 = vmax.f32 %v3798_v40, %v3488_v20  ;;  %v3490_v19 = vpop.f32.mrb[214].mxu1  ;;  %5965 = vmatprep.subr.bf16.mxu0 %v10191_v6 }
 0x4c3   : > { %v3763_v26 = vmax.f32 %v3762_v16, %v3490_v19  ;;  %v3492_v61 = vpop.f32.mrb[215].mxu1  ;;  %v4291_v8 = vpop.f32.mrb[56].mxu0 }
 0x4c4   : > { %v3800_v39 = vmax.f32 %v3799_v46, %v3492_v61  ;;  %v4742_v30 = vmax.f32 %v4741_v62, %v4291_v8  ;;  %v4293_v13 = vpop.f32.mrb[57].mxu0 }
 0x4c5   : > { %v4779_v2 = vmax.f32 %v4778_v18, %v4293_v13  ;;  %v4295_v44 = vpop.f32.mrb[58].mxu0  ;;  %4503 = vmatmul.mubr.bf16.gmra.mrb[64].mxu1 %v8839_v58  ;;  %5966 = vmatpush1.bf16.msra.mxu0 %v10256_v49  ;;  %v10258_v18 = vld [vmem:[#allocation14_spill] sm:$0xff] }
 0x4c6   : > { %v4743_v45 = vmax.f32 %v4742_v30, %v4295_v44  ;;  %v4297_v10 = vpop.f32.mrb[59].mxu0  ;;  %4512 = vmatprep.mubr.bf16.mxu1 %v10113_v17  ;;  %5967 = vmatprep.subr.bf16.mxu0 %v10257_v5 }
 0x4c7   : > { %v4780_v40 = vmax.f32 %v4779_v2, %v4297_v10 }
 0x4c8   : > { %v3496_v6 = vpop.f32.mrb[216].mxu1  ;;  %5316 = vmatmul.mubr.bf16.gmra.mrb[164].mxu0 %v10226_v14 }
 0x4c9   : > { %v3764_v27 = vmax.f32 %v3763_v26, %v3496_v6  ;;  %v3498_v9 = vpop.f32.mrb[217].mxu1  ;;  %5325 = vmatprep.mubr.bf16.mxu0 %v10113_v17  ;;  %5968 = vmatpush1.bf16.msra.mxu0 %v10194_v29  ;;  %v10259_v26 = vld [vmem:[#allocation15_spill] sm:$0xff]  ;;  %v10260_v29 = vld [vmem:[#allocation16_spill] sm:$0xff] }
 0x4ca   : > { %v3801_v62 = vmax.f32 %v3800_v39, %v3498_v9  ;;  %v3500_v58 = vpop.f32.mrb[218].mxu1  ;;  %5969 = vmatprep.subr.bf16.mxu0 %v10258_v18 }
 0x4cb   : > { %v3765_v24 = vmax.f32 %v3764_v27, %v3500_v58  ;;  %v3502_v16 = vpop.f32.mrb[219].mxu1  ;;  %v4301_v20 = vpop.f32.mrb[60].mxu0 }
 0x4cc   : > { %v3802_v46 = vmax.f32 %v3801_v62, %v3502_v16  ;;  %v4744_v19 = vmax.f32 %v4743_v45, %v4301_v20  ;;  %v4303_v61 = vpop.f32.mrb[61].mxu0  ;;  %v10261_v45 = vld [vmem:[#allocation17_spill] sm:$0xff] }
 0x4cd   : > { %v4781_v8 = vmax.f32 %v4780_v40, %v4303_v61  ;;  %v4305_v30 = vpop.f32.mrb[62].mxu0  ;;  %4513 = vmatmul.mubr.bf16.gmra.mrb[68].mxu1 %v8837_v55  ;;  %5970 = vmatpush1.bf16.msra.mxu0 %v10259_v26  ;;  %v10262_v40 = vld [vmem:[#allocation18_spill] sm:$0xff] }
 0x4ce   : > { %v4745_v13 = vmax.f32 %v4744_v19, %v4305_v30  ;;  %v4307_v2 = vpop.f32.mrb[63].mxu0  ;;  %4522 = vmatprep.mubr.bf16.mxu1 %v10113_v17  ;;  %5971 = vmatprep.subr.bf16.mxu0 %v10260_v29  ;;  %v10266_v29 = vld [vmem:[#allocation22_spill] sm:$0xff] }
 0x4cf   : > { %v4782_v39 = vmax.f32 %v4781_v8, %v4307_v2 }
 0x4d0   : > { %v3506_v44 = vpop.f32.mrb[220].mxu1  ;;  %5326 = vmatmul.mubr.bf16.gmra.mrb[168].mxu0 %v10231_v60 }
 0x4d1   : > { %v3766_v49 = vmax.f32 %v3765_v24, %v3506_v44  ;;  %v3508_v10 = vpop.f32.mrb[221].mxu1  ;;  %5335 = vmatprep.mubr.bf16.mxu0 %v10113_v17  ;;  %5972 = vmatpush1.bf16.msra.mxu0 %v10261_v45  ;;  %v10263_v24 = vld [vmem:[#allocation19_spill] sm:$0xff] }
 0x4d2   : > { %v3803_v5 = vmax.f32 %v3802_v46, %v3508_v10  ;;  %v3510_v55 = vpop.f32.mrb[222].mxu1  ;;  %5973 = vmatprep.subr.bf16.mxu0 %v10262_v40  ;;  %v10264_v46 = vld [vmem:[#allocation20_spill] sm:$0xff]  ;;  %v10267_v40 = vld [vmem:[#allocation23_spill] sm:$0xff] }
 0x4d3   : > { %v9412_v6 = vmax.f32 %v3766_v49, %v3510_v55  ;;  %v3512_v27 = vpop.f32.mrb[223].mxu1  ;;  %v4311_v9 = vpop.f32.mrb[64].mxu0 }
 0x4d4   : > { %v9414_v62 = vmax.f32 %v3803_v5, %v3512_v27  ;;  %v4746_v58 = vmax.f32 %v4745_v13, %v4311_v9  ;;  %v4313_v18 = vpop.f32.mrb[65].mxu0  ;;  %v10265_v13 = vld [vmem:[#allocation21_spill] sm:$0xff] }
 0x4d5   : > { %v4783_v16 = vmax.f32 %v4782_v39, %v4313_v18  ;;  %v4315_v20 = vpop.f32.mrb[66].mxu0  ;;  %4523 = vmatmul.mubr.bf16.gmra.mrb[72].mxu1 %v8853_v0  ;;  %5974 = vmatpush1.bf16.msra.mxu0 %v10263_v24 }
 0x4d6   : > { %v4747_v19 = vmax.f32 %v4746_v58, %v4315_v20  ;;  %v4317_v61 = vpop.f32.mrb[67].mxu0  ;;  %4532 = vmatprep.mubr.bf16.mxu1 %v10113_v17  ;;  %5975 = vmatprep.subr.bf16.mxu0 %v10264_v46 }
 0x4d7   : > { %v4784_v8 = vmax.f32 %v4783_v16, %v4317_v61 }
 0x4d8   : > { %v4038_v30 = vpop.f32.mrb[224].mxu1  ;;  %5336 = vmatmul.mubr.bf16.gmra.mrb[172].mxu0 %v10238_v42 }
 0x4d9   : > { %v4040_v26 = vpop.f32.mrb[225].mxu1  ;;  %5345 = vmatprep.mubr.bf16.mxu0 %v10113_v17  ;;  %5976 = vmatpush1.bf16.msra.mxu0 %v10265_v13 }
 0x4da   : > { %v4042_v2 = vpop.f32.mrb[226].mxu1  ;;  %5977 = vmatprep.subr.bf16.mxu0 %v10266_v29 }
 0x4db   : > { %v4657_v0 = vmax.f32 %v4038_v30, %v4042_v2  ;;  %v4044_v39 = vpop.f32.mrb[227].mxu1  ;;  %v4321_v44 = vpop.f32.mrb[68].mxu0 }
 0x4dc   : > { %v4694_v49 = vmax.f32 %v4040_v26, %v4044_v39  ;;  %v4748_v10 = vmax.f32 %v4747_v19, %v4321_v44  ;;  %v4323_v45 = vpop.f32.mrb[69].mxu0 }
 0x4dd   : > { %v4785_v5 = vmax.f32 %v4784_v8, %v4323_v45  ;;  %v4325_v55 = vpop.f32.mrb[70].mxu0  ;;  %4533 = vmatmul.mubr.bf16.gmra.mrb[76].mxu1 %v8849_v1  ;;  %5978 = vmatpush1.bf16.msra.mxu0 %v10267_v40 }
 0x4de   : > { %v4749_v27 = vmax.f32 %v4748_v10, %v4325_v55  ;;  %v4327_v9 = vpop.f32.mrb[71].mxu0  ;;  %4542 = vmatprep.mubr.bf16.mxu1 %v10113_v17  ;;  %6349 = vmatprep.subr.bf16.mxu0 %v10205_v59 }
 0x4df   : > { %v4786_v58 = vmax.f32 %v4785_v5, %v4327_v9 }
 0x4e0   : > { %v4048_v18 = vpop.f32.mrb[228].mxu1  ;;  %5346 = vmatmul.mubr.bf16.gmra.mrb[176].mxu0 %v10243_v54 }
 0x4e1   : > { %v4658_v16 = vmax.f32 %v4657_v0, %v4048_v18  ;;  %v4050_v20 = vpop.f32.mrb[229].mxu1  ;;  %5355 = vmatprep.mubr.bf16.mxu0 %v10113_v17 }
 0x4e2   : > { %v4695_v24 = vmax.f32 %v4694_v49, %v4050_v20  ;;  %v4052_v19 = vpop.f32.mrb[230].mxu1 }
 0x4e3   : > { %v4659_v61 = vmax.f32 %v4658_v16, %v4052_v19  ;;  %v4054_v1 = vpop.f32.mrb[231].mxu1  ;;  %v4331_v46 = vpop.f32.mrb[72].mxu0 }
 0x4e4   : > { %v4696_v8 = vmax.f32 %v4695_v24, %v4054_v1  ;;  %v4750_v30 = vmax.f32 %v4749_v27, %v4331_v46  ;;  %v4333_v26 = vpop.f32.mrb[73].mxu0 }
 0x4e5   : > { %v4787_v13 = vmax.f32 %v4786_v58, %v4333_v26  ;;  %v4335_v2 = vpop.f32.mrb[74].mxu0  ;;  %4543 = vmatmul.mubr.bf16.gmra.mrb[80].mxu1 %v8877_v47 }
 0x4e6   : > { %v4751_v59 = vmax.f32 %v4750_v30, %v4335_v2  ;;  %v4337_v29 = vpop.f32.mrb[75].mxu0  ;;  %4552 = vmatprep.mubr.bf16.mxu1 %v10113_v17 }
 0x4e7   : > { %v4788_v0 = vmax.f32 %v4787_v13, %v4337_v29 }
 0x4e8   : > { %v4058_v39 = vpop.f32.mrb[232].mxu1  ;;  %5356 = vmatmul.mubr.bf16.gmra.mrb[180].mxu0 %v10244_v34 }
 0x4e9   : > { %v4660_v44 = vmax.f32 %v4659_v61, %v4058_v39  ;;  %v4060_v49 = vpop.f32.mrb[233].mxu1  ;;  %5365 = vmatprep.mubr.bf16.mxu0 %v10113_v17  ;;  %v10268_v61 = vld [vmem:[#allocation73_spill] sm:$0xff] }
 0x4ea   : > { %v4697_v10 = vmax.f32 %v4696_v8, %v4060_v49  ;;  %v4062_v45 = vpop.f32.mrb[234].mxu1 }
 0x4eb   : > { %v4661_v5 = vmax.f32 %v4660_v44, %v4062_v45  ;;  %v4064_v55 = vpop.f32.mrb[235].mxu1  ;;  %v4341_v40 = vpop.f32.mrb[76].mxu0 }
 0x4ec   : > { %v4698_v27 = vmax.f32 %v4697_v10, %v4064_v55  ;;  %v4752_v9 = vmax.f32 %v4751_v59, %v4341_v40  ;;  %v4343_v47 = vpop.f32.mrb[77].mxu0 }
 0x4ed   : > { %v4789_v58 = vmax.f32 %v4788_v0, %v4343_v47  ;;  %v4345_v18 = vpop.f32.mrb[78].mxu0  ;;  %4553 = vmatmul.mubr.bf16.gmra.mrb[84].mxu1 %v10188_v38 }
 0x4ee   : > { %v4753_v16 = vmax.f32 %v4752_v9, %v4345_v18  ;;  %v4347_v20 = vpop.f32.mrb[79].mxu0  ;;  %4562 = vmatprep.mubr.bf16.mxu1 %v10113_v17 }
 0x4ef   : > { %v4790_v24 = vmax.f32 %v4789_v58, %v4347_v20 }
 0x4f0   : > { %v4068_v19 = vpop.f32.mrb[236].mxu1  ;;  %5366 = vmatmul.mubr.bf16.gmra.mrb[184].mxu0 %v10268_v61 }
 0x4f1   : > { %v4662_v1 = vmax.f32 %v4661_v5, %v4068_v19  ;;  %v4070_v46 = vpop.f32.mrb[237].mxu1  ;;  %5375 = vmatprep.mubr.bf16.mxu0 %v10113_v17  ;;  %v10269_v5 = vld [vmem:[#allocation72_spill] sm:$0xff] }
 0x4f2   : > { %v4699_v8 = vmax.f32 %v4698_v27, %v4070_v46  ;;  %v4072_v30 = vpop.f32.mrb[238].mxu1 }
 0x4f3   : > { %v4663_v26 = vmax.f32 %v4662_v1, %v4072_v30  ;;  %v4074_v13 = vpop.f32.mrb[239].mxu1  ;;  %v4351_v2 = vpop.f32.mrb[80].mxu0 }
 0x4f4   : > { %v4700_v59 = vmax.f32 %v4699_v8, %v4074_v13  ;;  %v4754_v29 = vmax.f32 %v4753_v16, %v4351_v2  ;;  %v4353_v38 = vpop.f32.mrb[81].mxu0 }
 0x4f5   : > { %v4791_v0 = vmax.f32 %v4790_v24, %v4353_v38  ;;  %v4355_v39 = vpop.f32.mrb[82].mxu0  ;;  %4563 = vmatmul.mubr.bf16.gmra.mrb[88].mxu1 %v8899_v7 }
 0x4f6   : > { %v4755_v44 = vmax.f32 %v4754_v29, %v4355_v39  ;;  %v4357_v49 = vpop.f32.mrb[83].mxu0  ;;  %4572 = vmatprep.mubr.bf16.mxu1 %v10113_v17 }
 0x4f7   : > { %v4792_v10 = vmax.f32 %v4791_v0, %v4357_v49 }
 0x4f8   : > { %v4078_v45 = vpop.f32.mrb[240].mxu1  ;;  %5376 = vmatmul.mubr.bf16.gmra.mrb[188].mxu0 %v10269_v5 }
 0x4f9   : > { %v4664_v55 = vmax.f32 %v4663_v26, %v4078_v45  ;;  %v4080_v40 = vpop.f32.mrb[241].mxu1  ;;  %5385 = vmatprep.mubr.bf16.mxu0 %v10113_v17  ;;  %v10270_v45 = vld [vmem:[#allocation48_spill] sm:$0xff] }
 0x4fa   : > { %v4701_v27 = vmax.f32 %v4700_v59, %v4080_v40  ;;  %v4082_v9 = vpop.f32.mrb[242].mxu1 }
 0x4fb   : > { %v4665_v47 = vmax.f32 %v4664_v55, %v4082_v9  ;;  %v4084_v58 = vpop.f32.mrb[243].mxu1  ;;  %v4361_v18 = vpop.f32.mrb[84].mxu0  ;;  %v3694_v55 = vrot.slane %v10270_v45, 4 }
 0x4fc   : > { %v4702_v16 = vmax.f32 %v4701_v27, %v4084_v58  ;;  %v4756_v20 = vmax.f32 %v4755_v44, %v4361_v18  ;;  %v4363_v7 = vpop.f32.mrb[85].mxu0  ;;  %v10271_v27 = vld [vmem:[#allocation43_spill] sm:$0xff] }
 0x4fd   : > { %v4793_v24 = vmax.f32 %v4792_v10, %v4363_v7  ;;  %v4365_v19 = vpop.f32.mrb[86].mxu0  ;;  %4573 = vmatmul.mubr.bf16.gmra.mrb[92].mxu1 %v10189_v51 }
 0x4fe   : > { %v4757_v1 = vmax.f32 %v4756_v20, %v4365_v19  ;;  %v4367_v46 = vpop.f32.mrb[87].mxu0  ;;  %5112 = vmatprep.mubr.bf16.mxu1 %v10113_v17  ;;  %v3695_v19 = vmax.f32 %v10270_v45, %v3694_v55  ;;  %v10276_v45 = vld [vmem:[#allocation53_spill] sm:$0xff] }
 0x4ff   : > { %v4794_v8 = vmax.f32 %v4793_v24, %v4367_v46 }
 0x500   : > { %v4088_v30 = vpop.f32.mrb[244].mxu1  ;;  %5386 = vmatmul.mubr.bf16.gmra.mrb[192].mxu0 %v10247_v11 }
 0x501   : > { %v4666_v26 = vmax.f32 %v4665_v47, %v4088_v30  ;;  %v4090_v13 = vpop.f32.mrb[245].mxu1  ;;  %5395 = vmatprep.mubr.bf16.mxu0 %v10113_v17  ;;  %v10272_v47 = vld [vmem:[#allocation49_spill] sm:$0xff] }
 0x502   : > { %v4703_v2 = vmax.f32 %v4702_v16, %v4090_v13  ;;  %v4092_v59 = vpop.f32.mrb[246].mxu1  ;;  %v3731_v58 = vrot.slane %v10272_v47, 4  ;;  %v10273_v16 = vld [vmem:[#allocation50_spill] sm:$0xff] }
 0x503   : > { %v4667_v29 = vmax.f32 %v4666_v26, %v4092_v59  ;;  %v4094_v38 = vpop.f32.mrb[247].mxu1  ;;  %v4371_v0 = vpop.f32.mrb[88].mxu0  ;;  %v10275_v59 = vld [vmem:[#allocation52_spill] sm:$0xff] }
 0x504   : > { %v4704_v39 = vmax.f32 %v4703_v2, %v4094_v38  ;;  %v4758_v44 = vmax.f32 %v4757_v1, %v4371_v0  ;;  %v4373_v51 = vpop.f32.mrb[89].mxu0  ;;  %v3732_v30 = vmax.f32 %v10272_v47, %v3731_v58  ;;  %v10277_v47 = vld [vmem:[#allocation55_spill] sm:$0xff] }
 0x505   : > { %v4795_v49 = vmax.f32 %v4794_v8, %v4373_v51  ;;  %v4375_v10 = vpop.f32.mrb[90].mxu0  ;;  %5113 = vmatmul.mubr.bf16.vlgmr.msra.gmra.mrb[96].mxu1 %v10221_v37  ;;  %v10274_v8 = vld [vmem:[#allocation51_spill] sm:$0xff] }
 0x506   : > { %v4759_v40 = vmax.f32 %v4758_v44, %v4375_v10  ;;  %5467 = vmatpush1.bf16.msra.mxu1 %v10271_v27  ;;  %v4377_v9 = vpop.f32.mrb[91].mxu0  ;;  %5122 = vmatprep.mubr.bf16.mxu1 %v10113_v17  ;;  %v3733_v55 = vrot.slane %v3732_v30, 2 }
 0x507   : > { %v4796_v18 = vmax.f32 %v4795_v49, %v4377_v9  ;;  %5468 = vmatprep.subr.bf16.mxu1 %v10273_v16  ;;  %v3696_v49 = vrot.slane %v3695_v19, 2 }
 0x508   : > { %v4098_v20 = vpop.f32.mrb[248].mxu1  ;;  %5396 = vmatmul.mubr.bf16.gmra.mrb[196].mxu0 %v10249_v35 }
 0x509   : > { %v4668_v7 = vmax.f32 %v4667_v29, %v4098_v20  ;;  %v4100_v24 = vpop.f32.mrb[249].mxu1  ;;  %5405 = vmatprep.mubr.bf16.mxu0 %v10113_v17 }
 0x50a   : > { %v4705_v1 = vmax.f32 %v4704_v39, %v4100_v24  ;;  %v4102_v46 = vpop.f32.mrb[250].mxu1  ;;  %5469 = vmatpush1.bf16.msra.mxu1 %v10274_v8  ;;  %v3697_v24 = vmax.f32 %v3695_v19, %v3696_v49  ;;  %v10311_v8 = vld [vmem:[#allocation40_spill] sm:$0xff] }
 0x50b   : > { %v4669_v26 = vmax.f32 %v4668_v7, %v4102_v46  ;;  %v4104_v13 = vpop.f32.mrb[251].mxu1  ;;  %v4381_v2 = vpop.f32.mrb[92].mxu0  ;;  %5470 = vmatprep.subr.bf16.mxu1 %v10275_v59 }
 0x50c   : > { %v4706_v38 = vmax.f32 %v4705_v1, %v4104_v13  ;;  %v4760_v0 = vmax.f32 %v4759_v40, %v4381_v2  ;;  %v4383_v44 = vpop.f32.mrb[93].mxu0  ;;  %v10278_v2 = vld [vmem:[#allocation56_spill] sm:$0xff]  ;;  %v3698_v19 = vrot.slane %v3697_v24, 1 }
 0x50d   : > { %v4797_v29 = vmax.f32 %v4796_v18, %v4383_v44  ;;  %v4385_v51 = vpop.f32.mrb[94].mxu0  ;;  %5123 = vmatmul.mubr.bf16.gmra.mrb[100].mxu1 %v10226_v14 }
 0x50e   : > { %v4761_v10 = vmax.f32 %v4760_v0, %v4385_v51  ;;  %v4387_v39 = vpop.f32.mrb[95].mxu0  ;;  %5132 = vmatprep.mubr.bf16.mxu1 %v10113_v17  ;;  %5471 = vmatpush1.bf16.msra.mxu1 %v10276_v45  ;;  %v3734_v0 = vmax.f32 %v3732_v30, %v3733_v55  ;;  %v10280_v30 = vld [vmem:[#allocation58_spill] sm:$0xff] }
 0x50f   : > { %v4798_v9 = vmax.f32 %v4797_v29, %v4387_v39  ;;  %5472 = vmatprep.subr.bf16.mxu1 %v10277_v47 }
 0x510   : > { %v4762_v58 = vrot.slane %v4761_v10, 4  ;;  %v4108_v20 = vpop.f32.mrb[252].mxu1  ;;  %5406 = vmatmul.mubr.bf16.gmra.mrb[200].mxu0 %v10250_v43  ;;  %v3735_v55 = vrot.slane %v3734_v0, 1 }
 0x511   : > { %v4799_v40 = vrot.slane %v4798_v9, 4  ;;  %v4670_v18 = vmax.f32 %v4669_v26, %v4108_v20  ;;  %v4110_v7 = vpop.f32.mrb[253].mxu1  ;;  %5415 = vmatprep.mubr.bf16.mxu0 %v10113_v17 }
 0x512   : > { %v4763_v1 = vmax.f32 %v4761_v10, %v4762_v58  ;;  %v4707_v46 = vmax.f32 %v4706_v38, %v4110_v7  ;;  %v4112_v13 = vpop.f32.mrb[254].mxu1  ;;  %5473 = vmatpush1.bf16.msra.mxu1 %v10278_v2 }
 0x513   : > { %v4800_v44 = vmax.f32 %v4798_v9, %v4799_v40  ;;  %v4671_v29 = vmax.f32 %v4670_v18, %v4112_v13  ;;  %v4114_v51 = vpop.f32.mrb[255].mxu1  ;;  %v4921_v39 = vpop.f32.mrb[96].mxu0  ;;  %5474 = vmatprep.subr.bf16.mxu1 %v10279_v28  ;;  %v10281_v40 = vld [vmem:[#allocation60_spill] sm:$0xff]  ;;  %v10287_v28 = vld [vmem:[#allocation62_spill] sm:$0xff] }
 0x514   : > { %v4764_v47 = vrot.slane %v4763_v1, 2  ;;  %v4708_v45 = vmax.f32 %v4707_v46, %v4114_v51  ;;  %v4923_v59 = vpop.f32.mrb[97].mxu0 }
 0x515   : > { %v4801_v26 = vrot.slane %v4800_v44, 2  ;;  %v4925_v20 = vpop.f32.mrb[98].mxu0  ;;  %5133 = vmatmul.mubr.bf16.gmra.mrb[104].mxu1 %v10231_v60 }
 0x516   : > { %v4765_v49 = vmax.f32 %v4763_v1, %v4764_v47  ;;  %v5659_v38 = vmax.f32 %v4921_v39, %v4925_v20  ;;  %v4927_v10 = vpop.f32.mrb[99].mxu0  ;;  %5142 = vmatprep.mubr.bf16.mxu1 %v10113_v17  ;;  %5475 = vmatpush1.bf16.msra.mxu1 %v10280_v30  ;;  %v9472_v47 = vmax.f32 %v3697_v24, %v3698_v19  ;;  %v10284_v30 = vld [vmem:[#allocation61_spill] sm:$0xff] }
 0x517   : > { %v4802_v9 = vmax.f32 %v4800_v44, %v4801_v26  ;;  %v5696_v58 = vmax.f32 %v4923_v59, %v4927_v10  ;;  %5476 = vmatprep.subr.bf16.mxu1 %v10281_v40  ;;  %v9477_v59 = vmax.f32 %v3734_v0, %v3735_v55 }
 0x518   : > { %v4766_v18 = vrot.slane %v4765_v49, 1  ;;  %v4118_v7 = vpop.f32.mrb[0].mxu1  ;;  %5416 = vmatmul.mubr.bf16.gmra.mrb[204].mxu0 %v10251_v31  ;;  %10282 = vst [vmem:[#allocation9_spill] sm:$0xff] %v9472_v47 }
 0x519   : > { %v4803_v46 = vrot.slane %v4802_v9, 1  ;;  %v4672_v13 = vmax.f32 %v4671_v29, %v4118_v7  ;;  %v4120_v51 = vpop.f32.mrb[1].mxu1  ;;  %5425 = vmatprep.mubr.bf16.mxu0 %v10113_v17  ;;  %10285 = vst [vmem:[#allocation13_spill] sm:$0xff] %v9477_v59 }
 0x51a   : > { %v9474_v1 = vmax.f32 %v4765_v49, %v4766_v18  ;;  %v4709_v39 = vmax.f32 %v4708_v45, %v4120_v51  ;;  %v4122_v20 = vpop.f32.mrb[2].mxu1  ;;  %5477 = vmatpush1.bf16.msra.mxu1 %v10284_v30  ;;  %v10290_v51 = vld [vmem:[#allocation67_spill] sm:$0xff] }
 0x51b   : > { %v9479_v44 = vmax.f32 %v4802_v9, %v4803_v46  ;;  %v4673_v26 = vmax.f32 %v4672_v13, %v4122_v20  ;;  %v4124_v10 = vpop.f32.mrb[3].mxu1  ;;  %v4931_v40 = vpop.f32.mrb[100].mxu0  ;;  %5478 = vmatprep.subr.bf16.mxu1 %v10287_v28  ;;  %v10288_v9 = vld [vmem:[#allocation64_spill] sm:$0xff]  ;;  %v10289_v46 = vld [vmem:[#allocation66_spill] sm:$0xff] }
 0x51c   : > { %10283 = vst [vmem:[#allocation10_spill] sm:$0xff] %v9474_v1  ;;  %v4710_v29 = vmax.f32 %v4709_v39, %v4124_v10  ;;  %v5660_v7 = vmax.f32 %v5659_v38, %v4931_v40  ;;  %v4933_v2 = vpop.f32.mrb[101].mxu0  ;;  %v10302_v1 = vld [vmem:[#allocation33_spill] sm:$0xff] }
 0x51d   : > { %10286 = vst [vmem:[#allocation25_spill] sm:$0xff] %v9479_v44  ;;  %v5697_v19 = vmax.f32 %v5696_v58, %v4933_v2  ;;  %v4935_v45 = vpop.f32.mrb[102].mxu0  ;;  %5143 = vmatmul.mubr.bf16.gmra.mrb[108].mxu1 %v10238_v42 }
 0x51e   : > { %v5661_v49 = vmax.f32 %v5660_v7, %v4935_v45  ;;  %v4937_v55 = vpop.f32.mrb[103].mxu0  ;;  %5152 = vmatprep.mubr.bf16.mxu1 %v10113_v17  ;;  %5479 = vmatpush1.bf16.msra.mxu1 %v10288_v9  ;;  %v10291_v7 = vld [vmem:[#allocation24_spill] sm:$0xff] }
 0x51f   : > { %v5698_v18 = vmax.f32 %v5697_v19, %v4937_v55  ;;  %5480 = vmatprep.subr.bf16.mxu1 %v10289_v46  ;;  %v10292_v46 = vld [vmem:[#allocation83_spill] sm:$0xff] }
 0x520   : > { %v4128_v38 = vpop.f32.mrb[4].mxu1  ;;  %5426 = vmatmul.mubr.bf16.gmra.mrb[208].mxu0 %v10252_v33 }
 0x521   : > { %v4674_v40 = vmax.f32 %v4673_v26, %v4128_v38  ;;  %v4130_v2 = vpop.f32.mrb[5].mxu1  ;;  %5435 = vmatprep.mubr.bf16.mxu0 %v10113_v17 }
 0x522   : > { %v4711_v58 = vmax.f32 %v4710_v29, %v4130_v2  ;;  %v4132_v13 = vpop.f32.mrb[6].mxu1  ;;  %5481 = vmatpush1.bf16.msra.mxu1 %v10290_v51 }
 0x523   : > { %v4675_v39 = vmax.f32 %v4674_v40, %v4132_v13  ;;  %v4134_v20 = vpop.f32.mrb[7].mxu1  ;;  %v4941_v10 = vpop.f32.mrb[104].mxu0  ;;  %6156 = vmatprep.subr.bf16.mxu1 %v10291_v7 }
 0x524   : > { %v4712_v45 = vmax.f32 %v4711_v58, %v4134_v20  ;;  %v5662_v19 = vmax.f32 %v5661_v49, %v4941_v10  ;;  %v4943_v55 = vpop.f32.mrb[105].mxu0 }
 0x525   : > { %v5699_v0 = vmax.f32 %v5698_v18, %v4943_v55  ;;  %v4945_v24 = vpop.f32.mrb[106].mxu0  ;;  %5153 = vmatmul.mubr.bf16.gmra.mrb[112].mxu1 %v10243_v54 }
 0x526   : > { %v5663_v26 = vmax.f32 %v5662_v19, %v4945_v24  ;;  %v4947_v38 = vpop.f32.mrb[107].mxu0  ;;  %5162 = vmatprep.mubr.bf16.mxu1 %v10113_v17 }
 0x527   : > { %v5700_v29 = vmax.f32 %v5699_v0, %v4947_v38 }
 0x528   : > { %v4138_v2 = vpop.f32.mrb[8].mxu1  ;;  %5436 = vmatmul.mubr.bf16.gmra.mrb[212].mxu0 %v10253_v21 }
 0x529   : > { %v4676_v40 = vmax.f32 %v4675_v39, %v4138_v2  ;;  %v4140_v13 = vpop.f32.mrb[9].mxu1  ;;  %5445 = vmatprep.mubr.bf16.mxu0 %v10113_v17 }
 0x52a   : > { %v4713_v7 = vmax.f32 %v4712_v45, %v4140_v13  ;;  %v4142_v58 = vpop.f32.mrb[10].mxu1 }
 0x52b   : > { %v4677_v49 = vmax.f32 %v4676_v40, %v4142_v58  ;;  %v4144_v20 = vpop.f32.mrb[11].mxu1  ;;  %v4951_v18 = vpop.f32.mrb[108].mxu0 }
 0x52c   : > { %v4714_v10 = vmax.f32 %v4713_v7, %v4144_v20  ;;  %v5664_v55 = vmax.f32 %v5663_v26, %v4951_v18  ;;  %v4953_v51 = vpop.f32.mrb[109].mxu0 }
 0x52d   : > { %v5701_v24 = vmax.f32 %v5700_v29, %v4953_v51  ;;  %v4955_v19 = vpop.f32.mrb[110].mxu0  ;;  %5163 = vmatmul.mubr.bf16.gmra.mrb[116].mxu1 %v10244_v34 }
 0x52e   : > { %v5665_v0 = vmax.f32 %v5664_v55, %v4955_v19  ;;  %v4957_v38 = vpop.f32.mrb[111].mxu0  ;;  %5172 = vmatprep.mubr.bf16.mxu1 %v10113_v17 }
 0x52f   : > { %v5702_v39 = vmax.f32 %v5701_v24, %v4957_v38 }
 0x530   : > { %v4148_v2 = vpop.f32.mrb[12].mxu1  ;;  %5446 = vmatmul.mubr.bf16.gmra.mrb[216].mxu0 %v10254_v12 }
 0x531   : > { %v4678_v45 = vmax.f32 %v4677_v49, %v4148_v2  ;;  %v4150_v13 = vpop.f32.mrb[13].mxu1  ;;  %5455 = vmatprep.mubr.bf16.mxu0 %v10113_v17 }
 0x532   : > { %v4715_v40 = vmax.f32 %v4714_v10, %v4150_v13  ;;  %v4152_v7 = vpop.f32.mrb[14].mxu1 }
 0x533   : > { %v4679_v26 = vmax.f32 %v4678_v45, %v4152_v7  ;;  %v4154_v58 = vpop.f32.mrb[15].mxu1  ;;  %v4961_v51 = vpop.f32.mrb[112].mxu0 }
 0x534   : > { %v4716_v29 = vmax.f32 %v4715_v40, %v4154_v58  ;;  %v5666_v20 = vmax.f32 %v5665_v0, %v4961_v51  ;;  %v4963_v18 = vpop.f32.mrb[113].mxu0 }
 0x535   : > { %v5703_v55 = vmax.f32 %v5702_v39, %v4963_v18  ;;  %v4965_v19 = vpop.f32.mrb[114].mxu0  ;;  %5173 = vmatmul.mubr.bf16.gmra.mrb[120].mxu1 %v10268_v61 }
 0x536   : > { %v5667_v24 = vmax.f32 %v5666_v20, %v4965_v19  ;;  %v4967_v38 = vpop.f32.mrb[115].mxu0  ;;  %5182 = vmatprep.mubr.bf16.mxu1 %v10113_v17 }
 0x537   : > { %v5704_v49 = vmax.f32 %v5703_v55, %v4967_v38 }
 0x538   : > { %v4158_v2 = vpop.f32.mrb[16].mxu1  ;;  %5456 = vmatmul.mubr.bf16.gmra.mrb[220].mxu0 %v10255_v48 }
 0x539   : > { %v4680_v10 = vmax.f32 %v4679_v26, %v4158_v2  ;;  %v4160_v13 = vpop.f32.mrb[17].mxu1  ;;  %5995 = vmatprep.mubr.bf16.mxu0 %v10113_v17 }
 0x53a   : > { %v4717_v45 = vmax.f32 %v4716_v29, %v4160_v13  ;;  %v4162_v40 = vpop.f32.mrb[18].mxu1 }
 0x53b   : > { %v4681_v0 = vmax.f32 %v4680_v10, %v4162_v40  ;;  %v4164_v7 = vpop.f32.mrb[19].mxu1  ;;  %v4971_v39 = vpop.f32.mrb[116].mxu0  ;;  %v10293_v10 = vld [vmem:[#allocation26_spill] sm:$0xff] }
 0x53c   : > { %v4718_v58 = vmax.f32 %v4717_v45, %v4164_v7  ;;  %v5668_v51 = vmax.f32 %v5667_v24, %v4971_v39  ;;  %v4973_v18 = vpop.f32.mrb[117].mxu0 }
 0x53d   : > { %v5705_v20 = vmax.f32 %v5704_v49, %v4973_v18  ;;  %v4975_v19 = vpop.f32.mrb[118].mxu0  ;;  %5183 = vmatmul.mubr.bf16.gmra.mrb[124].mxu1 %v10269_v5  ;;  %v10294_v49 = vld [vmem:[#allocation28_spill] sm:$0xff] }
 0x53e   : > { %v5669_v55 = vmax.f32 %v5668_v51, %v4975_v19  ;;  %v4977_v38 = vpop.f32.mrb[119].mxu0  ;;  %5192 = vmatprep.mubr.bf16.mxu1 %v10113_v17 }
 0x53f   : > { %v5706_v26 = vmax.f32 %v5705_v20, %v4977_v38 }
 0x540   : > { %v4168_v2 = vpop.f32.mrb[20].mxu1  ;;  %5996 = vmatmul.mubr.bf16.vlgmr.msra.gmra.mrb[224].mxu0 %v10292_v46 }
 0x541   : > { %v4682_v29 = vmax.f32 %v4681_v0, %v4168_v2  ;;  %v4170_v13 = vpop.f32.mrb[21].mxu1  ;;  %6005 = vmatprep.mubr.bf16.mxu0 %v10113_v17  ;;  %6350 = vmatpush1.bf16.msra.mxu0 %v10293_v10  ;;  %v10295_v0 = vld [vmem:[#allocation29_spill] sm:$0xff] }
 0x542   : > { %v4719_v24 = vmax.f32 %v4718_v58, %v4170_v13  ;;  %v4172_v45 = vpop.f32.mrb[22].mxu1  ;;  %6351 = vmatprep.subr.bf16.mxu0 %v10294_v49  ;;  %v10296_v58 = vld [vmem:[#allocation30_spill] sm:$0xff] }
 0x543   : > { %v4683_v40 = vmax.f32 %v4682_v29, %v4172_v45  ;;  %v4174_v7 = vpop.f32.mrb[23].mxu1  ;;  %v4981_v39 = vpop.f32.mrb[120].mxu0  ;;  %v10297_v29 = vld [vmem:[#allocation82_spill] sm:$0xff] }
 0x544   : > { %v4720_v51 = vmax.f32 %v4719_v24, %v4174_v7  ;;  %v5670_v18 = vmax.f32 %v5669_v55, %v4981_v39  ;;  %v4983_v19 = vpop.f32.mrb[121].mxu0  ;;  %v10298_v55 = vld [vmem:[#allocation31_spill] sm:$0xff]  ;;  %v10299_v7 = vld [vmem:[#allocation32_spill] sm:$0xff]  ;;  %v10300_v39 = vld [vmem:[#allocation54_spill] sm:$0xff] }
 0x545   : > { %v5707_v20 = vmax.f32 %v5706_v26, %v4983_v19  ;;  %v4985_v38 = vpop.f32.mrb[122].mxu0  ;;  %5193 = vmatmul.mubr.bf16.gmra.mrb[128].mxu1 %v10247_v11  ;;  %6352 = vmatpush1.bf16.msra.mxu0 %v10295_v0 }
 0x546   : > { %v5671_v2 = vmax.f32 %v5670_v18, %v4985_v38  ;;  %v4987_v9 = vpop.f32.mrb[123].mxu0  ;;  %5202 = vmatprep.mubr.bf16.mxu1 %v10113_v17  ;;  %6353 = vmatprep.subr.bf16.mxu0 %v10296_v58  ;;  %v3620_v18 = vrot.slane %v10300_v39, 4  ;;  %v10301_v58 = vld [vmem:[#allocation59_spill] sm:$0xff] }
 0x547   : > { %v5708_v13 = vmax.f32 %v5707_v20, %v4987_v9  ;;  %v3657_v9 = vrot.slane %v10301_v58, 4 }
 0x548   : > { %v4178_v10 = vpop.f32.mrb[24].mxu1  ;;  %6006 = vmatmul.mubr.bf16.gmra.mrb[228].mxu0 %v10297_v29 }
 0x549   : > { %v4684_v45 = vmax.f32 %v4683_v40, %v4178_v10  ;;  %v4180_v24 = vpop.f32.mrb[25].mxu1  ;;  %6015 = vmatprep.mubr.bf16.mxu0 %v10113_v17  ;;  %6354 = vmatpush1.bf16.msra.mxu0 %v10298_v55  ;;  %v10303_v55 = vld [vmem:[#allocation34_spill] sm:$0xff] }
 0x54a   : > { %v4721_v26 = vmax.f32 %v4720_v51, %v4180_v24  ;;  %v4182_v49 = vpop.f32.mrb[26].mxu1  ;;  %6355 = vmatprep.subr.bf16.mxu0 %v10299_v7  ;;  %v3658_v7 = vmax.f32 %v10301_v58, %v3657_v9 }
 0x54b   : > { %v4685_v19 = vmax.f32 %v4684_v45, %v4182_v49  ;;  %v4184_v38 = vpop.f32.mrb[27].mxu1  ;;  %v4991_v0 = vpop.f32.mrb[124].mxu0  ;;  %v3621_v45 = vmax.f32 %v10300_v39, %v3620_v18 }
 0x54c   : > { %v4722_v20 = vmax.f32 %v4721_v26, %v4184_v38  ;;  %v5672_v44 = vmax.f32 %v5671_v2, %v4991_v0  ;;  %v4993_v59 = vpop.f32.mrb[125].mxu0  ;;  %v10304_v2 = vld [vmem:[#allocation85_spill] sm:$0xff]  ;;  %v10305_v38 = vld [vmem:[#allocation35_spill] sm:$0xff]  ;;  %v10306_v0 = vld [vmem:[#allocation36_spill] sm:$0xff]  ;;  %v3659_v18 = vrot.slane %v3658_v7, 2 }
 0x54d   : > { %v5709_v40 = vmax.f32 %v5708_v13, %v4993_v59  ;;  %v4995_v10 = vpop.f32.mrb[126].mxu0  ;;  %5203 = vmatmul.mubr.bf16.gmra.mrb[132].mxu1 %v10249_v35  ;;  %6356 = vmatpush1.bf16.msra.mxu0 %v10302_v1 }
 0x54e   : > { %v5673_v51 = vmax.f32 %v5672_v44, %v4995_v10  ;;  %v4997_v24 = vpop.f32.mrb[127].mxu0  ;;  %5212 = vmatprep.mubr.bf16.mxu1 %v10113_v17  ;;  %6357 = vmatprep.subr.bf16.mxu0 %v10303_v55  ;;  %v3622_v10 = vrot.slane %v3621_v45, 2 }
 0x54f   : > { %v5710_v49 = vmax.f32 %v5709_v40, %v4997_v24 }
 0x550   : > { %v4188_v26 = vpop.f32.mrb[28].mxu1  ;;  %6016 = vmatmul.mubr.bf16.gmra.mrb[232].mxu0 %v10304_v2 }
 0x551   : > { %v4686_v59 = vmax.f32 %v4685_v19, %v4188_v26  ;;  %v4190_v13 = vpop.f32.mrb[29].mxu1  ;;  %6025 = vmatprep.mubr.bf16.mxu0 %v10113_v17  ;;  %6358 = vmatpush1.bf16.msra.mxu0 %v10305_v38  ;;  %v10307_v26 = vld [vmem:[#allocation37_spill] sm:$0xff] }
 0x552   : > { %v4723_v1 = vmax.f32 %v4722_v20, %v4190_v13  ;;  %v4192_v44 = vpop.f32.mrb[30].mxu1  ;;  %6359 = vmatprep.subr.bf16.mxu0 %v10306_v0  ;;  %v10308_v0 = vld [vmem:[#allocation38_spill] sm:$0xff] }
 0x553   : > { %v4687_v55 = vmax.f32 %v4686_v59, %v4192_v44  ;;  %v4194_v47 = vpop.f32.mrb[31].mxu1  ;;  %v5001_v39 = vpop.f32.mrb[128].mxu0  ;;  %v3623_v59 = vmax.f32 %v3621_v45, %v3622_v10 }
 0x554   : > { %v4724_v40 = vmax.f32 %v4723_v1, %v4194_v47  ;;  %v5674_v58 = vmax.f32 %v5673_v51, %v5001_v39  ;;  %v5003_v9 = vpop.f32.mrb[129].mxu0  ;;  %v3660_v47 = vmax.f32 %v3658_v7, %v3659_v18  ;;  %v10309_v39 = vld [vmem:[#allocation84_spill] sm:$0xff] }
 0x555   : > { %v4688_v24 = vrot.slane %v4687_v55, 4  ;;  %v5711_v28 = vmax.f32 %v5710_v49, %v5003_v9  ;;  %v5005_v19 = vpop.f32.mrb[130].mxu0  ;;  %5213 = vmatmul.mubr.bf16.gmra.mrb[136].mxu1 %v10250_v43  ;;  %6360 = vmatpush1.bf16.msra.mxu0 %v10307_v26  ;;  %v10310_v26 = vld [vmem:[#allocation39_spill] sm:$0xff]  ;;  %v3624_v16 = vrot.slane %v3623_v59, 1 }
 0x556   : > { %v4725_v38 = vrot.slane %v4724_v40, 4  ;;  %v5675_v20 = vmax.f32 %v5674_v58, %v5005_v19  ;;  %v5007_v13 = vpop.f32.mrb[131].mxu0  ;;  %5222 = vmatprep.mubr.bf16.mxu1 %v10113_v17  ;;  %6361 = vmatprep.subr.bf16.mxu0 %v10308_v0  ;;  %v3661_v7 = vrot.slane %v3660_v47, 1 }
 0x557   : > { %v4689_v44 = vmax.f32 %v4687_v55, %v4688_v24  ;;  %v5712_v30 = vmax.f32 %v5711_v28, %v5007_v13 }
 0x558   : > { %v4726_v51 = vmax.f32 %v4724_v40, %v4725_v38  ;;  %v4424_v1 = vpop.f32.mrb[32].mxu1  ;;  %6026 = vmatmul.mubr.bf16.gmra.mrb[236].mxu0 %v10309_v39 }
 0x559   : > { %v4690_v49 = vrot.slane %v4689_v44, 2  ;;  %v4426_v9 = vpop.f32.mrb[33].mxu1  ;;  %6035 = vmatprep.mubr.bf16.mxu0 %v10113_v17  ;;  %6362 = vmatpush1.bf16.msra.mxu0 %v10310_v26  ;;  %v10312_v26 = vld [vmem:[#allocation41_spill] sm:$0xff] }
 0x55a   : > { %v4727_v58 = vrot.slane %v4726_v51, 2  ;;  %v4428_v19 = vpop.f32.mrb[34].mxu1  ;;  %6363 = vmatprep.subr.bf16.mxu0 %v10311_v8 }
 0x55b   : > { %v4691_v0 = vmax.f32 %v4689_v44, %v4690_v49  ;;  %v4805_v45 = vmax.f32 %v4424_v1, %v4428_v19  ;;  %v4430_v10 = vpop.f32.mrb[35].mxu1  ;;  %v5011_v28 = vpop.f32.mrb[132].mxu0  ;;  %v9543_v44 = vmax.f32 %v3623_v59, %v3624_v16  ;;  %v9547_v49 = vmax.f32 %v3660_v47, %v3661_v7  ;;  %v10317_v59 = vld [vmem:[#allocation88_spill] sm:$0xff] }
 0x55c   : > { %v4728_v55 = vmax.f32 %v4726_v51, %v4727_v58  ;;  %v4842_v18 = vmax.f32 %v4426_v9, %v4430_v10  ;;  %v5676_v40 = vmax.f32 %v5675_v20, %v5011_v28  ;;  %v5013_v24 = vpop.f32.mrb[133].mxu0  ;;  %v10314_v9 = vld [vmem:[#allocation87_spill] sm:$0xff] }
 0x55d   : > { %v4692_v38 = vrot.slane %v4691_v0, 1  ;;  %v5713_v13 = vmax.f32 %v5712_v30, %v5013_v24  ;;  %v5015_v27 = vpop.f32.mrb[134].mxu0  ;;  %5223 = vmatmul.mubr.bf16.gmra.mrb[140].mxu1 %v10251_v31  ;;  %6364 = vmatpush1.bf16.msra.mxu0 %v10312_v26  ;;  %v10315_v26 = vld [vmem:[#allocation86_spill] sm:$0xff] }
 0x55e   : > { %v4729_v39 = vrot.slane %v4728_v55, 1  ;;  %v5677_v43 = vmax.f32 %v5676_v40, %v5015_v27  ;;  %v5017_v8 = vpop.f32.mrb[135].mxu0  ;;  %5232 = vmatprep.mubr.bf16.mxu1 %v10113_v17  ;;  %v10318_v27 = vld [vmem:[#allocation91_spill] sm:$0xff] }
 0x55f   : > { %v9545_v1 = vmax.f32 %v4691_v0, %v4692_v38  ;;  %v5714_v51 = vmax.f32 %v5713_v13, %v5017_v8 }
 0x560   : > { %v9549_v20 = vmax.f32 %v4728_v55, %v4729_v39  ;;  %v4434_v30 = vpop.f32.mrb[36].mxu1  ;;  %6036 = vmatmul.mubr.bf16.gmra.mrb[240].mxu0 %v10314_v9 }
 0x561   : > { %v4806_v58 = vmax.f32 %v4805_v45, %v4434_v30  ;;  %v4436_v19 = vpop.f32.mrb[37].mxu1  ;;  %6045 = vmatprep.mubr.bf16.mxu0 %v10113_v17 }
 0x562   : > { %10313 = vst [vmem:[#allocation65_spill] sm:$0xff] %v9549_v20  ;;  %v4843_v10 = vmax.f32 %v4842_v18, %v4436_v19  ;;  %v4438_v16 = vpop.f32.mrb[38].mxu1 }
 0x563   : > { %v4807_v0 = vmax.f32 %v4806_v58, %v4438_v16  ;;  %v4440_v47 = vpop.f32.mrb[39].mxu1  ;;  %v5021_v28 = vpop.f32.mrb[136].mxu0 }
 0x564   : > { %v4844_v39 = vmax.f32 %v4843_v10, %v4440_v47  ;;  %v5678_v7 = vmax.f32 %v5677_v43, %v5021_v28  ;;  %v5023_v55 = vpop.f32.mrb[137].mxu0 }
 0x565   : > { %v5715_v40 = vmax.f32 %v5714_v51, %v5023_v55  ;;  %v5025_v24 = vpop.f32.mrb[138].mxu0  ;;  %5233 = vmatmul.mubr.bf16.gmra.mrb[144].mxu1 %v10252_v33 }
 0x566   : > { %v5679_v45 = vmax.f32 %v5678_v7, %v5025_v24  ;;  %v5027_v38 = vpop.f32.mrb[139].mxu0  ;;  %5242 = vmatprep.mubr.bf16.mxu1 %v10113_v17 }
 0x567   : > { %v5716_v13 = vmax.f32 %v5715_v40, %v5027_v38 }
 0x568   : > { %v4444_v18 = vpop.f32.mrb[40].mxu1  ;;  %6046 = vmatmul.mubr.bf16.gmra.mrb[244].mxu0 %v10315_v26 }
 0x569   : > { %v4808_v8 = vmax.f32 %v4807_v0, %v4444_v18  ;;  %v4446_v30 = vpop.f32.mrb[41].mxu1  ;;  %6055 = vmatprep.mubr.bf16.mxu0 %v10113_v17  ;;  %v10316_v18 = vld [vmem:[#allocation89_spill] sm:$0xff] }
 0x56a   : > { %v4845_v58 = vmax.f32 %v4844_v39, %v4446_v30  ;;  %v4448_v19 = vpop.f32.mrb[42].mxu1 }
 0x56b   : > { %v4809_v43 = vmax.f32 %v4808_v8, %v4448_v19  ;;  %v4450_v10 = vpop.f32.mrb[43].mxu1  ;;  %v5031_v51 = vpop.f32.mrb[140].mxu0 }
 0x56c   : > { %v4846_v16 = vmax.f32 %v4845_v58, %v4450_v10  ;;  %v5680_v47 = vmax.f32 %v5679_v45, %v5031_v51  ;;  %v5033_v28 = vpop.f32.mrb[141].mxu0 }
 0x56d   : > { %v5717_v7 = vmax.f32 %v5716_v13, %v5033_v28  ;;  %v5035_v55 = vpop.f32.mrb[142].mxu0  ;;  %5243 = vmatmul.mubr.bf16.gmra.mrb[148].mxu1 %v10253_v21 }
 0x56e   : > { %v5681_v40 = vmax.f32 %v5680_v47, %v5035_v55  ;;  %v5037_v24 = vpop.f32.mrb[143].mxu0  ;;  %5252 = vmatprep.mubr.bf16.mxu1 %v10113_v17 }
 0x56f   : > { %v5718_v0 = vmax.f32 %v5717_v7, %v5037_v24 }
 0x570   : > { %v4454_v38 = vpop.f32.mrb[44].mxu1  ;;  %6056 = vmatmul.mubr.bf16.gmra.mrb[248].mxu0 %v10316_v18 }
 0x571   : > { %v4810_v39 = vmax.f32 %v4809_v43, %v4454_v38  ;;  %v4456_v30 = vpop.f32.mrb[45].mxu1  ;;  %6065 = vmatprep.mubr.bf16.mxu0 %v10113_v17 }
 0x572   : > { %v4847_v8 = vmax.f32 %v4846_v16, %v4456_v30  ;;  %v4458_v58 = vpop.f32.mrb[46].mxu1 }
 0x573   : > { %v4811_v45 = vmax.f32 %v4810_v39, %v4458_v58  ;;  %v4460_v19 = vpop.f32.mrb[47].mxu1  ;;  %v5041_v13 = vpop.f32.mrb[144].mxu0 }
 0x574   : > { %v4848_v10 = vmax.f32 %v4847_v8, %v4460_v19  ;;  %v5682_v51 = vmax.f32 %v5681_v40, %v5041_v13  ;;  %v5043_v28 = vpop.f32.mrb[145].mxu0 }
 0x575   : > { %v5719_v47 = vmax.f32 %v5718_v0, %v5043_v28  ;;  %v5045_v55 = vpop.f32.mrb[146].mxu0  ;;  %5253 = vmatmul.mubr.bf16.gmra.mrb[152].mxu1 %v10254_v12 }
 0x576   : > { %v5683_v7 = vmax.f32 %v5682_v51, %v5045_v55  ;;  %v5047_v24 = vpop.f32.mrb[147].mxu0  ;;  %5262 = vmatprep.mubr.bf16.mxu1 %v10113_v17 }
 0x577   : > { %v5720_v43 = vmax.f32 %v5719_v47, %v5047_v24 }
 0x578   : > { %v4464_v38 = vpop.f32.mrb[48].mxu1  ;;  %6066 = vmatmul.mubr.bf16.gmra.mrb[252].mxu0 %v10317_v59 }
 0x579   : > { %v4812_v16 = vmax.f32 %v4811_v45, %v4464_v38  ;;  %v4466_v30 = vpop.f32.mrb[49].mxu1  ;;  %6075 = vmatprep.mubr.bf16.mxu0 %v10113_v17 }
 0x57a   : > { %v4849_v39 = vmax.f32 %v4848_v10, %v4466_v30  ;;  %v4468_v8 = vpop.f32.mrb[50].mxu1 }
 0x57b   : > { %v4813_v40 = vmax.f32 %v4812_v16, %v4468_v8  ;;  %v4470_v58 = vpop.f32.mrb[51].mxu1  ;;  %v5051_v0 = vpop.f32.mrb[148].mxu0 }
 0x57c   : > { %v4850_v19 = vmax.f32 %v4849_v39, %v4470_v58  ;;  %v5684_v13 = vmax.f32 %v5683_v7, %v5051_v0  ;;  %v5053_v28 = vpop.f32.mrb[149].mxu0 }
 0x57d   : > { %v5721_v51 = vmax.f32 %v5720_v43, %v5053_v28  ;;  %v5055_v55 = vpop.f32.mrb[150].mxu0  ;;  %5263 = vmatmul.mubr.bf16.gmra.mrb[156].mxu1 %v10255_v48 }
 0x57e   : > { %v5685_v47 = vmax.f32 %v5684_v13, %v5055_v55  ;;  %v5057_v24 = vpop.f32.mrb[151].mxu0  ;;  %5498 = vmatprep.mubr.bf16.mxu1 %v10113_v17 }
 0x57f   : > { %v5722_v45 = vmax.f32 %v5721_v51, %v5057_v24  ;;  %v10319_v24 = vld [vmem:[#allocation27_spill] sm:$0xff] }
 0x580   : > { %v4474_v38 = vpop.f32.mrb[52].mxu1  ;;  %6076 = vmatmul.mubr.bf16.gmra.mrb[0].mxu0 %v10318_v27 }
 0x581   : > { %v4814_v10 = vmax.f32 %v4813_v40, %v4474_v38  ;;  %v4476_v30 = vpop.f32.mrb[53].mxu1  ;;  %6085 = vmatprep.mubr.bf16.mxu0 %v10113_v17  ;;  %v10320_v38 = vld [vmem:[#allocation42_spill] sm:$0xff] }
 0x582   : > { %v4851_v16 = vmax.f32 %v4850_v19, %v4476_v30  ;;  %v4478_v39 = vpop.f32.mrb[54].mxu1 }
 0x583   : > { %v4815_v7 = vmax.f32 %v4814_v10, %v4478_v39  ;;  %v4480_v8 = vpop.f32.mrb[55].mxu1  ;;  %v5061_v43 = vpop.f32.mrb[152].mxu0  ;;  %v10321_v10 = vld [vmem:[#allocation90_spill] sm:$0xff] }
 0x584   : > { %v4852_v58 = vmax.f32 %v4851_v16, %v4480_v8  ;;  %v5686_v0 = vmax.f32 %v5685_v47, %v5061_v43  ;;  %v5063_v28 = vpop.f32.mrb[153].mxu0  ;;  %v10322_v43 = vld [vmem:[#allocation45_spill] sm:$0xff] }
 0x585   : > { %v5723_v13 = vmax.f32 %v5722_v45, %v5063_v28  ;;  %v5065_v55 = vpop.f32.mrb[154].mxu0  ;;  %5499 = vmatmul.mubr.bf16.vlgmr.msra.gmra.mrb[160].mxu1 %v10221_v37 }
 0x586   : > { %v5687_v51 = vmax.f32 %v5686_v0, %v5065_v55  ;;  %6157 = vmatpush1.bf16.msra.mxu1 %v10319_v24  ;;  %v5067_v20 = vpop.f32.mrb[155].mxu0  ;;  %5508 = vmatprep.mubr.bf16.mxu1 %v10113_v17 }
 0x587   : > { %v5724_v40 = vmax.f32 %v5723_v13, %v5067_v20  ;;  %6158 = vmatprep.subr.bf16.mxu1 %v10320_v38 }
 0x588   : > { %v4484_v19 = vpop.f32.mrb[56].mxu1  ;;  %6086 = vmatmul.mubr.bf16.gmra.mrb[4].mxu0 %v10321_v10 }
 0x589   : > { %v4816_v30 = vmax.f32 %v4815_v7, %v4484_v19  ;;  %v4486_v16 = vpop.f32.mrb[57].mxu1  ;;  %6095 = vmatprep.mubr.bf16.mxu0 %v10113_v17 }
 0x58a   : > { %v4853_v47 = vmax.f32 %v4852_v58, %v4486_v16  ;;  %v4488_v45 = vpop.f32.mrb[58].mxu1  ;;  %6159 = vmatpush1.bf16.msra.mxu1 %v10179_v4  ;;  %v10323_v58 = vld [vmem:[#allocation46_spill] sm:$0xff]  ;;  %v10324_v4 = vld [vmem:[#allocation47_spill] sm:$0xff]  ;;  %v10325_v16 = vld [vmem:[#allocation93_spill] sm:$0xff] }
 0x58b   : > { %v4817_v37 = vmax.f32 %v4816_v30, %v4488_v45  ;;  %v4490_v39 = vpop.f32.mrb[59].mxu1  ;;  %v5071_v8 = vpop.f32.mrb[156].mxu0  ;;  %6160 = vmatprep.subr.bf16.mxu1 %v10322_v43 }
 0x58c   : > { %v4854_v0 = vmax.f32 %v4853_v47, %v4490_v39  ;;  %v5688_v20 = vmax.f32 %v5687_v51, %v5071_v8  ;;  %v5073_v28 = vpop.f32.mrb[157].mxu0 }
 0x58d   : > { %v5725_v13 = vmax.f32 %v5724_v40, %v5073_v28  ;;  %v5075_v55 = vpop.f32.mrb[158].mxu0  ;;  %5509 = vmatmul.mubr.bf16.gmra.mrb[164].mxu1 %v10226_v14 }
 0x58e   : > { %v5689_v7 = vmax.f32 %v5688_v20, %v5075_v55  ;;  %v5077_v24 = vpop.f32.mrb[159].mxu0  ;;  %5518 = vmatprep.mubr.bf16.mxu1 %v10113_v17  ;;  %6161 = vmatpush1.bf16.msra.mxu1 %v10323_v58 }
 0x58f   : > { %v5726_v38 = vmax.f32 %v5725_v13, %v5077_v24  ;;  %6162 = vmatprep.subr.bf16.mxu1 %v10324_v4 }
 0x590   : > { %v5690_v19 = vrot.slane %v5689_v7, 4  ;;  %v4494_v30 = vpop.f32.mrb[60].mxu1  ;;  %6096 = vmatmul.mubr.bf16.gmra.mrb[8].mxu0 %v10325_v16 }
 0x591   : > { %v5727_v47 = vrot.slane %v5726_v38, 4  ;;  %v4818_v51 = vmax.f32 %v4817_v37, %v4494_v30  ;;  %v4496_v45 = vpop.f32.mrb[61].mxu1  ;;  %6105 = vmatprep.mubr.bf16.mxu0 %v10113_v17 }
 0x592   : > { %v5691_v40 = vmax.f32 %v5689_v7, %v5690_v19  ;;  %v4855_v14 = vmax.f32 %v4854_v0, %v4496_v45  ;;  %v4498_v39 = vpop.f32.mrb[62].mxu1  ;;  %6163 = vmatpush1.bf16.msra.mxu1 %v8614_v23  ;;  %v10326_v19 = vld [vmem:[#allocation92_spill] sm:$0xff] }
 0x593   : > { %v5728_v8 = vmax.f32 %v5726_v38, %v5727_v47  ;;  %v4819_v43 = vmax.f32 %v4818_v51, %v4498_v39  ;;  %v4500_v20 = vpop.f32.mrb[63].mxu1  ;;  %v5307_v28 = vpop.f32.mrb[160].mxu0  ;;  %6164 = vmatprep.subr.bf16.mxu1 %v8622_v52 }
 0x594   : > { %v5692_v13 = vrot.slane %v5691_v40, 2  ;;  %v4856_v55 = vmax.f32 %v4855_v14, %v4500_v20  ;;  %v5309_v24 = vpop.f32.mrb[161].mxu0 }
 0x595   : > { %v5729_v58 = vrot.slane %v5728_v8, 2  ;;  %v5311_v4 = vpop.f32.mrb[162].mxu0  ;;  %5519 = vmatmul.mubr.bf16.gmra.mrb[168].mxu1 %v10231_v60 }
 0x596   : > { %v5693_v37 = vmax.f32 %v5691_v40, %v5692_v13  ;;  %v5807_v30 = vmax.f32 %v5307_v28, %v5311_v4  ;;  %v5313_v7 = vpop.f32.mrb[163].mxu0  ;;  %5528 = vmatprep.mubr.bf16.mxu1 %v10113_v17  ;;  %6165 = vmatpush1.bf16.msra.mxu1 %v8632_v57 }
 0x597   : > { %v5730_v23 = vmax.f32 %v5728_v8, %v5729_v58  ;;  %v5844_v0 = vmax.f32 %v5309_v24, %v5313_v7  ;;  %6166 = vmatprep.subr.bf16.mxu1 %v8637_v53  ;;  %v10327_v53 = vmax.f32 %v9356_v3, %v9358_v63  ;;  %v10329_v63 = vld [vmem:[#allocation44_spill] sm:$0xff] }
 0x598   : > { %v5694_v38 = vrot.slane %v5693_v37, 1  ;;  %v4504_v52 = vpop.f32.mrb[64].mxu1  ;;  %6106 = vmatmul.mubr.bf16.gmra.mrb[12].mxu0 %v10326_v19 }
 0x599   : > { %v5731_v47 = vrot.slane %v5730_v23, 1  ;;  %v4820_v51 = vmax.f32 %v4819_v43, %v4504_v52  ;;  %v4506_v45 = vpop.f32.mrb[65].mxu1  ;;  %6115 = vmatprep.mubr.bf16.mxu0 %v10113_v17 }
 0x59a   : > { %v5695_v60 = vmax.f32 %v5693_v37, %v5694_v38  ;;  %v4857_v40 = vmax.f32 %v4856_v55, %v4506_v45  ;;  %v4508_v14 = vpop.f32.mrb[66].mxu1  ;;  %6167 = vmatpush1.bf16.msra.mxu1 %v8650_v25  ;;  %v10328_v55 = vmax.f32 %v9361_v15, %v9363_v36 }
 0x59b   : > { %v5732_v39 = vmax.f32 %v5730_v23, %v5731_v47  ;;  %v4821_v57 = vmax.f32 %v4820_v51, %v4508_v14  ;;  %v4510_v8 = vpop.f32.mrb[67].mxu1  ;;  %v5317_v20 = vpop.f32.mrb[164].mxu0  ;;  %6168 = vmatprep.subr.bf16.mxu1 %v10186_v22 }
 0x59c   : > { %v9600_v28 = vmax.f32 %v10327_v53, %v5695_v60  ;;  %v4858_v43 = vmax.f32 %v4857_v40, %v4510_v8  ;;  %v5808_v13 = vmax.f32 %v5807_v30, %v5317_v20  ;;  %v5319_v24 = vpop.f32.mrb[165].mxu0 }
 0x59d   : > { %v9605_v58 = vmax.f32 %v10328_v55, %v5732_v39  ;;  %v5845_v25 = vmax.f32 %v5844_v0, %v5319_v24  ;;  %v5321_v4 = vpop.f32.mrb[166].mxu0  ;;  %5529 = vmatmul.mubr.bf16.gmra.mrb[172].mxu1 %v10238_v42  ;;  %v10330_v39 = vld [vmem:[#allocation94_spill] sm:$0xff] }
 0x59e   : > { %v5809_v37 = vmax.f32 %v5808_v13, %v5321_v4  ;;  %v5323_v7 = vpop.f32.mrb[167].mxu0  ;;  %5538 = vmatprep.mubr.bf16.mxu1 %v10113_v17  ;;  %6169 = vmatpush1.bf16.msra.mxu1 %v10187_v50 }
 0x59f   : > { %v5846_v22 = vmax.f32 %v5845_v25, %v5323_v7  ;;  %6170 = vmatprep.subr.bf16.mxu1 %v8661_v41 }
 0x5a0   : > { %v4514_v3 = vpop.f32.mrb[68].mxu1  ;;  %6116 = vmatmul.mubr.bf16.gmra.mrb[16].mxu0 %v10329_v63 }
 0x5a1   : > { %v4822_v30 = vmax.f32 %v4821_v57, %v4514_v3  ;;  %v4516_v15 = vpop.f32.mrb[69].mxu1  ;;  %6125 = vmatprep.mubr.bf16.mxu0 %v10113_v17  ;;  %v10331_v3 = vld [vmem:[#allocation96_spill] sm:$0xff] }
 0x5a2   : > { %v4859_v36 = vmax.f32 %v4858_v43, %v4516_v15  ;;  %v4518_v23 = vpop.f32.mrb[70].mxu1  ;;  %6171 = vmatpush1.bf16.msra.mxu1 %v8677_v56 }
 0x5a3   : > { %v4823_v42 = vmax.f32 %v4822_v30, %v4518_v23  ;;  %v4520_v0 = vpop.f32.mrb[71].mxu1  ;;  %v5327_v38 = vpop.f32.mrb[168].mxu0  ;;  %6542 = vmatprep.subr.bf16.mxu1 %v8683_v32 }
 0x5a4   : > { %v4860_v50 = vmax.f32 %v4859_v36, %v4520_v0  ;;  %v5810_v52 = vmax.f32 %v5809_v37, %v5327_v38  ;;  %v5329_v47 = vpop.f32.mrb[169].mxu0 }
 0x5a5   : > { %v5847_v41 = vmax.f32 %v5846_v22, %v5329_v47  ;;  %v5331_v51 = vpop.f32.mrb[170].mxu0  ;;  %5539 = vmatmul.mubr.bf16.gmra.mrb[176].mxu1 %v10243_v54 }
 0x5a6   : > { %v5811_v45 = vmax.f32 %v5810_v52, %v5331_v51  ;;  %v5333_v60 = vpop.f32.mrb[171].mxu0  ;;  %5548 = vmatprep.mubr.bf16.mxu1 %v10113_v17 }
 0x5a7   : > { %v5848_v40 = vmax.f32 %v5847_v41, %v5333_v60 }
 0x5a8   : > { %v4524_v14 = vpop.f32.mrb[72].mxu1  ;;  %6126 = vmatmul.mubr.bf16.gmra.mrb[20].mxu0 %v10330_v39 }
 0x5a9   : > { %v4824_v56 = vmax.f32 %v4823_v42, %v4524_v14  ;;  %v4526_v57 = vpop.f32.mrb[73].mxu1  ;;  %6135 = vmatprep.mubr.bf16.mxu0 %v10113_v17  ;;  %v10332_v14 = vld [vmem:[#allocation95_spill] sm:$0xff] }
 0x5aa   : > { %v4861_v32 = vmax.f32 %v4860_v50, %v4526_v57  ;;  %v4528_v8 = vpop.f32.mrb[74].mxu1 }
 0x5ab   : > { %v4825_v20 = vmax.f32 %v4824_v56, %v4528_v8  ;;  %v4530_v53 = vpop.f32.mrb[75].mxu1  ;;  %v5337_v43 = vpop.f32.mrb[172].mxu0 }
 0x5ac   : > { %v4862_v13 = vmax.f32 %v4861_v32, %v4530_v53  ;;  %v5812_v24 = vmax.f32 %v5811_v45, %v5337_v43  ;;  %v5339_v54 = vpop.f32.mrb[173].mxu0 }
 0x5ad   : > { %v5849_v55 = vmax.f32 %v5848_v40, %v5339_v54  ;;  %v5341_v25 = vpop.f32.mrb[174].mxu0  ;;  %5549 = vmatmul.mubr.bf16.gmra.mrb[180].mxu1 %v10244_v34 }
 0x5ae   : > { %v5813_v4 = vmax.f32 %v5812_v24, %v5341_v25  ;;  %v5343_v37 = vpop.f32.mrb[175].mxu0  ;;  %5558 = vmatprep.mubr.bf16.mxu1 %v10113_v17 }
 0x5af   : > { %v5850_v7 = vmax.f32 %v5849_v55, %v5343_v37 }
 0x5b0   : > { %v4534_v22 = vpop.f32.mrb[76].mxu1  ;;  %6136 = vmatmul.mubr.bf16.gmra.mrb[24].mxu0 %v10331_v3 }
 0x5b1   : > { %v4826_v30 = vmax.f32 %v4825_v20, %v4534_v22  ;;  %v4536_v15 = vpop.f32.mrb[77].mxu1  ;;  %6145 = vmatprep.mubr.bf16.mxu0 %v10113_v17 }
 0x5b2   : > { %v4863_v36 = vmax.f32 %v4862_v13, %v4536_v15  ;;  %v4538_v23 = vpop.f32.mrb[78].mxu1 }
 0x5b3   : > { %v4827_v42 = vmax.f32 %v4826_v30, %v4538_v23  ;;  %v4540_v0 = vpop.f32.mrb[79].mxu1  ;;  %v5347_v38 = vpop.f32.mrb[176].mxu0 }
 0x5b4   : > { %v4864_v50 = vmax.f32 %v4863_v36, %v4540_v0  ;;  %v5814_v52 = vmax.f32 %v5813_v4, %v5347_v38  ;;  %v5349_v34 = vpop.f32.mrb[177].mxu0 }
 0x5b5   : > { %v5851_v47 = vmax.f32 %v5850_v7, %v5349_v34  ;;  %v5351_v41 = vpop.f32.mrb[178].mxu0  ;;  %5559 = vmatmul.mubr.bf16.gmra.mrb[184].mxu1 %v10268_v61 }
 0x5b6   : > { %v5815_v51 = vmax.f32 %v5814_v52, %v5351_v41  ;;  %v5353_v45 = vpop.f32.mrb[179].mxu0  ;;  %5568 = vmatprep.mubr.bf16.mxu1 %v10113_v17 }
 0x5b7   : > { %v5852_v60 = vmax.f32 %v5851_v47, %v5353_v45 }
 0x5b8   : > { %v4544_v40 = vpop.f32.mrb[80].mxu1  ;;  %6146 = vmatmul.mubr.bf16.gmra.mrb[28].mxu0 %v10332_v14 }
 0x5b9   : > { %v4828_v56 = vmax.f32 %v4827_v42, %v4544_v40  ;;  %v4546_v57 = vpop.f32.mrb[81].mxu1  ;;  %6381 = vmatprep.mubr.bf16.mxu0 %v10113_v17 }
 0x5ba   : > { %v4865_v32 = vmax.f32 %v4864_v50, %v4546_v57  ;;  %v4548_v8 = vpop.f32.mrb[82].mxu1 }
 0x5bb   : > { %v4829_v20 = vmax.f32 %v4828_v56, %v4548_v8  ;;  %v4550_v53 = vpop.f32.mrb[83].mxu1  ;;  %v5357_v43 = vpop.f32.mrb[180].mxu0 }
 0x5bc   : > { %v4866_v13 = vmax.f32 %v4865_v32, %v4550_v53  ;;  %v5816_v24 = vmax.f32 %v5815_v51, %v5357_v43  ;;  %v5359_v61 = vpop.f32.mrb[181].mxu0  ;;  %v3768_v32 = vrot.slane %v9412_v6, 4 }
 0x5bd   : > { %v5853_v54 = vmax.f32 %v5852_v60, %v5359_v61  ;;  %v5361_v55 = vpop.f32.mrb[182].mxu0  ;;  %5569 = vmatmul.mubr.bf16.gmra.mrb[188].mxu1 %v10269_v5 }
 0x5be   : > { %v5817_v25 = vmax.f32 %v5816_v24, %v5361_v55  ;;  %v5363_v4 = vpop.f32.mrb[183].mxu0  ;;  %5578 = vmatprep.mubr.bf16.mxu1 %v10113_v17 }
 0x5bf   : > { %v5854_v37 = vmax.f32 %v5853_v54, %v5363_v4  ;;  %v3769_v4 = vmax.f32 %v9412_v6, %v3768_v32 }
 0x5c0   : > { %v4554_v7 = vpop.f32.mrb[84].mxu1  ;;  %6382 = vmatmul.mubr.bf16.vlgmr.msra.gmra.mrb[32].mxu0 %v10292_v46 }
 0x5c1   : > { %v4830_v22 = vmax.f32 %v4829_v20, %v4554_v7  ;;  %v4556_v30 = vpop.f32.mrb[85].mxu1  ;;  %6391 = vmatprep.mubr.bf16.mxu0 %v10113_v17 }
 0x5c2   : > { %v4867_v15 = vmax.f32 %v4866_v13, %v4556_v30  ;;  %v4558_v36 = vpop.f32.mrb[86].mxu1 }
 0x5c3   : > { %v4831_v23 = vmax.f32 %v4830_v22, %v4558_v36  ;;  %v4560_v42 = vpop.f32.mrb[87].mxu1  ;;  %v5367_v0 = vpop.f32.mrb[184].mxu0 }
 0x5c4   : > { %v4868_v38 = vmax.f32 %v4867_v15, %v4560_v42  ;;  %v5818_v50 = vmax.f32 %v5817_v25, %v5367_v0  ;;  %v5369_v5 = vpop.f32.mrb[185].mxu0  ;;  %v3770_v42 = vrot.slane %v3769_v4, 2 }
 0x5c5   : > { %v5855_v52 = vmax.f32 %v5854_v37, %v5369_v5  ;;  %v5371_v34 = vpop.f32.mrb[186].mxu0  ;;  %5579 = vmatmul.mubr.bf16.gmra.mrb[192].mxu1 %v10247_v11  ;;  %v3805_v11 = vrot.slane %v9414_v62, 4 }
 0x5c6   : > { %v5819_v47 = vmax.f32 %v5818_v50, %v5371_v34  ;;  %v5373_v41 = vpop.f32.mrb[187].mxu0  ;;  %5588 = vmatprep.mubr.bf16.mxu1 %v10113_v17 }
 0x5c7   : > { %v5856_v51 = vmax.f32 %v5855_v52, %v5373_v41  ;;  %v3806_v7 = vmax.f32 %v9414_v62, %v3805_v11  ;;  %v10333_v41 = vld [vmem:[#allocation77_spill] sm:$0xff] }
 0x5c8   : > { %v4564_v45 = vpop.f32.mrb[88].mxu1  ;;  %6392 = vmatmul.mubr.bf16.gmra.mrb[36].mxu0 %v10297_v29 }
 0x5c9   : > { %v4832_v60 = vmax.f32 %v4831_v23, %v4564_v45  ;;  %v4566_v40 = vpop.f32.mrb[89].mxu1  ;;  %6401 = vmatprep.mubr.bf16.mxu0 %v10113_v17  ;;  %v3807_v50 = vrot.slane %v3806_v7, 2 }
 0x5ca   : > { %v4869_v56 = vmax.f32 %v4868_v38, %v4566_v40  ;;  %v4568_v57 = vpop.f32.mrb[90].mxu1  ;;  %v3771_v40 = vmax.f32 %v3769_v4, %v3770_v42 }
 0x5cb   : > { %v4833_v8 = vmax.f32 %v4832_v60, %v4568_v57  ;;  %v4570_v20 = vpop.f32.mrb[91].mxu1  ;;  %v5377_v53 = vpop.f32.mrb[188].mxu0  ;;  %v3808_v32 = vmax.f32 %v3806_v7, %v3807_v50 }
 0x5cc   : > { %v4870_v43 = vmax.f32 %v4869_v56, %v4570_v20  ;;  %v5820_v13 = vmax.f32 %v5819_v47, %v5377_v53  ;;  %v5379_v24 = vpop.f32.mrb[189].mxu0  ;;  %v10334_v53 = vld [vmem:[#allocation84_spill] sm:$0xff] }
 0x5cd   : > { %v5857_v61 = vmax.f32 %v5856_v51, %v5379_v24  ;;  %v5381_v54 = vpop.f32.mrb[190].mxu0  ;;  %5589 = vmatmul.mubr.bf16.gmra.mrb[196].mxu1 %v10249_v35 }
 0x5ce   : > { %v5821_v55 = vmax.f32 %v5820_v13, %v5381_v54  ;;  %v5383_v25 = vpop.f32.mrb[191].mxu0  ;;  %5598 = vmatprep.mubr.bf16.mxu1 %v10113_v17 }
 0x5cf   : > { %v5858_v37 = vmax.f32 %v5857_v61, %v5383_v25  ;;  %v3772_v61 = vrot.slane %v3771_v40, 1 }
 0x5d0   : > { %v4574_v22 = vpop.f32.mrb[92].mxu1  ;;  %6402 = vmatmul.mubr.bf16.gmra.mrb[40].mxu0 %v10304_v2 }
 0x5d1   : > { %v4834_v30 = vmax.f32 %v4833_v8, %v4574_v22  ;;  %v4576_v15 = vpop.f32.mrb[93].mxu1  ;;  %6411 = vmatprep.mubr.bf16.mxu0 %v10113_v17  ;;  %v3809_v22 = vrot.slane %v3808_v32, 1  ;;  %v9649_v50 = vmax.f32 %v3771_v40, %v3772_v61 }
 0x5d2   : > { %v4871_v36 = vmax.f32 %v4870_v43, %v4576_v15  ;;  %v4578_v23 = vpop.f32.mrb[94].mxu1 }
 0x5d3   : > { %v4835_v35 = vmax.f32 %v4834_v30, %v4578_v23  ;;  %v4580_v0 = vpop.f32.mrb[95].mxu1  ;;  %v5387_v38 = vpop.f32.mrb[192].mxu0 }
 0x5d4   : > { %v4872_v5 = vmax.f32 %v4871_v36, %v4580_v0  ;;  %v5822_v52 = vmax.f32 %v5821_v55, %v5387_v38  ;;  %v5389_v6 = vpop.f32.mrb[193].mxu0 }
 0x5d5   : > { %v4836_v34 = vrot.slane %v4835_v35, 4  ;;  %v5859_v47 = vmax.f32 %v5858_v37, %v5389_v6  ;;  %v5391_v62 = vpop.f32.mrb[194].mxu0  ;;  %5599 = vmatmul.mubr.bf16.gmra.mrb[200].mxu1 %v10333_v41  ;;  %v9653_v6 = vmax.f32 %v3808_v32, %v3809_v22 }
 0x5d6   : > { %v4873_v51 = vrot.slane %v4872_v5, 4  ;;  %v5823_v45 = vmax.f32 %v5822_v52, %v5391_v62  ;;  %v5393_v60 = vpop.f32.mrb[195].mxu0  ;;  %5608 = vmatprep.mubr.bf16.mxu1 %v10113_v17 }
 0x5d7   : > { %v4837_v56 = vmax.f32 %v4835_v35, %v4836_v34  ;;  %v5860_v57 = vmax.f32 %v5859_v47, %v5393_v60 }
 0x5d8   : > { %v4874_v8 = vmax.f32 %v4872_v5, %v4873_v51  ;;  %v5114_v20 = vpop.f32.mrb[96].mxu1  ;;  %6412 = vmatmul.mubr.bf16.gmra.mrb[44].mxu0 %v10334_v53 }
 0x5d9   : > { %v4838_v11 = vrot.slane %v4837_v56, 2  ;;  %v5116_v43 = vpop.f32.mrb[97].mxu1  ;;  %6421 = vmatprep.mubr.bf16.mxu0 %v10113_v17 }
 0x5da   : > { %v4875_v13 = vrot.slane %v4874_v8, 2  ;;  %v5118_v24 = vpop.f32.mrb[98].mxu1 }
 0x5db   : > { %v4839_v54 = vmax.f32 %v4837_v56, %v4838_v11  ;;  %v5733_v55 = vmax.f32 %v5114_v20, %v5118_v24  ;;  %v5120_v25 = vpop.f32.mrb[99].mxu1  ;;  %v5397_v37 = vpop.f32.mrb[196].mxu0 }
 0x5dc   : > { %v4876_v4 = vmax.f32 %v4874_v8, %v4875_v13  ;;  %v5770_v30 = vmax.f32 %v5116_v43, %v5120_v25  ;;  %v5824_v15 = vmax.f32 %v5823_v45, %v5397_v37  ;;  %v5399_v7 = vpop.f32.mrb[197].mxu0 }
 0x5dd   : > { %v4840_v36 = vrot.slane %v4839_v54, 1  ;;  %v5861_v23 = vmax.f32 %v5860_v57, %v5399_v7  ;;  %v5401_v42 = vpop.f32.mrb[198].mxu0  ;;  %5609 = vmatmul.mubr.bf16.gmra.mrb[204].mxu1 %v10251_v31 }
 0x5de   : > { %v4877_v35 = vrot.slane %v4876_v4, 1  ;;  %v5825_v0 = vmax.f32 %v5824_v15, %v5401_v42  ;;  %v5403_v38 = vpop.f32.mrb[199].mxu0  ;;  %5618 = vmatprep.mubr.bf16.mxu1 %v10113_v17 }
 0x5df   : > { %v9651_v5 = vmax.f32 %v4839_v54, %v4840_v36  ;;  %v5862_v52 = vmax.f32 %v5861_v23, %v5403_v38 }
 0x5e0   : > { %v9655_v34 = vmax.f32 %v4876_v4, %v4877_v35  ;;  %v5124_v47 = vpop.f32.mrb[100].mxu1  ;;  %6422 = vmatmul.mubr.bf16.gmra.mrb[48].mxu0 %v10314_v9 }
 0x5e1   : > { %v5734_v62 = vmax.f32 %v5733_v55, %v5124_v47  ;;  %v5126_v41 = vpop.f32.mrb[101].mxu1  ;;  %6431 = vmatprep.mubr.bf16.mxu0 %v10113_v17  ;;  %v4885_v31 = vmax.f32 %v9649_v50, %v9651_v5 }
 0x5e2   : > { %v5771_v51 = vmax.f32 %v5770_v30, %v5126_v41  ;;  %v5128_v45 = vpop.f32.mrb[102].mxu1  ;;  %v4886_v60 = vmax.f32 %v9653_v6, %v9655_v34 }
 0x5e3   : > { %v5735_v40 = vmax.f32 %v5734_v62, %v5128_v45  ;;  %v5130_v56 = vpop.f32.mrb[103].mxu1  ;;  %v5407_v57 = vpop.f32.mrb[200].mxu0 }
 0x5e4   : > { %v5772_v32 = vmax.f32 %v5771_v51, %v5130_v56  ;;  %v5826_v8 = vmax.f32 %v5825_v0, %v5407_v57  ;;  %v5409_v20 = vpop.f32.mrb[201].mxu0 }
 0x5e5   : > { %v5863_v11 = vmax.f32 %v5862_v52, %v5409_v20  ;;  %v5411_v43 = vpop.f32.mrb[202].mxu0  ;;  %5619 = vmatmul.mubr.bf16.gmra.mrb[208].mxu1 %v10252_v33 }
 0x5e6   : > { %v5827_v13 = vmax.f32 %v5826_v8, %v5411_v43  ;;  %v5413_v24 = vpop.f32.mrb[203].mxu0  ;;  %5628 = vmatprep.mubr.bf16.mxu1 %v10113_v17 }
 0x5e7   : > { %v5864_v61 = vmax.f32 %v5863_v11, %v5413_v24 }
 0x5e8   : > { %v5134_v54 = vpop.f32.mrb[104].mxu1  ;;  %6432 = vmatmul.mubr.bf16.gmra.mrb[52].mxu0 %v10315_v26 }
 0x5e9   : > { %v5736_v55 = vmax.f32 %v5735_v40, %v5134_v54  ;;  %v5136_v25 = vpop.f32.mrb[105].mxu1  ;;  %6441 = vmatprep.mubr.bf16.mxu0 %v10113_v17 }
 0x5ea   : > { %v5773_v37 = vmax.f32 %v5772_v32, %v5136_v25  ;;  %v5138_v22 = vpop.f32.mrb[106].mxu1 }
 0x5eb   : > { %v5737_v4 = vmax.f32 %v5736_v55, %v5138_v22  ;;  %v5140_v30 = vpop.f32.mrb[107].mxu1  ;;  %v5417_v15 = vpop.f32.mrb[204].mxu0 }
 0x5ec   : > { %v5774_v7 = vmax.f32 %v5773_v37, %v5140_v30  ;;  %v5828_v36 = vmax.f32 %v5827_v13, %v5417_v15  ;;  %v5419_v33 = vpop.f32.mrb[205].mxu0 }
 0x5ed   : > { %v5865_v23 = vmax.f32 %v5864_v61, %v5419_v33  ;;  %v5421_v42 = vpop.f32.mrb[206].mxu0  ;;  %5629 = vmatmul.mubr.bf16.gmra.mrb[212].mxu1 %v10253_v21 }
 0x5ee   : > { %v5829_v35 = vmax.f32 %v5828_v36, %v5421_v42  ;;  %v5423_v0 = vpop.f32.mrb[207].mxu0  ;;  %5638 = vmatprep.mubr.bf16.mxu1 %v10113_v17 }
 0x5ef   : > { %v5866_v38 = vmax.f32 %v5865_v23, %v5423_v0 }
 0x5f0   : > { %v5144_v52 = vpop.f32.mrb[108].mxu1  ;;  %6442 = vmatmul.mubr.bf16.gmra.mrb[56].mxu0 %v10316_v18 }
 0x5f1   : > { %v5738_v47 = vmax.f32 %v5737_v4, %v5144_v52  ;;  %v5146_v62 = vpop.f32.mrb[109].mxu1  ;;  %6451 = vmatprep.mubr.bf16.mxu0 %v10113_v17 }
 0x5f2   : > { %v5775_v41 = vmax.f32 %v5774_v7, %v5146_v62  ;;  %v5148_v51 = vpop.f32.mrb[110].mxu1 }
 0x5f3   : > { %v5739_v45 = vmax.f32 %v5738_v47, %v5148_v51  ;;  %v5150_v40 = vpop.f32.mrb[111].mxu1  ;;  %v5427_v56 = vpop.f32.mrb[208].mxu0 }
 0x5f4   : > { %v5776_v57 = vmax.f32 %v5775_v41, %v5150_v40  ;;  %v5830_v32 = vmax.f32 %v5829_v35, %v5427_v56  ;;  %v5429_v21 = vpop.f32.mrb[209].mxu0 }
 0x5f5   : > { %v5867_v8 = vmax.f32 %v5866_v38, %v5429_v21  ;;  %v5431_v20 = vpop.f32.mrb[210].mxu0  ;;  %5639 = vmatmul.mubr.bf16.gmra.mrb[216].mxu1 %v10254_v12  ;;  %v10335_v21 = vld [vmem:[#allocation43_spill] sm:$0xff] }
 0x5f6   : > { %v5831_v11 = vmax.f32 %v5830_v32, %v5431_v20  ;;  %v5433_v43 = vpop.f32.mrb[211].mxu0  ;;  %5648 = vmatprep.mubr.bf16.mxu1 %v10113_v17 }
 0x5f7   : > { %v5868_v13 = vmax.f32 %v5867_v8, %v5433_v43 }
 0x5f8   : > { %v5154_v24 = vpop.f32.mrb[112].mxu1  ;;  %6452 = vmatmul.mubr.bf16.gmra.mrb[60].mxu0 %v10317_v59 }
 0x5f9   : > { %v5740_v61 = vmax.f32 %v5739_v45, %v5154_v24  ;;  %v5156_v54 = vpop.f32.mrb[113].mxu1  ;;  %6461 = vmatprep.mubr.bf16.mxu0 %v10113_v17 }
 0x5fa   : > { %v5777_v55 = vmax.f32 %v5776_v57, %v5156_v54  ;;  %v5158_v25 = vpop.f32.mrb[114].mxu1 }
 0x5fb   : > { %v5741_v37 = vmax.f32 %v5740_v61, %v5158_v25  ;;  %v5160_v22 = vpop.f32.mrb[115].mxu1  ;;  %v5437_v4 = vpop.f32.mrb[212].mxu0 }
 0x5fc   : > { %v5778_v30 = vmax.f32 %v5777_v55, %v5160_v22  ;;  %v5832_v15 = vmax.f32 %v5831_v11, %v5437_v4  ;;  %v5439_v12 = vpop.f32.mrb[213].mxu0  ;;  %v10336_v11 = vld [vmem:[#allocation50_spill] sm:$0xff]  ;;  %v10337_v55 = vld [vmem:[#allocation51_spill] sm:$0xff]  ;;  %v10338_v4 = vld [vmem:[#allocation52_spill] sm:$0xff] }
 0x5fd   : > { %v5869_v7 = vmax.f32 %v5868_v13, %v5439_v12  ;;  %v5441_v36 = vpop.f32.mrb[214].mxu0  ;;  %5649 = vmatmul.mubr.bf16.gmra.mrb[220].mxu1 %v10255_v48 }
 0x5fe   : > { %v5833_v33 = vmax.f32 %v5832_v15, %v5441_v36  ;;  %v5443_v23 = vpop.f32.mrb[215].mxu0  ;;  %6188 = vmatprep.mubr.bf16.mxu1 %v10113_v17 }
 0x5ff   : > { %v5870_v42 = vmax.f32 %v5869_v7, %v5443_v23 }
 0x600   : > { %v5164_v35 = vpop.f32.mrb[116].mxu1  ;;  %6462 = vmatmul.mubr.bf16.gmra.mrb[64].mxu0 %v10318_v27 }
 0x601   : > { %v5742_v0 = vmax.f32 %v5741_v37, %v5164_v35  ;;  %v5166_v38 = vpop.f32.mrb[117].mxu1  ;;  %6471 = vmatprep.mubr.bf16.mxu0 %v10113_v17 }
 0x602   : > { %v5779_v52 = vmax.f32 %v5778_v30, %v5166_v38  ;;  %v5168_v47 = vpop.f32.mrb[118].mxu1 }
 0x603   : > { %v5743_v62 = vmax.f32 %v5742_v0, %v5168_v47  ;;  %v5170_v41 = vpop.f32.mrb[119].mxu1  ;;  %v5447_v51 = vpop.f32.mrb[216].mxu0  ;;  %v10340_v0 = vld [vmem:[#allocation55_spill] sm:$0xff] }
 0x604   : > { %v5780_v45 = vmax.f32 %v5779_v52, %v5170_v41  ;;  %v5834_v40 = vmax.f32 %v5833_v33, %v5447_v51  ;;  %v5449_v48 = vpop.f32.mrb[217].mxu0 }
 0x605   : > { %v5871_v56 = vmax.f32 %v5870_v42, %v5449_v48  ;;  %v5451_v57 = vpop.f32.mrb[218].mxu0  ;;  %6189 = vmatmul.mubr.bf16.vlgmr.msra.gmra.mrb[224].mxu1 %v10292_v46  ;;  %v10339_v42 = vld [vmem:[#allocation53_spill] sm:$0xff]  ;;  %v10341_v48 = vld [vmem:[#allocation56_spill] sm:$0xff] }
 0x606   : > { %v5835_v32 = vmax.f32 %v5834_v40, %v5451_v57  ;;  %6543 = vmatpush1.bf16.msra.mxu1 %v10335_v21  ;;  %v5453_v8 = vpop.f32.mrb[219].mxu0  ;;  %6198 = vmatprep.mubr.bf16.mxu1 %v10113_v17 }
 0x607   : > { %v5872_v20 = vmax.f32 %v5871_v56, %v5453_v8  ;;  %6544 = vmatprep.subr.bf16.mxu1 %v10336_v11  ;;  %v10342_v8 = vld [vmem:[#allocation57_spill] sm:$0xff] }
 0x608   : > { %v5174_v43 = vpop.f32.mrb[120].mxu1  ;;  %6472 = vmatmul.mubr.bf16.gmra.mrb[68].mxu0 %v10321_v10 }
 0x609   : > { %v5744_v13 = vmax.f32 %v5743_v62, %v5174_v43  ;;  %v5176_v24 = vpop.f32.mrb[121].mxu1  ;;  %6481 = vmatprep.mubr.bf16.mxu0 %v10113_v17 }
 0x60a   : > { %v5781_v61 = vmax.f32 %v5780_v45, %v5176_v24  ;;  %v5178_v54 = vpop.f32.mrb[122].mxu1  ;;  %6545 = vmatpush1.bf16.msra.mxu1 %v10337_v55 }
 0x60b   : > { %v5745_v25 = vmax.f32 %v5744_v13, %v5178_v54  ;;  %v5180_v37 = vpop.f32.mrb[123].mxu1  ;;  %v5457_v22 = vpop.f32.mrb[220].mxu0  ;;  %6546 = vmatprep.subr.bf16.mxu1 %v10338_v4  ;;  %v10344_v4 = vld [vmem:[#allocation60_spill] sm:$0xff] }
 0x60c   : > { %v5782_v30 = vmax.f32 %v5781_v61, %v5180_v37  ;;  %v5836_v15 = vmax.f32 %v5835_v32, %v5457_v22  ;;  %v5459_v12 = vpop.f32.mrb[221].mxu0 }
 0x60d   : > { %v5873_v7 = vmax.f32 %v5872_v20, %v5459_v12  ;;  %v5461_v36 = vpop.f32.mrb[222].mxu0  ;;  %6199 = vmatmul.mubr.bf16.gmra.mrb[228].mxu1 %v10297_v29 }
 0x60e   : > { %v5837_v33 = vmax.f32 %v5836_v15, %v5461_v36  ;;  %v5463_v23 = vpop.f32.mrb[223].mxu0  ;;  %6208 = vmatprep.mubr.bf16.mxu1 %v10113_v17  ;;  %6547 = vmatpush1.bf16.msra.mxu1 %v10339_v42 }
 0x60f   : > { %v5874_v35 = vmax.f32 %v5873_v7, %v5463_v23  ;;  %6548 = vmatprep.subr.bf16.mxu1 %v10340_v0 }
 0x610   : > { %v5838_v38 = vrot.slane %v5837_v33, 4  ;;  %v5184_v52 = vpop.f32.mrb[124].mxu1  ;;  %6482 = vmatmul.mubr.bf16.gmra.mrb[72].mxu0 %v10325_v16 }
 0x611   : > { %v5875_v47 = vrot.slane %v5874_v35, 4  ;;  %v5746_v62 = vmax.f32 %v5745_v25, %v5184_v52  ;;  %v5186_v41 = vpop.f32.mrb[125].mxu1  ;;  %6491 = vmatprep.mubr.bf16.mxu0 %v10113_v17  ;;  %v10343_v25 = vld [vmem:[#allocation58_spill] sm:$0xff] }
 0x612   : > { %v5839_v51 = vmax.f32 %v5837_v33, %v5838_v38  ;;  %v5783_v45 = vmax.f32 %v5782_v30, %v5186_v41  ;;  %v5188_v40 = vpop.f32.mrb[126].mxu1  ;;  %6549 = vmatpush1.bf16.msra.mxu1 %v10341_v48  ;;  %v10347_v41 = vld [vmem:[#allocation9_spill] sm:$0xff] }
 0x613   : > { %v5876_v56 = vmax.f32 %v5874_v35, %v5875_v47  ;;  %v5747_v57 = vmax.f32 %v5746_v62, %v5188_v40  ;;  %v5190_v32 = vpop.f32.mrb[127].mxu1  ;;  %v5997_v21 = vpop.f32.mrb[224].mxu0  ;;  %6550 = vmatprep.subr.bf16.mxu1 %v10342_v8  ;;  %v10345_v35 = vld [vmem:[#allocation61_spill] sm:$0xff]  ;;  %v10346_v62 = vld [vmem:[#allocation62_spill] sm:$0xff] }
 0x614   : > { %v5840_v20 = vrot.slane %v5839_v51, 2  ;;  %v5784_v11 = vmax.f32 %v5783_v45, %v5190_v32  ;;  %v5999_v43 = vpop.f32.mrb[225].mxu0  ;;  %v10350_v32 = vld [vmem:[#allocation13_spill] sm:$0xff] }
 0x615   : > { %v5877_v13 = vrot.slane %v5876_v56, 2  ;;  %v6001_v24 = vpop.f32.mrb[226].mxu0  ;;  %6209 = vmatmul.mubr.bf16.gmra.mrb[232].mxu1 %v10304_v2 }
 0x616   : > { %v5841_v61 = vmax.f32 %v5839_v51, %v5840_v20  ;;  %v6735_v54 = vmax.f32 %v5997_v21, %v6001_v24  ;;  %v6003_v55 = vpop.f32.mrb[227].mxu0  ;;  %6218 = vmatprep.mubr.bf16.mxu1 %v10113_v17  ;;  %6551 = vmatpush1.bf16.msra.mxu1 %v10343_v25  ;;  %v10348_v51 = vld [vmem:[#allocation10_spill] sm:$0xff]  ;;  %v10351_v21 = vld [vmem:[#allocation25_spill] sm:$0xff] }
 0x617   : > { %v5878_v37 = vmax.f32 %v5876_v56, %v5877_v13  ;;  %v6772_v22 = vmax.f32 %v5999_v43, %v6003_v55  ;;  %6552 = vmatprep.subr.bf16.mxu1 %v10344_v4  ;;  %v10349_v45 = vmax.f32 %v10347_v41, %v10348_v51  ;;  %v10352_v8 = vmax.f32 %v10350_v32, %v10351_v21  ;;  %v10354_v25 = vld [vmem:[#allocation66_spill] sm:$0xff] }
 0x618   : > { %v5842_v30 = vrot.slane %v5841_v61, 1  ;;  %v5194_v15 = vpop.f32.mrb[128].mxu1  ;;  %6492 = vmatmul.mubr.bf16.gmra.mrb[76].mxu0 %v10326_v19 }
 0x619   : > { %v5879_v12 = vrot.slane %v5878_v37, 1  ;;  %v5748_v7 = vmax.f32 %v5747_v57, %v5194_v15  ;;  %v5196_v36 = vpop.f32.mrb[129].mxu1  ;;  %6501 = vmatprep.mubr.bf16.mxu0 %v10113_v17  ;;  %v10355_v15 = vld [vmem:[#allocation67_spill] sm:$0xff] }
 0x61a   : > { %v5843_v33 = vmax.f32 %v5841_v61, %v5842_v30  ;;  %v5785_v23 = vmax.f32 %v5784_v11, %v5196_v36  ;;  %v5198_v42 = vpop.f32.mrb[130].mxu1  ;;  %6553 = vmatpush1.bf16.msra.mxu1 %v10345_v35  ;;  %v10353_v61 = vld [vmem:[#allocation64_spill] sm:$0xff] }
 0x61b   : > { %v5880_v0 = vmax.f32 %v5878_v37, %v5879_v12  ;;  %v5749_v38 = vmax.f32 %v5748_v7, %v5198_v42  ;;  %v5200_v52 = vpop.f32.mrb[131].mxu1  ;;  %v6007_v47 = vpop.f32.mrb[228].mxu0  ;;  %6554 = vmatprep.subr.bf16.mxu1 %v10346_v62 }
 0x61c   : > { %v9706_v40 = vmax.f32 %v10349_v45, %v5843_v33  ;;  %v5786_v48 = vmax.f32 %v5785_v23, %v5200_v52  ;;  %v6736_v56 = vmax.f32 %v6735_v54, %v6007_v47  ;;  %v6009_v57 = vpop.f32.mrb[229].mxu0 }
 0x61d   : > { %v9711_v20 = vmax.f32 %v10352_v8, %v5880_v0  ;;  %v6773_v11 = vmax.f32 %v6772_v22, %v6009_v57  ;;  %v6011_v43 = vpop.f32.mrb[230].mxu0  ;;  %6219 = vmatmul.mubr.bf16.gmra.mrb[236].mxu1 %v10334_v53 }
 0x61e   : > { %v6737_v13 = vmax.f32 %v6736_v56, %v6011_v43  ;;  %v6013_v24 = vpop.f32.mrb[231].mxu0  ;;  %6228 = vmatprep.mubr.bf16.mxu1 %v10113_v17  ;;  %6555 = vmatpush1.bf16.msra.mxu1 %v10353_v61 }
 0x61f   : > { %v6774_v55 = vmax.f32 %v6773_v11, %v6013_v24  ;;  %6556 = vmatprep.subr.bf16.mxu1 %v10354_v25 }
 0x620   : > { %v5204_v54 = vpop.f32.mrb[132].mxu1  ;;  %6502 = vmatmul.mubr.bf16.gmra.mrb[80].mxu0 %v10329_v63 }
 0x621   : > { %v5750_v37 = vmax.f32 %v5749_v38, %v5204_v54  ;;  %v5206_v4 = vpop.f32.mrb[133].mxu1  ;;  %6511 = vmatprep.mubr.bf16.mxu0 %v10113_v17 }
 0x622   : > { %v5787_v22 = vmax.f32 %v5786_v48, %v5206_v4  ;;  %v5208_v30 = vpop.f32.mrb[134].mxu1  ;;  %6557 = vmatpush1.bf16.msra.mxu1 %v10355_v15 }
 0x623   : > { %v5751_v12 = vmax.f32 %v5750_v37, %v5208_v30  ;;  %v5210_v7 = vpop.f32.mrb[135].mxu1  ;;  %v6017_v36 = vpop.f32.mrb[232].mxu0 }
 0x624   : > { %v5788_v33 = vmax.f32 %v5787_v22, %v5210_v7  ;;  %v6738_v23 = vmax.f32 %v6737_v13, %v6017_v36  ;;  %v6019_v42 = vpop.f32.mrb[233].mxu0 }
 0x625   : > { %v6775_v35 = vmax.f32 %v6774_v55, %v6019_v42  ;;  %v6021_v0 = vpop.f32.mrb[234].mxu0  ;;  %6229 = vmatmul.mubr.bf16.gmra.mrb[240].mxu1 %v10314_v9 }
 0x626   : > { %v6739_v52 = vmax.f32 %v6738_v23, %v6021_v0  ;;  %v6023_v47 = vpop.f32.mrb[235].mxu0  ;;  %6238 = vmatprep.mubr.bf16.mxu1 %v10113_v17 }
 0x627   : > { %v6776_v38 = vmax.f32 %v6775_v35, %v6023_v47 }
 0x628   : > { %v5214_v62 = vpop.f32.mrb[136].mxu1  ;;  %6512 = vmatmul.mubr.bf16.gmra.mrb[84].mxu0 %v10330_v39 }
 0x629   : > { %v5752_v41 = vmax.f32 %v5751_v12, %v5214_v62  ;;  %v5216_v51 = vpop.f32.mrb[137].mxu1  ;;  %6521 = vmatprep.mubr.bf16.mxu0 %v10113_v17 }
 0x62a   : > { %v5789_v45 = vmax.f32 %v5788_v33, %v5216_v51  ;;  %v5218_v48 = vpop.f32.mrb[138].mxu1 }
 0x62b   : > { %v5753_v56 = vmax.f32 %v5752_v41, %v5218_v48  ;;  %v5220_v57 = vpop.f32.mrb[139].mxu1  ;;  %v6027_v32 = vpop.f32.mrb[236].mxu0 }
 0x62c   : > { %v5790_v21 = vmax.f32 %v5789_v45, %v5220_v57  ;;  %v6740_v8 = vmax.f32 %v6739_v52, %v6027_v32  ;;  %v6029_v11 = vpop.f32.mrb[237].mxu0 }
 0x62d   : > { %v6777_v43 = vmax.f32 %v6776_v38, %v6029_v11  ;;  %v6031_v13 = vpop.f32.mrb[238].mxu0  ;;  %6239 = vmatmul.mubr.bf16.gmra.mrb[244].mxu1 %v10315_v26 }
 0x62e   : > { %v6741_v24 = vmax.f32 %v6740_v8, %v6031_v13  ;;  %v6033_v61 = vpop.f32.mrb[239].mxu0  ;;  %6248 = vmatprep.mubr.bf16.mxu1 %v10113_v17 }
 0x62f   : > { %v6778_v55 = vmax.f32 %v6777_v43, %v6033_v61 }
 0x630   : > { %v5224_v25 = vpop.f32.mrb[140].mxu1  ;;  %6522 = vmatmul.mubr.bf16.gmra.mrb[88].mxu0 %v10331_v3 }
 0x631   : > { %v5754_v54 = vmax.f32 %v5753_v56, %v5224_v25  ;;  %v5226_v37 = vpop.f32.mrb[141].mxu1  ;;  %6531 = vmatprep.mubr.bf16.mxu0 %v10113_v17 }
 0x632   : > { %v5791_v4 = vmax.f32 %v5790_v21, %v5226_v37  ;;  %v5228_v22 = vpop.f32.mrb[142].mxu1 }
 0x633   : > { %v5755_v30 = vmax.f32 %v5754_v54, %v5228_v22  ;;  %v5230_v15 = vpop.f32.mrb[143].mxu1  ;;  %v6037_v12 = vpop.f32.mrb[240].mxu0 }
 0x634   : > { %v5792_v7 = vmax.f32 %v5791_v4, %v5230_v15  ;;  %v6742_v36 = vmax.f32 %v6741_v24, %v6037_v12  ;;  %v6039_v33 = vpop.f32.mrb[241].mxu0 }
 0x635   : > { %v6779_v23 = vmax.f32 %v6778_v55, %v6039_v33  ;;  %v6041_v42 = vpop.f32.mrb[242].mxu0  ;;  %6249 = vmatmul.mubr.bf16.gmra.mrb[248].mxu1 %v10316_v18 }
 0x636   : > { %v6743_v35 = vmax.f32 %v6742_v36, %v6041_v42  ;;  %v6043_v0 = vpop.f32.mrb[243].mxu0  ;;  %6258 = vmatprep.mubr.bf16.mxu1 %v10113_v17 }
 0x637   : > { %v6780_v52 = vmax.f32 %v6779_v23, %v6043_v0 }
 0x638   : > { %v5234_v47 = vpop.f32.mrb[144].mxu1  ;;  %6532 = vmatmul.mubr.bf16.gmra.mrb[92].mxu0 %v10332_v14 }
 0x639   : > { %v5756_v38 = vmax.f32 %v5755_v30, %v5234_v47  ;;  %v5236_v62 = vpop.f32.mrb[145].mxu1 }
 0x63a   : > { %v5793_v41 = vmax.f32 %v5792_v7, %v5236_v62  ;;  %v5238_v51 = vpop.f32.mrb[146].mxu1 }
 0x63b   : > { %v5757_v45 = vmax.f32 %v5756_v38, %v5238_v51  ;;  %v5240_v48 = vpop.f32.mrb[147].mxu1  ;;  %v6047_v56 = vpop.f32.mrb[244].mxu0 }
 0x63c   : > { %v5794_v57 = vmax.f32 %v5793_v41, %v5240_v48  ;;  %v6744_v32 = vmax.f32 %v6743_v35, %v6047_v56  ;;  %v6049_v21 = vpop.f32.mrb[245].mxu0 }
 0x63d   : > { %v6781_v8 = vmax.f32 %v6780_v52, %v6049_v21  ;;  %v6051_v11 = vpop.f32.mrb[246].mxu0  ;;  %6259 = vmatmul.mubr.bf16.gmra.mrb[252].mxu1 %v10317_v59 }
 0x63e   : > { %v6745_v43 = vmax.f32 %v6744_v32, %v6051_v11  ;;  %v6053_v13 = vpop.f32.mrb[247].mxu0  ;;  %6268 = vmatprep.mubr.bf16.mxu1 %v10113_v17 }
 0x63f   : > { %v6782_v24 = vmax.f32 %v6781_v8, %v6053_v13 }
 0x640   : > { %v5244_v61 = vpop.f32.mrb[148].mxu1 }
 0x641   : > { %v5758_v55 = vmax.f32 %v5757_v45, %v5244_v61  ;;  %v5246_v25 = vpop.f32.mrb[149].mxu1 }
 0x642   : > { %v5795_v54 = vmax.f32 %v5794_v57, %v5246_v25  ;;  %v5248_v37 = vpop.f32.mrb[150].mxu1 }
 0x643   : > { %v5759_v4 = vmax.f32 %v5758_v55, %v5248_v37  ;;  %v5250_v22 = vpop.f32.mrb[151].mxu1  ;;  %v6057_v30 = vpop.f32.mrb[248].mxu0 }
 0x644   : > { %v5796_v15 = vmax.f32 %v5795_v54, %v5250_v22  ;;  %v6746_v12 = vmax.f32 %v6745_v43, %v6057_v30  ;;  %v6059_v7 = vpop.f32.mrb[249].mxu0 }
 0x645   : > { %v6783_v36 = vmax.f32 %v6782_v24, %v6059_v7  ;;  %v6061_v33 = vpop.f32.mrb[250].mxu0  ;;  %6269 = vmatmul.mubr.bf16.gmra.mrb[0].mxu1 %v10318_v27 }
 0x646   : > { %v6747_v23 = vmax.f32 %v6746_v12, %v6061_v33  ;;  %v6063_v42 = vpop.f32.mrb[251].mxu0  ;;  %6278 = vmatprep.mubr.bf16.mxu1 %v10113_v17 }
 0x647   : > { %v6784_v35 = vmax.f32 %v6783_v36, %v6063_v42 }
 0x648   : > { %v5254_v0 = vpop.f32.mrb[152].mxu1 }
 0x649   : > { %v5760_v52 = vmax.f32 %v5759_v4, %v5254_v0  ;;  %v5256_v47 = vpop.f32.mrb[153].mxu1 }
 0x64a   : > { %v5797_v38 = vmax.f32 %v5796_v15, %v5256_v47  ;;  %v5258_v62 = vpop.f32.mrb[154].mxu1 }
 0x64b   : > { %v5761_v41 = vmax.f32 %v5760_v52, %v5258_v62  ;;  %v5260_v51 = vpop.f32.mrb[155].mxu1  ;;  %v6067_v45 = vpop.f32.mrb[252].mxu0 }
 0x64c   : > { %v5798_v48 = vmax.f32 %v5797_v38, %v5260_v51  ;;  %v6748_v56 = vmax.f32 %v6747_v23, %v6067_v45  ;;  %v6069_v57 = vpop.f32.mrb[253].mxu0 }
 0x64d   : > { %v6785_v32 = vmax.f32 %v6784_v35, %v6069_v57  ;;  %v6071_v21 = vpop.f32.mrb[254].mxu0  ;;  %6279 = vmatmul.mubr.bf16.gmra.mrb[4].mxu1 %v10321_v10 }
 0x64e   : > { %v6749_v8 = vmax.f32 %v6748_v56, %v6071_v21  ;;  %v6073_v11 = vpop.f32.mrb[255].mxu0  ;;  %6288 = vmatprep.mubr.bf16.mxu1 %v10113_v17 }
 0x64f   : > { %v6786_v43 = vmax.f32 %v6785_v32, %v6073_v11 }
 0x650   : > { %v5264_v13 = vpop.f32.mrb[156].mxu1 }
 0x651   : > { %v5762_v24 = vmax.f32 %v5761_v41, %v5264_v13  ;;  %v5266_v61 = vpop.f32.mrb[157].mxu1 }
 0x652   : > { %v5799_v55 = vmax.f32 %v5798_v48, %v5266_v61  ;;  %v5268_v25 = vpop.f32.mrb[158].mxu1 }
 0x653   : > { %v5763_v54 = vmax.f32 %v5762_v24, %v5268_v25  ;;  %v5270_v37 = vpop.f32.mrb[159].mxu1  ;;  %v6077_v4 = vpop.f32.mrb[0].mxu0 }
 0x654   : > { %v5800_v22 = vmax.f32 %v5799_v55, %v5270_v37  ;;  %v6750_v30 = vmax.f32 %v6749_v8, %v6077_v4  ;;  %v6079_v15 = vpop.f32.mrb[1].mxu0 }
 0x655   : > { %v5764_v12 = vrot.slane %v5763_v54, 4  ;;  %v6787_v7 = vmax.f32 %v6786_v43, %v6079_v15  ;;  %v6081_v36 = vpop.f32.mrb[2].mxu0  ;;  %6289 = vmatmul.mubr.bf16.gmra.mrb[8].mxu1 %v10325_v16 }
 0x656   : > { %v5801_v33 = vrot.slane %v5800_v22, 4  ;;  %v6751_v23 = vmax.f32 %v6750_v30, %v6081_v36  ;;  %v6083_v42 = vpop.f32.mrb[3].mxu0  ;;  %6298 = vmatprep.mubr.bf16.mxu1 %v10113_v17  ;;  %v10356_v30 = vmax.f32 %v9543_v44, %v9545_v1  ;;  %v10357_v36 = vld [vmem:[#allocation65_spill] sm:$0xff] }
 0x657   : > { %v5765_v35 = vmax.f32 %v5763_v54, %v5764_v12  ;;  %v6788_v0 = vmax.f32 %v6787_v7, %v6083_v42 }
 0x658   : > { %v5802_v52 = vmax.f32 %v5800_v22, %v5801_v33  ;;  %v5500_v47 = vpop.f32.mrb[160].mxu1  ;;  %v10358_v33 = vmax.f32 %v9547_v49, %v10357_v36 }
 0x659   : > { %v5766_v38 = vrot.slane %v5765_v35, 2  ;;  %v5502_v62 = vpop.f32.mrb[161].mxu1 }
 0x65a   : > { %v5803_v41 = vrot.slane %v5802_v52, 2  ;;  %v5504_v51 = vpop.f32.mrb[162].mxu1 }
 0x65b   : > { %v5767_v45 = vmax.f32 %v5765_v35, %v5766_v38  ;;  %v5881_v48 = vmax.f32 %v5500_v47, %v5504_v51  ;;  %v5506_v56 = vpop.f32.mrb[163].mxu1  ;;  %v6087_v57 = vpop.f32.mrb[4].mxu0 }
 0x65c   : > { %v5804_v32 = vmax.f32 %v5802_v52, %v5803_v41  ;;  %v5918_v21 = vmax.f32 %v5502_v62, %v5506_v56  ;;  %v6752_v8 = vmax.f32 %v6751_v23, %v6087_v57  ;;  %v6089_v11 = vpop.f32.mrb[5].mxu0 }
 0x65d   : > { %v5768_v43 = vrot.slane %v5767_v45, 1  ;;  %v6789_v13 = vmax.f32 %v6788_v0, %v6089_v11  ;;  %v6091_v24 = vpop.f32.mrb[6].mxu0  ;;  %6299 = vmatmul.mubr.bf16.gmra.mrb[12].mxu1 %v10326_v19 }
 0x65e   : > { %v5805_v61 = vrot.slane %v5804_v32, 1  ;;  %v6753_v55 = vmax.f32 %v6752_v8, %v6091_v24  ;;  %v6093_v25 = vpop.f32.mrb[7].mxu0  ;;  %6308 = vmatprep.mubr.bf16.mxu1 %v10113_v17 }
 0x65f   : > { %v5769_v54 = vmax.f32 %v5767_v45, %v5768_v43  ;;  %v6790_v37 = vmax.f32 %v6789_v13, %v6093_v25 }
 0x660   : > { %v5806_v4 = vmax.f32 %v5804_v32, %v5805_v61  ;;  %v5510_v22 = vpop.f32.mrb[164].mxu1 }
 0x661   : > { %v9744_v15 = vmax.f32 %v10356_v30, %v5769_v54  ;;  %v5882_v12 = vmax.f32 %v5881_v48, %v5510_v22  ;;  %v5512_v7 = vpop.f32.mrb[165].mxu1 }
 0x662   : > { %v9749_v23 = vmax.f32 %v10358_v33, %v5806_v4  ;;  %v5919_v42 = vmax.f32 %v5918_v21, %v5512_v7  ;;  %v5514_v35 = vpop.f32.mrb[166].mxu1 }
 0x663   : > { %v5883_v0 = vmax.f32 %v5882_v12, %v5514_v35  ;;  %v5516_v52 = vpop.f32.mrb[167].mxu1  ;;  %v6097_v47 = vpop.f32.mrb[8].mxu0 }
 0x664   : > { %v5920_v38 = vmax.f32 %v5919_v42, %v5516_v52  ;;  %v6754_v62 = vmax.f32 %v6753_v55, %v6097_v47  ;;  %v6099_v41 = vpop.f32.mrb[9].mxu0 }
 0x665   : > { %v6791_v51 = vmax.f32 %v6790_v37, %v6099_v41  ;;  %v6101_v45 = vpop.f32.mrb[10].mxu0  ;;  %6309 = vmatmul.mubr.bf16.gmra.mrb[16].mxu1 %v10329_v63 }
 0x666   : > { %v6755_v44 = vmax.f32 %v6754_v62, %v6101_v45  ;;  %v6103_v1 = vpop.f32.mrb[11].mxu0  ;;  %6318 = vmatprep.mubr.bf16.mxu1 %v10113_v17 }
 0x667   : > { %v6792_v48 = vmax.f32 %v6791_v51, %v6103_v1 }
 0x668   : > { %v5520_v49 = vpop.f32.mrb[168].mxu1 }
 0x669   : > { %v5884_v56 = vmax.f32 %v5883_v0, %v5520_v49  ;;  %v5522_v57 = vpop.f32.mrb[169].mxu1 }
 0x66a   : > { %v5921_v32 = vmax.f32 %v5920_v38, %v5522_v57  ;;  %v5524_v21 = vpop.f32.mrb[170].mxu1 }
 0x66b   : > { %v5885_v8 = vmax.f32 %v5884_v56, %v5524_v21  ;;  %v5526_v11 = vpop.f32.mrb[171].mxu1  ;;  %v6107_v43 = vpop.f32.mrb[12].mxu0 }
 0x66c   : > { %v5922_v13 = vmax.f32 %v5921_v32, %v5526_v11  ;;  %v6756_v24 = vmax.f32 %v6755_v44, %v6107_v43  ;;  %v6109_v61 = vpop.f32.mrb[13].mxu0 }
 0x66d   : > { %v6793_v55 = vmax.f32 %v6792_v48, %v6109_v61  ;;  %v6111_v25 = vpop.f32.mrb[14].mxu0  ;;  %6319 = vmatmul.mubr.bf16.gmra.mrb[20].mxu1 %v10330_v39 }
 0x66e   : > { %v6757_v54 = vmax.f32 %v6756_v24, %v6111_v25  ;;  %v6113_v37 = vpop.f32.mrb[15].mxu0  ;;  %6328 = vmatprep.mubr.bf16.mxu1 %v10113_v17 }
 0x66f   : > { %v6794_v4 = vmax.f32 %v6793_v55, %v6113_v37 }
 0x670   : > { %v5530_v22 = vpop.f32.mrb[172].mxu1 }
 0x671   : > { %v5886_v30 = vmax.f32 %v5885_v8, %v5530_v22  ;;  %v5532_v12 = vpop.f32.mrb[173].mxu1 }
 0x672   : > { %v5923_v7 = vmax.f32 %v5922_v13, %v5532_v12  ;;  %v5534_v36 = vpop.f32.mrb[174].mxu1 }
 0x673   : > { %v5887_v33 = vmax.f32 %v5886_v30, %v5534_v36  ;;  %v5536_v42 = vpop.f32.mrb[175].mxu1  ;;  %v6117_v35 = vpop.f32.mrb[16].mxu0 }
 0x674   : > { %v5924_v0 = vmax.f32 %v5923_v7, %v5536_v42  ;;  %v6758_v52 = vmax.f32 %v6757_v54, %v6117_v35  ;;  %v6119_v47 = vpop.f32.mrb[17].mxu0 }
 0x675   : > { %v6795_v38 = vmax.f32 %v6794_v4, %v6119_v47  ;;  %v6121_v62 = vpop.f32.mrb[18].mxu0  ;;  %6329 = vmatmul.mubr.bf16.gmra.mrb[24].mxu1 %v10331_v3 }
 0x676   : > { %v6759_v41 = vmax.f32 %v6758_v52, %v6121_v62  ;;  %v6123_v51 = vpop.f32.mrb[19].mxu0  ;;  %6338 = vmatprep.mubr.bf16.mxu1 %v10113_v17 }
 0x677   : > { %v6796_v45 = vmax.f32 %v6795_v38, %v6123_v51 }
 0x678   : > { %v5540_v44 = vpop.f32.mrb[176].mxu1 }
 0x679   : > { %v5888_v1 = vmax.f32 %v5887_v33, %v5540_v44  ;;  %v5542_v48 = vpop.f32.mrb[177].mxu1 }
 0x67a   : > { %v5925_v49 = vmax.f32 %v5924_v0, %v5542_v48  ;;  %v5544_v56 = vpop.f32.mrb[178].mxu1 }
 0x67b   : > { %v5889_v57 = vmax.f32 %v5888_v1, %v5544_v56  ;;  %v5546_v32 = vpop.f32.mrb[179].mxu1  ;;  %v6127_v21 = vpop.f32.mrb[20].mxu0 }
 0x67c   : > { %v5926_v8 = vmax.f32 %v5925_v49, %v5546_v32  ;;  %v6760_v11 = vmax.f32 %v6759_v41, %v6127_v21  ;;  %v6129_v43 = vpop.f32.mrb[21].mxu0 }
 0x67d   : > { %v6797_v13 = vmax.f32 %v6796_v45, %v6129_v43  ;;  %v6131_v24 = vpop.f32.mrb[22].mxu0  ;;  %6339 = vmatmul.mubr.bf16.gmra.mrb[28].mxu1 %v10332_v14  ;;  %v7041_v43 = vlaneseq }
 0x67e   : > { %v6761_v61 = vmax.f32 %v6760_v11, %v6131_v24  ;;  %v6133_v55 = vpop.f32.mrb[23].mxu0  ;;  %6574 = vmatprep.mubr.bf16.mxu1 %v10113_v17 }
 0x67f   : > { %v6798_v25 = vmax.f32 %v6797_v13, %v6133_v55 }
 0x680   : > { %v5550_v54 = vpop.f32.mrb[180].mxu1 }
 0x681   : > { %v5890_v37 = vmax.f32 %v5889_v57, %v5550_v54  ;;  %v5552_v4 = vpop.f32.mrb[181].mxu1 }
 0x682   : > { %v5927_v22 = vmax.f32 %v5926_v8, %v5552_v4  ;;  %v5554_v30 = vpop.f32.mrb[182].mxu1 }
 0x683   : > { %v5891_v12 = vmax.f32 %v5890_v37, %v5554_v30  ;;  %v5556_v7 = vpop.f32.mrb[183].mxu1  ;;  %v6137_v36 = vpop.f32.mrb[24].mxu0 }
 0x684   : > { %v5928_v33 = vmax.f32 %v5927_v22, %v5556_v7  ;;  %v6762_v42 = vmax.f32 %v6761_v61, %v6137_v36  ;;  %v6139_v35 = vpop.f32.mrb[25].mxu0  ;;  %v9763_v22 = vshrl.u32 %v7041_v43, 7 }
 0x685   : > { %v6799_v0 = vmax.f32 %v6798_v25, %v6139_v35  ;;  %v6141_v52 = vpop.f32.mrb[26].mxu0  ;;  %6575 = vmatmul.mubr.bf16.vlgmr.msra.gmra.mrb[32].mxu1 %v10292_v46 }
 0x686   : > { %v6763_v47 = vmax.f32 %v6762_v42, %v6141_v52  ;;  %v6143_v38 = vpop.f32.mrb[27].mxu0  ;;  %6584 = vmatprep.mubr.bf16.mxu1 %v10113_v17 }
 0x687   : > { %v6800_v62 = vmax.f32 %v6799_v0, %v6143_v38 }
 0x688   : > { %v5560_v41 = vpop.f32.mrb[184].mxu1 }
 0x689   : > { %v5892_v51 = vmax.f32 %v5891_v12, %v5560_v41  ;;  %v5562_v45 = vpop.f32.mrb[185].mxu1 }
 0x68a   : > { %v5929_v44 = vmax.f32 %v5928_v33, %v5562_v45  ;;  %v5564_v1 = vpop.f32.mrb[186].mxu1  ;;  %v9771_v45 = vld [vmem:[%s9903_s6] sm:$0xff] }
 0x68b   : > { %v5893_v48 = vmax.f32 %v5892_v51, %v5564_v1  ;;  %v5566_v49 = vpop.f32.mrb[187].mxu1  ;;  %v6147_v56 = vpop.f32.mrb[28].mxu0  ;;  %v7047_v1 = vsub.s32 1, %v9763_v22 }
 0x68c   : > { %v5930_v57 = vmax.f32 %v5929_v44, %v5566_v49  ;;  %v6764_v32 = vmax.f32 %v6763_v47, %v6147_v56  ;;  %v6149_v21 = vpop.f32.mrb[29].mxu0 }
 0x68d   : > { %v6801_v8 = vmax.f32 %v6800_v62, %v6149_v21  ;;  %v6151_v11 = vpop.f32.mrb[30].mxu0  ;;  %6585 = vmatmul.mubr.bf16.gmra.mrb[36].mxu1 %v10297_v29  ;;  %v7043_v62 = vsub.s32 0, %v9763_v22 }
 0x68e   : > { %v6765_v46 = vmax.f32 %v6764_v32, %v6151_v11  ;;  %v6153_v13 = vpop.f32.mrb[31].mxu0  ;;  %6594 = vmatprep.mubr.bf16.mxu1 %v10113_v17 }
 0x68f   : > { %v6802_v24 = vmax.f32 %v6801_v8, %v6153_v13  ;;  %v7044_v8 = vrot.slane %v9771_v45, %v7043_v62  ;;  %v7048_v13 = vrot.slane %v9771_v45, %v7047_v1 }
 0x690   : > { %v6766_v61 = vrot.slane %v6765_v46, 4  ;;  %v5570_v55 = vpop.f32.mrb[188].mxu1 }
 0x691   : > { %v6803_v25 = vrot.slane %v6802_v24, 4  ;;  %v5894_v54 = vmax.f32 %v5893_v48, %v5570_v55  ;;  %v5572_v37 = vpop.f32.mrb[189].mxu1 }
 0x692   : > { %v6767_v4 = vmax.f32 %v6765_v46, %v6766_v61  ;;  %v5931_v30 = vmax.f32 %v5930_v57, %v5572_v37  ;;  %v5574_v12 = vpop.f32.mrb[190].mxu1 }
 0x693   : > { %v6804_v7 = vmax.f32 %v6802_v24, %v6803_v25  ;;  %v5895_v36 = vmax.f32 %v5894_v54, %v5574_v12  ;;  %v5576_v33 = vpop.f32.mrb[191].mxu1  ;;  %v6383_v29 = vpop.f32.mrb[32].mxu0 }
 0x694   : > { %v6768_v42 = vrot.slane %v6767_v4, 2  ;;  %v5932_v35 = vmax.f32 %v5931_v30, %v5576_v33  ;;  %v6385_v0 = vpop.f32.mrb[33].mxu0 }
 0x695   : > { %v6805_v52 = vrot.slane %v6804_v7, 2  ;;  %v6387_v47 = vpop.f32.mrb[34].mxu0  ;;  %6595 = vmatmul.mubr.bf16.gmra.mrb[40].mxu1 %v10304_v2 }
 0x696   : > { %v6769_v38 = vmax.f32 %v6767_v4, %v6768_v42  ;;  %v6883_v41 = vmax.f32 %v6383_v29, %v6387_v47  ;;  %v6389_v51 = vpop.f32.mrb[35].mxu0  ;;  %6604 = vmatprep.mubr.bf16.mxu1 %v10113_v17 }
 0x697   : > { %v6806_v44 = vmax.f32 %v6804_v7, %v6805_v52  ;;  %v6920_v48 = vmax.f32 %v6385_v0, %v6389_v51 }
 0x698   : > { %v6770_v49 = vrot.slane %v6769_v38, 1  ;;  %v5580_v56 = vpop.f32.mrb[192].mxu1 }
 0x699   : > { %v6807_v57 = vrot.slane %v6806_v44, 1  ;;  %v5896_v2 = vmax.f32 %v5895_v36, %v5580_v56  ;;  %v5582_v32 = vpop.f32.mrb[193].mxu1 }
 0x69a   : > { %v6771_v21 = vmax.f32 %v6769_v38, %v6770_v49  ;;  %v5933_v11 = vmax.f32 %v5932_v35, %v5582_v32  ;;  %v5584_v46 = vpop.f32.mrb[194].mxu1 }
 0x69b   : > { %v6808_v43 = vmax.f32 %v6806_v44, %v6807_v57  ;;  %v5897_v24 = vmax.f32 %v5896_v2, %v5584_v46  ;;  %v5586_v61 = vpop.f32.mrb[195].mxu1  ;;  %v6393_v55 = vpop.f32.mrb[36].mxu0 }
 0x69c   : > { %v7031_v25 = vmax.f32 %v9600_v28, %v6771_v21  ;;  %v5934_v54 = vmax.f32 %v5933_v11, %v5586_v61  ;;  %v6884_v37 = vmax.f32 %v6883_v41, %v6393_v55  ;;  %v6395_v4 = vpop.f32.mrb[37].mxu0 }
 0x69d   : > { %v7032_v30 = vmax.f32 %v9605_v58, %v6808_v43  ;;  %v6921_v12 = vmax.f32 %v6920_v48, %v6395_v4  ;;  %v6397_v7 = vpop.f32.mrb[38].mxu0  ;;  %6605 = vmatmul.mubr.bf16.gmra.mrb[44].mxu1 %v10334_v53 }
 0x69e   : > { %v7081_v36 = vadd.f32 %v7044_v8, %v7031_v25  ;;  %v6885_v33 = vmax.f32 %v6884_v37, %v6397_v7  ;;  %v6399_v29 = vpop.f32.mrb[39].mxu0  ;;  %6614 = vmatprep.mubr.bf16.mxu1 %v10113_v17 }
 0x69f   : > { %v7082_v42 = vadd.f32 %v7048_v13, %v7032_v30  ;;  %v6922_v35 = vmax.f32 %v6921_v12, %v6399_v29 }
 0x6a0   : > { %v7089_v0 = vmax.f32 %v7081_v36, 0.0  ;;  %v5590_v52 = vpop.f32.mrb[196].mxu1 }
 0x6a1   : > { %v7090_v47 = vmax.f32 %v7082_v42, 0.0  ;;  %v5898_v28 = vmax.f32 %v5897_v24, %v5590_v52  ;;  %v5592_v38 = vpop.f32.mrb[197].mxu1 }
 0x6a2   : > { %v5935_v62 = vmax.f32 %v5934_v54, %v5592_v38  ;;  %v5594_v41 = vpop.f32.mrb[198].mxu1 }
 0x6a3   : > { %v9780_v51 = vcombine.low %v7089_v0, %v7090_v47  ;;  %v5899_v58 = vmax.f32 %v5898_v28, %v5594_v41  ;;  %v5596_v44 = vpop.f32.mrb[199].mxu1  ;;  %v6403_v1 = vpop.f32.mrb[40].mxu0 }
 0x6a4   : > { %v5936_v53 = vmax.f32 %v5935_v62, %v5596_v44  ;;  %v6886_v48 = vmax.f32 %v6885_v33, %v6403_v1  ;;  %v6405_v49 = vpop.f32.mrb[41].mxu0 }
 0x6a5   : > { %v6923_v56 = vmax.f32 %v6922_v35, %v6405_v49  ;;  %v6407_v57 = vpop.f32.mrb[42].mxu0  ;;  %6615 = vmatmul.mubr.bf16.gmra.mrb[48].mxu1 %v10314_v9 }
 0x6a6   : > { %v6887_v2 = vmax.f32 %v6886_v48, %v6407_v57  ;;  %v6409_v32 = vpop.f32.mrb[43].mxu0  ;;  %6624 = vmatprep.mubr.bf16.mxu1 %v10113_v17 }
 0x6a7   : > { %v6924_v21 = vmax.f32 %v6923_v56, %v6409_v32 }
 0x6a8   : > { %v5600_v8 = vpop.f32.mrb[200].mxu1 }
 0x6a9   : > { %v5900_v11 = vmax.f32 %v5899_v58, %v5600_v8  ;;  %v5602_v46 = vpop.f32.mrb[201].mxu1 }
 0x6aa   : > { %v5937_v43 = vmax.f32 %v5936_v53, %v5602_v46  ;;  %v5604_v13 = vpop.f32.mrb[202].mxu1 }
 0x6ab   : > { %v5901_v24 = vmax.f32 %v5900_v11, %v5604_v13  ;;  %v5606_v61 = vpop.f32.mrb[203].mxu1  ;;  %v6413_v55 = vpop.f32.mrb[44].mxu0 }
 0x6ac   : > { %v5938_v25 = vmax.f32 %v5937_v43, %v5606_v61  ;;  %v6888_v54 = vmax.f32 %v6887_v2, %v6413_v55  ;;  %v6415_v37 = vpop.f32.mrb[45].mxu0 }
 0x6ad   : > { %v6925_v4 = vmax.f32 %v6924_v21, %v6415_v37  ;;  %v6417_v30 = vpop.f32.mrb[46].mxu0  ;;  %6625 = vmatmul.mubr.bf16.gmra.mrb[52].mxu1 %v10315_v26 }
 0x6ae   : > { %v6889_v9 = vmax.f32 %v6888_v54, %v6417_v30  ;;  %v6419_v12 = vpop.f32.mrb[47].mxu0  ;;  %6634 = vmatprep.mubr.bf16.mxu1 %v10113_v17 }
 0x6af   : > { %v6926_v7 = vmax.f32 %v6925_v4, %v6419_v12 }
 0x6b0   : > { %v5610_v36 = vpop.f32.mrb[204].mxu1 }
 0x6b1   : > { %v5902_v33 = vmax.f32 %v5901_v24, %v5610_v36  ;;  %v5612_v29 = vpop.f32.mrb[205].mxu1 }
 0x6b2   : > { %v5939_v42 = vmax.f32 %v5938_v25, %v5612_v29  ;;  %v5614_v35 = vpop.f32.mrb[206].mxu1 }
 0x6b3   : > { %v5903_v0 = vmax.f32 %v5902_v33, %v5614_v35  ;;  %v5616_v52 = vpop.f32.mrb[207].mxu1  ;;  %v6423_v47 = vpop.f32.mrb[48].mxu0 }
 0x6b4   : > { %v5940_v28 = vmax.f32 %v5939_v42, %v5616_v52  ;;  %v6890_v38 = vmax.f32 %v6889_v9, %v6423_v47  ;;  %v6425_v62 = vpop.f32.mrb[49].mxu0 }
 0x6b5   : > { %v6927_v41 = vmax.f32 %v6926_v7, %v6425_v62  ;;  %v6427_v58 = vpop.f32.mrb[50].mxu0  ;;  %6635 = vmatmul.mubr.bf16.gmra.mrb[56].mxu1 %v10316_v18 }
 0x6b6   : > { %v6891_v26 = vmax.f32 %v6890_v38, %v6427_v58  ;;  %v6429_v44 = vpop.f32.mrb[51].mxu0  ;;  %6644 = vmatprep.mubr.bf16.mxu1 %v10113_v17 }
 0x6b7   : > { %v6928_v1 = vmax.f32 %v6927_v41, %v6429_v44 }
 0x6b8   : > { %v5620_v53 = vpop.f32.mrb[208].mxu1 }
 0x6b9   : > { %v5904_v48 = vmax.f32 %v5903_v0, %v5620_v53  ;;  %v5622_v49 = vpop.f32.mrb[209].mxu1 }
 0x6ba   : > { %v5941_v56 = vmax.f32 %v5940_v28, %v5622_v49  ;;  %v5624_v57 = vpop.f32.mrb[210].mxu1 }
 0x6bb   : > { %v5905_v2 = vmax.f32 %v5904_v48, %v5624_v57  ;;  %v5626_v32 = vpop.f32.mrb[211].mxu1  ;;  %v6433_v21 = vpop.f32.mrb[52].mxu0 }
 0x6bc   : > { %v5942_v8 = vmax.f32 %v5941_v56, %v5626_v32  ;;  %v6892_v11 = vmax.f32 %v6891_v26, %v6433_v21  ;;  %v6435_v46 = vpop.f32.mrb[53].mxu0 }
 0x6bd   : > { %v6929_v43 = vmax.f32 %v6928_v1, %v6435_v46  ;;  %v6437_v13 = vpop.f32.mrb[54].mxu0  ;;  %6645 = vmatmul.mubr.bf16.gmra.mrb[60].mxu1 %v10317_v59 }
 0x6be   : > { %v6893_v18 = vmax.f32 %v6892_v11, %v6437_v13  ;;  %v6439_v24 = vpop.f32.mrb[55].mxu0  ;;  %6654 = vmatprep.mubr.bf16.mxu1 %v10113_v17 }
 0x6bf   : > { %v6930_v61 = vmax.f32 %v6929_v43, %v6439_v24 }
 0x6c0   : > { %v5630_v55 = vpop.f32.mrb[212].mxu1 }
 0x6c1   : > { %v5906_v25 = vmax.f32 %v5905_v2, %v5630_v55  ;;  %v5632_v54 = vpop.f32.mrb[213].mxu1 }
 0x6c2   : > { %v5943_v37 = vmax.f32 %v5942_v8, %v5632_v54  ;;  %v5634_v4 = vpop.f32.mrb[214].mxu1 }
 0x6c3   : > { %v5907_v30 = vmax.f32 %v5906_v25, %v5634_v4  ;;  %v5636_v9 = vpop.f32.mrb[215].mxu1  ;;  %v6443_v12 = vpop.f32.mrb[56].mxu0 }
 0x6c4   : > { %v5944_v7 = vmax.f32 %v5943_v37, %v5636_v9  ;;  %v6894_v36 = vmax.f32 %v6893_v18, %v6443_v12  ;;  %v6445_v33 = vpop.f32.mrb[57].mxu0 }
 0x6c5   : > { %v6931_v29 = vmax.f32 %v6930_v61, %v6445_v33  ;;  %v6447_v42 = vpop.f32.mrb[58].mxu0  ;;  %6655 = vmatmul.mubr.bf16.gmra.mrb[64].mxu1 %v10318_v27 }
 0x6c6   : > { %v6895_v59 = vmax.f32 %v6894_v36, %v6447_v42  ;;  %v6449_v35 = vpop.f32.mrb[59].mxu0  ;;  %6664 = vmatprep.mubr.bf16.mxu1 %v10113_v17 }
 0x6c7   : > { %v6932_v0 = vmax.f32 %v6931_v29, %v6449_v35 }
 0x6c8   : > { %v5640_v52 = vpop.f32.mrb[216].mxu1 }
 0x6c9   : > { %v5908_v47 = vmax.f32 %v5907_v30, %v5640_v52  ;;  %v5642_v28 = vpop.f32.mrb[217].mxu1 }
 0x6ca   : > { %v5945_v38 = vmax.f32 %v5944_v7, %v5642_v28  ;;  %v5644_v62 = vpop.f32.mrb[218].mxu1 }
 0x6cb   : > { %v5909_v41 = vmax.f32 %v5908_v47, %v5644_v62  ;;  %v5646_v58 = vpop.f32.mrb[219].mxu1  ;;  %v6453_v26 = vpop.f32.mrb[60].mxu0 }
 0x6cc   : > { %v5946_v44 = vmax.f32 %v5945_v38, %v5646_v58  ;;  %v6896_v1 = vmax.f32 %v6895_v59, %v6453_v26  ;;  %v6455_v53 = vpop.f32.mrb[61].mxu0 }
 0x6cd   : > { %v6933_v48 = vmax.f32 %v6932_v0, %v6455_v53  ;;  %v6457_v49 = vpop.f32.mrb[62].mxu0  ;;  %6665 = vmatmul.mubr.bf16.gmra.mrb[68].mxu1 %v10321_v10 }
 0x6ce   : > { %v6897_v27 = vmax.f32 %v6896_v1, %v6457_v49  ;;  %v6459_v56 = vpop.f32.mrb[63].mxu0  ;;  %6674 = vmatprep.mubr.bf16.mxu1 %v10113_v17 }
 0x6cf   : > { %v6934_v57 = vmax.f32 %v6933_v48, %v6459_v56 }
 0x6d0   : > { %v5650_v2 = vpop.f32.mrb[220].mxu1 }
 0x6d1   : > { %v5910_v32 = vmax.f32 %v5909_v41, %v5650_v2  ;;  %v5652_v21 = vpop.f32.mrb[221].mxu1 }
 0x6d2   : > { %v5947_v8 = vmax.f32 %v5946_v44, %v5652_v21  ;;  %v5654_v11 = vpop.f32.mrb[222].mxu1 }
 0x6d3   : > { %v5911_v46 = vmax.f32 %v5910_v32, %v5654_v11  ;;  %v5656_v43 = vpop.f32.mrb[223].mxu1  ;;  %v6463_v13 = vpop.f32.mrb[64].mxu0 }
 0x6d4   : > { %v5948_v18 = vmax.f32 %v5947_v8, %v5656_v43  ;;  %v6898_v24 = vmax.f32 %v6897_v27, %v6463_v13  ;;  %v6465_v61 = vpop.f32.mrb[65].mxu0 }
 0x6d5   : > { %v5912_v55 = vrot.slane %v5911_v46, 4  ;;  %v6935_v25 = vmax.f32 %v6934_v57, %v6465_v61  ;;  %v6467_v54 = vpop.f32.mrb[66].mxu0  ;;  %6675 = vmatmul.mubr.bf16.gmra.mrb[72].mxu1 %v10325_v16 }
 0x6d6   : > { %v5949_v10 = vrot.slane %v5948_v18, 4  ;;  %v6899_v37 = vmax.f32 %v6898_v24, %v6467_v54  ;;  %v6469_v4 = vpop.f32.mrb[67].mxu0  ;;  %6684 = vmatprep.mubr.bf16.mxu1 %v10113_v17 }
 0x6d7   : > { %v5913_v30 = vmax.f32 %v5911_v46, %v5912_v55  ;;  %v6936_v9 = vmax.f32 %v6935_v25, %v6469_v4 }
 0x6d8   : > { %v5950_v12 = vmax.f32 %v5948_v18, %v5949_v10  ;;  %v6190_v7 = vpop.f32.mrb[224].mxu1 }
 0x6d9   : > { %v5914_v36 = vrot.slane %v5913_v30, 2  ;;  %v6192_v33 = vpop.f32.mrb[225].mxu1 }
 0x6da   : > { %v5951_v29 = vrot.slane %v5950_v12, 2  ;;  %v6194_v42 = vpop.f32.mrb[226].mxu1 }
 0x6db   : > { %v5915_v59 = vmax.f32 %v5913_v30, %v5914_v36  ;;  %v6809_v35 = vmax.f32 %v6190_v7, %v6194_v42  ;;  %v6196_v0 = vpop.f32.mrb[227].mxu1  ;;  %v6473_v52 = vpop.f32.mrb[68].mxu0 }
 0x6dc   : > { %v5952_v47 = vmax.f32 %v5950_v12, %v5951_v29  ;;  %v6846_v28 = vmax.f32 %v6192_v33, %v6196_v0  ;;  %v6900_v16 = vmax.f32 %v6899_v37, %v6473_v52  ;;  %v6475_v38 = vpop.f32.mrb[69].mxu0 }
 0x6dd   : > { %v5916_v62 = vrot.slane %v5915_v59, 1  ;;  %v6937_v41 = vmax.f32 %v6936_v9, %v6475_v38  ;;  %v6477_v58 = vpop.f32.mrb[70].mxu0  ;;  %6685 = vmatmul.mubr.bf16.gmra.mrb[76].mxu1 %v10326_v19 }
 0x6de   : > { %v5953_v26 = vrot.slane %v5952_v47, 1  ;;  %v6901_v44 = vmax.f32 %v6900_v16, %v6477_v58  ;;  %v6479_v1 = vpop.f32.mrb[71].mxu0  ;;  %6694 = vmatprep.mubr.bf16.mxu1 %v10113_v17 }
 0x6df   : > { %v5917_v53 = vmax.f32 %v5915_v59, %v5916_v62  ;;  %v6938_v48 = vmax.f32 %v6937_v41, %v6479_v1 }
 0x6e0   : > { %v5954_v49 = vmax.f32 %v5952_v47, %v5953_v26  ;;  %v6200_v27 = vpop.f32.mrb[228].mxu1 }
 0x6e1   : > { %v9801_v56 = vmax.f32 %v4885_v31, %v5917_v53  ;;  %v6810_v57 = vmax.f32 %v6809_v35, %v6200_v27  ;;  %v6202_v2 = vpop.f32.mrb[229].mxu1 }
 0x6e2   : > { %v9806_v19 = vmax.f32 %v4886_v60, %v5954_v49  ;;  %v6847_v32 = vmax.f32 %v6846_v28, %v6202_v2  ;;  %v6204_v21 = vpop.f32.mrb[230].mxu1 }
 0x6e3   : > { %v6811_v8 = vmax.f32 %v6810_v57, %v6204_v21  ;;  %v6206_v11 = vpop.f32.mrb[231].mxu1  ;;  %v6483_v46 = vpop.f32.mrb[72].mxu0 }
 0x6e4   : > { %v6848_v43 = vmax.f32 %v6847_v32, %v6206_v11  ;;  %v6902_v13 = vmax.f32 %v6901_v44, %v6483_v46  ;;  %v6485_v18 = vpop.f32.mrb[73].mxu0 }
 0x6e5   : > { %v6939_v24 = vmax.f32 %v6938_v48, %v6485_v18  ;;  %v6487_v61 = vpop.f32.mrb[74].mxu0  ;;  %6695 = vmatmul.mubr.bf16.gmra.mrb[80].mxu1 %v10329_v63 }
 0x6e6   : > { %v6903_v50 = vmax.f32 %v6902_v13, %v6487_v61  ;;  %v6489_v5 = vpop.f32.mrb[75].mxu0  ;;  %6704 = vmatprep.mubr.bf16.mxu1 %v10113_v17 }
 0x6e7   : > { %v6940_v31 = vmax.f32 %v6939_v24, %v6489_v5 }
 0x6e8   : > { %v6210_v6 = vpop.f32.mrb[232].mxu1 }
 0x6e9   : > { %v6812_v34 = vmax.f32 %v6811_v8, %v6210_v6  ;;  %v6212_v60 = vpop.f32.mrb[233].mxu1 }
 0x6ea   : > { %v6849_v55 = vmax.f32 %v6848_v43, %v6212_v60  ;;  %v6214_v25 = vpop.f32.mrb[234].mxu1 }
 0x6eb   : > { %v6813_v54 = vmax.f32 %v6812_v34, %v6214_v25  ;;  %v6216_v10 = vpop.f32.mrb[235].mxu1  ;;  %v6493_v37 = vpop.f32.mrb[76].mxu0 }
 0x6ec   : > { %v6850_v4 = vmax.f32 %v6849_v55, %v6216_v10  ;;  %v6904_v30 = vmax.f32 %v6903_v50, %v6493_v37  ;;  %v6495_v9 = vpop.f32.mrb[77].mxu0 }
 0x6ed   : > { %v6941_v12 = vmax.f32 %v6940_v31, %v6495_v9  ;;  %v6497_v7 = vpop.f32.mrb[78].mxu0  ;;  %6705 = vmatmul.mubr.bf16.gmra.mrb[84].mxu1 %v10330_v39 }
 0x6ee   : > { %v6905_v63 = vmax.f32 %v6904_v30, %v6497_v7  ;;  %v6499_v36 = vpop.f32.mrb[79].mxu0  ;;  %6714 = vmatprep.mubr.bf16.mxu1 %v10113_v17 }
 0x6ef   : > { %v6942_v33 = vmax.f32 %v6941_v12, %v6499_v36 }
 0x6f0   : > { %v6220_v29 = vpop.f32.mrb[236].mxu1 }
 0x6f1   : > { %v6814_v42 = vmax.f32 %v6813_v54, %v6220_v29  ;;  %v6222_v59 = vpop.f32.mrb[237].mxu1 }
 0x6f2   : > { %v6851_v35 = vmax.f32 %v6850_v4, %v6222_v59  ;;  %v6224_v0 = vpop.f32.mrb[238].mxu1 }
 0x6f3   : > { %v6815_v52 = vmax.f32 %v6814_v42, %v6224_v0  ;;  %v6226_v47 = vpop.f32.mrb[239].mxu1  ;;  %v6503_v28 = vpop.f32.mrb[80].mxu0 }
 0x6f4   : > { %v6852_v16 = vmax.f32 %v6851_v35, %v6226_v47  ;;  %v6906_v38 = vmax.f32 %v6905_v63, %v6503_v28  ;;  %v6505_v62 = vpop.f32.mrb[81].mxu0 }
 0x6f5   : > { %v6943_v41 = vmax.f32 %v6942_v33, %v6505_v62  ;;  %v6507_v58 = vpop.f32.mrb[82].mxu0  ;;  %6715 = vmatmul.mubr.bf16.gmra.mrb[88].mxu1 %v10331_v3 }
 0x6f6   : > { %v6907_v39 = vmax.f32 %v6906_v38, %v6507_v58  ;;  %v6509_v26 = vpop.f32.mrb[83].mxu0  ;;  %6724 = vmatprep.mubr.bf16.mxu1 %v10113_v17 }
 0x6f7   : > { %v6944_v44 = vmax.f32 %v6943_v41, %v6509_v26 }
 0x6f8   : > { %v6230_v1 = vpop.f32.mrb[240].mxu1 }
 0x6f9   : > { %v6816_v53 = vmax.f32 %v6815_v52, %v6230_v1  ;;  %v6232_v48 = vpop.f32.mrb[241].mxu1 }
 0x6fa   : > { %v6853_v49 = vmax.f32 %v6852_v16, %v6232_v48  ;;  %v6234_v27 = vpop.f32.mrb[242].mxu1 }
 0x6fb   : > { %v6817_v57 = vmax.f32 %v6816_v53, %v6234_v27  ;;  %v6236_v2 = vpop.f32.mrb[243].mxu1  ;;  %v6513_v32 = vpop.f32.mrb[84].mxu0 }
 0x6fc   : > { %v6854_v21 = vmax.f32 %v6853_v49, %v6236_v2  ;;  %v6908_v8 = vmax.f32 %v6907_v39, %v6513_v32  ;;  %v6515_v11 = vpop.f32.mrb[85].mxu0 }
 0x6fd   : > { %v6945_v46 = vmax.f32 %v6944_v44, %v6515_v11  ;;  %v6517_v43 = vpop.f32.mrb[86].mxu0  ;;  %6725 = vmatmul.mubr.bf16.gmra.mrb[92].mxu1 %v10332_v14  ;;  %v7063_v11 = vsub.s32 5, %v9763_v22 }
 0x6fe   : > { %v6909_v3 = vmax.f32 %v6908_v8, %v6517_v43  ;;  %v6519_v13 = vpop.f32.mrb[87].mxu0 }
 0x6ff   : > { %v6946_v18 = vmax.f32 %v6945_v46, %v6519_v13 }
 0x700   : > { %v6240_v17 = vpop.f32.mrb[244].mxu1 }
 0x701   : > { %v6818_v24 = vmax.f32 %v6817_v57, %v6240_v17  ;;  %v6242_v61 = vpop.f32.mrb[245].mxu1 }
 0x702   : > { %v6855_v50 = vmax.f32 %v6854_v21, %v6242_v61  ;;  %v6244_v5 = vpop.f32.mrb[246].mxu1  ;;  %v7059_v21 = vsub.s32 4, %v9763_v22 }
 0x703   : > { %v6819_v31 = vmax.f32 %v6818_v24, %v6244_v5  ;;  %v6246_v6 = vpop.f32.mrb[247].mxu1  ;;  %v6523_v34 = vpop.f32.mrb[88].mxu0 }
 0x704   : > { %v6856_v60 = vmax.f32 %v6855_v50, %v6246_v6  ;;  %v6910_v55 = vmax.f32 %v6909_v3, %v6523_v34  ;;  %v6525_v25 = vpop.f32.mrb[89].mxu0  ;;  %v7060_v24 = vrot.slane %v9771_v45, %v7059_v21 }
 0x705   : > { %v6947_v54 = vmax.f32 %v6946_v18, %v6525_v25  ;;  %v6527_v10 = vpop.f32.mrb[90].mxu0 }
 0x706   : > { %v6911_v37 = vmax.f32 %v6910_v55, %v6527_v10  ;;  %v6529_v4 = vpop.f32.mrb[91].mxu0 }
 0x707   : > { %v6948_v30 = vmax.f32 %v6947_v54, %v6529_v4 }
 0x708   : > { %v6250_v14 = vpop.f32.mrb[248].mxu1 }
 0x709   : > { %v6820_v9 = vmax.f32 %v6819_v31, %v6250_v14  ;;  %v6252_v12 = vpop.f32.mrb[249].mxu1  ;;  %v7064_v31 = vrot.slane %v9771_v45, %v7063_v11 }
 0x70a   : > { %v6857_v7 = vmax.f32 %v6856_v60, %v6252_v12  ;;  %v6254_v63 = vpop.f32.mrb[250].mxu1 }
 0x70b   : > { %v6821_v36 = vmax.f32 %v6820_v9, %v6254_v63  ;;  %v6256_v33 = vpop.f32.mrb[251].mxu1  ;;  %v6533_v29 = vpop.f32.mrb[92].mxu0 }
 0x70c   : > { %v6858_v42 = vmax.f32 %v6857_v7, %v6256_v33  ;;  %v6912_v59 = vmax.f32 %v6911_v37, %v6533_v29  ;;  %v6535_v35 = vpop.f32.mrb[93].mxu0 }
 0x70d   : > { %v6949_v0 = vmax.f32 %v6948_v30, %v6535_v35  ;;  %v6537_v52 = vpop.f32.mrb[94].mxu0 }
 0x70e   : > { %v6913_v47 = vmax.f32 %v6912_v59, %v6537_v52  ;;  %v6539_v28 = vpop.f32.mrb[95].mxu0 }
 0x70f   : > { %v6950_v16 = vmax.f32 %v6949_v0, %v6539_v28 }
 0x710   : > { %v6914_v38 = vrot.slane %v6913_v47, 4  ;;  %v6260_v62 = vpop.f32.mrb[252].mxu1 }
 0x711   : > { %v6951_v41 = vrot.slane %v6950_v16, 4  ;;  %v6822_v58 = vmax.f32 %v6821_v36, %v6260_v62  ;;  %v6262_v39 = vpop.f32.mrb[253].mxu1 }
 0x712   : > { %v6915_v26 = vmax.f32 %v6913_v47, %v6914_v38  ;;  %v6859_v44 = vmax.f32 %v6858_v42, %v6262_v39  ;;  %v6264_v1 = vpop.f32.mrb[254].mxu1 }
 0x713   : > { %v6952_v53 = vmax.f32 %v6950_v16, %v6951_v41  ;;  %v6823_v48 = vmax.f32 %v6822_v58, %v6264_v1  ;;  %v6266_v49 = vpop.f32.mrb[255].mxu1 }
 0x714   : > { %v6916_v27 = vrot.slane %v6915_v26, 2  ;;  %v6860_v57 = vmax.f32 %v6859_v44, %v6266_v49 }
 0x715   : > { %v6953_v2 = vrot.slane %v6952_v53, 2 }
 0x716   : > { %v6917_v32 = vmax.f32 %v6915_v26, %v6916_v27 }
 0x717   : > { %v6954_v8 = vmax.f32 %v6952_v53, %v6953_v2 }
 0x718   : > { %v6918_v46 = vrot.slane %v6917_v32, 1  ;;  %v6270_v43 = vpop.f32.mrb[0].mxu1 }
 0x719   : > { %v6955_v3 = vrot.slane %v6954_v8, 1  ;;  %v6824_v13 = vmax.f32 %v6823_v48, %v6270_v43  ;;  %v6272_v18 = vpop.f32.mrb[1].mxu1 }
 0x71a   : > { %v6919_v17 = vmax.f32 %v6917_v32, %v6918_v46  ;;  %v6861_v61 = vmax.f32 %v6860_v57, %v6272_v18  ;;  %v6274_v50 = vpop.f32.mrb[2].mxu1 }
 0x71b   : > { %v6956_v5 = vmax.f32 %v6954_v8, %v6955_v3  ;;  %v6825_v6 = vmax.f32 %v6824_v13, %v6274_v50  ;;  %v6276_v34 = vpop.f32.mrb[3].mxu1 }
 0x71c   : > { %v7035_v60 = vmax.f32 %v9706_v40, %v6919_v17  ;;  %v6862_v55 = vmax.f32 %v6861_v61, %v6276_v34 }
 0x71d   : > { %v7036_v25 = vmax.f32 %v9711_v20, %v6956_v5 }
 0x71e   : > { %v7085_v54 = vadd.f32 %v7060_v24, %v7035_v60 }
 0x71f   : > { %v7086_v10 = vadd.f32 %v7064_v31, %v7036_v25 }
 0x720   : > { %v7093_v37 = vmax.f32 %v7085_v54, 0.0  ;;  %v6280_v4 = vpop.f32.mrb[4].mxu1 }
 0x721   : > { %v7094_v30 = vmax.f32 %v7086_v10, 0.0  ;;  %v6826_v14 = vmax.f32 %v6825_v6, %v6280_v4  ;;  %v6282_v9 = vpop.f32.mrb[5].mxu1 }
 0x722   : > { %v6863_v12 = vmax.f32 %v6862_v55, %v6282_v9  ;;  %v6284_v7 = vpop.f32.mrb[6].mxu1 }
 0x723   : > { %v9821_v63 = vcombine.low %v7093_v37, %v7094_v30  ;;  %v6827_v36 = vmax.f32 %v6826_v14, %v6284_v7  ;;  %v6286_v33 = vpop.f32.mrb[7].mxu1 }
 0x724   : > { %v6864_v29 = vmax.f32 %v6863_v12, %v6286_v33 }
 0x728   : > { %v6290_v42 = vpop.f32.mrb[8].mxu1 }
 0x729   : > { %v6828_v59 = vmax.f32 %v6827_v36, %v6290_v42  ;;  %v6292_v40 = vpop.f32.mrb[9].mxu1 }
 0x72a   : > { %v6865_v35 = vmax.f32 %v6864_v29, %v6292_v40  ;;  %v6294_v0 = vpop.f32.mrb[10].mxu1  ;;  %v7051_v40 = vsub.s32 2, %v9763_v22 }
 0x72b   : > { %v6829_v20 = vmax.f32 %v6828_v59, %v6294_v0  ;;  %v6296_v52 = vpop.f32.mrb[11].mxu1 }
 0x72c   : > { %v6866_v47 = vmax.f32 %v6865_v35, %v6296_v52  ;;  %v7055_v52 = vsub.s32 3, %v9763_v22 }
 0x730   : > { %v6300_v28 = vpop.f32.mrb[12].mxu1 }
 0x731   : > { %v6830_v16 = vmax.f32 %v6829_v20, %v6300_v28  ;;  %v6302_v38 = vpop.f32.mrb[13].mxu1 }
 0x732   : > { %v6867_v62 = vmax.f32 %v6866_v47, %v6302_v38  ;;  %v6304_v41 = vpop.f32.mrb[14].mxu1 }
 0x733   : > { %v6831_v58 = vmax.f32 %v6830_v16, %v6304_v41  ;;  %v6306_v39 = vpop.f32.mrb[15].mxu1  ;;  %v7803_v16 = vmov 1966171168  }
 0x734   : > { %v6868_v26 = vmax.f32 %v6867_v62, %v6306_v39  ;;  %v7110_v38 = vunpack.c.l.s4 %v7803_v16 }
 0x738   : > { %v6310_v44 = vpop.f32.mrb[16].mxu1 }
 0x739   : > { %v6832_v1 = vmax.f32 %v6831_v58, %v6310_v44  ;;  %v6312_v53 = vpop.f32.mrb[17].mxu1  ;;  %v7052_v58 = vrot.slane %v9771_v45, %v7051_v40 }
 0x73a   : > { %v6869_v48 = vmax.f32 %v6868_v26, %v6312_v53  ;;  %v6314_v49 = vpop.f32.mrb[18].mxu1  ;;  %v7056_v26 = vrot.slane %v9771_v45, %v7055_v52 }
 0x73b   : > { %v6833_v27 = vmax.f32 %v6832_v1, %v6314_v49  ;;  %v6316_v57 = vpop.f32.mrb[19].mxu1  ;;  %v7111_v49 = vunpack.c.0.s8 %v7110_v38 }
 0x73c   : > { %v6870_v2 = vmax.f32 %v6869_v48, %v6316_v57 }
 0x740   : > { %v6320_v32 = vpop.f32.mrb[20].mxu1 }
 0x741   : > { %v6834_v21 = vmax.f32 %v6833_v27, %v6320_v32  ;;  %v6322_v8 = vpop.f32.mrb[21].mxu1 }
 0x742   : > { %v6871_v11 = vmax.f32 %v6870_v2, %v6322_v8  ;;  %v6324_v46 = vpop.f32.mrb[22].mxu1 }
 0x743   : > { %v6835_v43 = vmax.f32 %v6834_v21, %v6324_v46  ;;  %v6326_v3 = vpop.f32.mrb[23].mxu1 }
 0x744   : > { %v6872_v13 = vmax.f32 %v6871_v11, %v6326_v3  ;;  %v9830_v3 = vsub.s32 %v7111_v49, %v9763_v22 }
 0x748   : > { %v6330_v18 = vpop.f32.mrb[24].mxu1 }
 0x749   : > { %v6836_v17 = vmax.f32 %v6835_v43, %v6330_v18  ;;  %v6332_v24 = vpop.f32.mrb[25].mxu1 }
 0x74a   : > { %v6873_v61 = vmax.f32 %v6872_v13, %v6332_v24  ;;  %v6334_v50 = vpop.f32.mrb[26].mxu1  ;;  %v7115_v24 = vrot.slane %v9780_v51, %v9830_v3 }
 0x74b   : > { %v6837_v5 = vmax.f32 %v6836_v17, %v6334_v50  ;;  %v6336_v31 = vpop.f32.mrb[27].mxu1 }
 0x74c   : > { %v6874_v6 = vmax.f32 %v6873_v61, %v6336_v31 }
 0x750   : > { %v6340_v34 = vpop.f32.mrb[28].mxu1 }
 0x751   : > { %v6838_v60 = vmax.f32 %v6837_v5, %v6340_v34  ;;  %v6342_v55 = vpop.f32.mrb[29].mxu1 }
 0x752   : > { %v6875_v25 = vmax.f32 %v6874_v6, %v6342_v55  ;;  %v6344_v54 = vpop.f32.mrb[30].mxu1 }
 0x753   : > { %v6839_v10 = vmax.f32 %v6838_v60, %v6344_v54  ;;  %v6346_v37 = vpop.f32.mrb[31].mxu1 }
 0x754   : > { %v6876_v4 = vmax.f32 %v6875_v25, %v6346_v37 }
 0x755   : > { %v6840_v30 = vrot.slane %v6839_v10, 4 }
 0x756   : > { %v6877_v14 = vrot.slane %v6876_v4, 4 }
 0x757   : > { %v6841_v9 = vmax.f32 %v6839_v10, %v6840_v30 }
 0x758   : > { %v6878_v12 = vmax.f32 %v6876_v4, %v6877_v14  ;;  %v6576_v7 = vpop.f32.mrb[32].mxu1 }
 0x759   : > { %v6842_v36 = vrot.slane %v6841_v9, 2  ;;  %v6578_v33 = vpop.f32.mrb[33].mxu1 }
 0x75a   : > { %v6879_v29 = vrot.slane %v6878_v12, 2  ;;  %v6580_v42 = vpop.f32.mrb[34].mxu1 }
 0x75b   : > { %v6843_v59 = vmax.f32 %v6841_v9, %v6842_v36  ;;  %v6957_v35 = vmax.f32 %v6576_v7, %v6580_v42  ;;  %v6582_v0 = vpop.f32.mrb[35].mxu1 }
 0x75c   : > { %v6880_v20 = vmax.f32 %v6878_v12, %v6879_v29  ;;  %v6994_v47 = vmax.f32 %v6578_v33, %v6582_v0 }
 0x75d   : > { %v6844_v28 = vrot.slane %v6843_v59, 1 }
 0x75e   : > { %v6881_v62 = vrot.slane %v6880_v20, 1 }
 0x75f   : > { %v6845_v41 = vmax.f32 %v6843_v59, %v6844_v28 }
 0x760   : > { %v6882_v39 = vmax.f32 %v6880_v20, %v6881_v62  ;;  %v6586_v44 = vpop.f32.mrb[36].mxu1 }
 0x761   : > { %v7033_v1 = vmax.f32 %v9744_v15, %v6845_v41  ;;  %v6958_v53 = vmax.f32 %v6957_v35, %v6586_v44  ;;  %v6588_v48 = vpop.f32.mrb[37].mxu1 }
 0x762   : > { %v7034_v27 = vmax.f32 %v9749_v23, %v6882_v39  ;;  %v6995_v57 = vmax.f32 %v6994_v47, %v6588_v48  ;;  %v6590_v2 = vpop.f32.mrb[38].mxu1 }
 0x763   : > { %v7083_v32 = vadd.f32 %v7052_v58, %v7033_v1  ;;  %v6959_v21 = vmax.f32 %v6958_v53, %v6590_v2  ;;  %v6592_v8 = vpop.f32.mrb[39].mxu1 }
 0x764   : > { %v7084_v11 = vadd.f32 %v7056_v26, %v7034_v27  ;;  %v6996_v46 = vmax.f32 %v6995_v57, %v6592_v8 }
 0x765   : > { %v7091_v43 = vmax.f32 %v7083_v32, 0.0 }
 0x766   : > { %v7092_v45 = vmax.f32 %v7084_v11, 0.0 }
 0x768   : > { %v7106_v13 = vcombine.low %v7091_v43, %v7092_v45  ;;  %v6596_v18 = vpop.f32.mrb[40].mxu1 }
 0x769   : > { %v6960_v15 = vmax.f32 %v6959_v21, %v6596_v18  ;;  %v6598_v17 = vpop.f32.mrb[41].mxu1 }
 0x76a   : > { %v7122_v23 = vrot.slane %v7106_v13, %v9830_v3  ;;  %v6997_v61 = vmax.f32 %v6996_v46, %v6598_v17  ;;  %v6600_v50 = vpop.f32.mrb[42].mxu1 }
 0x76b   : > { %v6961_v5 = vmax.f32 %v6960_v15, %v6600_v50  ;;  %v6602_v31 = vpop.f32.mrb[43].mxu1 }
 0x76c   : > { %v6998_v6 = vmax.f32 %v6997_v61, %v6602_v31  ;;  %v9835_v34 = vcombine.low %v7115_v24, %v7122_v23 }
 0x770   : > { %v6606_v60 = vpop.f32.mrb[44].mxu1 }
 0x771   : > { %v6962_v55 = vmax.f32 %v6961_v5, %v6606_v60  ;;  %v6608_v25 = vpop.f32.mrb[45].mxu1 }
 0x772   : > { %v6999_v54 = vmax.f32 %v6998_v6, %v6608_v25  ;;  %v6610_v10 = vpop.f32.mrb[46].mxu1 }
 0x773   : > { %v6963_v37 = vmax.f32 %v6962_v55, %v6610_v10  ;;  %v6612_v4 = vpop.f32.mrb[47].mxu1 }
 0x774   : > { %v7000_v30 = vmax.f32 %v6999_v54, %v6612_v4 }
 0x778   : > { %v6616_v14 = vpop.f32.mrb[48].mxu1 }
 0x779   : > { %v6964_v9 = vmax.f32 %v6963_v37, %v6616_v14  ;;  %v6618_v51 = vpop.f32.mrb[49].mxu1 }
 0x77a   : > { %v7001_v12 = vmax.f32 %v7000_v30, %v6618_v51  ;;  %v6620_v7 = vpop.f32.mrb[50].mxu1 }
 0x77b   : > { %v6965_v36 = vmax.f32 %v6964_v9, %v6620_v7  ;;  %v6622_v33 = vpop.f32.mrb[51].mxu1 }
 0x77c   : > { %v7002_v29 = vmax.f32 %v7001_v12, %v6622_v33 }
 0x780   : > { %v6626_v42 = vpop.f32.mrb[52].mxu1 }
 0x781   : > { %v6966_v59 = vmax.f32 %v6965_v36, %v6626_v42  ;;  %v6628_v40 = vpop.f32.mrb[53].mxu1 }
 0x782   : > { %v7003_v35 = vmax.f32 %v7002_v29, %v6628_v40  ;;  %v6630_v0 = vpop.f32.mrb[54].mxu1 }
 0x783   : > { %v6967_v20 = vmax.f32 %v6966_v59, %v6630_v0  ;;  %v6632_v52 = vpop.f32.mrb[55].mxu1 }
 0x784   : > { %v7004_v47 = vmax.f32 %v7003_v35, %v6632_v52 }
 0x788   : > { %v6636_v28 = vpop.f32.mrb[56].mxu1 }
 0x789   : > { %v6968_v16 = vmax.f32 %v6967_v20, %v6636_v28  ;;  %v6638_v38 = vpop.f32.mrb[57].mxu1 }
 0x78a   : > { %v7005_v62 = vmax.f32 %v7004_v47, %v6638_v38  ;;  %v6640_v41 = vpop.f32.mrb[58].mxu1 }
 0x78b   : > { %v6969_v58 = vmax.f32 %v6968_v16, %v6640_v41  ;;  %v6642_v39 = vpop.f32.mrb[59].mxu1 }
 0x78c   : > { %v7006_v26 = vmax.f32 %v7005_v62, %v6642_v39 }
 0x790   : > { %v6646_v44 = vpop.f32.mrb[60].mxu1 }
 0x791   : > { %v6970_v1 = vmax.f32 %v6969_v58, %v6646_v44  ;;  %v6648_v53 = vpop.f32.mrb[61].mxu1 }
 0x792   : > { %v7007_v48 = vmax.f32 %v7006_v26, %v6648_v53  ;;  %v6650_v49 = vpop.f32.mrb[62].mxu1 }
 0x793   : > { %v6971_v27 = vmax.f32 %v6970_v1, %v6650_v49  ;;  %v6652_v57 = vpop.f32.mrb[63].mxu1 }
 0x794   : > { %v7008_v2 = vmax.f32 %v7007_v48, %v6652_v57 }
 0x798   : > { %v6656_v32 = vpop.f32.mrb[64].mxu1 }
 0x799   : > { %v6972_v21 = vmax.f32 %v6971_v27, %v6656_v32  ;;  %v6658_v8 = vpop.f32.mrb[65].mxu1 }
 0x79a   : > { %v7009_v11 = vmax.f32 %v7008_v2, %v6658_v8  ;;  %v6660_v46 = vpop.f32.mrb[66].mxu1 }
 0x79b   : > { %v6973_v43 = vmax.f32 %v6972_v21, %v6660_v46  ;;  %v6662_v45 = vpop.f32.mrb[67].mxu1 }
 0x79c   : > { %v7010_v13 = vmax.f32 %v7009_v11, %v6662_v45 }
 0x7a0   : > { %v6666_v18 = vpop.f32.mrb[68].mxu1 }
 0x7a1   : > { %v6974_v15 = vmax.f32 %v6973_v43, %v6666_v18  ;;  %v6668_v17 = vpop.f32.mrb[69].mxu1 }
 0x7a2   : > { %v7011_v24 = vmax.f32 %v7010_v13, %v6668_v17  ;;  %v6670_v23 = vpop.f32.mrb[70].mxu1 }
 0x7a3   : > { %v6975_v61 = vmax.f32 %v6974_v15, %v6670_v23  ;;  %v6672_v50 = vpop.f32.mrb[71].mxu1 }
 0x7a4   : > { %v7012_v5 = vmax.f32 %v7011_v24, %v6672_v50 }
 0x7a8   : > { %v6676_v31 = vpop.f32.mrb[72].mxu1 }
 0x7a9   : > { %v6976_v6 = vmax.f32 %v6975_v61, %v6676_v31  ;;  %v6678_v60 = vpop.f32.mrb[73].mxu1  ;;  %v7067_v61 = vsub.s32 6, %v9763_v22 }
 0x7aa   : > { %v7013_v55 = vmax.f32 %v7012_v5, %v6678_v60  ;;  %v6680_v25 = vpop.f32.mrb[74].mxu1  ;;  %v7071_v5 = vsub.s32 7, %v9763_v22 }
 0x7ab   : > { %v6977_v54 = vmax.f32 %v6976_v6, %v6680_v25  ;;  %v6682_v10 = vpop.f32.mrb[75].mxu1 }
 0x7ac   : > { %v7014_v37 = vmax.f32 %v7013_v55, %v6682_v10  ;;  %v7701_v55 = vld [vmem:[%s9903_s6] sm:$0xff] }
 0x7ad   : > { %v7068_v25 = vrot.slane %v7701_v55, %v7067_v61  ;;  %v7072_v10 = vrot.slane %v7701_v55, %v7071_v5 }
 0x7b0   : > { %v6686_v4 = vpop.f32.mrb[76].mxu1 }
 0x7b1   : > { %v6978_v30 = vmax.f32 %v6977_v54, %v6686_v4  ;;  %v6688_v14 = vpop.f32.mrb[77].mxu1 }
 0x7b2   : > { %v7015_v9 = vmax.f32 %v7014_v37, %v6688_v14  ;;  %v6690_v51 = vpop.f32.mrb[78].mxu1 }
 0x7b3   : > { %v6979_v12 = vmax.f32 %v6978_v30, %v6690_v51  ;;  %v6692_v7 = vpop.f32.mrb[79].mxu1 }
 0x7b4   : > { %v7016_v36 = vmax.f32 %v7015_v9, %v6692_v7 }
 0x7b8   : > { %v6696_v33 = vpop.f32.mrb[80].mxu1 }
 0x7b9   : > { %v6980_v29 = vmax.f32 %v6979_v12, %v6696_v33  ;;  %v6698_v42 = vpop.f32.mrb[81].mxu1  ;;  %v7129_v12 = vrot.slane %v9821_v63, %v9830_v3 }
 0x7ba   : > { %v7017_v59 = vmax.f32 %v7016_v36, %v6698_v42  ;;  %v6700_v40 = vpop.f32.mrb[82].mxu1 }
 0x7bb   : > { %v6981_v35 = vmax.f32 %v6980_v29, %v6700_v40  ;;  %v6702_v0 = vpop.f32.mrb[83].mxu1 }
 0x7bc   : > { %v7018_v20 = vmax.f32 %v7017_v59, %v6702_v0 }
 0x7c0   : > { %v6706_v52 = vpop.f32.mrb[84].mxu1 }
 0x7c1   : > { %v6982_v47 = vmax.f32 %v6981_v35, %v6706_v52  ;;  %v6708_v28 = vpop.f32.mrb[85].mxu1 }
 0x7c2   : > { %v7019_v16 = vmax.f32 %v7018_v20, %v6708_v28  ;;  %v6710_v38 = vpop.f32.mrb[86].mxu1 }
 0x7c3   : > { %v6983_v62 = vmax.f32 %v6982_v47, %v6710_v38  ;;  %v6712_v41 = vpop.f32.mrb[87].mxu1 }
 0x7c4   : > { %v7020_v58 = vmax.f32 %v7019_v16, %v6712_v41 }
 0x7c8   : > { %v6716_v39 = vpop.f32.mrb[88].mxu1 }
 0x7c9   : > { %v6984_v26 = vmax.f32 %v6983_v62, %v6716_v39  ;;  %v6718_v44 = vpop.f32.mrb[89].mxu1 }
 0x7ca   : > { %v7021_v1 = vmax.f32 %v7020_v58, %v6718_v44  ;;  %v6720_v53 = vpop.f32.mrb[90].mxu1 }
 0x7cb   : > { %v6985_v48 = vmax.f32 %v6984_v26, %v6720_v53  ;;  %v6722_v49 = vpop.f32.mrb[91].mxu1 }
 0x7cc   : > { %v7022_v27 = vmax.f32 %v7021_v1, %v6722_v49 }
 0x7d0   : > { %v6726_v57 = vpop.f32.mrb[92].mxu1 }
 0x7d1   : > { %v6986_v2 = vmax.f32 %v6985_v48, %v6726_v57  ;;  %v6728_v32 = vpop.f32.mrb[93].mxu1 }
 0x7d2   : > { %v7023_v21 = vmax.f32 %v7022_v27, %v6728_v32  ;;  %v6730_v8 = vpop.f32.mrb[94].mxu1 }
 0x7d3   : > { %v6987_v11 = vmax.f32 %v6986_v2, %v6730_v8  ;;  %v6732_v46 = vpop.f32.mrb[95].mxu1 }
 0x7d4   : > { %v7024_v43 = vmax.f32 %v7023_v21, %v6732_v46 }
 0x7d5   : > { %v6988_v45 = vrot.slane %v6987_v11, 4 }
 0x7d6   : > { %v7025_v13 = vrot.slane %v7024_v43, 4 }
 0x7d7   : > { %v6989_v18 = vmax.f32 %v6987_v11, %v6988_v45 }
 0x7d8   : > { %v7026_v15 = vmax.f32 %v7024_v43, %v7025_v13 }
 0x7d9   : > { %v6990_v17 = vrot.slane %v6989_v18, 2 }
 0x7da   : > { %v7027_v24 = vrot.slane %v7026_v15, 2 }
 0x7db   : > { %v6991_v23 = vmax.f32 %v6989_v18, %v6990_v17 }
 0x7dc   : > { %v7028_v50 = vmax.f32 %v7026_v15, %v7027_v24 }
 0x7dd   : > { %v6992_v31 = vrot.slane %v6991_v23, 1 }
 0x7de   : > { %v7029_v6 = vrot.slane %v7028_v50, 1 }
 0x7df   : > { %v6993_v60 = vmax.f32 %v6991_v23, %v6992_v31 }
 0x7e0   : > { %v7030_v54 = vmax.f32 %v7028_v50, %v7029_v6 }
 0x7e1   : > { %v7037_v37 = vmax.f32 %v9801_v56, %v6993_v60  ;;  %v7145_v56 = vrot.slane %v9835_v34, %v9830_v3 }
 0x7e2   : > { %v7038_v4 = vmax.f32 %v9806_v19, %v7030_v54 }
 0x7e3   : > { %v7087_v30 = vadd.f32 %v7068_v25, %v7037_v37 }
 0x7e4   : > { %v7088_v14 = vadd.f32 %v7072_v10, %v7038_v4 }
 0x7e5   : > { %v7095_v9 = vmax.f32 %v7087_v30, 0.0 }
 0x7e6   : > { %v7096_v22 = vmax.f32 %v7088_v14, 0.0 }
 0x7e8   : > { %v7108_v51 = vcombine.low %v7095_v9, %v7096_v22 }
 0x7ea   : > { %v7136_v7 = vrot.slane %v7108_v51, %v9830_v3 }
 0x7ec   : > { %v7138_v36 = vcombine.low %v7129_v12, %v7136_v7 }
 0x7ee   : > { %v7152_v19 = vrot.slane %v7138_v36, %v9830_v3 }
 0x7f0   : > { %v7153_v33 = vcombine.low %v7145_v56, %v7152_v19 }
 0x7f2   : > { %7155 = vst [vmem:[%s286_s15] sm:$0xff] %v7153_v33 }
 0x7f3   : > { %7743 = shalt.err (!%p7740_p7)
}
 0x7f4   : > { %s7744_s9 = scalar_lea.hbm %s9855_s21, 128  ;;  %s7748_s16 = scalar_lea.hbm %s9904_s7, 256 }
 0x7f5   : > { %p7745_p8 = scmp.ne.s32.totalorder %s9855_s21, %s7744_s9  ;;  %p7749_p1 = scmp.lt.u32.totalorder %s9855_s21, %s9904_s7 }
 0x7f6   : > { %p7750_p0 = scmp.lt.u32.totalorder %s7748_s16, %s7744_s9  ;;  %p7752_p6 = scmp.lt.u32.totalorder %s7744_s9, %s9855_s21 }
 0x7f7   : > { %p7746_p11 = pnand %p7745_p8, %p10359_p9 }
 0x7f8   : > { %p7751_p5 = por %p7750_p0, %p7749_p1 }
 0x7f9   : > { %p7747_p13 = pneg %p7746_p11 }
 0x7fa   : > { %p7753_p10 = por %p7752_p6, %p7751_p5 }
 0x7fc   : > { %p7754_p12 = pnand %p7753_p10, %p7747_p13 }
 0x7fe   : > { %7757 = shalt.err (!%p7754_p12)
}
 0x7ff   : > { %7640 = dma.vmem_to_hbm [thread:$0]  (%p10359_p9), %s9857_s19, 128, %s9855_s21, %s7157_s28  }
 0x800 PF: > { %p7652_p2 = scmp.ge.s32.totalorder %s7796_s27, 2  ;;  %s7183_s13 = sand.u32 1, %s7784_s24  }
 0x801   : > { %p10360_p3 = scmp.ne.s32.totalorder %s10071_s12, 0  ;;  %s7184_s20 = scalar_lea.sflag [#allocation4], %s7183_s13 }
 0x803   : > { %p7647_p4 = pnand %p7652_p2, %p10360_p3 }
 0x805   : > { %7779 = dma.done.wait (!%p7647_p4), %s7184_s20, 128  }
 0x806   : > { %7781 = vsyncadd (!%p7647_p4), %s7184_s20, 4294967168  ;;  %p18_p7 = scmp.ge.s32.totalorder %s7870_s30, 4   ;;  %s10361_s24 = smov %s7788_s25 }
 0x807   : > { %s10362_s25 = smov %s7792_s26  ;;  %s10363_s26 = smov %s7881_s10 }
 0x808   : > { %s10364_s27 = smov %s7870_s30  ;;  %20 = sbr.rel (!%p18_p7) target bundleno = 4 (0x4), region = 88 }
 0x80f   :  { %7189 = vsyncpa [#allocation3], 1 }
 0x810   :  { %7191 = vsyncpa [#allocation3 + $0x1], 1 }
 0x811   :  { %7192 = vsyncpa [#allocation4], 1 }
 0x812   :  { %7194 = vsyncpa [#allocation4 + $0x1], 1 }

</bundles_post_ra>
